<compile_context>
chip_gen: v7x
topology: tpu7x:2x2x1
jax: 0.10.0
libtpu: 0.0.40
codegen_flags: <defaults>
</compile_context>

<pallas_src>
import functools

import jax
import jax.numpy as jnp
from jax.experimental import pallas as pl
from jax.experimental.pallas import tpu as pltpu


LANE = 128
SUBLANE = 8
HIDDEN = 1000
OUT_DIM = 2
ALPHA = 0.2
N_MID = 4                 # the four 1000 -> 1000 hidden layers (layers 1..4)
MAX_BATCH_TILE = 256      # batch tile; keeps activation VMEM bounded


def _round_up(n, m):
    return ((n + m - 1) // m) * m


# --------------------------------------------------------------------------
# Kernel: one grid step == one batch tile through the whole 6-layer MLP.
# --------------------------------------------------------------------------
def _fused_mlp_kernel(z_ref, w0_ref, b0_ref, wm_ref, bm_ref, wl_ref, bl_ref,
                      o_ref, *, alpha):
    # z_ref:  (TB, F_in)       f32   padded input batch tile
    # w0_ref: (F_in, F_h)      bf16  layer 0 weight (in, out)
    # b0_ref: (1, F_h)         f32
    # wm_ref: (4, F_h, F_h)    bf16  hidden-layer weights (resident in VMEM)
    # bm_ref: (4, 1, F_h)      f32
    # wl_ref: (F_h, F_out)     bf16  final-layer weight
    # bl_ref: (1, F_out)       f32
    # o_ref:  (TB, F_out)      f32   padded logits (only first 2 lanes real)
    x = z_ref[...]

    # Layer 0: z_dim -> 1000 (+ LeakyReLU)
    y = jnp.dot(x.astype(jnp.bfloat16), w0_ref[...],
                preferred_element_type=jnp.float32) + b0_ref[...]
    x = jnp.where(y > 0, y, alpha * y)

    # Layers 1..4: 1000 -> 1000 (+ LeakyReLU), statically unrolled
    for i in range(N_MID):
        y = jnp.dot(x.astype(jnp.bfloat16), wm_ref[i],
                    preferred_element_type=jnp.float32) + bm_ref[i]
        x = jnp.where(y > 0, y, alpha * y)

    # Layer 5: 1000 -> 2 (no activation)
    o_ref[...] = jnp.dot(x.astype(jnp.bfloat16), wl_ref[...],
                         preferred_element_type=jnp.float32) + bl_ref[...]


# --------------------------------------------------------------------------
# Parameter construction / one-time packing
# --------------------------------------------------------------------------
def init_discriminator_params(key, z_dim, hidden=HIDDEN, out_dim=OUT_DIM):
    """normal_init: weight ~ N(0, 0.02), bias = 0 (matches weight_init('normal')).

    Weights kept in PyTorch nn.Linear layout (out_features, in_features)."""
    dims = [z_dim] + [hidden] * 5 + [out_dim]
    params = []
    for i in range(len(dims) - 1):
        key, sub = jax.random.split(key)
        w_pt = jax.random.normal(sub, (dims[i + 1], dims[i]), jnp.float32) * 0.02
        b = jnp.zeros((dims[i + 1],), jnp.float32)
        params.append((w_pt, b))
    return params


def prepare_params(params, z_dim):
    """One-time packing: transpose to (in, out), pad feature dims only to the
    next multiple of 128 (per layer, not uniformly), quantize weights to bf16."""
    f_in = _round_up(z_dim, LANE)     # 128 for z_dim=32
    f_h = _round_up(HIDDEN, LANE)     # 1024
    f_out = _round_up(OUT_DIM, LANE)  # 128

    def pad_w(w_pt, rows, cols):
        out_f, in_f = w_pt.shape
        w = jnp.zeros((rows, cols), jnp.float32).at[:in_f, :out_f].set(w_pt.T)
        return w.astype(jnp.bfloat16)

    def pad_b(b, cols):
        return jnp.zeros((1, cols), jnp.float32).at[0, :b.shape[0]].set(b)

    w0 = pad_w(params[0][0], f_in, f_h)
    b0 = pad_b(params[0][1], f_h)
    wm = jnp.stack([pad_w(params[i][0], f_h, f_h) for i in range(1, 1 + N_MID)])
    bm = jnp.stack([pad_b(params[i][1], f_h) for i in range(1, 1 + N_MID)])
    wl = pad_w(params[5][0], f_h, f_out)
    bl = pad_b(params[5][1], f_out)
    return dict(w0=w0, b0=b0, wm=wm, bm=bm, wl=wl, bl=bl, f_in=f_in)


# --------------------------------------------------------------------------
# Forward
# --------------------------------------------------------------------------
@jax.jit
def _discriminator_fwd_padded(z_pad, w0, b0, wm, bm, wl, bl):
    bpad, f_in = z_pad.shape
    f_h = w0.shape[1]
    f_out = wl.shape[1]
    tb = min(bpad, MAX_BATCH_TILE)           # bpad is a multiple of tb
    grid = (bpad // tb,)

    const2 = lambda b: (0, 0)
    const3 = lambda b: (0, 0, 0)
    kernel = functools.partial(_fused_mlp_kernel, alpha=ALPHA)

    return pl.pallas_call(
        kernel,
        out_shape=jax.ShapeDtypeStruct((bpad, f_out), jnp.float32),
        grid_spec=pltpu.PrefetchScalarGridSpec(
            num_scalar_prefetch=0,
            grid=grid,
            in_specs=[
                pl.BlockSpec((tb, f_in), lambda b: (b, 0)),      # batch tile of z
                pl.BlockSpec((f_in, f_h), const2),               # layer-0 weight
                pl.BlockSpec((1, f_h), const2),                  # layer-0 bias
                pl.BlockSpec((N_MID, f_h, f_h), const3),         # hidden weights
                pl.BlockSpec((N_MID, 1, f_h), const3),           # hidden biases
                pl.BlockSpec((f_h, f_out), const2),              # final weight
                pl.BlockSpec((1, f_out), const2),                # final bias
            ],
            out_specs=pl.BlockSpec((tb, f_out), lambda b: (b, 0)),
        ),
        compiler_params=pltpu.CompilerParams(
            dimension_semantics=("parallel",),
            vmem_limit_bytes=40 * 1024 * 1024,
        ),
    )(z_pad, w0, b0, wm, bm, wl, bl)


def discriminator_forward(packed, z):
    """Fused Pallas forward. z: (B, z_dim) -> (B, 2) f32 logits."""
    b, zd = z.shape
    f_in = packed["f_in"]
    bpad = _round_up(max(b, SUBLANE), SUBLANE)
    tb = min(bpad, MAX_BATCH_TILE)
    bpad = _round_up(bpad, tb)
    z_pad = jnp.zeros((bpad, f_in), jnp.float32).at[:b, :zd].set(
        z.astype(jnp.float32))
    out = _discriminator_fwd_padded(z_pad, packed["w0"], packed["b0"],
                                    packed["wm"], packed["bm"],
                                    packed["wl"], packed["bl"])
    return out[:b, :OUT_DIM]


# --------------------------------------------------------------------------
# Self-test
# --------------------------------------------------------------------------
if __name__ == "__main__":
    Z_DIM = 32
    BATCH = 8

    key = jax.random.PRNGKey(0)
    k_params, k_z = jax.random.split(key)

    params = init_discriminator_params(k_params, Z_DIM)
    packed = prepare_params(params, Z_DIM)          # one-time weight packing

    z = jax.random.normal(k_z, (BATCH, Z_DIM), jnp.float32)

    out = discriminator_forward(packed, z)
    out = jax.block_until_ready(out)
    assert out.shape == (BATCH, OUT_DIM), out.shape

    # Pure-JAX reference using the same bf16 weights and bf16 activation feed
    # into the matmul, f32 accumulation (mirrors the kernel's math).
    x_ref = z.astype(jnp.float32)
    for i, (w_pt, b) in enumerate(params):
        w_bf = w_pt.T.astype(jnp.bfloat16)
        y = jnp.dot(x_ref.astype(jnp.bfloat16), w_bf,
                    preferred_element_type=jnp.float32) + b
        if i != len(params) - 1:
            x_ref = jnp.where(y > 0, y, ALPHA * y)
        else:
            x_ref = y

    max_err = float(jnp.max(jnp.abs(out - x_ref)))
    assert jnp.allclose(out, x_ref, atol=1e-3, rtol=2e-2), max_err

    print("KERNEL_OK")
</pallas_src>

<mosaic_0001>
module attributes {stable_mosaic.version = 11 : i64} {
  func.func @_fused_mlp_kernel(%arg0: i32, %arg1: memref<8x128xf32, #tpu.memory_space<vmem>>, %arg2: memref<128x1024xbf16, #tpu.memory_space<vmem>>, %arg3: memref<1x1024xf32, #tpu.memory_space<vmem>>, %arg4: memref<4x1024x1024xbf16, #tpu.memory_space<vmem>>, %arg5: memref<4x1x1024xf32, #tpu.memory_space<vmem>>, %arg6: memref<1024x128xbf16, #tpu.memory_space<vmem>>, %arg7: memref<1x128xf32, #tpu.memory_space<vmem>>, %arg8: memref<8x128xf32, #tpu.memory_space<vmem>>) attributes {dimension_semantics = [#tpu.dimension_semantics<parallel>], iteration_bounds = array<i64: 1>, scalar_prefetch = 0 : i64, scratch_operands = 0 : i64, tpu.core_type = #tpu.core_type<tc>, window_params = [{transform_indices = @transform_0, window_bounds = array<i64: 8, 128>}, {pipeline_mode = #tpu.pipeline_mode<synchronous>, transform_indices = @transform_1, window_bounds = array<i64: 128, 1024>}, {pipeline_mode = #tpu.pipeline_mode<synchronous>, transform_indices = @transform_2, window_bounds = array<i64: 1, 1024>}, {pipeline_mode = #tpu.pipeline_mode<synchronous>, transform_indices = @transform_3, window_bounds = array<i64: 4, 1024, 1024>}, {pipeline_mode = #tpu.pipeline_mode<synchronous>, transform_indices = @transform_4, window_bounds = array<i64: 4, 1, 1024>}, {pipeline_mode = #tpu.pipeline_mode<synchronous>, transform_indices = @transform_5, window_bounds = array<i64: 1024, 128>}, {pipeline_mode = #tpu.pipeline_mode<synchronous>, transform_indices = @transform_6, window_bounds = array<i64: 1, 128>}, {transform_indices = @transform_7, window_bounds = array<i64: 8, 128>}]} {
    %c0 = arith.constant 0 : index
    %c0_0 = arith.constant 0 : index
    %0 = vector.load %arg1[%c0, %c0_0] : memref<8x128xf32, #tpu.memory_space<vmem>>, vector<8x128xf32>
    %1 = arith.truncf %0 : vector<8x128xf32> to vector<8x128xbf16>
    %c0_1 = arith.constant 0 : index
    %c0_2 = arith.constant 0 : index
    %2 = vector.load %arg2[%c0_1, %c0_2] : memref<128x1024xbf16, #tpu.memory_space<vmem>>, vector<128x1024xbf16>
    %cst = arith.constant dense<0.000000e+00> : vector<8x1024xf32>
    %3 = tpu.matmul %1, %2, %cst {dimension_numbers = #tpu.dot_dimension_numbers<[1], [0], [0], [1], [0, 0, 1, 1], [], []>} : vector<8x128xbf16>, vector<128x1024xbf16>, vector<8x1024xf32> -> vector<8x1024xf32>
    %c0_3 = arith.constant 0 : index
    %c0_4 = arith.constant 0 : index
    %4 = vector.load %arg3[%c0_3, %c0_4] : memref<1x1024xf32, #tpu.memory_space<vmem>>, vector<1x1024xf32>
    %5 = vector.broadcast %4 : vector<1x1024xf32> to vector<8x1024xf32>
    %6 = arith.addf %3, %5 : vector<8x1024xf32>
    %cst_5 = arith.constant 0.000000e+00 : f32
    %7 = vector.broadcast %cst_5 : f32 to vector<8x1024xf32>
    %8 = arith.cmpf ogt, %6, %7 : vector<8x1024xf32>
    %cst_6 = arith.constant 2.000000e-01 : f32
    %9 = vector.broadcast %cst_6 : f32 to vector<8x1024xf32>
    %10 = arith.mulf %9, %6 : vector<8x1024xf32>
    %11 = arith.select %8, %6, %10 : vector<8x1024xi1>, vector<8x1024xf32>
    %12 = arith.truncf %11 : vector<8x1024xf32> to vector<8x1024xbf16>
    %c0_7 = arith.constant 0 : index
    %c0_8 = arith.constant 0 : index
    %c0_9 = arith.constant 0 : index
    %13 = vector.load %arg4[%c0_7, %c0_8, %c0_9] : memref<4x1024x1024xbf16, #tpu.memory_space<vmem>>, vector<1x1024x1024xbf16>
    %14 = vector.shape_cast %13 : vector<1x1024x1024xbf16> to vector<1024x1024xbf16>
    %cst_10 = arith.constant dense<0.000000e+00> : vector<8x1024xf32>
    %15 = tpu.matmul %12, %14, %cst_10 {dimension_numbers = #tpu.dot_dimension_numbers<[1], [0], [0], [1], [0, 0, 1, 1], [], []>} : vector<8x1024xbf16>, vector<1024x1024xbf16>, vector<8x1024xf32> -> vector<8x1024xf32>
    %c0_11 = arith.constant 0 : index
    %c0_12 = arith.constant 0 : index
    %c0_13 = arith.constant 0 : index
    %16 = vector.load %arg5[%c0_11, %c0_12, %c0_13] : memref<4x1x1024xf32, #tpu.memory_space<vmem>>, vector<1x1x1024xf32>
    %17 = vector.shape_cast %16 : vector<1x1x1024xf32> to vector<1x1024xf32>
    %18 = vector.broadcast %17 : vector<1x1024xf32> to vector<8x1024xf32>
    %19 = arith.addf %15, %18 : vector<8x1024xf32>
    %cst_14 = arith.constant 0.000000e+00 : f32
    %20 = vector.broadcast %cst_14 : f32 to vector<8x1024xf32>
    %21 = arith.cmpf ogt, %19, %20 : vector<8x1024xf32>
    %cst_15 = arith.constant 2.000000e-01 : f32
    %22 = vector.broadcast %cst_15 : f32 to vector<8x1024xf32>
    %23 = arith.mulf %22, %19 : vector<8x1024xf32>
    %24 = arith.select %21, %19, %23 : vector<8x1024xi1>, vector<8x1024xf32>
    %25 = arith.truncf %24 : vector<8x1024xf32> to vector<8x1024xbf16>
    %c1 = arith.constant 1 : index
    %c0_16 = arith.constant 0 : index
    %c0_17 = arith.constant 0 : index
    %26 = vector.load %arg4[%c1, %c0_16, %c0_17] : memref<4x1024x1024xbf16, #tpu.memory_space<vmem>>, vector<1x1024x1024xbf16>
    %27 = vector.shape_cast %26 : vector<1x1024x1024xbf16> to vector<1024x1024xbf16>
    %cst_18 = arith.constant dense<0.000000e+00> : vector<8x1024xf32>
    %28 = tpu.matmul %25, %27, %cst_18 {dimension_numbers = #tpu.dot_dimension_numbers<[1], [0], [0], [1], [0, 0, 1, 1], [], []>} : vector<8x1024xbf16>, vector<1024x1024xbf16>, vector<8x1024xf32> -> vector<8x1024xf32>
    %c1_19 = arith.constant 1 : index
    %c0_20 = arith.constant 0 : index
    %c0_21 = arith.constant 0 : index
    %29 = vector.load %arg5[%c1_19, %c0_20, %c0_21] : memref<4x1x1024xf32, #tpu.memory_space<vmem>>, vector<1x1x1024xf32>
    %30 = vector.shape_cast %29 : vector<1x1x1024xf32> to vector<1x1024xf32>
    %31 = vector.broadcast %30 : vector<1x1024xf32> to vector<8x1024xf32>
    %32 = arith.addf %28, %31 : vector<8x1024xf32>
    %cst_22 = arith.constant 0.000000e+00 : f32
    %33 = vector.broadcast %cst_22 : f32 to vector<8x1024xf32>
    %34 = arith.cmpf ogt, %32, %33 : vector<8x1024xf32>
    %cst_23 = arith.constant 2.000000e-01 : f32
    %35 = vector.broadcast %cst_23 : f32 to vector<8x1024xf32>
    %36 = arith.mulf %35, %32 : vector<8x1024xf32>
    %37 = arith.select %34, %32, %36 : vector<8x1024xi1>, vector<8x1024xf32>
    %38 = arith.truncf %37 : vector<8x1024xf32> to vector<8x1024xbf16>
    %c2 = arith.constant 2 : index
    %c0_24 = arith.constant 0 : index
    %c0_25 = arith.constant 0 : index
    %39 = vector.load %arg4[%c2, %c0_24, %c0_25] : memref<4x1024x1024xbf16, #tpu.memory_space<vmem>>, vector<1x1024x1024xbf16>
    %40 = vector.shape_cast %39 : vector<1x1024x1024xbf16> to vector<1024x1024xbf16>
    %cst_26 = arith.constant dense<0.000000e+00> : vector<8x1024xf32>
    %41 = tpu.matmul %38, %40, %cst_26 {dimension_numbers = #tpu.dot_dimension_numbers<[1], [0], [0], [1], [0, 0, 1, 1], [], []>} : vector<8x1024xbf16>, vector<1024x1024xbf16>, vector<8x1024xf32> -> vector<8x1024xf32>
    %c2_27 = arith.constant 2 : index
    %c0_28 = arith.constant 0 : index
    %c0_29 = arith.constant 0 : index
    %42 = vector.load %arg5[%c2_27, %c0_28, %c0_29] : memref<4x1x1024xf32, #tpu.memory_space<vmem>>, vector<1x1x1024xf32>
    %43 = vector.shape_cast %42 : vector<1x1x1024xf32> to vector<1x1024xf32>
    %44 = vector.broadcast %43 : vector<1x1024xf32> to vector<8x1024xf32>
    %45 = arith.addf %41, %44 : vector<8x1024xf32>
    %cst_30 = arith.constant 0.000000e+00 : f32
    %46 = vector.broadcast %cst_30 : f32 to vector<8x1024xf32>
    %47 = arith.cmpf ogt, %45, %46 : vector<8x1024xf32>
    %cst_31 = arith.constant 2.000000e-01 : f32
    %48 = vector.broadcast %cst_31 : f32 to vector<8x1024xf32>
    %49 = arith.mulf %48, %45 : vector<8x1024xf32>
    %50 = arith.select %47, %45, %49 : vector<8x1024xi1>, vector<8x1024xf32>
    %51 = arith.truncf %50 : vector<8x1024xf32> to vector<8x1024xbf16>
    %c3 = arith.constant 3 : index
    %c0_32 = arith.constant 0 : index
    %c0_33 = arith.constant 0 : index
    %52 = vector.load %arg4[%c3, %c0_32, %c0_33] : memref<4x1024x1024xbf16, #tpu.memory_space<vmem>>, vector<1x1024x1024xbf16>
    %53 = vector.shape_cast %52 : vector<1x1024x1024xbf16> to vector<1024x1024xbf16>
    %cst_34 = arith.constant dense<0.000000e+00> : vector<8x1024xf32>
    %54 = tpu.matmul %51, %53, %cst_34 {dimension_numbers = #tpu.dot_dimension_numbers<[1], [0], [0], [1], [0, 0, 1, 1], [], []>} : vector<8x1024xbf16>, vector<1024x1024xbf16>, vector<8x1024xf32> -> vector<8x1024xf32>
    %c3_35 = arith.constant 3 : index
    %c0_36 = arith.constant 0 : index
    %c0_37 = arith.constant 0 : index
    %55 = vector.load %arg5[%c3_35, %c0_36, %c0_37] : memref<4x1x1024xf32, #tpu.memory_space<vmem>>, vector<1x1x1024xf32>
    %56 = vector.shape_cast %55 : vector<1x1x1024xf32> to vector<1x1024xf32>
    %57 = vector.broadcast %56 : vector<1x1024xf32> to vector<8x1024xf32>
    %58 = arith.addf %54, %57 : vector<8x1024xf32>
    %cst_38 = arith.constant 0.000000e+00 : f32
    %59 = vector.broadcast %cst_38 : f32 to vector<8x1024xf32>
    %60 = arith.cmpf ogt, %58, %59 : vector<8x1024xf32>
    %cst_39 = arith.constant 2.000000e-01 : f32
    %61 = vector.broadcast %cst_39 : f32 to vector<8x1024xf32>
    %62 = arith.mulf %61, %58 : vector<8x1024xf32>
    %63 = arith.select %60, %58, %62 : vector<8x1024xi1>, vector<8x1024xf32>
    %64 = arith.truncf %63 : vector<8x1024xf32> to vector<8x1024xbf16>
    %c0_40 = arith.constant 0 : index
    %c0_41 = arith.constant 0 : index
    %65 = vector.load %arg6[%c0_40, %c0_41] : memref<1024x128xbf16, #tpu.memory_space<vmem>>, vector<1024x128xbf16>
    %cst_42 = arith.constant dense<0.000000e+00> : vector<8x128xf32>
    %66 = tpu.matmul %64, %65, %cst_42 {dimension_numbers = #tpu.dot_dimension_numbers<[1], [0], [0], [1], [0, 0, 1, 1], [], []>} : vector<8x1024xbf16>, vector<1024x128xbf16>, vector<8x128xf32> -> vector<8x128xf32>
    %c0_43 = arith.constant 0 : index
    %c0_44 = arith.constant 0 : index
    %67 = vector.load %arg7[%c0_43, %c0_44] : memref<1x128xf32, #tpu.memory_space<vmem>>, vector<1x128xf32>
    %68 = vector.broadcast %67 : vector<1x128xf32> to vector<8x128xf32>
    %69 = arith.addf %66, %68 : vector<8x128xf32>
    %c0_45 = arith.constant 0 : index
    %c0_46 = arith.constant 0 : index
    %70 = vector.load %arg8[%c0_45, %c0_46] : memref<8x128xf32, #tpu.memory_space<vmem>>, vector<8x128xf32>
    tpu.vector_store %arg8[%c0_45, %c0_46], %69 {strides = array<i32>} : memref<8x128xf32, #tpu.memory_space<vmem>>, vector<8x128xf32>,
    return
  }
  func.func @transform_0(%arg0: i32) -> (i32, i32) {
    %c0_i32 = arith.constant 0 : i32
    %c0_i32_0 = arith.constant 0 : i32
    return %arg0, %c0_i32 : i32, i32
  }
  func.func @transform_1(%arg0: i32) -> (i32, i32) {
    %c0_i32 = arith.constant 0 : i32
    %c0_i32_0 = arith.constant 0 : i32
    %c0_i32_1 = arith.constant 0 : i32
    return %c0_i32, %c0_i32_0 : i32, i32
  }
  func.func @transform_2(%arg0: i32) -> (i32, i32) {
    %c0_i32 = arith.constant 0 : i32
    %c0_i32_0 = arith.constant 0 : i32
    %c0_i32_1 = arith.constant 0 : i32
    return %c0_i32, %c0_i32_0 : i32, i32
  }
  func.func @transform_3(%arg0: i32) -> (i32, i32, i32) {
    %c0_i32 = arith.constant 0 : i32
    %c0_i32_0 = arith.constant 0 : i32
    %c0_i32_1 = arith.constant 0 : i32
    %c0_i32_2 = arith.constant 0 : i32
    return %c0_i32, %c0_i32_0, %c0_i32_1 : i32, i32, i32
  }
  func.func @transform_4(%arg0: i32) -> (i32, i32, i32) {
    %c0_i32 = arith.constant 0 : i32
    %c0_i32_0 = arith.constant 0 : i32
    %c0_i32_1 = arith.constant 0 : i32
    %c0_i32_2 = arith.constant 0 : i32
    return %c0_i32, %c0_i32_0, %c0_i32_1 : i32, i32, i32
  }
  func.func @transform_5(%arg0: i32) -> (i32, i32) {
    %c0_i32 = arith.constant 0 : i32
    %c0_i32_0 = arith.constant 0 : i32
    %c0_i32_1 = arith.constant 0 : i32
    return %c0_i32, %c0_i32_0 : i32, i32
  }
  func.func @transform_6(%arg0: i32) -> (i32, i32) {
    %c0_i32 = arith.constant 0 : i32
    %c0_i32_0 = arith.constant 0 : i32
    %c0_i32_1 = arith.constant 0 : i32
    return %c0_i32, %c0_i32_0 : i32, i32
  }
  func.func @transform_7(%arg0: i32) -> (i32, i32) {
    %c0_i32 = arith.constant 0 : i32
    %c0_i32_0 = arith.constant 0 : i32
    return %arg0, %c0_i32 : i32, i32
  }
}

</mosaic_0001>

<bundles_post_ra>
// kernel: _discriminator_fwd_padded.1
= control target key start
LH: loop header
LB: loop body
LE: loop exit
PB: predicated region body
PF: predicated region fallthrough
CT: control target
= control target key end

     0   :  { %12 = vsyncpa [#allocation3], 0  ;;  %s19969_s0 = inlined_call_operand.hbm [shape: f32[8,128], index: 0, kind: input, shape index: {}]   ;;  %s19970_s1 = inlined_call_operand.hbm [shape: bf16[128,1024], index: 1, kind: input, shape index: {}]   ;;  %s19971_s2 = inlined_call_operand.hbm [shape: f32[1,1024], index: 2, kind: input, shape index: {}]   ;;  %s19972_s3 = inlined_call_operand.hbm [shape: bf16[4,1024,1024], index: 3, kind: input, shape index: {}]   ;;  %s19973_s4 = inlined_call_operand.hbm [shape: f32[4,1,1024], index: 4, kind: input, shape index: {}]   ;;  %s19974_s5 = inlined_call_operand.hbm [shape: bf16[1024,128], index: 5, kind: input, shape index: {}]   ;;  %s19975_s6 = inlined_call_operand.hbm [shape: f32[1,128], index: 6, kind: input, shape index: {}]   ;;  %s19976_s7 = inlined_call_operand.hbm [shape: f32[8,128], index: 7, kind: output, shape index: {}]  }
   0x1   :  { %13 = vsyncpa [#allocation6], 0 }
   0x2   :  { %14 = vsyncpa [#allocation9], 0 }
   0x3   :  { %15 = vsyncpa [#allocation12], 0 }
   0x4   :  { %16 = vsyncpa [#allocation4], 0  ;;  %s19411_s24 = smov [#allocation5]   ;;  %s19225_s28 = scalar_lea.hbm %s19970_s1, 8192 }
   0x5   :  { %s32_s25 = sshll.u32 %s19411_s24, 4  ;;  %p19226_p0 = scmp.ne.s32.totalorder %s19970_s1, %s19225_s28  ;;  %s33_s25 = int_to_ptr.vmem [resolvable:$true] %s32_s25 }
   0x6   :  { %p19229_p1 = scmp.lt.u32.totalorder %s19225_s28, %s19970_s1 }
   0x8   :  { %p19231_p2 = pnand %p19229_p1, %p19226_p0 }
   0xa   :  { %19234 = shalt.err (!%p19231_p2)
}
   0xb   :  { %s19235_s10 = scalar_lea.vmem %s33_s25, 8192  ;;  %p19240_p4 = scmp.lt.s32.totalorder %s33_s25, %s33_s25 }
   0xc   :  { %p19236_p3 = scmp.ne.s32.totalorder %s33_s25, %s19235_s10  ;;  %p19241_p5 = scmp.lt.s32.totalorder %s19235_s10, %s19235_s10 }
   0xe   :  { %p19242_p6 = por %p19241_p5, %p19240_p4 }
  0x10   :  { %p19243_p7 = pnand %p19242_p6, %p19236_p3 }
  0x12   :  { %19246 = shalt.err (!%p19243_p7)
}
  0x13   :  { %s19412_s11 = smov 512   ;;  %s19413_s12 = smov 32  }
  0x14   :  { %38 = dma.hbm_to_vmem [thread:$0]  %s19970_s1, 8192, %s33_s25, [#allocation6], %s19412_s11, %s19412_s11, %s19413_s12  }
  0x15   :  { %s19414_s15 = smov [#allocation8]   ;;  %s19415_s17 = smov [#allocation11]  }
  0x16   :  { %s54_s16 = sshll.u32 %s19414_s15, 4  ;;  %s78_s18 = sshll.u32 %s19415_s17, 4  ;;  %s55_s16 = int_to_ptr.vmem [resolvable:$true] %s54_s16  ;;  %s79_s18 = int_to_ptr.vmem [resolvable:$true] %s78_s18 }
  0x17   :  { %s19247_s21 = scalar_lea.hbm %s19972_s3, 262144 }
  0x18   :  { %p19248_p8 = scmp.ne.s32.totalorder %s19972_s3, %s19247_s21  ;;  %p19251_p9 = scmp.lt.u32.totalorder %s19247_s21, %s19972_s3 }
  0x1a   :  { %p19253_p10 = pnand %p19251_p9, %p19248_p8 }
  0x1c   :  { %19256 = shalt.err (!%p19253_p10)
}
  0x1d   :  { %s19257_s1 = scalar_lea.vmem %s55_s16, 262144  ;;  %p19262_p12 = scmp.lt.s32.totalorder %s55_s16, %s55_s16 }
  0x1e   :  { %p19258_p11 = scmp.ne.s32.totalorder %s55_s16, %s19257_s1  ;;  %p19263_p13 = scmp.lt.s32.totalorder %s19257_s1, %s19257_s1 }
  0x20   :  { %p19264_p0 = por %p19263_p13, %p19262_p12 }
  0x22   :  { %p19265_p1 = pnand %p19264_p0, %p19258_p11 }
  0x24   :  { %19268 = shalt.err (!%p19265_p1)
}
  0x25   :  { %60 = dma.hbm_to_vmem [thread:$0]  %s19972_s3, 262144, %s55_s16, [#allocation9], %s19412_s11, %s19412_s11, %s19413_s12  }
  0x26   :  { %s19269_s30 = scalar_lea.hbm %s19974_s5, 8192 }
  0x27   :  { %p19270_p2 = scmp.ne.s32.totalorder %s19974_s5, %s19269_s30  ;;  %p19273_p3 = scmp.lt.u32.totalorder %s19269_s30, %s19974_s5 }
  0x29   :  { %p19275_p4 = pnand %p19273_p3, %p19270_p2 }
  0x2b   :  { %19278 = shalt.err (!%p19275_p4)
}
  0x2c   :  { %s19279_s14 = scalar_lea.vmem %s79_s18, 8192  ;;  %p19284_p6 = scmp.lt.s32.totalorder %s79_s18, %s79_s18 }
  0x2d   :  { %p19280_p5 = scmp.ne.s32.totalorder %s79_s18, %s19279_s14  ;;  %p19285_p7 = scmp.lt.s32.totalorder %s19279_s14, %s19279_s14 }
  0x2f   :  { %p19286_p8 = por %p19285_p7, %p19284_p6 }
  0x31   :  { %p19287_p9 = pnand %p19286_p8, %p19280_p5 }
  0x33   :  { %19290 = shalt.err (!%p19287_p9)
}
  0x34   :  { %s19416_s3 = smov 64   ;;  %s19417_s11 = smov 4  }
  0x35   :  { %84 = dma.hbm_to_vmem [thread:$0]  %s19974_s5, 8192, %s79_s18, [#allocation12], %s19416_s3, %s19416_s3, %s19417_s11  }
  0x36   :  { %s19418_s16 = smov [#allocation2]   ;;  %s19419_s19 = smov [#allocation7]  }
  0x37   :  { %s23_s17 = sshll.u32 %s19418_s16, 4  ;;  %s45_s20 = sshll.u32 %s19419_s19, 4  ;;  %s24_s17 = int_to_ptr.vmem [resolvable:$true] %s23_s17  ;;  %s46_s20 = int_to_ptr.vmem [resolvable:$true] %s45_s20 }
  0x38   :  { %s19291_s23 = scalar_lea.hbm %s19969_s0, 128 }
  0x39   :  { %p19292_p10 = scmp.ne.s32.totalorder %s19969_s0, %s19291_s23  ;;  %p19295_p11 = scmp.lt.u32.totalorder %s19291_s23, %s19969_s0 }
  0x3b   :  { %p19297_p12 = pnand %p19295_p11, %p19292_p10 }
  0x3d   :  { %19300 = shalt.err (!%p19297_p12)
}
  0x3e   :  { %s19301_s5 = scalar_lea.vmem %s24_s17, 128  ;;  %p19306_p0 = scmp.lt.s32.totalorder %s24_s17, %s24_s17 }
  0x3f   :  { %p19302_p13 = scmp.ne.s32.totalorder %s24_s17, %s19301_s5  ;;  %p19307_p1 = scmp.lt.s32.totalorder %s19301_s5, %s19301_s5 }
  0x41   :  { %p19308_p2 = por %p19307_p1, %p19306_p0 }
  0x43   :  { %p19309_p3 = pnand %p19308_p2, %p19302_p13 }
  0x45   :  { %19312 = shalt.err (!%p19309_p3)
}
  0x46   :  { %26 = dma.hbm_to_vmem [thread:$0]  %s19969_s0, 128, %s24_s17, [#allocation3]  }
  0x47   :  { %s19313_s30 = scalar_lea.hbm %s19971_s2, 128 }
  0x48   :  { %p19314_p4 = scmp.ne.s32.totalorder %s19971_s2, %s19313_s30  ;;  %p19317_p5 = scmp.lt.u32.totalorder %s19313_s30, %s19971_s2 }
  0x4a   :  { %p19319_p6 = pnand %p19317_p5, %p19314_p4 }
  0x4c   :  { %19322 = shalt.err (!%p19319_p6)
}
  0x4d   :  { %s19323_s14 = scalar_lea.vmem %s46_s20, 128  ;;  %p19328_p8 = scmp.lt.s32.totalorder %s46_s20, %s46_s20 }
  0x4e   :  { %p19324_p7 = scmp.ne.s32.totalorder %s46_s20, %s19323_s14  ;;  %p19329_p9 = scmp.lt.s32.totalorder %s19323_s14, %s19323_s14 }
  0x50   :  { %p19330_p10 = por %p19329_p9, %p19328_p8 }
  0x52   :  { %p19331_p11 = pnand %p19330_p10, %p19324_p7 }
  0x54   :  { %19334 = shalt.err (!%p19331_p11)
}
  0x55   :  { %48 = dma.hbm_to_vmem [thread:$0]  %s19971_s2, 128, %s46_s20, [#allocation6]  }
  0x56   :  { %s19420_s11 = smov [#allocation10]   ;;  %s19335_s17 = scalar_lea.hbm %s19973_s4, 512 }
  0x57   :  { %s66_s12 = sshll.u32 %s19420_s11, 4  ;;  %p19336_p12 = scmp.ne.s32.totalorder %s19973_s4, %s19335_s17  ;;  %s67_s12 = int_to_ptr.vmem [resolvable:$true] %s66_s12 }
  0x58   :  { %p19339_p13 = scmp.lt.u32.totalorder %s19335_s17, %s19973_s4 }
  0x5a   :  { %p19341_p0 = pnand %p19339_p13, %p19336_p12 }
  0x5c   :  { %19344 = shalt.err (!%p19341_p0)
}
  0x5d   :  { %s19345_s24 = scalar_lea.vmem %s67_s12, 512  ;;  %p19350_p2 = scmp.lt.s32.totalorder %s67_s12, %s67_s12 }
  0x5e   :  { %p19346_p1 = scmp.ne.s32.totalorder %s67_s12, %s19345_s24  ;;  %p19351_p3 = scmp.lt.s32.totalorder %s19345_s24, %s19345_s24 }
  0x60   :  { %p19352_p4 = por %p19351_p3, %p19350_p2 }
  0x62   :  { %p19353_p5 = pnand %p19352_p4, %p19346_p1 }
  0x64   :  { %19356 = shalt.err (!%p19353_p5)
}
  0x65   :  { %s19421_s2 = smov 128   ;;  %s19422_s20 = smov 8  }
  0x66   :  { %72 = dma.hbm_to_vmem [thread:$0]  %s19973_s4, 512, %s67_s12, [#allocation9], %s19421_s2, %s19421_s2, %s19422_s20  }
  0x67   :  { %s19423_s25 = smov [#allocation13]   ;;  %s19357_s28 = scalar_lea.hbm %s19975_s6, 16 }
  0x68   :  { %s91_s5 = sshll.u32 %s19423_s25, 4  ;;  %p19358_p6 = scmp.ne.s32.totalorder %s19975_s6, %s19357_s28  ;;  %s92_s5 = int_to_ptr.vmem [resolvable:$true] %s91_s5 }
  0x69   :  { %p19361_p7 = scmp.lt.u32.totalorder %s19357_s28, %s19975_s6 }
  0x6b   :  { %p19363_p8 = pnand %p19361_p7, %p19358_p6 }
  0x6d   :  { %19366 = shalt.err (!%p19363_p8)
}
  0x6e   :  { %s19367_s10 = scalar_lea.vmem %s92_s5, 16  ;;  %s19371_s4 = scalar_lea.vmem %s92_s5, 32 }
  0x6f   :  { %p19368_p9 = scmp.ne.s32.totalorder %s92_s5, %s19367_s10  ;;  %p19372_p10 = scmp.lt.s32.totalorder %s92_s5, %s92_s5 }
  0x70   :  { %p19373_p11 = scmp.lt.s32.totalorder %s19371_s4, %s19367_s10 }
  0x72   :  { %p19374_p12 = por %p19373_p11, %p19372_p10 }
  0x74   :  { %p19375_p13 = pnand %p19374_p12, %p19368_p9 }
  0x76   :  { %19378 = shalt.err (!%p19375_p13)
}
  0x77   :  { %94 = dma.hbm_to_vmem [thread:$0]  %s19975_s6, 16, %s92_s5, [#allocation12]  }
  0x78   :  { %19401 = dma.done.wait [#allocation3], 128  }
  0x79   :  { %19402 = vsyncadd [#allocation3], 4294967168 }
  0x7a   :  { %19403 = dma.done.wait [#allocation6], 8320  }
  0x7b   :  { %19404 = vsyncadd [#allocation6], 4294958976 }
  0x7c   :  { %19405 = dma.done.wait [#allocation9], 262656  }
  0x7d   :  { %19406 = vsyncadd [#allocation9], 4294704640 }
  0x7e   :  { %19407 = dma.done.wait [#allocation12], 8208  }
  0x7f   :  { %19408 = vsyncadd [#allocation12], 4294959088  ;;  %v19424_v0 = vmov 0   ;;  %v119_v1 = vld [vmem:[#allocation5] sm:$0xff]  ;;  %v120_v14 = vld [vmem:[#allocation5 + $0x8] sm:$0xff]  ;;  %s19425_s6 = smov [#allocation14]  }
  0x80   :  { %577 = vmatprep.mubr.bf16.mxu0 %v19424_v0  ;;  %618 = vmatprep.mubr.bf16.mxu1 %v19424_v0  ;;  %v123_v2 = vld [vmem:[#allocation5 + $0x20] sm:$0xff]  ;;  %v124_v15 = vld [vmem:[#allocation5 + $0x28] sm:$0xff]  ;;  %v121_v58 = vld [vmem:[#allocation5 + $0x10] sm:$0xff]  ;;  %s16641_s0 = sshll.u32 %s19425_s6, 4  ;;  %s16642_s0 = int_to_ptr.vmem [resolvable:$true] %s16641_s0 }
  0x81   :  { %v127_v3 = vld [vmem:[#allocation5 + $0x40] sm:$0xff]  ;;  %v16654_v4 = vcombine.high %v119_v1, %v123_v2  ;;  %v16653_v5 = vcombine.low %v119_v1, %v123_v2  ;;  %v128_v16 = vld [vmem:[#allocation5 + $0x48] sm:$0xff]  ;;  %v16656_v18 = vcombine.high %v120_v14, %v124_v15  ;;  %v16655_v19 = vcombine.low %v120_v14, %v124_v15  ;;  %v125_v59 = vld [vmem:[#allocation5 + $0x30] sm:$0xff]  ;;  %s19379_s3 = scalar_lea.vmem %s16642_s0, 128  ;;  %p19384_p1 = scmp.lt.s32.totalorder %s16642_s0, %s16642_s0 }
  0x82   :  { %v131_v6 = vld [vmem:[#allocation5 + $0x60] sm:$0xff]  ;;  %v132_v17 = vld [vmem:[#allocation5 + $0x68] sm:$0xff]  ;;  %v117_v62 = vld [vmem:[#allocation2] sm:$0xff]  ;;  %v16658_v2 = vcombine.high %v121_v58, %v125_v59  ;;  %p19380_p0 = scmp.ne.s32.totalorder %s16642_s0, %s19379_s3  ;;  %p19385_p2 = scmp.lt.s32.totalorder %s19379_s3, %s19379_s3 }
  0x83   :  { %v16662_v7 = vcombine.high %v127_v3, %v131_v6  ;;  %v135_v8 = vld [vmem:[#allocation5 + $0x80] sm:$0xff]  ;;  %545 = vmatprep.subr.bf16.mxu0 %v16654_v4  ;;  %v16661_v10 = vcombine.low %v127_v3, %v131_v6  ;;  %v16664_v20 = vcombine.high %v128_v16, %v132_v17  ;;  %v136_v22 = vld [vmem:[#allocation5 + $0x88] sm:$0xff]  ;;  %586 = vmatprep.subr.bf16.mxu1 %v16656_v18  ;;  %v129_v4 = vld [vmem:[#allocation5 + $0x50] sm:$0xff] }
  0x84   :  { %v139_v9 = vld [vmem:[#allocation5 + $0xa0] sm:$0xff]  ;;  %546 = vmatpush1.bf16.msra.mxu0 %v16653_v5  ;;  %v140_v23 = vld [vmem:[#allocation5 + $0xa8] sm:$0xff]  ;;  %587 = vmatpush1.bf16.msra.mxu1 %v16655_v19  ;;  %v16663_v27 = vcombine.low %v128_v16, %v132_v17  ;;  %v133_v5 = vld [vmem:[#allocation5 + $0x70] sm:$0xff]  ;;  %v19552_v6 = vpack.c.bf16 %v117_v62, %v117_v62  ;;  %p19386_p3 = por %p19385_p2, %p19384_p1 }
  0x85   :  { %547 = vmatprep.subr.bf16.mxu0 %v16662_v7  ;;  %v16670_v11 = vcombine.high %v135_v8, %v139_v9  ;;  %v143_v12 = vld [vmem:[#allocation5 + $0xc0] sm:$0xff]  ;;  %v16669_v21 = vcombine.low %v135_v8, %v139_v9  ;;  %588 = vmatprep.subr.bf16.mxu1 %v16664_v20  ;;  %v16672_v28 = vcombine.high %v136_v22, %v140_v23  ;;  %v144_v30 = vld [vmem:[#allocation5 + $0xc8] sm:$0xff]  ;;  %v122_v9 = vld [vmem:[#allocation5 + $0x18] sm:$0xff] }
  0x86   :  { %v147_v13 = vld [vmem:[#allocation5 + $0xe0] sm:$0xff]  ;;  %v148_v31 = vld [vmem:[#allocation5 + $0xe8] sm:$0xff]  ;;  %v16671_v35 = vcombine.low %v136_v22, %v140_v23  ;;  %v16657_v8 = vcombine.low %v121_v58, %v125_v59  ;;  %v141_v14 = vld [vmem:[#allocation5 + $0xb0] sm:$0xff]  ;;  %v16665_v16 = vcombine.low %v129_v4, %v133_v5  ;;  %p19387_p4 = pnand %p19386_p3, %p19380_p0 }
  0x87   :  { %v16678_v24 = vcombine.high %v143_v12, %v147_v13  ;;  %v151_v25 = vld [vmem:[#allocation5 + $0x100] sm:$0xff]  ;;  %v16677_v29 = vcombine.low %v143_v12, %v147_v13  ;;  %v16680_v36 = vcombine.high %v144_v30, %v148_v31  ;;  %v152_v38 = vld [vmem:[#allocation5 + $0x108] sm:$0xff]  ;;  %v16679_v43 = vcombine.low %v144_v30, %v148_v31  ;;  %v137_v13 = vld [vmem:[#allocation5 + $0x90] sm:$0xff] }
  0x88   :  { %548 = vmatpush1.bf16.msra.mxu0 %v16661_v10  ;;  %v155_v26 = vld [vmem:[#allocation5 + $0x120] sm:$0xff]  ;;  %589 = vmatpush1.bf16.msra.mxu1 %v16663_v27  ;;  %v156_v39 = vld [vmem:[#allocation5 + $0x128] sm:$0xff]  ;;  %v126_v10 = vld [vmem:[#allocation5 + $0x38] sm:$0xff]  ;;  %v16674_v19 = vcombine.high %v137_v13, %v141_v14 }
  0x89   :  { %549 = vmatprep.subr.bf16.mxu0 %v16670_v11  ;;  %v16686_v32 = vcombine.high %v151_v25, %v155_v26  ;;  %v159_v33 = vld [vmem:[#allocation5 + $0x140] sm:$0xff]  ;;  %590 = vmatprep.subr.bf16.mxu1 %v16672_v28  ;;  %v16685_v37 = vcombine.low %v151_v25, %v155_v26  ;;  %v16688_v44 = vcombine.high %v152_v38, %v156_v39  ;;  %v160_v46 = vld [vmem:[#allocation5 + $0x148] sm:$0xff]  ;;  %v130_v17 = vld [vmem:[#allocation5 + $0x58] sm:$0xff] }
  0x8a   :  { %v163_v34 = vld [vmem:[#allocation5 + $0x160] sm:$0xff]  ;;  %v164_v47 = vld [vmem:[#allocation5 + $0x168] sm:$0xff]  ;;  %v16687_v51 = vcombine.low %v152_v38, %v156_v39  ;;  %v16666_v11 = vcombine.high %v129_v4, %v133_v5  ;;  %v16660_v15 = vcombine.high %v122_v9, %v126_v10  ;;  %v134_v18 = vld [vmem:[#allocation5 + $0x78] sm:$0xff]  ;;  %v16659_v22 = vcombine.low %v122_v9, %v126_v10 }
  0x8b   :  { %v16694_v40 = vcombine.high %v159_v33, %v163_v34  ;;  %v167_v41 = vld [vmem:[#allocation5 + $0x180] sm:$0xff]  ;;  %v16693_v45 = vcombine.low %v159_v33, %v163_v34  ;;  %v16696_v52 = vcombine.high %v160_v46, %v164_v47  ;;  %v168_v54 = vld [vmem:[#allocation5 + $0x188] sm:$0xff]  ;;  %v16695_v57 = vcombine.low %v160_v46, %v164_v47  ;;  %v145_v20 = vld [vmem:[#allocation5 + $0xd0] sm:$0xff] }
  0x8c   :  { %550 = vmatpush1.bf16.msra.mxu0 %v16669_v21  ;;  %v171_v42 = vld [vmem:[#allocation5 + $0x1a0] sm:$0xff]  ;;  %591 = vmatpush1.bf16.msra.mxu1 %v16671_v35  ;;  %v172_v55 = vld [vmem:[#allocation5 + $0x1a8] sm:$0xff]  ;;  %v149_v21 = vld [vmem:[#allocation5 + $0xf0] sm:$0xff]  ;;  %v16668_v23 = vcombine.high %v130_v17, %v134_v18  ;;  %v16667_v30 = vcombine.low %v130_v17, %v134_v18 }
  0x8d   :  { %551 = vmatprep.subr.bf16.mxu0 %v16678_v24  ;;  %592 = vmatprep.subr.bf16.mxu1 %v16680_v36  ;;  %v16702_v48 = vcombine.high %v167_v41, %v171_v42  ;;  %v175_v49 = vld [vmem:[#allocation5 + $0x1c0] sm:$0xff]  ;;  %v16701_v53 = vcombine.low %v167_v41, %v171_v42  ;;  %v16704_v60 = vcombine.high %v168_v54, %v172_v55  ;;  %v176_v63 = vld [vmem:[#allocation5 + $0x1c8] sm:$0xff]  ;;  %v153_v25 = vld [vmem:[#allocation5 + $0x110] sm:$0xff] }
  0x8e   :  { %v179_v50 = vld [vmem:[#allocation5 + $0x1e0] sm:$0xff]  ;;  %v180_v1 = vld [vmem:[#allocation5 + $0x1e8] sm:$0xff]  ;;  %v16703_v3 = vcombine.low %v168_v54, %v172_v55  ;;  %v16673_v24 = vcombine.low %v137_v13, %v141_v14  ;;  %v157_v26 = vld [vmem:[#allocation5 + $0x130] sm:$0xff]  ;;  %v16681_v34 = vcombine.low %v145_v20, %v149_v21 }
  0x8f   :  { %v16710_v56 = vcombine.high %v175_v49, %v179_v50  ;;  %v16709_v61 = vcombine.low %v175_v49, %v179_v50  ;;  %v16712_v7 = vcombine.high %v176_v63, %v180_v1  ;;  %v16711_v12 = vcombine.low %v176_v63, %v180_v1  ;;  %v138_v27 = vld [vmem:[#allocation5 + $0x98] sm:$0xff]  ;;  %v161_v35 = vld [vmem:[#allocation5 + $0x150] sm:$0xff]  ;;  %v741_v58 = vld [vmem:[#allocation8] sm:$0xff] }
  0x90   :  { %552 = vmatpush1.bf16.msra.mxu0 %v16677_v29  ;;  %593 = vmatpush1.bf16.msra.mxu1 %v16679_v43  ;;  %v142_v28 = vld [vmem:[#allocation5 + $0xb8] sm:$0xff]  ;;  %v16682_v29 = vcombine.high %v145_v20, %v149_v21  ;;  %v165_v36 = vld [vmem:[#allocation5 + $0x170] sm:$0xff]  ;;  %v16689_v42 = vcombine.low %v153_v25, %v157_v26  ;;  %v745_v59 = vld [vmem:[#allocation8 + $0x20] sm:$0xff] }
  0x91   :  { %553 = vmatprep.subr.bf16.mxu0 %v16686_v32  ;;  %594 = vmatprep.subr.bf16.mxu1 %v16688_v44  ;;  %v146_v31 = vld [vmem:[#allocation5 + $0xd8] sm:$0xff]  ;;  %v16676_v33 = vcombine.high %v138_v27, %v142_v28  ;;  %v16675_v38 = vcombine.low %v138_v27, %v142_v28  ;;  %v169_v43 = vld [vmem:[#allocation5 + $0x190] sm:$0xff]  ;;  %v16697_v49 = vcombine.low %v161_v35, %v165_v36  ;;  %v753_v4 = vld [vmem:[#allocation8 + $0x60] sm:$0xff] }
  0x92   :  { %v150_v32 = vld [vmem:[#allocation5 + $0xf8] sm:$0xff]  ;;  %v173_v44 = vld [vmem:[#allocation5 + $0x1b0] sm:$0xff]  ;;  %v16718_v5 = vcombine.high %v741_v58, %v745_v59  ;;  %v761_v13 = vld [vmem:[#allocation8 + $0xa0] sm:$0xff] }
  0x93   :  { %v154_v39 = vld [vmem:[#allocation5 + $0x118] sm:$0xff]  ;;  %v16684_v41 = vcombine.high %v146_v31, %v150_v32  ;;  %v177_v50 = vld [vmem:[#allocation5 + $0x1d0] sm:$0xff]  ;;  %v765_v20 = vld [vmem:[#allocation8 + $0xc0] sm:$0xff] }
  0x94   :  { %554 = vmatpush1.bf16.msra.mxu0 %v16685_v37  ;;  %595 = vmatpush1.bf16.msra.mxu1 %v16687_v51  ;;  %v16690_v37 = vcombine.high %v153_v25, %v157_v26  ;;  %v162_v46 = vld [vmem:[#allocation5 + $0x158] sm:$0xff]  ;;  %v181_v51 = vld [vmem:[#allocation5 + $0x1f0] sm:$0xff]  ;;  %v769_v21 = vld [vmem:[#allocation8 + $0xe0] sm:$0xff] }
  0x95   :  { %555 = vmatprep.subr.bf16.mxu0 %v16694_v40  ;;  %596 = vmatprep.subr.bf16.mxu1 %v16696_v52  ;;  %v158_v40 = vld [vmem:[#allocation5 + $0x138] sm:$0xff]  ;;  %v16706_v52 = vcombine.high %v169_v43, %v173_v44  ;;  %v746_v9 = vld [vmem:[#allocation8 + $0x28] sm:$0xff]  ;;  %v773_v28 = vld [vmem:[#allocation8 + $0x100] sm:$0xff] }
  0x96   :  { %v166_v47 = vld [vmem:[#allocation5 + $0x178] sm:$0xff]  ;;  %v754_v17 = vld [vmem:[#allocation8 + $0x68] sm:$0xff] }
  0x97   :  { %v170_v54 = vld [vmem:[#allocation5 + $0x198] sm:$0xff]  ;;  %v762_v25 = vld [vmem:[#allocation8 + $0xa8] sm:$0xff] }
  0x98   :  { %556 = vmatpush1.bf16.msra.mxu0 %v16693_v45  ;;  %597 = vmatpush1.bf16.msra.mxu1 %v16695_v57  ;;  %v16683_v45 = vcombine.low %v146_v31, %v150_v32  ;;  %v174_v55 = vld [vmem:[#allocation5 + $0x1b8] sm:$0xff]  ;;  %v16705_v57 = vcombine.low %v169_v43, %v173_v44  ;;  %v766_v32 = vld [vmem:[#allocation8 + $0xc8] sm:$0xff]  ;;  %v789_v43 = vld [vmem:[#allocation8 + $0x180] sm:$0xff] }
  0x99   :  { %557 = vmatprep.subr.bf16.mxu0 %v16702_v48  ;;  %598 = vmatprep.subr.bf16.mxu1 %v16704_v60  ;;  %v16692_v48 = vcombine.high %v154_v39, %v158_v40  ;;  %v16714_v60 = vcombine.high %v177_v50, %v181_v51  ;;  %v178_v62 = vld [vmem:[#allocation5 + $0x1d8] sm:$0xff]  ;;  %v16708_v1 = vcombine.high %v170_v54, %v174_v55  ;;  %v793_v44 = vld [vmem:[#allocation8 + $0x1a0] sm:$0xff] }
  0x9a   :  { %v182_v63 = vld [vmem:[#allocation5 + $0x1f8] sm:$0xff] }
  0x9b   :  { %v16716_v10 = vcombine.high %v178_v62, %v182_v63 }
  0x9c   :  { %558 = vmatpush1.bf16.msra.mxu0 %v16701_v53  ;;  %599 = vmatpush1.bf16.msra.mxu1 %v16703_v3  ;;  %v16691_v53 = vcombine.low %v154_v39, %v158_v40  ;;  %v749_v3 = vld [vmem:[#allocation8 + $0x40] sm:$0xff]  ;;  %v774_v40 = vld [vmem:[#allocation8 + $0x108] sm:$0xff] }
  0x9d   :  { %559 = vmatprep.subr.bf16.mxu0 %v16710_v56  ;;  %600 = vmatprep.subr.bf16.mxu1 %v16712_v7  ;;  %v16700_v56 = vcombine.high %v162_v46, %v166_v47  ;;  %v16707_v7 = vcombine.low %v170_v54, %v174_v55  ;;  %v16726_v14 = vcombine.high %v749_v3, %v753_v4 }
  0x9e   :  { %v16765_v55 = vcombine.low %v789_v43, %v793_v44 }
  0xa0   :  { %560 = vmatpush1.bf16.msra.mxu0 %v16709_v61  ;;  %601 = vmatpush1.bf16.msra.mxu1 %v16711_v12  ;;  %v16699_v61 = vcombine.low %v162_v46, %v166_v47  ;;  %v757_v12 = vld [vmem:[#allocation8 + $0x80] sm:$0xff] }
  0xa1   :  { %627 = vmatprep.subr.bf16.mxu0 %v16658_v2  ;;  %668 = vmatprep.subr.bf16.mxu1 %v16660_v15  ;;  %v16713_v2 = vcombine.low %v177_v50, %v181_v51  ;;  %v16715_v15 = vcombine.low %v178_v62, %v182_v63  ;;  %v16733_v27 = vcombine.low %v757_v12, %v761_v13 }
  0xa2   :  { %v16766_v50 = vcombine.high %v789_v43, %v793_v44 }
  0xa3   :  { %578 = vmatmul.mubr.bf16.vlgmr.msra.gmra.mrb[0].mxu0 %v19552_v6  ;;  %619 = vmatmul.mubr.bf16.vlgmr.msra.gmra.mrb[0].mxu1 %v19552_v6 }
  0xa4   :  { %628 = vmatpush1.bf16.msra.mxu0 %v16657_v8  ;;  %659 = vmatprep.mubr.bf16.mxu0 %v19424_v0  ;;  %v742_v8 = vld [vmem:[#allocation8 + $0x8] sm:$0xff] }
  0xa5   :  { %629 = vmatprep.subr.bf16.mxu0 %v16666_v11  ;;  %669 = vmatpush1.bf16.msra.mxu1 %v16659_v22  ;;  %v16717_v11 = vcombine.low %v741_v58, %v745_v59  ;;  %v16720_v18 = vcombine.high %v742_v8, %v746_v9  ;;  %v16734_v22 = vcombine.high %v757_v12, %v761_v13 }
  0xa6   :  { %700 = vmatprep.mubr.bf16.mxu1 %v19424_v0  ;;  %670 = vmatprep.subr.bf16.mxu1 %v16668_v23  ;;  %v16698_v0 = vcombine.high %v161_v35, %v165_v36  ;;  %v16719_v23 = vcombine.low %v742_v8, %v746_v9  ;;  %v16741_v35 = vcombine.low %v765_v20, %v769_v21  ;;  %v781_v36 = vld [vmem:[#allocation8 + $0x140] sm:$0xff] }
  0xa8   :  { %630 = vmatpush1.bf16.msra.mxu0 %v16665_v16  ;;  %v750_v16 = vld [vmem:[#allocation8 + $0x48] sm:$0xff] }
  0xa9   :  { %631 = vmatprep.subr.bf16.mxu0 %v16674_v19  ;;  %671 = vmatpush1.bf16.msra.mxu1 %v16667_v30  ;;  %v16725_v19 = vcombine.low %v749_v3, %v753_v4  ;;  %v16728_v26 = vcombine.high %v750_v16, %v754_v17  ;;  %v16742_v30 = vcombine.high %v765_v20, %v769_v21 }
  0xaa   :  { %672 = vmatprep.subr.bf16.mxu1 %v16676_v33  ;;  %v16727_v31 = vcombine.low %v750_v16, %v754_v17  ;;  %v770_v33 = vld [vmem:[#allocation8 + $0xe8] sm:$0xff] }
  0xac   :  { %632 = vmatpush1.bf16.msra.mxu0 %v16673_v24  ;;  %v758_v24 = vld [vmem:[#allocation8 + $0x88] sm:$0xff] }
  0xad   :  { %633 = vmatprep.subr.bf16.mxu0 %v16682_v29  ;;  %673 = vmatpush1.bf16.msra.mxu1 %v16675_v38  ;;  %v777_v29 = vld [vmem:[#allocation8 + $0x120] sm:$0xff]  ;;  %v16735_v39 = vcombine.low %v758_v24, %v762_v25 }
  0xae   :  { %674 = vmatprep.subr.bf16.mxu1 %v16684_v41  ;;  %v16750_v38 = vcombine.high %v773_v28, %v777_v29  ;;  %v778_v41 = vld [vmem:[#allocation8 + $0x128] sm:$0xff] }
  0xaf   :  { %v16752_v46 = vcombine.high %v774_v40, %v778_v41  ;;  %v16751_v51 = vcombine.low %v774_v40, %v778_v41 }
  0xb0   :  { %634 = vmatpush1.bf16.msra.mxu0 %v16681_v34  ;;  %v16736_v34 = vcombine.high %v758_v24, %v762_v25 }
  0xb1   :  { %635 = vmatprep.subr.bf16.mxu0 %v16690_v37  ;;  %675 = vmatpush1.bf16.msra.mxu1 %v16683_v45  ;;  %v785_v37 = vld [vmem:[#allocation8 + $0x160] sm:$0xff]  ;;  %v16743_v45 = vcombine.low %v766_v32, %v770_v33 }
  0xb2   :  { %676 = vmatprep.subr.bf16.mxu1 %v16692_v48  ;;  %v16757_v47 = vcombine.low %v781_v36, %v785_v37  ;;  %v782_v48 = vld [vmem:[#allocation8 + $0x148] sm:$0xff] }
  0xb4   :  { %636 = vmatpush1.bf16.msra.mxu0 %v16689_v42  ;;  %v16749_v42 = vcombine.low %v773_v28, %v777_v29 }
  0xb5   :  { %637 = vmatprep.subr.bf16.mxu0 %v16698_v0  ;;  %677 = vmatpush1.bf16.msra.mxu1 %v16691_v53  ;;  %v16758_v0 = vcombine.high %v781_v36, %v785_v37  ;;  %v801_v53 = vld [vmem:[#allocation8 + $0x1e0] sm:$0xff] }
  0xb6   :  { %678 = vmatprep.subr.bf16.mxu1 %v16700_v56  ;;  %v790_v56 = vld [vmem:[#allocation8 + $0x188] sm:$0xff] }
  0xb8   :  { %638 = vmatpush1.bf16.msra.mxu0 %v16697_v49  ;;  %v786_v49 = vld [vmem:[#allocation8 + $0x168] sm:$0xff] }
  0xb9   :  { %639 = vmatprep.subr.bf16.mxu0 %v16706_v52  ;;  %679 = vmatpush1.bf16.msra.mxu1 %v16699_v61  ;;  %v797_v52 = vld [vmem:[#allocation8 + $0x1c0] sm:$0xff]  ;;  %v16760_v54 = vcombine.high %v782_v48, %v786_v49  ;;  %v16759_v59 = vcombine.low %v782_v48, %v786_v49 }
  0xba   :  { %680 = vmatprep.subr.bf16.mxu1 %v16708_v1  ;;  %v16774_v58 = vcombine.high %v797_v52, %v801_v53  ;;  %v809_v61 = vld [vmem:[#allocation8 + $0x220] sm:$0xff]  ;;  %v16773_v63 = vcombine.low %v797_v52, %v801_v53  ;;  %v798_v1 = vld [vmem:[#allocation8 + $0x1c8] sm:$0xff] }
  0xbb   :  { %v853_v48 = vld [vmem:[#allocation8 + $0x380] sm:$0xff]  ;;  %v854_v53 = vld [vmem:[#allocation8 + $0x388] sm:$0xff] }
  0xbc   :  { %640 = vmatpush1.bf16.msra.mxu0 %v16705_v57  ;;  %v794_v57 = vld [vmem:[#allocation8 + $0x1a8] sm:$0xff]  ;;  %v857_v49 = vld [vmem:[#allocation8 + $0x3a0] sm:$0xff] }
  0xbd   :  { %641 = vmatprep.subr.bf16.mxu0 %v16714_v60  ;;  %681 = vmatpush1.bf16.msra.mxu1 %v16707_v7  ;;  %v805_v60 = vld [vmem:[#allocation8 + $0x200] sm:$0xff]  ;;  %v16768_v62 = vcombine.high %v790_v56, %v794_v57  ;;  %v16767_v4 = vcombine.low %v790_v56, %v794_v57 }
  0xbe   :  { %682 = vmatprep.subr.bf16.mxu1 %v16716_v10  ;;  %v16782_v3 = vcombine.high %v805_v60, %v809_v61  ;;  %v817_v7 = vld [vmem:[#allocation8 + $0x260] sm:$0xff]  ;;  %v16781_v9 = vcombine.low %v805_v60, %v809_v61  ;;  %v806_v10 = vld [vmem:[#allocation8 + $0x208] sm:$0xff] }
  0xbf   :  { %v861_v56 = vld [vmem:[#allocation8 + $0x3c0] sm:$0xff]  ;;  %v862_v61 = vld [vmem:[#allocation8 + $0x3c8] sm:$0xff] }
  0xc0   :  { %642 = vmatpush1.bf16.msra.mxu0 %v16713_v2  ;;  %v802_v2 = vld [vmem:[#allocation8 + $0x1e8] sm:$0xff]  ;;  %v865_v57 = vld [vmem:[#allocation8 + $0x3e0] sm:$0xff] }
  0xc1   :  { %3855 = vmatprep.subr.bf16.mxu0 %v16718_v5  ;;  %683 = vmatpush1.bf16.msra.mxu1 %v16715_v15  ;;  %v813_v5 = vld [vmem:[#allocation8 + $0x240] sm:$0xff]  ;;  %v16776_v8 = vcombine.high %v798_v1, %v802_v2  ;;  %v16775_v13 = vcombine.low %v798_v1, %v802_v2 }
  0xc2   :  { %4019 = vmatprep.subr.bf16.mxu1 %v16720_v18  ;;  %v16790_v12 = vcombine.high %v813_v5, %v817_v7  ;;  %v825_v15 = vld [vmem:[#allocation8 + $0x2a0] sm:$0xff]  ;;  %v16789_v17 = vcombine.low %v813_v5, %v817_v7  ;;  %v814_v18 = vld [vmem:[#allocation8 + $0x248] sm:$0xff] }
  0xc3   :  { %660 = vmatmul.mubr.bf16.vlgmr.msra.gmra.mrb[4].mxu0 %v19552_v6  ;;  %v19560_v1 = vld [vmem:[#allocation8 + $0x400] sm:$0xff]  ;;  %v874_v5 = vld [vmem:[#allocation8 + $0x428] sm:$0xff] }
  0xc4   :  { %3856 = vmatpush1.bf16.msra.mxu0 %v16717_v11  ;;  %701 = vmatmul.mubr.bf16.vlgmr.msra.gmra.mrb[4].mxu1 %v19552_v6  ;;  %v16744_v6 = vcombine.high %v766_v32, %v770_v33  ;;  %v810_v11 = vld [vmem:[#allocation8 + $0x228] sm:$0xff]  ;;  %v19562_v2 = vld [vmem:[#allocation8 + $0x420] sm:$0xff] }
  0xc5   :  { %3857 = vmatprep.subr.bf16.mxu0 %v16726_v14  ;;  %4020 = vmatpush1.bf16.msra.mxu1 %v16719_v23  ;;  %v821_v14 = vld [vmem:[#allocation8 + $0x280] sm:$0xff]  ;;  %v16784_v16 = vcombine.high %v806_v10, %v810_v11  ;;  %v16783_v21 = vcombine.low %v806_v10, %v810_v11 }
  0xc6   :  { %4021 = vmatprep.subr.bf16.mxu1 %v16728_v26  ;;  %v16798_v20 = vcombine.high %v821_v14, %v825_v15  ;;  %v833_v23 = vld [vmem:[#allocation8 + $0x2e0] sm:$0xff]  ;;  %v16797_v25 = vcombine.low %v821_v14, %v825_v15  ;;  %v822_v26 = vld [vmem:[#allocation8 + $0x288] sm:$0xff] }
  0xc8   :  { %3858 = vmatpush1.bf16.msra.mxu0 %v16725_v19  ;;  %v818_v19 = vld [vmem:[#allocation8 + $0x268] sm:$0xff] }
  0xc9   :  { %3859 = vmatprep.subr.bf16.mxu0 %v16734_v22  ;;  %4022 = vmatpush1.bf16.msra.mxu1 %v16727_v31  ;;  %v829_v22 = vld [vmem:[#allocation8 + $0x2c0] sm:$0xff]  ;;  %v16792_v24 = vcombine.high %v814_v18, %v818_v19  ;;  %v16791_v29 = vcombine.low %v814_v18, %v818_v19 }
  0xca   :  { %4023 = vmatprep.subr.bf16.mxu1 %v16736_v34  ;;  %v16806_v28 = vcombine.high %v829_v22, %v833_v23  ;;  %v841_v31 = vld [vmem:[#allocation8 + $0x320] sm:$0xff]  ;;  %v16805_v33 = vcombine.low %v829_v22, %v833_v23  ;;  %v830_v34 = vld [vmem:[#allocation8 + $0x2c8] sm:$0xff] }
  0xcc   :  { %3860 = vmatpush1.bf16.msra.mxu0 %v16733_v27  ;;  %v826_v27 = vld [vmem:[#allocation8 + $0x2a8] sm:$0xff] }
  0xcd   :  { %3861 = vmatprep.subr.bf16.mxu0 %v16742_v30  ;;  %4024 = vmatpush1.bf16.msra.mxu1 %v16735_v39  ;;  %v837_v30 = vld [vmem:[#allocation8 + $0x300] sm:$0xff]  ;;  %v16800_v32 = vcombine.high %v822_v26, %v826_v27  ;;  %v16799_v37 = vcombine.low %v822_v26, %v826_v27 }
  0xce   :  { %4025 = vmatprep.subr.bf16.mxu1 %v16744_v6  ;;  %v16814_v36 = vcombine.high %v837_v30, %v841_v31  ;;  %v849_v39 = vld [vmem:[#allocation8 + $0x360] sm:$0xff]  ;;  %v16813_v41 = vcombine.low %v837_v30, %v841_v31  ;;  %v838_v6 = vld [vmem:[#allocation8 + $0x308] sm:$0xff] }
  0xd0   :  { %3862 = vmatpush1.bf16.msra.mxu0 %v16741_v35  ;;  %v834_v35 = vld [vmem:[#allocation8 + $0x2e8] sm:$0xff] }
  0xd1   :  { %3863 = vmatprep.subr.bf16.mxu0 %v16750_v38  ;;  %4026 = vmatpush1.bf16.msra.mxu1 %v16743_v45  ;;  %v845_v38 = vld [vmem:[#allocation8 + $0x340] sm:$0xff]  ;;  %v16808_v40 = vcombine.high %v830_v34, %v834_v35  ;;  %v16807_v44 = vcombine.low %v830_v34, %v834_v35  ;;  %v846_v45 = vld [vmem:[#allocation8 + $0x348] sm:$0xff] }
  0xd2   :  { %4027 = vmatprep.subr.bf16.mxu1 %v16752_v46  ;;  %v16822_v43 = vcombine.high %v845_v38, %v849_v39  ;;  %v16821_v46 = vcombine.low %v845_v38, %v849_v39  ;;  %v882_v34 = vld [vmem:[#allocation8 + $0x468] sm:$0xff] }
  0xd4   :  { %3864 = vmatpush1.bf16.msra.mxu0 %v16749_v42  ;;  %v842_v42 = vld [vmem:[#allocation8 + $0x328] sm:$0xff] }
  0xd5   :  { %3865 = vmatprep.subr.bf16.mxu0 %v16758_v0  ;;  %4028 = vmatpush1.bf16.msra.mxu1 %v16751_v51  ;;  %v16816_v0 = vcombine.high %v838_v6, %v842_v42  ;;  %v16815_v51 = vcombine.low %v838_v6, %v842_v42  ;;  %v885_v6 = vld [vmem:[#allocation8 + $0x480] sm:$0xff] }
  0xd6   :  { %4029 = vmatprep.subr.bf16.mxu1 %v16760_v54  ;;  %v16829_v54 = vcombine.low %v853_v48, %v857_v49 }
  0xd8   :  { %3866 = vmatpush1.bf16.msra.mxu0 %v16757_v47  ;;  %v850_v47 = vld [vmem:[#allocation8 + $0x368] sm:$0xff] }
  0xd9   :  { %3867 = vmatprep.subr.bf16.mxu0 %v16766_v50  ;;  %4030 = vmatpush1.bf16.msra.mxu1 %v16759_v59  ;;  %v16830_v50 = vcombine.high %v853_v48, %v857_v49  ;;  %v16824_v52 = vcombine.high %v846_v45, %v850_v47  ;;  %v16823_v59 = vcombine.low %v846_v45, %v850_v47  ;;  %v890_v45 = vld [vmem:[#allocation8 + $0x4a8] sm:$0xff] }
  0xda   :  { %4031 = vmatprep.subr.bf16.mxu1 %v16768_v62  ;;  %v866_v62 = vld [vmem:[#allocation8 + $0x3e8] sm:$0xff] }
  0xdb   :  { %v16840_v10 = vcombine.high %v862_v61, %v866_v62  ;;  %v16839_v11 = vcombine.low %v862_v61, %v866_v62  ;;  %v901_v62 = vld [vmem:[#allocation8 + $0x500] sm:$0xff] }
  0xdc   :  { %3868 = vmatpush1.bf16.msra.mxu0 %v16765_v55  ;;  %v858_v55 = vld [vmem:[#allocation8 + $0x3a8] sm:$0xff] }
  0xdd   :  { %3869 = vmatprep.subr.bf16.mxu0 %v16774_v58  ;;  %4032 = vmatpush1.bf16.msra.mxu1 %v16767_v4  ;;  %v16838_v58 = vcombine.high %v861_v56, %v865_v57  ;;  %v16832_v60 = vcombine.high %v854_v53, %v858_v55  ;;  %v16846_v4 = vcombine.high %v19560_v1, %v19562_v2 }
  0xde   :  { %4033 = vmatprep.subr.bf16.mxu1 %v16776_v8  ;;  %v16831_v7 = vcombine.low %v854_v53, %v858_v55  ;;  %v16845_v8 = vcombine.low %v19560_v1, %v19562_v2  ;;  %v894_v55 = vld [vmem:[#allocation8 + $0x4c8] sm:$0xff] }
  0xdf   :  { %v902_v1 = vld [vmem:[#allocation8 + $0x508] sm:$0xff] }
  0xe0   :  { %3870 = vmatpush1.bf16.msra.mxu0 %v16773_v63  ;;  %v16837_v63 = vcombine.low %v861_v56, %v865_v57  ;;  %v898_v56 = vld [vmem:[#allocation8 + $0x4e8] sm:$0xff] }
  0xe1   :  { %3871 = vmatprep.subr.bf16.mxu0 %v16782_v3  ;;  %4034 = vmatpush1.bf16.msra.mxu1 %v16775_v13  ;;  %v19564_v3 = vld [vmem:[#allocation8 + $0x408] sm:$0xff]  ;;  %v185_v13 = vlaneseq  ;;  %v16872_v61 = vcombine.high %v894_v55, %v898_v56 }
  0xe2   :  { %4035 = vmatprep.subr.bf16.mxu1 %v16784_v16  ;;  %v19577_v16 = vld [vmem:[#allocation7] sm:$0xff]  ;;  %v906_v2 = vld [vmem:[#allocation8 + $0x528] sm:$0xff] }
  0xe3   :  { %v19572_v14 = vshrl.u32 %v185_v13, 7  ;;  %v16879_v13 = vcombine.low %v902_v1, %v906_v2 }
  0xe4   :  { %3872 = vmatpush1.bf16.msra.mxu0 %v16781_v9  ;;  %v16847_v9 = vcombine.low %v19564_v3, %v874_v5 }
  0xe5   :  { %3873 = vmatprep.subr.bf16.mxu0 %v16790_v12  ;;  %4036 = vmatpush1.bf16.msra.mxu1 %v16783_v21  ;;  %v16848_v12 = vcombine.high %v19564_v3, %v874_v5  ;;  %v19575_v15 = vsub.s32 0, %v19572_v14  ;;  %v19587_v21 = vsub.s32 3, %v19572_v14 }
  0xe6   :  { %4037 = vmatprep.subr.bf16.mxu1 %v16792_v24 }
  0xe7   :  { %v188_v18 = vrot.slane %v19577_v16, %v19575_v15  ;;  %v200_v30 = vrot.slane %v19577_v16, %v19587_v21 }
  0xe8   :  { %3874 = vmatpush1.bf16.msra.mxu0 %v16789_v17  ;;  %v19580_v17 = vsub.s32 1, %v19572_v14 }
  0xe9   :  { %3875 = vmatprep.subr.bf16.mxu0 %v16798_v20  ;;  %4038 = vmatpush1.bf16.msra.mxu1 %v16791_v29  ;;  %v877_v29 = vld [vmem:[#allocation8 + $0x440] sm:$0xff] }
  0xea   :  { %4039 = vmatprep.subr.bf16.mxu1 %v16800_v32  ;;  %v192_v19 = vrot.slane %v19577_v16, %v19580_v17  ;;  %v881_v32 = vld [vmem:[#allocation8 + $0x460] sm:$0xff] }
  0xeb   :  { %v16853_v48 = vcombine.low %v877_v29, %v881_v32 }
  0xec   :  { %3876 = vmatpush1.bf16.msra.mxu0 %v16797_v25 }
  0xed   :  { %3877 = vmatprep.subr.bf16.mxu0 %v16806_v28  ;;  %4040 = vmatpush1.bf16.msra.mxu1 %v16799_v37 }
  0xee   :  { %4041 = vmatprep.subr.bf16.mxu1 %v16808_v40  ;;  %v16854_v40 = vcombine.high %v877_v29, %v881_v32  ;;  %v925_v29 = vld [vmem:[#allocation8 + $0x5c0] sm:$0xff]  ;;  %v930_v32 = vld [vmem:[#allocation8 + $0x5e8] sm:$0xff] }
  0xf0   :  { %3878 = vmatpush1.bf16.msra.mxu0 %v16805_v33  ;;  %v878_v33 = vld [vmem:[#allocation8 + $0x448] sm:$0xff] }
  0xf1   :  { %3879 = vmatprep.subr.bf16.mxu0 %v16814_v36  ;;  %4042 = vmatpush1.bf16.msra.mxu1 %v16807_v44  ;;  %v889_v44 = vld [vmem:[#allocation8 + $0x4a0] sm:$0xff]  ;;  %v16855_v49 = vcombine.low %v878_v33, %v882_v34 }
  0xf2   :  { %4043 = vmatprep.subr.bf16.mxu1 %v16816_v0  ;;  %v886_v0 = vld [vmem:[#allocation8 + $0x488] sm:$0xff] }
  0xf4   :  { %3880 = vmatpush1.bf16.msra.mxu0 %v16813_v41  ;;  %v16856_v41 = vcombine.high %v878_v33, %v882_v34 }
  0xf5   :  { %3881 = vmatprep.subr.bf16.mxu0 %v16822_v43  ;;  %4044 = vmatpush1.bf16.msra.mxu1 %v16815_v51  ;;  %v16864_v51 = vcombine.high %v886_v0, %v890_v45 }
  0xf6   :  { %4045 = vmatprep.subr.bf16.mxu1 %v16824_v52  ;;  %v893_v52 = vld [vmem:[#allocation8 + $0x4c0] sm:$0xff] }
  0xf8   :  { %3882 = vmatpush1.bf16.msra.mxu0 %v16821_v46 }
  0xf9   :  { %3883 = vmatprep.subr.bf16.mxu0 %v16830_v50  ;;  %4046 = vmatpush1.bf16.msra.mxu1 %v16823_v59  ;;  %v16862_v50 = vcombine.high %v885_v6, %v889_v44  ;;  %v16863_v59 = vcombine.low %v886_v0, %v890_v45 }
  0xfa   :  { %4047 = vmatprep.subr.bf16.mxu1 %v16832_v60 }
  0xfc   :  { %3884 = vmatpush1.bf16.msra.mxu0 %v16829_v54  ;;  %v897_v54 = vld [vmem:[#allocation8 + $0x4e0] sm:$0xff] }
  0xfd   :  { %3885 = vmatprep.subr.bf16.mxu0 %v16838_v58  ;;  %4048 = vmatpush1.bf16.msra.mxu1 %v16831_v7  ;;  %v16861_v58 = vcombine.low %v885_v6, %v889_v44  ;;  %v16870_v60 = vcombine.high %v893_v52, %v897_v54  ;;  %v16869_v3 = vcombine.low %v893_v52, %v897_v54  ;;  %v937_v6 = vld [vmem:[#allocation8 + $0x620] sm:$0xff]  ;;  %v942_v52 = vld [vmem:[#allocation8 + $0x648] sm:$0xff] }
  0xfe   :  { %4049 = vmatprep.subr.bf16.mxu1 %v16840_v10  ;;  %v16880_v7 = vcombine.high %v902_v1, %v906_v2  ;;  %v910_v10 = vld [vmem:[#allocation8 + $0x548] sm:$0xff] }
 0x100   :  { %3886 = vmatpush1.bf16.msra.mxu0 %v16837_v63  ;;  %v905_v63 = vld [vmem:[#allocation8 + $0x520] sm:$0xff] }
 0x101   :  { %3896 = vmatprep.subr.bf16.mxu0 %v16846_v4  ;;  %4050 = vmatpush1.bf16.msra.mxu1 %v16839_v11  ;;  %v16871_v4 = vcombine.low %v894_v55, %v898_v56  ;;  %v16878_v5 = vcombine.high %v901_v62, %v905_v63  ;;  %v914_v11 = vld [vmem:[#allocation8 + $0x568] sm:$0xff] }
 0x102   :  { %4060 = vmatprep.subr.bf16.mxu1 %v16848_v12  ;;  %v16877_v12 = vcombine.low %v901_v62, %v905_v63  ;;  %v954_v62 = vld [vmem:[#allocation8 + $0x6a8] sm:$0xff] }
 0x176   :  { %v579_v20 = vpop.f32.mrb[0].mxu0  ;;  %v19591_v36 = vpop.f32.mrb[0].mxu1 }
 0x177   :  { %v580_v22 = vadd.f32 %v579_v20, %v188_v18  ;;  %v581_v23 = vpop.f32.mrb[1].mxu0  ;;  %v622_v38 = vpop.f32.mrb[1].mxu1  ;;  %v917_v20 = vld [vmem:[#allocation8 + $0x580] sm:$0xff] }
 0x178   :  { %v582_v24 = vadd.f32 %v581_v23, %v192_v19  ;;  %v583_v25 = vpop.f32.mrb[2].mxu0  ;;  %v623_v42 = vadd.f32 %v622_v38, %v200_v30  ;;  %v624_v43 = vpop.f32.mrb[2].mxu1  ;;  %v16888_v19 = vcombine.high %v910_v10, %v914_v11  ;;  %v918_v23 = vld [vmem:[#allocation8 + $0x588] sm:$0xff]  ;;  %v929_v30 = vld [vmem:[#allocation8 + $0x5e0] sm:$0xff] }
 0x179   :  { %vm709_vm0 = vcmp.gt.f32.partialorder %v580_v22, 0.0  ;;  %v717_v26 = vmul.f32 0.2, %v580_v22  ;;  %v584_v27 = vpop.f32.mrb[3].mxu0  ;;  %v625_v46 = vpop.f32.mrb[3].mxu1  ;;  %v938_v43 = vld [vmem:[#allocation8 + $0x628] sm:$0xff]  ;;  %v16901_v45 = vcombine.low %v925_v29, %v929_v30 }
 0x17a   :  { %vm710_vm1 = vcmp.gt.f32.partialorder %v582_v24, 0.0  ;;  %v718_v28 = vmul.f32 0.2, %v582_v24  ;;  %vm712_vm2 = vcmp.gt.f32.partialorder %v623_v42, 0.0  ;;  %v720_v47 = vmul.f32 0.2, %v623_v42 }
 0x17b   :  { %v725_v31 = vsel %vm709_vm0, %v580_v22, %v717_v26  ;;  %v921_v22 = vld [vmem:[#allocation8 + $0x5a0] sm:$0xff]  ;;  %v16887_v26 = vcombine.low %v910_v10, %v914_v11 }
 0x17c   :  { %v726_v35 = vsel %vm710_vm1, %v582_v24, %v718_v28  ;;  %v19595_v39 = vpack.c.bf16 %v725_v31, %v725_v31  ;;  %v728_v53 = vsel %vm712_vm2, %v623_v42, %v720_v47  ;;  %v922_v24 = vld [vmem:[#allocation8 + $0x5a8] sm:$0xff]  ;;  %v16894_v27 = vcombine.high %v917_v20, %v921_v22 }
 0x17d   :  { %v19593_v37 = vpack.c.bf16 %v726_v35, %v726_v35  ;;  %v19601_v57 = vpack.c.bf16 %v728_v53, %v728_v53  ;;  %v16896_v28 = vcombine.high %v918_v23, %v922_v24  ;;  %v926_v31 = vld [vmem:[#allocation8 + $0x5c8] sm:$0xff]  ;;  %v16893_v33 = vcombine.low %v917_v20, %v921_v22 }
 0x17e   :  { %v16895_v34 = vcombine.low %v918_v23, %v922_v24  ;;  %v16902_v35 = vcombine.high %v925_v29, %v929_v30  ;;  %v16904_v38 = vcombine.high %v926_v31, %v930_v32  ;;  %v934_v42 = vld [vmem:[#allocation8 + $0x608] sm:$0xff]  ;;  %v16903_v46 = vcombine.low %v926_v31, %v930_v32 }
 0x17f   :  { %3887 = vmatprep.mubr.bf16.mxu0 %v19593_v37  ;;  %4051 = vmatprep.mubr.bf16.mxu1 %v19593_v37  ;;  %v946_v53 = vld [vmem:[#allocation8 + $0x668] sm:$0xff]  ;;  %v16911_v55 = vcombine.low %v934_v42, %v938_v43  ;;  %v19613_v31 = vsub.s32 5, %v19572_v14 }
 0x180   :  { %3888 = vmatmul.mubr.bf16.vlgmr.msra.gmra.mrb[8].mxu0 %v19595_v39  ;;  %4052 = vmatmul.mubr.bf16.vlgmr.msra.gmra.mrb[8].mxu1 %v19595_v39  ;;  %v16919_v1 = vcombine.low %v942_v52, %v946_v53  ;;  %v970_v20 = vld [vmem:[#allocation8 + $0x728] sm:$0xff] }
 0x181   :  { %3897 = vmatpush1.bf16.msra.mxu0 %v16845_v8  ;;  %4061 = vmatpush1.bf16.msra.mxu1 %v16847_v9  ;;  %v909_v8 = vld [vmem:[#allocation8 + $0x540] sm:$0xff]  ;;  %v974_v29 = vld [vmem:[#allocation8 + $0x748] sm:$0xff] }
 0x182   :  { %3898 = vmatprep.subr.bf16.mxu0 %v16854_v40  ;;  %4062 = vmatprep.subr.bf16.mxu1 %v16856_v41  ;;  %v913_v9 = vld [vmem:[#allocation8 + $0x560] sm:$0xff]  ;;  %v978_v30 = vld [vmem:[#allocation8 + $0x768] sm:$0xff] }
 0x183   :  { %3928 = vmatprep.mubr.bf16.mxu0 %v19601_v57  ;;  %4092 = vmatprep.mubr.bf16.mxu1 %v19601_v57  ;;  %v16886_v18 = vcombine.high %v909_v8, %v913_v9  ;;  %v16885_v25 = vcombine.low %v909_v8, %v913_v9  ;;  %v933_v40 = vld [vmem:[#allocation8 + $0x600] sm:$0xff]  ;;  %v962_v8 = vld [vmem:[#allocation8 + $0x6e8] sm:$0xff] }
 0x184   :  { %v16909_v54 = vcombine.low %v933_v40, %v937_v6 }
 0x185   :  { %3899 = vmatpush1.bf16.msra.mxu0 %v16853_v48  ;;  %4063 = vmatpush1.bf16.msra.mxu1 %v16855_v49  ;;  %v16910_v48 = vcombine.high %v933_v40, %v937_v6  ;;  %v16912_v49 = vcombine.high %v934_v42, %v938_v43  ;;  %v985_v6 = vld [vmem:[#allocation8 + $0x7a0] sm:$0xff]  ;;  %v982_v42 = vld [vmem:[#allocation8 + $0x788] sm:$0xff] }
 0x186   :  { %3900 = vmatprep.subr.bf16.mxu0 %v16862_v50  ;;  %4064 = vmatprep.subr.bf16.mxu1 %v16864_v51  ;;  %v941_v50 = vld [vmem:[#allocation8 + $0x640] sm:$0xff]  ;;  %v986_v43 = vld [vmem:[#allocation8 + $0x7a8] sm:$0xff] }
 0x187   :  { %v945_v51 = vld [vmem:[#allocation8 + $0x660] sm:$0xff] }
 0x188   :  { %v16918_v56 = vcombine.high %v941_v50, %v945_v51  ;;  %v16917_v63 = vcombine.low %v941_v50, %v945_v51  ;;  %v989_v50 = vld [vmem:[#allocation8 + $0x7c0] sm:$0xff] }
 0x189   :  { %3901 = vmatpush1.bf16.msra.mxu0 %v16861_v58  ;;  %4065 = vmatpush1.bf16.msra.mxu1 %v16863_v59  ;;  %v16920_v58 = vcombine.high %v942_v52, %v946_v53  ;;  %v949_v59 = vld [vmem:[#allocation8 + $0x680] sm:$0xff] }
 0x18a   :  { %3902 = vmatprep.subr.bf16.mxu0 %v16870_v60  ;;  %4066 = vmatprep.subr.bf16.mxu1 %v16872_v61  ;;  %v953_v60 = vld [vmem:[#allocation8 + $0x6a0] sm:$0xff]  ;;  %v950_v61 = vld [vmem:[#allocation8 + $0x688] sm:$0xff] }
 0x18b   :  { %v16926_v2 = vcombine.high %v949_v59, %v953_v60  ;;  %v16925_v9 = vcombine.low %v949_v59, %v953_v60  ;;  %v16927_v10 = vcombine.low %v950_v61, %v954_v62  ;;  %v993_v53 = vld [vmem:[#allocation8 + $0x7e0] sm:$0xff] }
 0x18d   :  { %3903 = vmatpush1.bf16.msra.mxu0 %v16869_v3  ;;  %4067 = vmatpush1.bf16.msra.mxu1 %v16871_v4  ;;  %v16928_v3 = vcombine.high %v950_v61, %v954_v62  ;;  %v957_v4 = vld [vmem:[#allocation8 + $0x6c0] sm:$0xff]  ;;  %v16959_v61 = vcombine.low %v982_v42, %v986_v43  ;;  %v16966_v62 = vcombine.high %v989_v50, %v993_v53 }
 0x18e   :  { %3904 = vmatprep.subr.bf16.mxu0 %v16878_v5  ;;  %4068 = vmatprep.subr.bf16.mxu1 %v16880_v7  ;;  %v961_v5 = vld [vmem:[#allocation8 + $0x6e0] sm:$0xff]  ;;  %v958_v7 = vld [vmem:[#allocation8 + $0x6c8] sm:$0xff] }
 0x18f   :  { %v16934_v11 = vcombine.high %v957_v4, %v961_v5  ;;  %v16933_v22 = vcombine.low %v957_v4, %v961_v5  ;;  %v16935_v23 = vcombine.low %v958_v7, %v962_v8  ;;  %v998_v4 = vld [vmem:[#allocation8 + $0x808] sm:$0xff] }
 0x191   :  { %3905 = vmatpush1.bf16.msra.mxu0 %v16877_v12  ;;  %4069 = vmatpush1.bf16.msra.mxu1 %v16879_v13  ;;  %v16936_v12 = vcombine.high %v958_v7, %v962_v8  ;;  %v965_v13 = vld [vmem:[#allocation8 + $0x700] sm:$0xff]  ;;  %v16965_v7 = vcombine.low %v989_v50, %v993_v53  ;;  %v1034_v53 = vld [vmem:[#allocation8 + $0x928] sm:$0xff] }
 0x192   :  { %3906 = vmatprep.subr.bf16.mxu0 %v16886_v18  ;;  %4070 = vmatprep.subr.bf16.mxu1 %v16888_v19  ;;  %v969_v18 = vld [vmem:[#allocation8 + $0x720] sm:$0xff]  ;;  %v966_v19 = vld [vmem:[#allocation8 + $0x708] sm:$0xff] }
 0x193   :  { %v16942_v24 = vcombine.high %v965_v13, %v969_v18  ;;  %v16941_v32 = vcombine.low %v965_v13, %v969_v18  ;;  %v1006_v13 = vld [vmem:[#allocation8 + $0x848] sm:$0xff]  ;;  %v1033_v50 = vld [vmem:[#allocation8 + $0x920] sm:$0xff] }
 0x194   :  { %v1010_v18 = vld [vmem:[#allocation8 + $0x868] sm:$0xff] }
 0x195   :  { %3907 = vmatpush1.bf16.msra.mxu0 %v16885_v25  ;;  %4071 = vmatpush1.bf16.msra.mxu1 %v16887_v26  ;;  %v16944_v25 = vcombine.high %v966_v19, %v970_v20  ;;  %v973_v26 = vld [vmem:[#allocation8 + $0x740] sm:$0xff] }
 0x196   :  { %3908 = vmatprep.subr.bf16.mxu0 %v16894_v27  ;;  %4072 = vmatprep.subr.bf16.mxu1 %v16896_v28  ;;  %v19605_v41 = vpop.f32.mrb[4].mxu0  ;;  %v19610_v27 = vsub.s32 2, %v19572_v14  ;;  %v977_v28 = vld [vmem:[#allocation8 + $0x760] sm:$0xff] }
 0x197   :  { %v19607_v44 = vpop.f32.mrb[5].mxu0 }
 0x198   :  { %v665_v0 = vpop.f32.mrb[6].mxu0  ;;  %v196_v40 = vrot.slane %v19577_v16, %v19610_v27 }
 0x199   :  { %3909 = vmatpush1.bf16.msra.mxu0 %v16893_v33  ;;  %4073 = vmatpush1.bf16.msra.mxu1 %v16895_v34  ;;  %v666_v47 = vpop.f32.mrb[7].mxu0  ;;  %v16943_v33 = vcombine.low %v966_v19, %v970_v20  ;;  %v16950_v34 = vcombine.high %v973_v26, %v977_v28  ;;  %v208_v0 = vrot.slane %v19577_v16, %v19613_v31 }
 0x19a   :  { %3910 = vmatprep.subr.bf16.mxu0 %v16902_v35  ;;  %4074 = vmatprep.subr.bf16.mxu1 %v16904_v38  ;;  %v16952_v35 = vcombine.high %v974_v29, %v978_v30  ;;  %v981_v38 = vld [vmem:[#allocation8 + $0x780] sm:$0xff]  ;;  %v19619_v47 = vpop.f32.mrb[4].mxu1  ;;  %v621_v52 = vadd.f32 %v19591_v36, %v196_v40  ;;  %v1002_v36 = vld [vmem:[#allocation8 + $0x828] sm:$0xff] }
 0x19b   :  { %v19621_v51 = vpop.f32.mrb[5].mxu1  ;;  %v16957_v60 = vcombine.low %v981_v38, %v985_v6  ;;  %v1021_v40 = vld [vmem:[#allocation8 + $0x8c0] sm:$0xff] }
 0x19c   :  { %vm711_vm3 = vcmp.gt.f32.partialorder %v621_v52, 0.0 }
 0x19d   :  { %3911 = vmatpush1.bf16.msra.mxu0 %v16901_v45  ;;  %4075 = vmatpush1.bf16.msra.mxu1 %v16903_v46  ;;  %v16949_v45 = vcombine.low %v973_v26, %v977_v28  ;;  %v16951_v46 = vcombine.low %v974_v29, %v978_v30  ;;  %v1013_v26 = vld [vmem:[#allocation8 + $0x880] sm:$0xff]  ;;  %v1014_v29 = vld [vmem:[#allocation8 + $0x888] sm:$0xff] }
 0x19e   :  { %3912 = vmatprep.subr.bf16.mxu0 %v16910_v48  ;;  %4076 = vmatprep.subr.bf16.mxu1 %v16912_v49  ;;  %v16958_v48 = vcombine.high %v981_v38, %v985_v6  ;;  %v16960_v49 = vcombine.high %v982_v42, %v986_v43  ;;  %v1017_v28 = vld [vmem:[#allocation8 + $0x8a0] sm:$0xff]  ;;  %v1018_v30 = vld [vmem:[#allocation8 + $0x8a8] sm:$0xff] }
 0x19f   :  { %v16992_v38 = vcombine.high %v1014_v29, %v1018_v30  ;;  %v1025_v6 = vld [vmem:[#allocation8 + $0x8e0] sm:$0xff]  ;;  %v1022_v42 = vld [vmem:[#allocation8 + $0x8c8] sm:$0xff] }
 0x1a0   :  { %v1026_v43 = vld [vmem:[#allocation8 + $0x8e8] sm:$0xff] }
 0x1a1   :  { %3913 = vmatpush1.bf16.msra.mxu0 %v16909_v54  ;;  %4077 = vmatpush1.bf16.msra.mxu1 %v16911_v55  ;;  %v990_v54 = vld [vmem:[#allocation8 + $0x7c8] sm:$0xff] }
 0x1a2   :  { %3914 = vmatprep.subr.bf16.mxu0 %v16918_v56  ;;  %4078 = vmatprep.subr.bf16.mxu1 %v16920_v58  ;;  %v994_v55 = vld [vmem:[#allocation8 + $0x7e8] sm:$0xff]  ;;  %v706_v56 = vpop.f32.mrb[6].mxu1  ;;  %v664_v58 = vadd.f32 %v19607_v44, %v208_v0  ;;  %v16989_v0 = vcombine.low %v1013_v26, %v1017_v28 }
 0x1a3   :  { %v707_v59 = vpop.f32.mrb[7].mxu1  ;;  %v16967_v44 = vcombine.low %v990_v54, %v994_v55 }
 0x1a4   :  { %v722_v5 = vmul.f32 0.2, %v664_v58  ;;  %vm714_vm4 = vcmp.gt.f32.partialorder %v664_v58, 0.0  ;;  %v1037_v59 = vld [vmem:[#allocation8 + $0x940] sm:$0xff] }
 0x1a5   :  { %3915 = vmatpush1.bf16.msra.mxu0 %v16917_v63  ;;  %4079 = vmatpush1.bf16.msra.mxu1 %v16919_v1  ;;  %v16968_v63 = vcombine.high %v990_v54, %v994_v55  ;;  %v997_v1 = vld [vmem:[#allocation8 + $0x800] sm:$0xff]  ;;  %v16997_v54 = vcombine.low %v1021_v40, %v1025_v6  ;;  %v16999_v55 = vcombine.low %v1022_v42, %v1026_v43 }
 0x1a6   :  { %3916 = vmatprep.subr.bf16.mxu0 %v16926_v2  ;;  %4080 = vmatprep.subr.bf16.mxu1 %v16928_v3  ;;  %v719_v2 = vmul.f32 0.2, %v621_v52  ;;  %v1001_v3 = vld [vmem:[#allocation8 + $0x820] sm:$0xff]  ;;  %v730_v19 = vsel %vm714_vm4, %v664_v58, %v722_v5  ;;  %v1046_v5 = vld [vmem:[#allocation8 + $0x988] sm:$0xff] }
 0x1a7   :  { %v16974_v8 = vcombine.high %v997_v1, %v1001_v3  ;;  %v16973_v20 = vcombine.low %v997_v1, %v1001_v3 }
 0x1a9   :  { %3917 = vmatpush1.bf16.msra.mxu0 %v16925_v9  ;;  %4081 = vmatpush1.bf16.msra.mxu1 %v16927_v10  ;;  %v16976_v9 = vcombine.high %v998_v4, %v1002_v36  ;;  %v1005_v10 = vld [vmem:[#allocation8 + $0x840] sm:$0xff] }
 0x1aa   :  { %3918 = vmatprep.subr.bf16.mxu0 %v16934_v11  ;;  %4082 = vmatprep.subr.bf16.mxu1 %v16936_v12  ;;  %v727_v11 = vsel %vm711_vm3, %v621_v52, %v719_v2  ;;  %v1009_v12 = vld [vmem:[#allocation8 + $0x860] sm:$0xff]  ;;  %v1030_v52 = vld [vmem:[#allocation8 + $0x908] sm:$0xff] }
 0x1ab   :  { %v17008_v58 = vcombine.high %v1030_v52, %v1034_v53  ;;  %v17007_v1 = vcombine.low %v1030_v52, %v1034_v53  ;;  %v1082_v52 = vld [vmem:[#allocation8 + $0xaa8] sm:$0xff] }
 0x1ad   :  { %3919 = vmatpush1.bf16.msra.mxu0 %v16933_v22  ;;  %4083 = vmatpush1.bf16.msra.mxu1 %v16935_v23  ;;  %v16975_v22 = vcombine.low %v998_v4, %v1002_v36  ;;  %v19625_v23 = vpack.c.bf16 %v727_v11, %v727_v11  ;;  %v1045_v4 = vld [vmem:[#allocation8 + $0x980] sm:$0xff] }
 0x1ae   :  { %3920 = vmatprep.subr.bf16.mxu0 %v16942_v24  ;;  %4084 = vmatprep.subr.bf16.mxu1 %v16944_v25  ;;  %v16982_v24 = vcombine.high %v1005_v10, %v1009_v12  ;;  %v16984_v25 = vcombine.high %v1006_v13, %v1010_v18  ;;  %v1049_v36 = vld [vmem:[#allocation8 + $0x9a0] sm:$0xff] }
 0x1af   :  { %v1053_v11 = vld [vmem:[#allocation8 + $0x9c0] sm:$0xff] }
 0x1b1   :  { %3921 = vmatpush1.bf16.msra.mxu0 %v16941_v32  ;;  %4085 = vmatpush1.bf16.msra.mxu1 %v16943_v33  ;;  %v19627_v32 = vpack.c.bf16 %v730_v19, %v730_v19  ;;  %v16981_v33 = vcombine.low %v1005_v10, %v1009_v12  ;;  %v1057_v12 = vld [vmem:[#allocation8 + $0x9e0] sm:$0xff]  ;;  %v17021_v19 = vcombine.low %v1045_v4, %v1049_v36 }
 0x1b2   :  { %3922 = vmatprep.subr.bf16.mxu0 %v16950_v34  ;;  %4086 = vmatprep.subr.bf16.mxu1 %v16952_v35  ;;  %v16983_v34 = vcombine.low %v1006_v13, %v1010_v18  ;;  %v16990_v35 = vcombine.high %v1013_v26, %v1017_v28  ;;  %v1054_v13 = vld [vmem:[#allocation8 + $0x9c8] sm:$0xff]  ;;  %v1065_v26 = vld [vmem:[#allocation8 + $0xa20] sm:$0xff] }
 0x1b3   :  { %v1058_v18 = vld [vmem:[#allocation8 + $0x9e8] sm:$0xff] }
 0x1b4   :  { %v1062_v28 = vld [vmem:[#allocation8 + $0xa08] sm:$0xff] }
 0x1b5   :  { %3923 = vmatpush1.bf16.msra.mxu0 %v16949_v45  ;;  %4087 = vmatpush1.bf16.msra.mxu1 %v16951_v46  ;;  %v16991_v45 = vcombine.low %v1014_v29, %v1018_v30  ;;  %v16998_v46 = vcombine.high %v1021_v40, %v1025_v6  ;;  %v1066_v29 = vld [vmem:[#allocation8 + $0xa28] sm:$0xff]  ;;  %v17029_v30 = vcombine.low %v1053_v11, %v1057_v12  ;;  %v1073_v40 = vld [vmem:[#allocation8 + $0xa60] sm:$0xff] }
 0x1b6   :  { %3924 = vmatprep.subr.bf16.mxu0 %v16958_v48  ;;  %4088 = vmatprep.subr.bf16.mxu1 %v16960_v49  ;;  %v17000_v48 = vcombine.high %v1022_v42, %v1026_v43  ;;  %v1029_v49 = vld [vmem:[#allocation8 + $0x900] sm:$0xff]  ;;  %v1070_v6 = vld [vmem:[#allocation8 + $0xa48] sm:$0xff] }
 0x1b7   :  { %v17006_v56 = vcombine.high %v1029_v49, %v1033_v50  ;;  %v1074_v42 = vld [vmem:[#allocation8 + $0xa68] sm:$0xff] }
 0x1b9   :  { %3925 = vmatpush1.bf16.msra.mxu0 %v16957_v60  ;;  %4089 = vmatpush1.bf16.msra.mxu1 %v16959_v61  ;;  %v1041_v60 = vld [vmem:[#allocation8 + $0x960] sm:$0xff]  ;;  %v1038_v61 = vld [vmem:[#allocation8 + $0x948] sm:$0xff] }
 0x1ba   :  { %3926 = vmatprep.subr.bf16.mxu0 %v16966_v62  ;;  %4090 = vmatprep.subr.bf16.mxu1 %v16968_v63  ;;  %v1042_v62 = vld [vmem:[#allocation8 + $0x968] sm:$0xff]  ;;  %v17005_v63 = vcombine.low %v1029_v49, %v1033_v50  ;;  %v17014_v2 = vcombine.high %v1037_v59, %v1041_v60  ;;  %v1081_v49 = vld [vmem:[#allocation8 + $0xaa0] sm:$0xff] }
 0x1bb   :  { %v17016_v3 = vcombine.high %v1038_v61, %v1042_v62  ;;  %v1078_v50 = vld [vmem:[#allocation8 + $0xa88] sm:$0xff] }
 0x1bd   :  { %3927 = vmatpush1.bf16.msra.mxu0 %v16965_v7  ;;  %4091 = vmatpush1.bf16.msra.mxu1 %v16967_v44  ;;  %v1050_v7 = vld [vmem:[#allocation8 + $0x9a8] sm:$0xff]  ;;  %v17013_v44 = vcombine.low %v1037_v59, %v1041_v60  ;;  %v1089_v59 = vld [vmem:[#allocation8 + $0xae0] sm:$0xff] }
 0x1be   :  { %3937 = vmatprep.subr.bf16.mxu0 %v16974_v8  ;;  %4101 = vmatprep.subr.bf16.mxu1 %v16976_v9  ;;  %v17015_v8 = vcombine.low %v1038_v61, %v1042_v62  ;;  %v17022_v9 = vcombine.high %v1045_v4, %v1049_v36  ;;  %v17024_v10 = vcombine.high %v1046_v5, %v1050_v7  ;;  %v1086_v60 = vld [vmem:[#allocation8 + $0xac8] sm:$0xff]  ;;  %v1097_v4 = vld [vmem:[#allocation8 + $0xb20] sm:$0xff] }
 0x1bf   :  { %v1090_v61 = vld [vmem:[#allocation8 + $0xae8] sm:$0xff] }
 0x1c0   :  { %3929 = vmatmul.mubr.bf16.vlgmr.msra.gmra.mrb[8].mxu0 %v19625_v23  ;;  %4093 = vmatmul.mubr.bf16.vlgmr.msra.gmra.mrb[8].mxu1 %v19625_v23  ;;  %v1094_v36 = vld [vmem:[#allocation8 + $0xb08] sm:$0xff] }
 0x1c1   :  { %3938 = vmatpush1.bf16.msra.mxu0 %v16973_v20  ;;  %4102 = vmatpush1.bf16.msra.mxu1 %v16975_v22  ;;  %v17023_v20 = vcombine.low %v1046_v5, %v1050_v7  ;;  %v17030_v22 = vcombine.high %v1053_v11, %v1057_v12  ;;  %v1098_v5 = vld [vmem:[#allocation8 + $0xb28] sm:$0xff]  ;;  %v19634_v11 = vsub.s32 4, %v19572_v14  ;;  %v1105_v12 = vld [vmem:[#allocation8 + $0xb60] sm:$0xff] }
 0x1c2   :  { %3939 = vmatprep.subr.bf16.mxu0 %v16982_v24  ;;  %4103 = vmatprep.subr.bf16.mxu1 %v16984_v25  ;;  %v17032_v24 = vcombine.high %v1054_v13, %v1058_v18  ;;  %v1061_v25 = vld [vmem:[#allocation8 + $0xa00] sm:$0xff] }
 0x1c3   :  { %3969 = vmatprep.mubr.bf16.mxu0 %v19627_v32  ;;  %4133 = vmatprep.mubr.bf16.mxu1 %v19627_v32  ;;  %v17037_v43 = vcombine.low %v1061_v25, %v1065_v26 }
 0x1c5   :  { %3940 = vmatpush1.bf16.msra.mxu0 %v16981_v33  ;;  %4104 = vmatpush1.bf16.msra.mxu1 %v16983_v34  ;;  %v17031_v33 = vcombine.low %v1054_v13, %v1058_v18  ;;  %v17038_v34 = vcombine.high %v1061_v25, %v1065_v26  ;;  %v1102_v13 = vld [vmem:[#allocation8 + $0xb48] sm:$0xff]  ;;  %v1109_v26 = vld [vmem:[#allocation8 + $0xb80] sm:$0xff] }
 0x1c6   :  { %3941 = vmatprep.subr.bf16.mxu0 %v16990_v35  ;;  %4105 = vmatprep.subr.bf16.mxu1 %v16992_v38  ;;  %v17040_v35 = vcombine.high %v1062_v28, %v1066_v29  ;;  %v1069_v38 = vld [vmem:[#allocation8 + $0xa40] sm:$0xff]  ;;  %v1106_v18 = vld [vmem:[#allocation8 + $0xb68] sm:$0xff] }
 0x1c7   :  { %v17045_v53 = vcombine.low %v1069_v38, %v1073_v40  ;;  %v17080_v25 = vcombine.high %v1102_v13, %v1106_v18 }
 0x1c9   :  { %3942 = vmatpush1.bf16.msra.mxu0 %v16989_v0  ;;  %4106 = vmatpush1.bf16.msra.mxu1 %v16991_v45  ;;  %v17039_v0 = vcombine.low %v1062_v28, %v1066_v29  ;;  %v17046_v45 = vcombine.high %v1069_v38, %v1073_v40  ;;  %v204_v28 = vrot.slane %v19577_v16, %v19634_v11  ;;  %v1113_v29 = vld [vmem:[#allocation8 + $0xba0] sm:$0xff] }
 0x1ca   :  { %3943 = vmatprep.subr.bf16.mxu0 %v16998_v46  ;;  %4107 = vmatprep.subr.bf16.mxu1 %v17000_v48  ;;  %v17048_v46 = vcombine.high %v1070_v6, %v1074_v42  ;;  %v1077_v48 = vld [vmem:[#allocation8 + $0xa80] sm:$0xff]  ;;  %v17079_v38 = vcombine.low %v1102_v13, %v1106_v18  ;;  %v17086_v40 = vcombine.high %v1109_v26, %v1113_v29  ;;  %v1146_v13 = vld [vmem:[#allocation8 + $0xca8] sm:$0xff] }
 0x1cb   :  { %v17053_v62 = vcombine.low %v1077_v48, %v1081_v49 }
 0x1cd   :  { %3944 = vmatpush1.bf16.msra.mxu0 %v16997_v54  ;;  %4108 = vmatpush1.bf16.msra.mxu1 %v16999_v55  ;;  %v17047_v54 = vcombine.low %v1070_v6, %v1074_v42  ;;  %v17054_v55 = vcombine.high %v1077_v48, %v1081_v49  ;;  %v1117_v42 = vld [vmem:[#allocation8 + $0xbc0] sm:$0xff]  ;;  %v17085_v49 = vcombine.low %v1109_v26, %v1113_v29  ;;  %v1150_v29 = vld [vmem:[#allocation8 + $0xcc8] sm:$0xff] }
 0x1ce   :  { %3945 = vmatprep.subr.bf16.mxu0 %v17006_v56  ;;  %4109 = vmatprep.subr.bf16.mxu1 %v17008_v58  ;;  %v17056_v56 = vcombine.high %v1078_v50, %v1082_v52  ;;  %v1085_v58 = vld [vmem:[#allocation8 + $0xac0] sm:$0xff] }
 0x1cf   :  { %v17061_v7 = vcombine.low %v1085_v58, %v1089_v59  ;;  %v1149_v26 = vld [vmem:[#allocation8 + $0xcc0] sm:$0xff] }
 0x1d1   :  { %3946 = vmatpush1.bf16.msra.mxu0 %v17005_v63  ;;  %4110 = vmatpush1.bf16.msra.mxu1 %v17007_v1  ;;  %v17055_v63 = vcombine.low %v1078_v50, %v1082_v52  ;;  %v17062_v1 = vcombine.high %v1085_v58, %v1089_v59  ;;  %v1130_v58 = vld [vmem:[#allocation8 + $0xc28] sm:$0xff] }
 0x1d2   :  { %3947 = vmatprep.subr.bf16.mxu0 %v17014_v2  ;;  %4111 = vmatprep.subr.bf16.mxu1 %v17016_v3  ;;  %v17064_v2 = vcombine.high %v1086_v60, %v1090_v61  ;;  %v1093_v3 = vld [vmem:[#allocation8 + $0xb00] sm:$0xff] }
 0x1d5   :  { %3948 = vmatpush1.bf16.msra.mxu0 %v17013_v44  ;;  %4112 = vmatpush1.bf16.msra.mxu1 %v17015_v8  ;;  %v17063_v44 = vcombine.low %v1086_v60, %v1090_v61  ;;  %v17070_v8 = vcombine.high %v1093_v3, %v1097_v4 }
 0x1d6   :  { %3949 = vmatprep.subr.bf16.mxu0 %v17022_v9  ;;  %4113 = vmatprep.subr.bf16.mxu1 %v17024_v10  ;;  %v17072_v9 = vcombine.high %v1094_v36, %v1098_v5  ;;  %v1101_v10 = vld [vmem:[#allocation8 + $0xb40] sm:$0xff] }
 0x1d9   :  { %3950 = vmatpush1.bf16.msra.mxu0 %v17021_v19  ;;  %4114 = vmatpush1.bf16.msra.mxu1 %v17023_v20  ;;  %v19637_v19 = vsub.s32 7, %v19572_v14  ;;  %v17069_v20 = vcombine.low %v1093_v3, %v1097_v4  ;;  %v1138_v3 = vld [vmem:[#allocation8 + $0xc68] sm:$0xff] }
 0x1da   :  { %3951 = vmatprep.subr.bf16.mxu0 %v17030_v22  ;;  %4115 = vmatprep.subr.bf16.mxu1 %v17032_v24  ;;  %v17071_v22 = vcombine.low %v1094_v36, %v1098_v5  ;;  %v17078_v24 = vcombine.high %v1101_v10, %v1105_v12 }
 0x1dd   :  { %3952 = vmatpush1.bf16.msra.mxu0 %v17029_v30  ;;  %4116 = vmatpush1.bf16.msra.mxu1 %v17031_v33  ;;  %v1110_v30 = vld [vmem:[#allocation8 + $0xb88] sm:$0xff] }
 0x1de   :  { %3953 = vmatprep.subr.bf16.mxu0 %v17038_v34  ;;  %4117 = vmatprep.subr.bf16.mxu1 %v17040_v35  ;;  %v1114_v33 = vld [vmem:[#allocation8 + $0xba8] sm:$0xff]  ;;  %v216_v34 = vrot.slane %v19577_v16, %v19637_v19  ;;  %v17077_v35 = vcombine.low %v1101_v10, %v1105_v12  ;;  %v1145_v10 = vld [vmem:[#allocation8 + $0xca0] sm:$0xff] }
 0x1df   :  { %v17088_v6 = vcombine.high %v1110_v30, %v1114_v33  ;;  %v17087_v16 = vcombine.low %v1110_v30, %v1114_v33  ;;  %v1142_v12 = vld [vmem:[#allocation8 + $0xc88] sm:$0xff] }
 0x1e0   :  { %v705_v48 = vadd.f32 %v19621_v51, %v216_v34  ;;  %v1154_v30 = vld [vmem:[#allocation8 + $0xce8] sm:$0xff]  ;;  %v17119_v34 = vcombine.low %v1142_v12, %v1146_v13 }
 0x1e1   :  { %3954 = vmatpush1.bf16.msra.mxu0 %v17037_v43  ;;  %4118 = vmatpush1.bf16.msra.mxu1 %v17039_v0  ;;  %v662_v43 = vadd.f32 %v19605_v41, %v204_v28  ;;  %v1121_v0 = vld [vmem:[#allocation8 + $0xbe0] sm:$0xff] }
 0x1e2   :  { %3955 = vmatprep.subr.bf16.mxu0 %v17046_v45  ;;  %4119 = vmatprep.subr.bf16.mxu1 %v17048_v46  ;;  %v1118_v45 = vld [vmem:[#allocation8 + $0xbc8] sm:$0xff]  ;;  %v17094_v50 = vcombine.high %v1117_v42, %v1121_v0  ;;  %v724_v41 = vmul.f32 0.2, %v705_v48  ;;  %v17093_v59 = vcombine.low %v1117_v42, %v1121_v0  ;;  %vm716_vm6 = vcmp.gt.f32.partialorder %v705_v48, 0.0  ;;  %v1153_v28 = vld [vmem:[#allocation8 + $0xce0] sm:$0xff] }
 0x1e3   :  { %v1122_v46 = vld [vmem:[#allocation8 + $0xbe8] sm:$0xff]  ;;  %vm713_vm5 = vcmp.gt.f32.partialorder %v662_v43, 0.0  ;;  %v17125_v0 = vcombine.low %v1149_v26, %v1153_v28 }
 0x1e4   :  { %v17096_v52 = vcombine.high %v1118_v45, %v1122_v46  ;;  %v17095_v60 = vcombine.low %v1118_v45, %v1122_v46  ;;  %v732_v4 = vsel %vm716_vm6, %v705_v48, %v724_v41  ;;  %v1158_v42 = vld [vmem:[#allocation8 + $0xd08] sm:$0xff]  ;;  %v17127_v45 = vcombine.low %v1150_v29, %v1154_v30  ;;  %v1177_v41 = vld [vmem:[#allocation8 + $0xda0] sm:$0xff] }
 0x1e5   :  { %3956 = vmatpush1.bf16.msra.mxu0 %v17045_v53  ;;  %4120 = vmatpush1.bf16.msra.mxu1 %v17047_v54  ;;  %v1125_v53 = vld [vmem:[#allocation8 + $0xc00] sm:$0xff]  ;;  %v721_v54 = vmul.f32 0.2, %v662_v43  ;;  %v19647_v18 = vpack.c.bf16 %v732_v4, %v732_v4  ;;  %v1186_v4 = vld [vmem:[#allocation8 + $0xde8] sm:$0xff] }
 0x1e6   :  { %3957 = vmatprep.subr.bf16.mxu0 %v17054_v55  ;;  %4121 = vmatprep.subr.bf16.mxu1 %v17056_v56  ;;  %v1129_v55 = vld [vmem:[#allocation8 + $0xc20] sm:$0xff]  ;;  %v1126_v56 = vld [vmem:[#allocation8 + $0xc08] sm:$0xff] }
 0x1e7   :  { %v17102_v51 = vcombine.high %v1125_v53, %v1129_v55  ;;  %v17104_v61 = vcombine.high %v1126_v56, %v1130_v58  ;;  %v17101_v36 = vcombine.low %v1125_v53, %v1129_v55  ;;  %v17103_v5 = vcombine.low %v1126_v56, %v1130_v58  ;;  %v1173_v58 = vld [vmem:[#allocation8 + $0xd80] sm:$0xff] }
 0x1e9   :  { %3958 = vmatpush1.bf16.msra.mxu0 %v17053_v62  ;;  %4122 = vmatpush1.bf16.msra.mxu1 %v17055_v63  ;;  %v1133_v62 = vld [vmem:[#allocation8 + $0xc40] sm:$0xff]  ;;  %v729_v63 = vsel %vm713_vm5, %v662_v43, %v721_v54  ;;  %v1162_v43 = vld [vmem:[#allocation8 + $0xd28] sm:$0xff] }
 0x1ea   :  { %3959 = vmatprep.subr.bf16.mxu0 %v17062_v1  ;;  %4123 = vmatprep.subr.bf16.mxu1 %v17064_v2  ;;  %v1137_v1 = vld [vmem:[#allocation8 + $0xc60] sm:$0xff]  ;;  %v1134_v2 = vld [vmem:[#allocation8 + $0xc48] sm:$0xff]  ;;  %v17136_v48 = vcombine.high %v1158_v42, %v1162_v43  ;;  %v17135_v54 = vcombine.low %v1158_v42, %v1162_v43 }
 0x1eb   :  { %v1206_v42 = vld [vmem:[#allocation8 + $0xe88] sm:$0xff] }
 0x1ec   :  { %v1210_v43 = vld [vmem:[#allocation8 + $0xea8] sm:$0xff] }
 0x1ed   :  { %3960 = vmatpush1.bf16.msra.mxu0 %v17061_v7  ;;  %4124 = vmatpush1.bf16.msra.mxu1 %v17063_v44  ;;  %v19645_v7 = vpack.c.bf16 %v729_v63, %v729_v63  ;;  %v17110_v44 = vcombine.high %v1133_v62, %v1137_v1 }
 0x1ee   :  { %3961 = vmatprep.subr.bf16.mxu0 %v17070_v8  ;;  %4125 = vmatprep.subr.bf16.mxu1 %v17072_v9  ;;  %v17112_v8 = vcombine.high %v1134_v2, %v1138_v3  ;;  %v1141_v9 = vld [vmem:[#allocation8 + $0xc80] sm:$0xff] }
 0x1ef   :  { %v17117_v33 = vcombine.low %v1141_v9, %v1145_v10 }
 0x1f1   :  { %3962 = vmatpush1.bf16.msra.mxu0 %v17069_v20  ;;  %4126 = vmatpush1.bf16.msra.mxu1 %v17071_v22  ;;  %v17109_v20 = vcombine.low %v1133_v62, %v1137_v1  ;;  %v17111_v22 = vcombine.low %v1134_v2, %v1138_v3  ;;  %v17150_v62 = vcombine.high %v1173_v58, %v1177_v41  ;;  %v1181_v1 = vld [vmem:[#allocation8 + $0xdc0] sm:$0xff]  ;;  %v1182_v3 = vld [vmem:[#allocation8 + $0xdc8] sm:$0xff] }
 0x1f2   :  { %3963 = vmatprep.subr.bf16.mxu0 %v17078_v24  ;;  %4127 = vmatprep.subr.bf16.mxu1 %v17080_v25  ;;  %v17118_v24 = vcombine.high %v1141_v9, %v1145_v10  ;;  %v17120_v25 = vcombine.high %v1142_v12, %v1146_v13  ;;  %v1185_v2 = vld [vmem:[#allocation8 + $0xde0] sm:$0xff]  ;;  %v1190_v12 = vld [vmem:[#allocation8 + $0xe08] sm:$0xff] }
 0x1f3   :  { %v1189_v9 = vld [vmem:[#allocation8 + $0xe00] sm:$0xff]  ;;  %v1194_v13 = vld [vmem:[#allocation8 + $0xe28] sm:$0xff] }
 0x1f4   :  { %v1193_v10 = vld [vmem:[#allocation8 + $0xe20] sm:$0xff] }
 0x1f5   :  { %3964 = vmatpush1.bf16.msra.mxu0 %v17077_v35  ;;  %4128 = vmatpush1.bf16.msra.mxu1 %v17079_v38  ;;  %v17126_v35 = vcombine.high %v1149_v26, %v1153_v28  ;;  %v17128_v38 = vcombine.high %v1150_v29, %v1154_v30  ;;  %v1197_v26 = vld [vmem:[#allocation8 + $0xe40] sm:$0xff]  ;;  %v1198_v29 = vld [vmem:[#allocation8 + $0xe48] sm:$0xff] }
 0x1f6   :  { %3965 = vmatprep.subr.bf16.mxu0 %v17086_v40  ;;  %4129 = vmatprep.subr.bf16.mxu1 %v17088_v6  ;;  %v1157_v40 = vld [vmem:[#allocation8 + $0xd00] sm:$0xff]  ;;  %v1202_v30 = vld [vmem:[#allocation8 + $0xe68] sm:$0xff] }
 0x1f7   :  { %v1161_v6 = vld [vmem:[#allocation8 + $0xd20] sm:$0xff] }
 0x1f8   :  { %v17134_v46 = vcombine.high %v1157_v40, %v1161_v6  ;;  %v17133_v53 = vcombine.low %v1157_v40, %v1161_v6  ;;  %v1201_v28 = vld [vmem:[#allocation8 + $0xe60] sm:$0xff] }
 0x1f9   :  { %3966 = vmatpush1.bf16.msra.mxu0 %v17085_v49  ;;  %4130 = vmatpush1.bf16.msra.mxu1 %v17087_v16  ;;  %v1165_v49 = vld [vmem:[#allocation8 + $0xd40] sm:$0xff] }
 0x1fa   :  { %3967 = vmatprep.subr.bf16.mxu0 %v17094_v50  ;;  %4131 = vmatprep.subr.bf16.mxu1 %v17096_v52  ;;  %v1169_v16 = vld [vmem:[#allocation8 + $0xd60] sm:$0xff]  ;;  %v1166_v50 = vld [vmem:[#allocation8 + $0xd48] sm:$0xff] }
 0x1fb   :  { %v1170_v52 = vld [vmem:[#allocation8 + $0xd68] sm:$0xff]  ;;  %v17142_v55 = vcombine.high %v1165_v49, %v1169_v16  ;;  %v1205_v40 = vld [vmem:[#allocation8 + $0xe80] sm:$0xff] }
 0x1fc   :  { %v17144_v56 = vcombine.high %v1166_v50, %v1170_v52  ;;  %v1209_v6 = vld [vmem:[#allocation8 + $0xea0] sm:$0xff] }
 0x1fd   :  { %3968 = vmatpush1.bf16.msra.mxu0 %v17093_v59  ;;  %4132 = vmatpush1.bf16.msra.mxu1 %v17095_v60  ;;  %v1174_v59 = vld [vmem:[#allocation8 + $0xd88] sm:$0xff] }
 0x1fe   :  { %3978 = vmatprep.subr.bf16.mxu0 %v17102_v51  ;;  %4142 = vmatprep.subr.bf16.mxu1 %v17104_v61  ;;  %v1178_v60 = vld [vmem:[#allocation8 + $0xda8] sm:$0xff]  ;;  %v17141_v51 = vcombine.low %v1165_v49, %v1169_v16  ;;  %v17143_v61 = vcombine.low %v1166_v50, %v1170_v52  ;;  %v1213_v49 = vld [vmem:[#allocation8 + $0xec0] sm:$0xff] }
 0x1ff   :  { %v17152_v63 = vcombine.high %v1174_v59, %v1178_v60  ;;  %v1217_v16 = vld [vmem:[#allocation8 + $0xee0] sm:$0xff]  ;;  %v1214_v50 = vld [vmem:[#allocation8 + $0xec8] sm:$0xff] }
 0x200   :  { %3970 = vmatmul.mubr.bf16.vlgmr.msra.gmra.mrb[8].mxu0 %v19645_v7  ;;  %4134 = vmatmul.mubr.bf16.vlgmr.msra.gmra.mrb[8].mxu1 %v19645_v7  ;;  %v1218_v52 = vld [vmem:[#allocation8 + $0xee8] sm:$0xff] }
 0x201   :  { %3979 = vmatpush1.bf16.msra.mxu0 %v17101_v36  ;;  %4143 = vmatpush1.bf16.msra.mxu1 %v17103_v5  ;;  %v17149_v36 = vcombine.low %v1173_v58, %v1177_v41  ;;  %v17151_v5 = vcombine.low %v1174_v59, %v1178_v60  ;;  %v1221_v58 = vld [vmem:[#allocation8 + $0xf00] sm:$0xff]  ;;  %v1222_v59 = vld [vmem:[#allocation8 + $0xf08] sm:$0xff] }
 0x202   :  { %3980 = vmatprep.subr.bf16.mxu0 %v17110_v44  ;;  %4144 = vmatprep.subr.bf16.mxu1 %v17112_v8  ;;  %v17158_v44 = vcombine.high %v1181_v1, %v1185_v2  ;;  %v17160_v8 = vcombine.high %v1182_v3, %v1186_v4  ;;  %v1225_v41 = vld [vmem:[#allocation8 + $0xf20] sm:$0xff]  ;;  %v1226_v60 = vld [vmem:[#allocation8 + $0xf28] sm:$0xff] }
 0x203   :  { %4010 = vmatprep.mubr.bf16.mxu0 %v19647_v18  ;;  %4174 = vmatprep.mubr.bf16.mxu1 %v19647_v18 }
 0x205   :  { %3981 = vmatpush1.bf16.msra.mxu0 %v17109_v20  ;;  %4145 = vmatpush1.bf16.msra.mxu1 %v17111_v22  ;;  %v17157_v20 = vcombine.low %v1181_v1, %v1185_v2  ;;  %v17159_v22 = vcombine.low %v1182_v3, %v1186_v4  ;;  %v1229_v1 = vld [vmem:[#allocation8 + $0xf40] sm:$0xff]  ;;  %v19654_v2 = vsub.s32 6, %v19572_v14  ;;  %v1230_v4 = vld [vmem:[#allocation8 + $0xf48] sm:$0xff] }
 0x206   :  { %3982 = vmatprep.subr.bf16.mxu0 %v17118_v24  ;;  %4146 = vmatprep.subr.bf16.mxu1 %v17120_v25  ;;  %v17166_v24 = vcombine.high %v1189_v9, %v1193_v10  ;;  %v17168_v25 = vcombine.high %v1190_v12, %v1194_v13  ;;  %v1233_v3 = vld [vmem:[#allocation8 + $0xf60] sm:$0xff] }
 0x207   :  { %v17205_v14 = vcombine.low %v1229_v1, %v1233_v3 }
 0x209   :  { %3983 = vmatpush1.bf16.msra.mxu0 %v17117_v33  ;;  %4147 = vmatpush1.bf16.msra.mxu1 %v17119_v34  ;;  %v17165_v33 = vcombine.low %v1189_v9, %v1193_v10  ;;  %v17167_v34 = vcombine.low %v1190_v12, %v1194_v13  ;;  %v1237_v10 = vld [vmem:[#allocation8 + $0xf80] sm:$0xff]  ;;  %v19221_v12 = vld [vmem:[#allocation7] sm:$0xff] }
 0x20a   :  { %3984 = vmatprep.subr.bf16.mxu0 %v17126_v35  ;;  %4148 = vmatprep.subr.bf16.mxu1 %v17128_v38  ;;  %v17174_v35 = vcombine.high %v1197_v26, %v1201_v28  ;;  %v17176_v38 = vcombine.high %v1198_v29, %v1202_v30  ;;  %v212_v13 = vrot.slane %v19221_v12, %v19654_v2 }
 0x20d   :  { %3985 = vmatpush1.bf16.msra.mxu0 %v17125_v0  ;;  %4149 = vmatpush1.bf16.msra.mxu1 %v17127_v45  ;;  %v17173_v0 = vcombine.low %v1197_v26, %v1201_v28  ;;  %v17175_v45 = vcombine.low %v1198_v29, %v1202_v30  ;;  %v1245_v29 = vld [vmem:[#allocation8 + $0xfc0] sm:$0xff]  ;;  %v703_v30 = vadd.f32 %v19619_v47, %v212_v13 }
 0x20e   :  { %3986 = vmatprep.subr.bf16.mxu0 %v17134_v46  ;;  %4150 = vmatprep.subr.bf16.mxu1 %v17136_v48  ;;  %v17182_v46 = vcombine.high %v1205_v40, %v1209_v6  ;;  %v17184_v48 = vcombine.high %v1206_v42, %v1210_v43 }
 0x20f   :  { %vm715_vm7 = vcmp.gt.f32.partialorder %v703_v30, 0.0 }
 0x211   :  { %3987 = vmatpush1.bf16.msra.mxu0 %v17133_v53  ;;  %4151 = vmatpush1.bf16.msra.mxu1 %v17135_v54  ;;  %v17181_v53 = vcombine.low %v1205_v40, %v1209_v6  ;;  %v17183_v54 = vcombine.low %v1206_v42, %v1210_v43  ;;  %v743_v43 = vld [vmem:[#allocation8 + $0x10] sm:$0xff] }
 0x212   :  { %3988 = vmatprep.subr.bf16.mxu0 %v17142_v55  ;;  %4152 = vmatprep.subr.bf16.mxu1 %v17144_v56  ;;  %v17190_v55 = vcombine.high %v1213_v49, %v1217_v16  ;;  %v17192_v56 = vcombine.high %v1214_v50, %v1218_v52 }
 0x215   :  { %3989 = vmatpush1.bf16.msra.mxu0 %v17141_v51  ;;  %4153 = vmatpush1.bf16.msra.mxu1 %v17143_v61  ;;  %v17189_v51 = vcombine.low %v1213_v49, %v1217_v16  ;;  %v17191_v61 = vcombine.low %v1214_v50, %v1218_v52 }
 0x216   :  { %3990 = vmatprep.subr.bf16.mxu0 %v17150_v62  ;;  %4154 = vmatprep.subr.bf16.mxu1 %v17152_v63  ;;  %v17198_v62 = vcombine.high %v1221_v58, %v1225_v41  ;;  %v17200_v63 = vcombine.high %v1222_v59, %v1226_v60 }
 0x219   :  { %3991 = vmatpush1.bf16.msra.mxu0 %v17149_v36  ;;  %4155 = vmatpush1.bf16.msra.mxu1 %v17151_v5  ;;  %v1234_v36 = vld [vmem:[#allocation8 + $0xf68] sm:$0xff]  ;;  %v17197_v5 = vcombine.low %v1221_v58, %v1225_v41 }
 0x21a   :  { %3992 = vmatprep.subr.bf16.mxu0 %v17158_v44  ;;  %4156 = vmatprep.subr.bf16.mxu1 %v17160_v8  ;;  %v17199_v44 = vcombine.low %v1222_v59, %v1226_v60  ;;  %v17206_v8 = vcombine.high %v1229_v1, %v1233_v3  ;;  %v17208_v9 = vcombine.high %v1230_v4, %v1234_v36  ;;  %v764_v1 = vld [vmem:[#allocation8 + $0xb8] sm:$0xff] }
 0x21d   :  { %3993 = vmatpush1.bf16.msra.mxu0 %v17157_v20  ;;  %4157 = vmatpush1.bf16.msra.mxu1 %v17159_v22  ;;  %v1241_v20 = vld [vmem:[#allocation8 + $0xfa0] sm:$0xff]  ;;  %v1238_v22 = vld [vmem:[#allocation8 + $0xf88] sm:$0xff] }
 0x21e   :  { %3994 = vmatprep.subr.bf16.mxu0 %v17166_v24  ;;  %4158 = vmatprep.subr.bf16.mxu1 %v17168_v25  ;;  %v1242_v24 = vld [vmem:[#allocation8 + $0xfa8] sm:$0xff]  ;;  %v17207_v25 = vcombine.low %v1230_v4, %v1234_v36  ;;  %v17214_v26 = vcombine.high %v1237_v10, %v1241_v20 }
 0x21f   :  { %v17216_v28 = vcombine.high %v1238_v22, %v1242_v24  ;;  %v17215_v40 = vcombine.low %v1238_v22, %v1242_v24  ;;  %v775_v24 = vld [vmem:[#allocation8 + $0x110] sm:$0xff] }
 0x221   :  { %3995 = vmatpush1.bf16.msra.mxu0 %v17165_v33  ;;  %4159 = vmatpush1.bf16.msra.mxu1 %v17167_v34  ;;  %v1249_v33 = vld [vmem:[#allocation8 + $0xfe0] sm:$0xff]  ;;  %v1246_v34 = vld [vmem:[#allocation8 + $0xfc8] sm:$0xff] }
 0x222   :  { %3996 = vmatprep.subr.bf16.mxu0 %v17174_v35  ;;  %4160 = vmatprep.subr.bf16.mxu1 %v17176_v38  ;;  %v1250_v35 = vld [vmem:[#allocation8 + $0xfe8] sm:$0xff]  ;;  %v17213_v38 = vcombine.low %v1237_v10, %v1241_v20  ;;  %v17222_v6 = vcombine.high %v1245_v29, %v1249_v33  ;;  %v17221_v47 = vcombine.low %v1245_v29, %v1249_v33  ;;  %v772_v10 = vld [vmem:[#allocation8 + $0xf8] sm:$0xff]  ;;  %v783_v33 = vld [vmem:[#allocation8 + $0x150] sm:$0xff] }
 0x223   :  { %v17224_v42 = vcombine.high %v1246_v34, %v1250_v35  ;;  %v17223_v49 = vcombine.low %v1246_v34, %v1250_v35  ;;  %v787_v34 = vld [vmem:[#allocation8 + $0x170] sm:$0xff]  ;;  %v784_v35 = vld [vmem:[#allocation8 + $0x158] sm:$0xff] }
 0x225   :  { %3997 = vmatpush1.bf16.msra.mxu0 %v17173_v0  ;;  %4161 = vmatpush1.bf16.msra.mxu1 %v17175_v45  ;;  %v723_v0 = vmul.f32 0.2, %v703_v30  ;;  %v747_v45 = vld [vmem:[#allocation8 + $0x30] sm:$0xff] }
 0x226   :  { %3998 = vmatprep.subr.bf16.mxu0 %v17182_v46  ;;  %4162 = vmatprep.subr.bf16.mxu1 %v17184_v48  ;;  %v744_v46 = vld [vmem:[#allocation8 + $0x18] sm:$0xff]  ;;  %v16722_v16 = vcombine.high %v743_v43, %v747_v45  ;;  %v16721_v58 = vcombine.low %v743_v43, %v747_v45  ;;  %v795_v45 = vld [vmem:[#allocation8 + $0x1b0] sm:$0xff] }
 0x227   :  { %v748_v48 = vld [vmem:[#allocation8 + $0x38] sm:$0xff]  ;;  %v731_v52 = vsel %vm715_vm7, %v703_v30, %v723_v0  ;;  %v791_v0 = vld [vmem:[#allocation8 + $0x190] sm:$0xff] }
 0x228   :  { %v16724_v50 = vcombine.high %v744_v46, %v748_v48  ;;  %v19658_v41 = vpack.c.bf16 %v731_v52, %v731_v52  ;;  %v16723_v59 = vcombine.low %v744_v46, %v748_v48  ;;  %v792_v46 = vld [vmem:[#allocation8 + $0x198] sm:$0xff]  ;;  %v799_v52 = vld [vmem:[#allocation8 + $0x1d0] sm:$0xff] }
 0x229   :  { %3999 = vmatpush1.bf16.msra.mxu0 %v17181_v53  ;;  %4163 = vmatpush1.bf16.msra.mxu1 %v17183_v54  ;;  %v751_v53 = vld [vmem:[#allocation8 + $0x50] sm:$0xff]  ;;  %v796_v48 = vld [vmem:[#allocation8 + $0x1b8] sm:$0xff] }
 0x22a   :  { %4000 = vmatprep.subr.bf16.mxu0 %v17190_v55  ;;  %4164 = vmatprep.subr.bf16.mxu1 %v17192_v56  ;;  %v755_v54 = vld [vmem:[#allocation8 + $0x70] sm:$0xff]  ;;  %v752_v55 = vld [vmem:[#allocation8 + $0x58] sm:$0xff] }
 0x22b   :  { %v756_v56 = vld [vmem:[#allocation8 + $0x78] sm:$0xff]  ;;  %v16730_v60 = vcombine.high %v751_v53, %v755_v54  ;;  %v16729_v3 = vcombine.low %v751_v53, %v755_v54  ;;  %v803_v53 = vld [vmem:[#allocation8 + $0x1f0] sm:$0xff] }
 0x22c   :  { %v16731_v4 = vcombine.low %v752_v55, %v756_v56  ;;  %v800_v54 = vld [vmem:[#allocation8 + $0x1d8] sm:$0xff] }
 0x22d   :  { %4001 = vmatpush1.bf16.msra.mxu0 %v17189_v51  ;;  %4165 = vmatpush1.bf16.msra.mxu1 %v17191_v61  ;;  %v16732_v51 = vcombine.high %v752_v55, %v756_v56  ;;  %v759_v61 = vld [vmem:[#allocation8 + $0x90] sm:$0xff]  ;;  %v804_v55 = vld [vmem:[#allocation8 + $0x1f8] sm:$0xff]  ;;  %v16769_v56 = vcombine.low %v791_v0, %v795_v45 }
 0x22e   :  { %4002 = vmatprep.subr.bf16.mxu0 %v17198_v62  ;;  %4166 = vmatprep.subr.bf16.mxu1 %v17200_v63  ;;  %v763_v62 = vld [vmem:[#allocation8 + $0xb0] sm:$0xff]  ;;  %v760_v63 = vld [vmem:[#allocation8 + $0x98] sm:$0xff] }
 0x22f   :  { %v16738_v36 = vcombine.high %v759_v61, %v763_v62  ;;  %v16737_v12 = vcombine.low %v759_v61, %v763_v62  ;;  %v16739_v13 = vcombine.low %v760_v63, %v764_v1  ;;  %v811_v61 = vld [vmem:[#allocation8 + $0x230] sm:$0xff]  ;;  %v808_v62 = vld [vmem:[#allocation8 + $0x218] sm:$0xff] }
 0x231   :  { %4003 = vmatpush1.bf16.msra.mxu0 %v17197_v5  ;;  %4167 = vmatpush1.bf16.msra.mxu1 %v17199_v44  ;;  %v16740_v5 = vcombine.high %v760_v63, %v764_v1  ;;  %v767_v44 = vld [vmem:[#allocation8 + $0xd0] sm:$0xff]  ;;  %v812_v63 = vld [vmem:[#allocation8 + $0x238] sm:$0xff]  ;;  %v16777_v1 = vcombine.low %v799_v52, %v803_v53 }
 0x232   :  { %4004 = vmatprep.subr.bf16.mxu0 %v17206_v8  ;;  %4168 = vmatprep.subr.bf16.mxu1 %v17208_v9  ;;  %v771_v8 = vld [vmem:[#allocation8 + $0xf0] sm:$0xff]  ;;  %v768_v9 = vld [vmem:[#allocation8 + $0xd8] sm:$0xff] }
 0x233   :  { %v16746_v20 = vcombine.high %v767_v44, %v771_v8  ;;  %v16748_v22 = vcombine.high %v768_v9, %v772_v10 }
 0x235   :  { %4005 = vmatpush1.bf16.msra.mxu0 %v17205_v14  ;;  %4169 = vmatpush1.bf16.msra.mxu1 %v17207_v25  ;;  %v779_v14 = vld [vmem:[#allocation8 + $0x130] sm:$0xff]  ;;  %v780_v25 = vld [vmem:[#allocation8 + $0x138] sm:$0xff] }
 0x236   :  { %4006 = vmatprep.subr.bf16.mxu0 %v17214_v26  ;;  %4170 = vmatprep.subr.bf16.mxu1 %v17216_v28  ;;  %v16745_v26 = vcombine.low %v767_v44, %v771_v8  ;;  %v16747_v28 = vcombine.low %v768_v9, %v772_v10  ;;  %v16754_v29 = vcombine.high %v775_v24, %v779_v14  ;;  %v819_v44 = vld [vmem:[#allocation8 + $0x270] sm:$0xff]  ;;  %v816_v8 = vld [vmem:[#allocation8 + $0x258] sm:$0xff] }
 0x237   :  { %v820_v9 = vld [vmem:[#allocation8 + $0x278] sm:$0xff] }
 0x239   :  { %4007 = vmatpush1.bf16.msra.mxu0 %v17213_v38  ;;  %4171 = vmatpush1.bf16.msra.mxu1 %v17215_v40  ;;  %v788_v38 = vld [vmem:[#allocation8 + $0x178] sm:$0xff]  ;;  %v16753_v40 = vcombine.low %v775_v24, %v779_v14  ;;  %v827_v24 = vld [vmem:[#allocation8 + $0x2b0] sm:$0xff] }
 0x23a   :  { %4008 = vmatprep.subr.bf16.mxu0 %v17222_v6  ;;  %4172 = vmatprep.subr.bf16.mxu1 %v17224_v42  ;;  %v16762_v42 = vcombine.high %v783_v33, %v787_v34  ;;  %v16764_v43 = vcombine.high %v784_v35, %v788_v38  ;;  %v824_v14 = vld [vmem:[#allocation8 + $0x298] sm:$0xff] }
 0x23d   :  { %4009 = vmatpush1.bf16.msra.mxu0 %v17221_v47  ;;  %4173 = vmatpush1.bf16.msra.mxu1 %v17223_v49  ;;  %v16761_v47 = vcombine.low %v783_v33, %v787_v34  ;;  %v16763_v49 = vcombine.low %v784_v35, %v788_v38  ;;  %v835_v33 = vld [vmem:[#allocation8 + $0x2f0] sm:$0xff]  ;;  %v832_v34 = vld [vmem:[#allocation8 + $0x2d8] sm:$0xff] }
 0x23e   :  { %4183 = vmatprep.subr.bf16.mxu0 %v16722_v16  ;;  %4347 = vmatprep.subr.bf16.mxu1 %v16724_v50  ;;  %v16770_v16 = vcombine.high %v791_v0, %v795_v45  ;;  %v16772_v50 = vcombine.high %v792_v46, %v796_v48  ;;  %v836_v35 = vld [vmem:[#allocation8 + $0x2f8] sm:$0xff]  ;;  %v843_v0 = vld [vmem:[#allocation8 + $0x330] sm:$0xff] }
 0x23f   :  { %v840_v45 = vld [vmem:[#allocation8 + $0x318] sm:$0xff] }
 0x240   :  { %4011 = vmatmul.mubr.bf16.vlgmr.msra.gmra.mrb[8].mxu0 %v19658_v41  ;;  %4175 = vmatmul.mubr.bf16.vlgmr.msra.gmra.mrb[8].mxu1 %v19658_v41 }
 0x241   :  { %4184 = vmatpush1.bf16.msra.mxu0 %v16721_v58  ;;  %4215 = vmatprep.mubr.bf16.mxu0 %v19593_v37  ;;  %v16771_v58 = vcombine.low %v792_v46, %v796_v48  ;;  %v844_v46 = vld [vmem:[#allocation8 + $0x338] sm:$0xff] }
 0x242   :  { %4348 = vmatpush1.bf16.msra.mxu1 %v16723_v59  ;;  %4379 = vmatprep.mubr.bf16.mxu1 %v19593_v37  ;;  %v776_v37 = vld [vmem:[#allocation8 + $0x118] sm:$0xff]  ;;  %v16778_v59 = vcombine.high %v799_v52, %v803_v53  ;;  %v851_v52 = vld [vmem:[#allocation8 + $0x370] sm:$0xff] }
 0x243   :  { %4185 = vmatprep.subr.bf16.mxu0 %v16730_v60  ;;  %4349 = vmatprep.subr.bf16.mxu1 %v16732_v51  ;;  %v16756_v30 = vcombine.high %v776_v37, %v780_v25  ;;  %v16755_v6 = vcombine.low %v776_v37, %v780_v25  ;;  %v16780_v60 = vcombine.high %v800_v54, %v804_v55  ;;  %v807_v51 = vld [vmem:[#allocation8 + $0x210] sm:$0xff]  ;;  %v828_v37 = vld [vmem:[#allocation8 + $0x2b8] sm:$0xff] }
 0x244   :  { %v16785_v10 = vcombine.low %v807_v51, %v811_v61  ;;  %v848_v53 = vld [vmem:[#allocation8 + $0x358] sm:$0xff] }
 0x245   :  { %4186 = vmatpush1.bf16.msra.mxu0 %v16729_v3  ;;  %v16779_v3 = vcombine.low %v800_v54, %v804_v55  ;;  %v852_v54 = vld [vmem:[#allocation8 + $0x378] sm:$0xff] }
 0x246   :  { %4350 = vmatpush1.bf16.msra.mxu1 %v16731_v4  ;;  %4187 = vmatprep.subr.bf16.mxu0 %v16738_v36  ;;  %v16786_v4 = vcombine.high %v807_v51, %v811_v61  ;;  %v16788_v36 = vcombine.high %v808_v62, %v812_v63  ;;  %v859_v51 = vld [vmem:[#allocation8 + $0x3b0] sm:$0xff]  ;;  %v856_v61 = vld [vmem:[#allocation8 + $0x398] sm:$0xff] }
 0x247   :  { %4351 = vmatprep.subr.bf16.mxu1 %v16740_v5  ;;  %v815_v5 = vld [vmem:[#allocation8 + $0x250] sm:$0xff] }
 0x248   :  { %v16793_v25 = vcombine.low %v815_v5, %v819_v44 }
 0x249   :  { %4188 = vmatpush1.bf16.msra.mxu0 %v16737_v12  ;;  %v16787_v12 = vcombine.low %v808_v62, %v812_v63  ;;  %v860_v62 = vld [vmem:[#allocation8 + $0x3b8] sm:$0xff] }
 0x24a   :  { %4352 = vmatpush1.bf16.msra.mxu1 %v16739_v13  ;;  %4189 = vmatprep.subr.bf16.mxu0 %v16746_v20  ;;  %v16794_v13 = vcombine.high %v815_v5, %v819_v44  ;;  %v16796_v20 = vcombine.high %v816_v8, %v820_v9  ;;  %v867_v5 = vld [vmem:[#allocation8 + $0x3f0] sm:$0xff]  ;;  %v864_v44 = vld [vmem:[#allocation8 + $0x3d8] sm:$0xff] }
 0x24b   :  { %4353 = vmatprep.subr.bf16.mxu1 %v16748_v22  ;;  %v823_v22 = vld [vmem:[#allocation8 + $0x290] sm:$0xff] }
 0x24c   :  { %v16801_v38 = vcombine.low %v823_v22, %v827_v24 }
 0x24d   :  { %4190 = vmatpush1.bf16.msra.mxu0 %v16745_v26  ;;  %v16795_v26 = vcombine.low %v816_v8, %v820_v9  ;;  %v868_v8 = vld [vmem:[#allocation8 + $0x3f8] sm:$0xff] }
 0x24e   :  { %4354 = vmatpush1.bf16.msra.mxu1 %v16747_v28  ;;  %4191 = vmatprep.subr.bf16.mxu0 %v16754_v29  ;;  %v16802_v28 = vcombine.high %v823_v22, %v827_v24  ;;  %v16804_v29 = vcombine.high %v824_v14, %v828_v37  ;;  %v875_v22 = vld [vmem:[#allocation8 + $0x430] sm:$0xff]  ;;  %v872_v24 = vld [vmem:[#allocation8 + $0x418] sm:$0xff] }
 0x24f   :  { %4355 = vmatprep.subr.bf16.mxu1 %v16756_v30  ;;  %v831_v30 = vld [vmem:[#allocation8 + $0x2d0] sm:$0xff] }
 0x250   :  { %v16809_v48 = vcombine.low %v831_v30, %v835_v33 }
 0x251   :  { %4192 = vmatpush1.bf16.msra.mxu0 %v16753_v40  ;;  %v16803_v40 = vcombine.low %v824_v14, %v828_v37  ;;  %v876_v14 = vld [vmem:[#allocation8 + $0x438] sm:$0xff] }
 0x252   :  { %4356 = vmatpush1.bf16.msra.mxu1 %v16755_v6  ;;  %4193 = vmatprep.subr.bf16.mxu0 %v16762_v42  ;;  %v16810_v6 = vcombine.high %v831_v30, %v835_v33  ;;  %v16812_v42 = vcombine.high %v832_v34, %v836_v35  ;;  %v883_v30 = vld [vmem:[#allocation8 + $0x470] sm:$0xff] }
 0x253   :  { %4357 = vmatprep.subr.bf16.mxu1 %v16764_v43  ;;  %v839_v43 = vld [vmem:[#allocation8 + $0x310] sm:$0xff] }
 0x254   :  { %v16817_v55 = vcombine.low %v839_v43, %v843_v0 }
 0x255   :  { %4194 = vmatpush1.bf16.msra.mxu0 %v16761_v47  ;;  %v16811_v47 = vcombine.low %v832_v34, %v836_v35  ;;  %v880_v34 = vld [vmem:[#allocation8 + $0x458] sm:$0xff] }
 0x256   :  { %4358 = vmatpush1.bf16.msra.mxu1 %v16763_v49  ;;  %4195 = vmatprep.subr.bf16.mxu0 %v16770_v16  ;;  %v16818_v49 = vcombine.high %v839_v43, %v843_v0  ;;  %v16820_v16 = vcombine.high %v840_v45, %v844_v46  ;;  %v884_v35 = vld [vmem:[#allocation8 + $0x478] sm:$0xff] }
 0x257   :  { %4359 = vmatprep.subr.bf16.mxu1 %v16772_v50  ;;  %v847_v50 = vld [vmem:[#allocation8 + $0x350] sm:$0xff]  ;;  %v16860_v43 = vcombine.high %v880_v34, %v884_v35  ;;  %v888_v0 = vld [vmem:[#allocation8 + $0x498] sm:$0xff] }
 0x258   :  { %v16825_v63 = vcombine.low %v847_v50, %v851_v52 }
 0x259   :  { %4196 = vmatpush1.bf16.msra.mxu0 %v16769_v56  ;;  %v16819_v56 = vcombine.low %v840_v45, %v844_v46  ;;  %v892_v45 = vld [vmem:[#allocation8 + $0x4b8] sm:$0xff] }
 0x25a   :  { %4360 = vmatpush1.bf16.msra.mxu1 %v16771_v58  ;;  %4197 = vmatprep.subr.bf16.mxu0 %v16778_v59  ;;  %v16826_v58 = vcombine.high %v847_v50, %v851_v52  ;;  %v16828_v59 = vcombine.high %v848_v53, %v852_v54  ;;  %v899_v50 = vld [vmem:[#allocation8 + $0x4f0] sm:$0xff]  ;;  %v896_v52 = vld [vmem:[#allocation8 + $0x4d8] sm:$0xff] }
 0x25b   :  { %4361 = vmatprep.subr.bf16.mxu1 %v16780_v60  ;;  %v855_v60 = vld [vmem:[#allocation8 + $0x390] sm:$0xff] }
 0x25c   :  { %v16833_v9 = vcombine.low %v855_v60, %v859_v51 }
 0x25d   :  { %4198 = vmatpush1.bf16.msra.mxu0 %v16777_v1  ;;  %v16827_v1 = vcombine.low %v848_v53, %v852_v54  ;;  %v900_v53 = vld [vmem:[#allocation8 + $0x4f8] sm:$0xff] }
 0x25e   :  { %4362 = vmatpush1.bf16.msra.mxu1 %v16779_v3  ;;  %4199 = vmatprep.subr.bf16.mxu0 %v16786_v4  ;;  %v16834_v3 = vcombine.high %v855_v60, %v859_v51  ;;  %v16836_v4 = vcombine.high %v856_v61, %v860_v62  ;;  %v904_v60 = vld [vmem:[#allocation8 + $0x518] sm:$0xff] }
 0x25f   :  { %4363 = vmatprep.subr.bf16.mxu1 %v16788_v36  ;;  %v863_v36 = vld [vmem:[#allocation8 + $0x3d0] sm:$0xff]  ;;  %v908_v51 = vld [vmem:[#allocation8 + $0x538] sm:$0xff] }
 0x260   :  { %v16841_v37 = vcombine.low %v863_v36, %v867_v5 }
 0x261   :  { %4200 = vmatpush1.bf16.msra.mxu0 %v16785_v10  ;;  %v16835_v10 = vcombine.low %v856_v61, %v860_v62  ;;  %v16875_v61 = vcombine.low %v896_v52, %v900_v53 }
 0x262   :  { %4364 = vmatpush1.bf16.msra.mxu1 %v16787_v12  ;;  %4201 = vmatprep.subr.bf16.mxu0 %v16794_v13  ;;  %v16842_v12 = vcombine.high %v863_v36, %v867_v5  ;;  %v16844_v13 = vcombine.high %v864_v44, %v868_v8  ;;  %v916_v36 = vld [vmem:[#allocation8 + $0x578] sm:$0xff] }
 0x263   :  { %4365 = vmatprep.subr.bf16.mxu1 %v16796_v20  ;;  %v871_v20 = vld [vmem:[#allocation8 + $0x410] sm:$0xff] }
 0x264   :  { %v16849_v33 = vcombine.low %v871_v20, %v875_v22 }
 0x265   :  { %4202 = vmatpush1.bf16.msra.mxu0 %v16793_v25  ;;  %v16843_v25 = vcombine.low %v864_v44, %v868_v8  ;;  %v16883_v44 = vcombine.low %v904_v60, %v908_v51 }
 0x266   :  { %4366 = vmatpush1.bf16.msra.mxu1 %v16795_v26  ;;  %4203 = vmatprep.subr.bf16.mxu0 %v16802_v28  ;;  %v16850_v26 = vcombine.high %v871_v20, %v875_v22  ;;  %v16852_v28 = vcombine.high %v872_v24, %v876_v14  ;;  %v924_v20 = vld [vmem:[#allocation8 + $0x5b8] sm:$0xff] }
 0x267   :  { %4367 = vmatprep.subr.bf16.mxu1 %v16804_v29  ;;  %v879_v29 = vld [vmem:[#allocation8 + $0x450] sm:$0xff] }
 0x268   :  { %v16857_v46 = vcombine.low %v879_v29, %v883_v30 }
 0x269   :  { %4204 = vmatpush1.bf16.msra.mxu0 %v16801_v38  ;;  %v16851_v38 = vcombine.low %v872_v24, %v876_v14 }
 0x26a   :  { %4368 = vmatpush1.bf16.msra.mxu1 %v16803_v40  ;;  %4205 = vmatprep.subr.bf16.mxu0 %v16810_v6  ;;  %v16858_v40 = vcombine.high %v879_v29, %v883_v30  ;;  %v887_v6 = vld [vmem:[#allocation8 + $0x490] sm:$0xff]  ;;  %v932_v29 = vld [vmem:[#allocation8 + $0x5f8] sm:$0xff] }
 0x26b   :  { %4369 = vmatprep.subr.bf16.mxu1 %v16812_v42  ;;  %v891_v42 = vld [vmem:[#allocation8 + $0x4b0] sm:$0xff] }
 0x26c   :  { %v16865_v54 = vcombine.low %v887_v6, %v891_v42 }
 0x26d   :  { %4206 = vmatpush1.bf16.msra.mxu0 %v16809_v48  ;;  %v16859_v48 = vcombine.low %v880_v34, %v884_v35 }
 0x26e   :  { %4370 = vmatpush1.bf16.msra.mxu1 %v16811_v47  ;;  %4207 = vmatprep.subr.bf16.mxu0 %v16818_v49  ;;  %v16866_v47 = vcombine.high %v887_v6, %v891_v42  ;;  %v16868_v49 = vcombine.high %v888_v0, %v892_v45  ;;  %v936_v6 = vld [vmem:[#allocation8 + $0x618] sm:$0xff] }
 0x26f   :  { %4371 = vmatprep.subr.bf16.mxu1 %v16820_v16  ;;  %v895_v16 = vld [vmem:[#allocation8 + $0x4d0] sm:$0xff]  ;;  %v940_v42 = vld [vmem:[#allocation8 + $0x638] sm:$0xff] }
 0x271   :  { %4208 = vmatpush1.bf16.msra.mxu0 %v16817_v55  ;;  %v16874_v55 = vcombine.high %v895_v16, %v899_v50 }
 0x272   :  { %4372 = vmatpush1.bf16.msra.mxu1 %v16819_v56  ;;  %4209 = vmatprep.subr.bf16.mxu0 %v16826_v58  ;;  %v16876_v56 = vcombine.high %v896_v52, %v900_v53  ;;  %v903_v58 = vld [vmem:[#allocation8 + $0x510] sm:$0xff]  ;;  %v16915_v52 = vcombine.low %v936_v6, %v940_v42 }
 0x273   :  { %4373 = vmatprep.subr.bf16.mxu1 %v16828_v59  ;;  %v907_v59 = vld [vmem:[#allocation8 + $0x530] sm:$0xff] }
 0x274   :  { %v16882_v62 = vcombine.high %v903_v58, %v907_v59  ;;  %v16881_v5 = vcombine.low %v903_v58, %v907_v59  ;;  %v956_v58 = vld [vmem:[#allocation8 + $0x6b8] sm:$0xff] }
 0x275   :  { %4210 = vmatpush1.bf16.msra.mxu0 %v16825_v63  ;;  %v16884_v63 = vcombine.high %v904_v60, %v908_v51 }
 0x276   :  { %4374 = vmatpush1.bf16.msra.mxu1 %v16827_v1  ;;  %4211 = vmatprep.subr.bf16.mxu0 %v16834_v3  ;;  %v911_v1 = vld [vmem:[#allocation8 + $0x550] sm:$0xff] }
 0x277   :  { %4375 = vmatprep.subr.bf16.mxu1 %v16836_v4  ;;  %v915_v3 = vld [vmem:[#allocation8 + $0x570] sm:$0xff]  ;;  %v912_v4 = vld [vmem:[#allocation8 + $0x558] sm:$0xff] }
 0x278   :  { %v16890_v8 = vcombine.high %v911_v1, %v915_v3  ;;  %v16889_v22 = vcombine.low %v911_v1, %v915_v3  ;;  %v16891_v24 = vcombine.low %v912_v4, %v916_v36  ;;  %v964_v1 = vld [vmem:[#allocation8 + $0x6f8] sm:$0xff] }
 0x279   :  { %4212 = vmatpush1.bf16.msra.mxu0 %v16833_v9  ;;  %v16892_v9 = vcombine.high %v912_v4, %v916_v36 }
 0x27a   :  { %4376 = vmatpush1.bf16.msra.mxu1 %v16835_v10  ;;  %4213 = vmatprep.subr.bf16.mxu0 %v16842_v12  ;;  %v919_v10 = vld [vmem:[#allocation8 + $0x590] sm:$0xff] }
 0x27b   :  { %4377 = vmatprep.subr.bf16.mxu1 %v16844_v13  ;;  %v923_v12 = vld [vmem:[#allocation8 + $0x5b0] sm:$0xff]  ;;  %v920_v13 = vld [vmem:[#allocation8 + $0x598] sm:$0xff] }
 0x27c   :  { %v16898_v14 = vcombine.high %v919_v10, %v923_v12  ;;  %v16897_v30 = vcombine.low %v919_v10, %v923_v12  ;;  %v972_v10 = vld [vmem:[#allocation8 + $0x738] sm:$0xff] }
 0x27d   :  { %4214 = vmatpush1.bf16.msra.mxu0 %v16841_v37  ;;  %v16900_v37 = vcombine.high %v920_v13, %v924_v20 }
 0x27e   :  { %4378 = vmatpush1.bf16.msra.mxu1 %v16843_v25  ;;  %4224 = vmatprep.subr.bf16.mxu0 %v16850_v26  ;;  %v927_v25 = vld [vmem:[#allocation8 + $0x5d0] sm:$0xff] }
 0x27f   :  { %4388 = vmatprep.subr.bf16.mxu1 %v16852_v28  ;;  %v931_v26 = vld [vmem:[#allocation8 + $0x5f0] sm:$0xff]  ;;  %v928_v28 = vld [vmem:[#allocation8 + $0x5d8] sm:$0xff] }
 0x280   :  { %4216 = vmatmul.mubr.bf16.vlgmr.msra.gmra.mrb[12].mxu0 %v19595_v39  ;;  %v16906_v34 = vcombine.high %v927_v25, %v931_v26  ;;  %v16908_v35 = vcombine.high %v928_v28, %v932_v29 }
 0x281   :  { %4380 = vmatmul.mubr.bf16.vlgmr.msra.gmra.mrb[12].mxu1 %v19595_v39  ;;  %4225 = vmatpush1.bf16.msra.mxu0 %v16849_v33  ;;  %v16867_v39 = vcombine.low %v888_v0, %v892_v45  ;;  %v16899_v33 = vcombine.low %v920_v13, %v924_v20  ;;  %v16907_v0 = vcombine.low %v928_v28, %v932_v29 }
 0x282   :  { %4256 = vmatprep.mubr.bf16.mxu0 %v19601_v57  ;;  %4389 = vmatpush1.bf16.msra.mxu1 %v16851_v38  ;;  %v935_v38 = vld [vmem:[#allocation8 + $0x610] sm:$0xff] }
 0x283   :  { %4420 = vmatprep.mubr.bf16.mxu1 %v19601_v57  ;;  %4226 = vmatprep.subr.bf16.mxu0 %v16858_v40  ;;  %v16873_v57 = vcombine.low %v895_v16, %v899_v50  ;;  %v939_v40 = vld [vmem:[#allocation8 + $0x630] sm:$0xff]  ;;  %v948_v16 = vld [vmem:[#allocation8 + $0x678] sm:$0xff] }
 0x284   :  { %4390 = vmatprep.subr.bf16.mxu1 %v16860_v43  ;;  %v16905_v43 = vcombine.low %v927_v25, %v931_v26  ;;  %v16914_v45 = vcombine.high %v935_v38, %v939_v40  ;;  %v16913_v50 = vcombine.low %v935_v38, %v939_v40  ;;  %v980_v25 = vld [vmem:[#allocation8 + $0x778] sm:$0xff] }
 0x285   :  { %4227 = vmatpush1.bf16.msra.mxu0 %v16857_v46  ;;  %v16916_v46 = vcombine.high %v936_v6, %v940_v42  ;;  %v988_v38 = vld [vmem:[#allocation8 + $0x7b8] sm:$0xff] }
 0x286   :  { %4391 = vmatpush1.bf16.msra.mxu1 %v16859_v48  ;;  %4228 = vmatprep.subr.bf16.mxu0 %v16866_v47  ;;  %v943_v48 = vld [vmem:[#allocation8 + $0x650] sm:$0xff] }
 0x287   :  { %4392 = vmatprep.subr.bf16.mxu1 %v16868_v49  ;;  %v947_v47 = vld [vmem:[#allocation8 + $0x670] sm:$0xff]  ;;  %v944_v49 = vld [vmem:[#allocation8 + $0x658] sm:$0xff] }
 0x288   :  { %v16922_v53 = vcombine.high %v943_v48, %v947_v47  ;;  %v16921_v59 = vcombine.low %v943_v48, %v947_v47  ;;  %v16923_v60 = vcombine.low %v944_v49, %v948_v16  ;;  %v996_v48 = vld [vmem:[#allocation8 + $0x7f8] sm:$0xff] }
 0x289   :  { %4229 = vmatpush1.bf16.msra.mxu0 %v16865_v54  ;;  %v16924_v54 = vcombine.high %v944_v49, %v948_v16 }
 0x28a   :  { %4393 = vmatpush1.bf16.msra.mxu1 %v16867_v39  ;;  %4230 = vmatprep.subr.bf16.mxu0 %v16874_v55  ;;  %v951_v39 = vld [vmem:[#allocation8 + $0x690] sm:$0xff] }
 0x28b   :  { %4394 = vmatprep.subr.bf16.mxu1 %v16876_v56  ;;  %v955_v55 = vld [vmem:[#allocation8 + $0x6b0] sm:$0xff]  ;;  %v952_v56 = vld [vmem:[#allocation8 + $0x698] sm:$0xff] }
 0x28c   :  { %v16930_v51 = vcombine.high %v951_v39, %v955_v55  ;;  %v16929_v3 = vcombine.low %v951_v39, %v955_v55  ;;  %v16931_v4 = vcombine.low %v952_v56, %v956_v58  ;;  %v1004_v39 = vld [vmem:[#allocation8 + $0x838] sm:$0xff] }
 0x28d   :  { %4231 = vmatpush1.bf16.msra.mxu0 %v16873_v57  ;;  %v16932_v57 = vcombine.high %v952_v56, %v956_v58 }
 0x28e   :  { %4395 = vmatpush1.bf16.msra.mxu1 %v16875_v61  ;;  %4232 = vmatprep.subr.bf16.mxu0 %v16882_v62  ;;  %v959_v61 = vld [vmem:[#allocation8 + $0x6d0] sm:$0xff] }
 0x28f   :  { %4396 = vmatprep.subr.bf16.mxu1 %v16884_v63  ;;  %v963_v62 = vld [vmem:[#allocation8 + $0x6f0] sm:$0xff]  ;;  %v960_v63 = vld [vmem:[#allocation8 + $0x6d8] sm:$0xff] }
 0x290   :  { %v16938_v36 = vcombine.high %v959_v61, %v963_v62  ;;  %v16937_v12 = vcombine.low %v959_v61, %v963_v62  ;;  %v16939_v13 = vcombine.low %v960_v63, %v964_v1  ;;  %v1008_v61 = vld [vmem:[#allocation8 + $0x858] sm:$0xff] }
 0x291   :  { %4233 = vmatpush1.bf16.msra.mxu0 %v16881_v5  ;;  %v16940_v5 = vcombine.high %v960_v63, %v964_v1  ;;  %v1012_v62 = vld [vmem:[#allocation8 + $0x878] sm:$0xff] }
 0x292   :  { %4397 = vmatpush1.bf16.msra.mxu1 %v16883_v44  ;;  %4234 = vmatprep.subr.bf16.mxu0 %v16890_v8  ;;  %v967_v44 = vld [vmem:[#allocation8 + $0x710] sm:$0xff] }
 0x293   :  { %4398 = vmatprep.subr.bf16.mxu1 %v16892_v9  ;;  %v971_v8 = vld [vmem:[#allocation8 + $0x730] sm:$0xff]  ;;  %v968_v9 = vld [vmem:[#allocation8 + $0x718] sm:$0xff] }
 0x294   :  { %v16946_v20 = vcombine.high %v967_v44, %v971_v8  ;;  %v16945_v26 = vcombine.low %v967_v44, %v971_v8  ;;  %v16947_v28 = vcombine.low %v968_v9, %v972_v10  ;;  %v1020_v44 = vld [vmem:[#allocation8 + $0x8b8] sm:$0xff] }
 0x295   :  { %4235 = vmatpush1.bf16.msra.mxu0 %v16889_v22  ;;  %v16948_v22 = vcombine.high %v968_v9, %v972_v10  ;;  %v16987_v9 = vcombine.low %v1008_v61, %v1012_v62 }
 0x296   :  { %4399 = vmatpush1.bf16.msra.mxu1 %v16891_v24  ;;  %4236 = vmatprep.subr.bf16.mxu0 %v16898_v14  ;;  %v975_v24 = vld [vmem:[#allocation8 + $0x750] sm:$0xff] }
 0x297   :  { %4400 = vmatprep.subr.bf16.mxu1 %v16900_v37  ;;  %v979_v14 = vld [vmem:[#allocation8 + $0x770] sm:$0xff]  ;;  %v976_v37 = vld [vmem:[#allocation8 + $0x758] sm:$0xff] }
 0x298   :  { %v16954_v29 = vcombine.high %v975_v24, %v979_v14  ;;  %v16953_v40 = vcombine.low %v975_v24, %v979_v14  ;;  %v16955_v6 = vcombine.low %v976_v37, %v980_v25  ;;  %v1028_v24 = vld [vmem:[#allocation8 + $0x8f8] sm:$0xff] }
 0x299   :  { %4237 = vmatpush1.bf16.msra.mxu0 %v16897_v30  ;;  %v16956_v30 = vcombine.high %v976_v37, %v980_v25 }
 0x29a   :  { %4401 = vmatpush1.bf16.msra.mxu1 %v16899_v33  ;;  %4238 = vmatprep.subr.bf16.mxu0 %v16906_v34  ;;  %v983_v33 = vld [vmem:[#allocation8 + $0x790] sm:$0xff] }
 0x29b   :  { %4402 = vmatprep.subr.bf16.mxu1 %v16908_v35  ;;  %v987_v34 = vld [vmem:[#allocation8 + $0x7b0] sm:$0xff]  ;;  %v984_v35 = vld [vmem:[#allocation8 + $0x798] sm:$0xff] }
 0x29c   :  { %v16962_v42 = vcombine.high %v983_v33, %v987_v34  ;;  %v16961_v47 = vcombine.low %v983_v33, %v987_v34  ;;  %v16963_v49 = vcombine.low %v984_v35, %v988_v38 }
 0x29d   :  { %4239 = vmatpush1.bf16.msra.mxu0 %v16905_v43  ;;  %v16964_v43 = vcombine.high %v984_v35, %v988_v38  ;;  %v1039_v38 = vld [vmem:[#allocation8 + $0x950] sm:$0xff] }
 0x29e   :  { %4403 = vmatpush1.bf16.msra.mxu1 %v16907_v0  ;;  %4240 = vmatprep.subr.bf16.mxu0 %v16914_v45  ;;  %v991_v0 = vld [vmem:[#allocation8 + $0x7d0] sm:$0xff] }
 0x29f   :  { %4404 = vmatprep.subr.bf16.mxu1 %v16916_v46  ;;  %v995_v45 = vld [vmem:[#allocation8 + $0x7f0] sm:$0xff]  ;;  %v992_v46 = vld [vmem:[#allocation8 + $0x7d8] sm:$0xff] }
 0x2a0   :  { %v16970_v16 = vcombine.high %v991_v0, %v995_v45  ;;  %v16969_v55 = vcombine.low %v991_v0, %v995_v45  ;;  %v16971_v56 = vcombine.low %v992_v46, %v996_v48 }
 0x2a1   :  { %4241 = vmatpush1.bf16.msra.mxu0 %v16913_v50  ;;  %v16972_v50 = vcombine.high %v992_v46, %v996_v48  ;;  %v1047_v48 = vld [vmem:[#allocation8 + $0x990] sm:$0xff] }
 0x2a2   :  { %4405 = vmatpush1.bf16.msra.mxu1 %v16915_v52  ;;  %4242 = vmatprep.subr.bf16.mxu0 %v16922_v53  ;;  %v999_v52 = vld [vmem:[#allocation8 + $0x810] sm:$0xff] }
 0x2a3   :  { %4406 = vmatprep.subr.bf16.mxu1 %v16924_v54  ;;  %v1003_v53 = vld [vmem:[#allocation8 + $0x830] sm:$0xff]  ;;  %v1000_v54 = vld [vmem:[#allocation8 + $0x818] sm:$0xff] }
 0x2a4   :  { %v16978_v58 = vcombine.high %v999_v52, %v1003_v53  ;;  %v16979_v63 = vcombine.low %v1000_v54, %v1004_v39 }
 0x2a5   :  { %4243 = vmatpush1.bf16.msra.mxu0 %v16921_v59  ;;  %v16980_v59 = vcombine.high %v1000_v54, %v1004_v39  ;;  %v1055_v39 = vld [vmem:[#allocation8 + $0x9d0] sm:$0xff] }
 0x2a6   :  { %4407 = vmatpush1.bf16.msra.mxu1 %v16923_v60  ;;  %4244 = vmatprep.subr.bf16.mxu0 %v16930_v51  ;;  %v1007_v60 = vld [vmem:[#allocation8 + $0x850] sm:$0xff] }
 0x2a7   :  { %4408 = vmatprep.subr.bf16.mxu1 %v16932_v57  ;;  %v1011_v51 = vld [vmem:[#allocation8 + $0x870] sm:$0xff]  ;;  %v16977_v57 = vcombine.low %v999_v52, %v1003_v53 }
 0x2a8   :  { %v16986_v1 = vcombine.high %v1007_v60, %v1011_v51  ;;  %v16985_v8 = vcombine.low %v1007_v60, %v1011_v51 }
 0x2a9   :  { %4245 = vmatpush1.bf16.msra.mxu0 %v16929_v3  ;;  %v1015_v3 = vld [vmem:[#allocation8 + $0x890] sm:$0xff] }
 0x2aa   :  { %4409 = vmatpush1.bf16.msra.mxu1 %v16931_v4  ;;  %4246 = vmatprep.subr.bf16.mxu0 %v16938_v36  ;;  %v1019_v4 = vld [vmem:[#allocation8 + $0x8b0] sm:$0xff]  ;;  %v16988_v36 = vcombine.high %v1008_v61, %v1012_v62 }
 0x2ab   :  { %4410 = vmatprep.subr.bf16.mxu1 %v16940_v5  ;;  %v1016_v5 = vld [vmem:[#allocation8 + $0x898] sm:$0xff]  ;;  %v16994_v10 = vcombine.high %v1015_v3, %v1019_v4  ;;  %v16993_v14 = vcombine.low %v1015_v3, %v1019_v4  ;;  %v1063_v61 = vld [vmem:[#allocation8 + $0xa10] sm:$0xff] }
 0x2ac   :  { %v1067_v62 = vld [vmem:[#allocation8 + $0xa30] sm:$0xff] }
 0x2ad   :  { %4247 = vmatpush1.bf16.msra.mxu0 %v16937_v12  ;;  %v16996_v12 = vcombine.high %v1016_v5, %v1020_v44 }
 0x2ae   :  { %4411 = vmatpush1.bf16.msra.mxu1 %v16939_v13  ;;  %4248 = vmatprep.subr.bf16.mxu0 %v16946_v20  ;;  %v1023_v13 = vld [vmem:[#allocation8 + $0x8d0] sm:$0xff] }
 0x2af   :  { %4412 = vmatprep.subr.bf16.mxu1 %v16948_v22  ;;  %v1027_v20 = vld [vmem:[#allocation8 + $0x8f0] sm:$0xff]  ;;  %v1024_v22 = vld [vmem:[#allocation8 + $0x8d8] sm:$0xff] }
 0x2b0   :  { %v17002_v37 = vcombine.high %v1023_v13, %v1027_v20  ;;  %v17004_v25 = vcombine.high %v1024_v22, %v1028_v24  ;;  %v17003_v33 = vcombine.low %v1024_v22, %v1028_v24  ;;  %v1079_v24 = vld [vmem:[#allocation8 + $0xa90] sm:$0xff] }
 0x2b1   :  { %4249 = vmatpush1.bf16.msra.mxu0 %v16945_v26  ;;  %v1031_v26 = vld [vmem:[#allocation8 + $0x910] sm:$0xff] }
 0x2b2   :  { %4413 = vmatpush1.bf16.msra.mxu1 %v16947_v28  ;;  %4250 = vmatprep.subr.bf16.mxu0 %v16954_v29  ;;  %v1035_v28 = vld [vmem:[#allocation8 + $0x930] sm:$0xff]  ;;  %v1032_v29 = vld [vmem:[#allocation8 + $0x918] sm:$0xff] }
 0x2b3   :  { %4414 = vmatprep.subr.bf16.mxu1 %v16956_v30  ;;  %v1036_v30 = vld [vmem:[#allocation8 + $0x938] sm:$0xff]  ;;  %v17010_v34 = vcombine.high %v1031_v26, %v1035_v28 }
 0x2b4   :  { %v17012_v35 = vcombine.high %v1032_v29, %v1036_v30  ;;  %v17011_v0 = vcombine.low %v1032_v29, %v1036_v30  ;;  %v1087_v30 = vld [vmem:[#allocation8 + $0xad0] sm:$0xff] }
 0x2b5   :  { %4251 = vmatpush1.bf16.msra.mxu0 %v16953_v40  ;;  %v1043_v40 = vld [vmem:[#allocation8 + $0x970] sm:$0xff] }
 0x2b6   :  { %4415 = vmatpush1.bf16.msra.mxu1 %v16955_v6  ;;  %4252 = vmatprep.subr.bf16.mxu0 %v16962_v42  ;;  %v1040_v6 = vld [vmem:[#allocation8 + $0x958] sm:$0xff]  ;;  %v17018_v45 = vcombine.high %v1039_v38, %v1043_v40 }
 0x2b7   :  { %4416 = vmatprep.subr.bf16.mxu1 %v16964_v43  ;;  %v1044_v42 = vld [vmem:[#allocation8 + $0x978] sm:$0xff]  ;;  %v17009_v43 = vcombine.low %v1031_v26, %v1035_v28 }
 0x2b8   :  { %v17020_v46 = vcombine.high %v1040_v6, %v1044_v42  ;;  %v17019_v52 = vcombine.low %v1040_v6, %v1044_v42  ;;  %v1095_v42 = vld [vmem:[#allocation8 + $0xb10] sm:$0xff] }
 0x2b9   :  { %4253 = vmatpush1.bf16.msra.mxu0 %v16961_v47  ;;  %v1051_v47 = vld [vmem:[#allocation8 + $0x9b0] sm:$0xff] }
 0x2ba   :  { %4417 = vmatpush1.bf16.msra.mxu1 %v16963_v49  ;;  %4254 = vmatprep.subr.bf16.mxu0 %v16970_v16  ;;  %v1048_v49 = vld [vmem:[#allocation8 + $0x998] sm:$0xff]  ;;  %v17026_v53 = vcombine.high %v1047_v48, %v1051_v47 }
 0x2bb   :  { %4418 = vmatprep.subr.bf16.mxu1 %v16972_v50  ;;  %v1052_v16 = vld [vmem:[#allocation8 + $0x9b8] sm:$0xff]  ;;  %v17017_v50 = vcombine.low %v1039_v38, %v1043_v40 }
 0x2bc   :  { %v17028_v54 = vcombine.high %v1048_v49, %v1052_v16  ;;  %v17027_v60 = vcombine.low %v1048_v49, %v1052_v16  ;;  %v1103_v16 = vld [vmem:[#allocation8 + $0xb50] sm:$0xff] }
 0x2bd   :  { %4255 = vmatpush1.bf16.msra.mxu0 %v16969_v55  ;;  %v1059_v55 = vld [vmem:[#allocation8 + $0x9f0] sm:$0xff] }
 0x2be   :  { %4419 = vmatpush1.bf16.msra.mxu1 %v16971_v56  ;;  %4265 = vmatprep.subr.bf16.mxu0 %v16978_v58  ;;  %v1056_v56 = vld [vmem:[#allocation8 + $0x9d8] sm:$0xff]  ;;  %v17034_v51 = vcombine.high %v1055_v39, %v1059_v55  ;;  %v17033_v3 = vcombine.low %v1055_v39, %v1059_v55 }
 0x2bf   :  { %4429 = vmatprep.subr.bf16.mxu1 %v16980_v59  ;;  %v1060_v58 = vld [vmem:[#allocation8 + $0x9f8] sm:$0xff]  ;;  %v17025_v59 = vcombine.low %v1047_v48, %v1051_v47 }
 0x2c0   :  { %4257 = vmatmul.mubr.bf16.vlgmr.msra.gmra.mrb[12].mxu0 %v19625_v23  ;;  %v17035_v4 = vcombine.low %v1056_v56, %v1060_v58 }
 0x2c1   :  { %4421 = vmatmul.mubr.bf16.vlgmr.msra.gmra.mrb[12].mxu1 %v19625_v23  ;;  %4266 = vmatpush1.bf16.msra.mxu0 %v16977_v57  ;;  %v16995_v23 = vcombine.low %v1016_v5, %v1020_v44  ;;  %v17036_v57 = vcombine.high %v1056_v56, %v1060_v58  ;;  %v1071_v44 = vld [vmem:[#allocation8 + $0xa50] sm:$0xff] }
 0x2c2   :  { %4297 = vmatprep.mubr.bf16.mxu0 %v19627_v32  ;;  %4430 = vmatpush1.bf16.msra.mxu1 %v16979_v63  ;;  %v1064_v63 = vld [vmem:[#allocation8 + $0xa18] sm:$0xff]  ;;  %v1111_v58 = vld [vmem:[#allocation8 + $0xb90] sm:$0xff] }
 0x2c3   :  { %4461 = vmatprep.mubr.bf16.mxu1 %v19627_v32  ;;  %4267 = vmatprep.subr.bf16.mxu0 %v16986_v1  ;;  %v17001_v32 = vcombine.low %v1023_v13, %v1027_v20  ;;  %v1068_v1 = vld [vmem:[#allocation8 + $0xa38] sm:$0xff] }
 0x2c4   :  { %4431 = vmatprep.subr.bf16.mxu1 %v16988_v36  ;;  %v17042_v36 = vcombine.high %v1063_v61, %v1067_v62  ;;  %v17044_v5 = vcombine.high %v1064_v63, %v1068_v1  ;;  %v17043_v13 = vcombine.low %v1064_v63, %v1068_v1  ;;  %v1119_v1 = vld [vmem:[#allocation8 + $0xbd0] sm:$0xff] }
 0x2c5   :  { %4268 = vmatpush1.bf16.msra.mxu0 %v16985_v8  ;;  %v1075_v8 = vld [vmem:[#allocation8 + $0xa70] sm:$0xff] }
 0x2c6   :  { %4432 = vmatpush1.bf16.msra.mxu1 %v16987_v9  ;;  %4269 = vmatprep.subr.bf16.mxu0 %v16994_v10  ;;  %v1072_v9 = vld [vmem:[#allocation8 + $0xa58] sm:$0xff]  ;;  %v17050_v20 = vcombine.high %v1071_v44, %v1075_v8 }
 0x2c7   :  { %4433 = vmatprep.subr.bf16.mxu1 %v16996_v12  ;;  %v1076_v10 = vld [vmem:[#allocation8 + $0xa78] sm:$0xff]  ;;  %v17041_v12 = vcombine.low %v1063_v61, %v1067_v62 }
 0x2c8   :  { %v17052_v22 = vcombine.high %v1072_v9, %v1076_v10  ;;  %v17051_v26 = vcombine.low %v1072_v9, %v1076_v10  ;;  %v1127_v10 = vld [vmem:[#allocation8 + $0xc10] sm:$0xff] }
 0x2c9   :  { %4270 = vmatpush1.bf16.msra.mxu0 %v16993_v14  ;;  %v1083_v14 = vld [vmem:[#allocation8 + $0xab0] sm:$0xff] }
 0x2ca   :  { %4434 = vmatpush1.bf16.msra.mxu1 %v16995_v23  ;;  %4271 = vmatprep.subr.bf16.mxu0 %v17002_v37  ;;  %v1080_v23 = vld [vmem:[#allocation8 + $0xa98] sm:$0xff]  ;;  %v17058_v28 = vcombine.high %v1079_v24, %v1083_v14 }
 0x2cb   :  { %4435 = vmatprep.subr.bf16.mxu1 %v17004_v25  ;;  %v1084_v37 = vld [vmem:[#allocation8 + $0xab8] sm:$0xff]  ;;  %v17049_v25 = vcombine.low %v1071_v44, %v1075_v8 }
 0x2cc   :  { %v17060_v29 = vcombine.high %v1080_v23, %v1084_v37  ;;  %v17059_v38 = vcombine.low %v1080_v23, %v1084_v37  ;;  %v1135_v37 = vld [vmem:[#allocation8 + $0xc50] sm:$0xff] }
 0x2cd   :  { %4272 = vmatpush1.bf16.msra.mxu0 %v17001_v32  ;;  %v1091_v32 = vld [vmem:[#allocation8 + $0xaf0] sm:$0xff] }
 0x2ce   :  { %4436 = vmatpush1.bf16.msra.mxu1 %v17003_v33  ;;  %4273 = vmatprep.subr.bf16.mxu0 %v17010_v34  ;;  %v1088_v33 = vld [vmem:[#allocation8 + $0xad8] sm:$0xff]  ;;  %v17066_v40 = vcombine.high %v1087_v30, %v1091_v32 }
 0x2cf   :  { %4437 = vmatprep.subr.bf16.mxu1 %v17012_v35  ;;  %v1092_v34 = vld [vmem:[#allocation8 + $0xaf8] sm:$0xff]  ;;  %v17057_v35 = vcombine.low %v1079_v24, %v1083_v14 }
 0x2d0   :  { %v17068_v6 = vcombine.high %v1088_v33, %v1092_v34  ;;  %v17067_v48 = vcombine.low %v1088_v33, %v1092_v34  ;;  %v1143_v33 = vld [vmem:[#allocation8 + $0xc90] sm:$0xff] }
 0x2d1   :  { %4274 = vmatpush1.bf16.msra.mxu0 %v17009_v43  ;;  %v1099_v43 = vld [vmem:[#allocation8 + $0xb30] sm:$0xff] }
 0x2d2   :  { %4438 = vmatpush1.bf16.msra.mxu1 %v17011_v0  ;;  %4275 = vmatprep.subr.bf16.mxu0 %v17018_v45  ;;  %v1096_v0 = vld [vmem:[#allocation8 + $0xb18] sm:$0xff]  ;;  %v17074_v47 = vcombine.high %v1095_v42, %v1099_v43  ;;  %v1147_v34 = vld [vmem:[#allocation8 + $0xcb0] sm:$0xff] }
 0x2d3   :  { %4439 = vmatprep.subr.bf16.mxu1 %v17020_v46  ;;  %v1100_v45 = vld [vmem:[#allocation8 + $0xb38] sm:$0xff]  ;;  %v17065_v46 = vcombine.low %v1087_v30, %v1091_v32 }
 0x2d4   :  { %v17076_v49 = vcombine.high %v1096_v0, %v1100_v45  ;;  %v17075_v39 = vcombine.low %v1096_v0, %v1100_v45  ;;  %v1151_v45 = vld [vmem:[#allocation8 + $0xcd0] sm:$0xff] }
 0x2d5   :  { %4276 = vmatpush1.bf16.msra.mxu0 %v17017_v50  ;;  %v1107_v50 = vld [vmem:[#allocation8 + $0xb70] sm:$0xff] }
 0x2d6   :  { %4440 = vmatpush1.bf16.msra.mxu1 %v17019_v52  ;;  %4277 = vmatprep.subr.bf16.mxu0 %v17026_v53  ;;  %v1104_v52 = vld [vmem:[#allocation8 + $0xb58] sm:$0xff]  ;;  %v17082_v55 = vcombine.high %v1103_v16, %v1107_v50 }
 0x2d7   :  { %4441 = vmatprep.subr.bf16.mxu1 %v17028_v54  ;;  %v1108_v53 = vld [vmem:[#allocation8 + $0xb78] sm:$0xff]  ;;  %v17073_v54 = vcombine.low %v1095_v42, %v1099_v43  ;;  %v17122_v43 = vcombine.high %v1143_v33, %v1147_v34 }
 0x2d8   :  { %v17084_v56 = vcombine.high %v1104_v52, %v1108_v53  ;;  %v17083_v61 = vcombine.low %v1104_v52, %v1108_v53  ;;  %v1159_v52 = vld [vmem:[#allocation8 + $0xd10] sm:$0xff] }
 0x2d9   :  { %4278 = vmatpush1.bf16.msra.mxu0 %v17025_v59  ;;  %v1115_v59 = vld [vmem:[#allocation8 + $0xbb0] sm:$0xff] }
 0x2da   :  { %4442 = vmatpush1.bf16.msra.mxu1 %v17027_v60  ;;  %4279 = vmatprep.subr.bf16.mxu0 %v17034_v51  ;;  %v1112_v60 = vld [vmem:[#allocation8 + $0xb98] sm:$0xff]  ;;  %v17090_v62 = vcombine.high %v1111_v58, %v1115_v59  ;;  %v1163_v53 = vld [vmem:[#allocation8 + $0xd30] sm:$0xff] }
 0x2db   :  { %4443 = vmatprep.subr.bf16.mxu1 %v17036_v57  ;;  %v1116_v51 = vld [vmem:[#allocation8 + $0xbb8] sm:$0xff]  ;;  %v17081_v57 = vcombine.low %v1103_v16, %v1107_v50 }
 0x2dc   :  { %v17092_v63 = vcombine.high %v1112_v60, %v1116_v51  ;;  %v17091_v44 = vcombine.low %v1112_v60, %v1116_v51  ;;  %v1171_v60 = vld [vmem:[#allocation8 + $0xd70] sm:$0xff]  ;;  %v1168_v51 = vld [vmem:[#allocation8 + $0xd58] sm:$0xff] }
 0x2dd   :  { %4280 = vmatpush1.bf16.msra.mxu0 %v17033_v3  ;;  %v1123_v3 = vld [vmem:[#allocation8 + $0xbf0] sm:$0xff] }
 0x2de   :  { %4444 = vmatpush1.bf16.msra.mxu1 %v17035_v4  ;;  %4281 = vmatprep.subr.bf16.mxu0 %v17042_v36  ;;  %v1120_v4 = vld [vmem:[#allocation8 + $0xbd8] sm:$0xff]  ;;  %v17098_v8 = vcombine.high %v1119_v1, %v1123_v3 }
 0x2df   :  { %4445 = vmatprep.subr.bf16.mxu1 %v17044_v5  ;;  %v1124_v36 = vld [vmem:[#allocation8 + $0xbf8] sm:$0xff]  ;;  %v17089_v5 = vcombine.low %v1111_v58, %v1115_v59  ;;  %v1167_v59 = vld [vmem:[#allocation8 + $0xd50] sm:$0xff] }
 0x2e0   :  { %v17100_v9 = vcombine.high %v1120_v4, %v1124_v36  ;;  %v17099_v24 = vcombine.low %v1120_v4, %v1124_v36  ;;  %v1179_v4 = vld [vmem:[#allocation8 + $0xdb0] sm:$0xff]  ;;  %v1176_v36 = vld [vmem:[#allocation8 + $0xd98] sm:$0xff] }
 0x2e1   :  { %4282 = vmatpush1.bf16.msra.mxu0 %v17041_v12  ;;  %v1131_v12 = vld [vmem:[#allocation8 + $0xc30] sm:$0xff] }
 0x2e2   :  { %4446 = vmatpush1.bf16.msra.mxu1 %v17043_v13  ;;  %4283 = vmatprep.subr.bf16.mxu0 %v17050_v20  ;;  %v1128_v13 = vld [vmem:[#allocation8 + $0xc18] sm:$0xff]  ;;  %v17106_v14 = vcombine.high %v1127_v10, %v1131_v12 }
 0x2e3   :  { %4447 = vmatprep.subr.bf16.mxu1 %v17052_v22  ;;  %v1132_v20 = vld [vmem:[#allocation8 + $0xc38] sm:$0xff]  ;;  %v17097_v22 = vcombine.low %v1119_v1, %v1123_v3  ;;  %v1175_v3 = vld [vmem:[#allocation8 + $0xd90] sm:$0xff] }
 0x2e4   :  { %v17108_v23 = vcombine.high %v1128_v13, %v1132_v20  ;;  %v17107_v30 = vcombine.low %v1128_v13, %v1132_v20  ;;  %v1183_v20 = vld [vmem:[#allocation8 + $0xdd0] sm:$0xff] }
 0x2e5   :  { %4284 = vmatpush1.bf16.msra.mxu0 %v17049_v25  ;;  %v1139_v25 = vld [vmem:[#allocation8 + $0xc70] sm:$0xff] }
 0x2e6   :  { %4448 = vmatpush1.bf16.msra.mxu1 %v17051_v26  ;;  %4285 = vmatprep.subr.bf16.mxu0 %v17058_v28  ;;  %v17105_v26 = vcombine.low %v1127_v10, %v1131_v12  ;;  %v1136_v28 = vld [vmem:[#allocation8 + $0xc58] sm:$0xff]  ;;  %v17114_v32 = vcombine.high %v1135_v37, %v1139_v25 }
 0x2e7   :  { %4449 = vmatprep.subr.bf16.mxu1 %v17060_v29  ;;  %v1140_v29 = vld [vmem:[#allocation8 + $0xc78] sm:$0xff] }
 0x2e8   :  { %v17115_v42 = vcombine.low %v1136_v28, %v1140_v29 }
 0x2e9   :  { %4286 = vmatpush1.bf16.msra.mxu0 %v17057_v35  ;;  %v17116_v35 = vcombine.high %v1136_v28, %v1140_v29  ;;  %v17153_v28 = vcombine.low %v1175_v3, %v1179_v4 }
 0x2ea   :  { %4450 = vmatpush1.bf16.msra.mxu1 %v17059_v38  ;;  %4287 = vmatprep.subr.bf16.mxu0 %v17066_v40  ;;  %v1144_v38 = vld [vmem:[#allocation8 + $0xc98] sm:$0xff] }
 0x2eb   :  { %4451 = vmatprep.subr.bf16.mxu1 %v17068_v6  ;;  %v1148_v40 = vld [vmem:[#allocation8 + $0xcb8] sm:$0xff]  ;;  %v17113_v6 = vcombine.low %v1135_v37, %v1139_v25 }
 0x2ec   :  { %v17124_v0 = vcombine.high %v1144_v38, %v1148_v40  ;;  %v1188_v37 = vld [vmem:[#allocation8 + $0xdf8] sm:$0xff] }
 0x2ed   :  { %4288 = vmatpush1.bf16.msra.mxu0 %v17065_v46  ;;  %v1155_v46 = vld [vmem:[#allocation8 + $0xcf0] sm:$0xff] }
 0x2ee   :  { %4452 = vmatpush1.bf16.msra.mxu1 %v17067_v48  ;;  %4289 = vmatprep.subr.bf16.mxu0 %v17074_v47  ;;  %v1152_v48 = vld [vmem:[#allocation8 + $0xcd8] sm:$0xff]  ;;  %v17130_v16 = vcombine.high %v1151_v45, %v1155_v46 }
 0x2ef   :  { %4453 = vmatprep.subr.bf16.mxu1 %v17076_v49  ;;  %v1156_v47 = vld [vmem:[#allocation8 + $0xcf8] sm:$0xff]  ;;  %v17121_v49 = vcombine.low %v1143_v33, %v1147_v34  ;;  %v1191_v33 = vld [vmem:[#allocation8 + $0xe10] sm:$0xff] }
 0x2f0   :  { %v17132_v50 = vcombine.high %v1152_v48, %v1156_v47  ;;  %v1195_v34 = vld [vmem:[#allocation8 + $0xe30] sm:$0xff] }
 0x2f1   :  { %4290 = vmatpush1.bf16.msra.mxu0 %v17073_v54  ;;  %v1160_v54 = vld [vmem:[#allocation8 + $0xd18] sm:$0xff] }
 0x2f2   :  { %4454 = vmatpush1.bf16.msra.mxu1 %v17075_v39  ;;  %4291 = vmatprep.subr.bf16.mxu0 %v17082_v55  ;;  %v1164_v39 = vld [vmem:[#allocation8 + $0xd38] sm:$0xff]  ;;  %v17131_v55 = vcombine.low %v1152_v48, %v1156_v47  ;;  %v1203_v48 = vld [vmem:[#allocation8 + $0xe70] sm:$0xff] }
 0x2f3   :  { %4455 = vmatprep.subr.bf16.mxu1 %v17084_v56  ;;  %v17138_v56 = vcombine.high %v1159_v52, %v1163_v53  ;;  %v17140_v58 = vcombine.high %v1160_v54, %v1164_v39  ;;  %v1200_v47 = vld [vmem:[#allocation8 + $0xe58] sm:$0xff] }
 0x2f5   :  { %4292 = vmatpush1.bf16.msra.mxu0 %v17081_v57  ;;  %v1172_v57 = vld [vmem:[#allocation8 + $0xd78] sm:$0xff] }
 0x2f6   :  { %4456 = vmatpush1.bf16.msra.mxu1 %v17083_v61  ;;  %4293 = vmatprep.subr.bf16.mxu0 %v17090_v62  ;;  %v17137_v61 = vcombine.low %v1159_v52, %v1163_v53  ;;  %v17139_v62 = vcombine.low %v1160_v54, %v1164_v39  ;;  %v17148_v1 = vcombine.high %v1168_v51, %v1172_v57  ;;  %v1207_v53 = vld [vmem:[#allocation8 + $0xe90] sm:$0xff]  ;;  %v1208_v39 = vld [vmem:[#allocation8 + $0xe98] sm:$0xff] }
 0x2f7   :  { %4457 = vmatprep.subr.bf16.mxu1 %v17092_v63  ;;  %v17146_v63 = vcombine.high %v1167_v59, %v1171_v60  ;;  %v1211_v54 = vld [vmem:[#allocation8 + $0xeb0] sm:$0xff] }
 0x2f9   :  { %4294 = vmatpush1.bf16.msra.mxu0 %v17089_v5  ;;  %v1180_v5 = vld [vmem:[#allocation8 + $0xdb8] sm:$0xff] }
 0x2fa   :  { %4458 = vmatpush1.bf16.msra.mxu1 %v17091_v44  ;;  %4295 = vmatprep.subr.bf16.mxu0 %v17098_v8  ;;  %v17145_v44 = vcombine.low %v1167_v59, %v1171_v60  ;;  %v17147_v8 = vcombine.low %v1168_v51, %v1172_v57  ;;  %v17156_v13 = vcombine.high %v1176_v36, %v1180_v5  ;;  %v1215_v60 = vld [vmem:[#allocation8 + $0xed0] sm:$0xff]  ;;  %v1216_v57 = vld [vmem:[#allocation8 + $0xed8] sm:$0xff] }
 0x2fb   :  { %4459 = vmatprep.subr.bf16.mxu1 %v17100_v9  ;;  %v17154_v9 = vcombine.high %v1175_v3, %v1179_v4  ;;  %v17155_v29 = vcombine.low %v1176_v36, %v1180_v5  ;;  %v1219_v51 = vld [vmem:[#allocation8 + $0xef0] sm:$0xff]  ;;  %v1224_v5 = vld [vmem:[#allocation8 + $0xf18] sm:$0xff] }
 0x2fc   :  { %v1223_v4 = vld [vmem:[#allocation8 + $0xf10] sm:$0xff] }
 0x2fd   :  { %4296 = vmatpush1.bf16.msra.mxu0 %v17097_v22  ;;  %v1187_v22 = vld [vmem:[#allocation8 + $0xdf0] sm:$0xff] }
 0x2fe   :  { %4460 = vmatpush1.bf16.msra.mxu1 %v17099_v24  ;;  %4306 = vmatprep.subr.bf16.mxu0 %v17106_v14  ;;  %v1227_v36 = vld [vmem:[#allocation8 + $0xf30] sm:$0xff] }
 0x2ff   :  { %4470 = vmatprep.subr.bf16.mxu1 %v17108_v23  ;;  %v1184_v23 = vld [vmem:[#allocation8 + $0xdd8] sm:$0xff] }
 0x300   :  { %4298 = vmatmul.mubr.bf16.vlgmr.msra.gmra.mrb[12].mxu0 %v19645_v7 }
 0x301   :  { %4462 = vmatmul.mubr.bf16.vlgmr.msra.gmra.mrb[12].mxu1 %v19645_v7  ;;  %4307 = vmatpush1.bf16.msra.mxu0 %v17105_v26  ;;  %v17123_v7 = vcombine.low %v1144_v38, %v1148_v40  ;;  %v1192_v40 = vld [vmem:[#allocation8 + $0xe18] sm:$0xff] }
 0x302   :  { %4338 = vmatprep.mubr.bf16.mxu0 %v19647_v18  ;;  %4471 = vmatpush1.bf16.msra.mxu1 %v17107_v30  ;;  %v17162_v30 = vcombine.high %v1183_v20, %v1187_v22 }
 0x303   :  { %4502 = vmatprep.mubr.bf16.mxu1 %v19647_v18  ;;  %4308 = vmatprep.subr.bf16.mxu0 %v17114_v32  ;;  %v17129_v18 = vcombine.low %v1151_v45, %v1155_v46  ;;  %v17164_v32 = vcombine.high %v1184_v23, %v1188_v37  ;;  %v1199_v46 = vld [vmem:[#allocation8 + $0xe50] sm:$0xff] }
 0x304   :  { %4472 = vmatprep.subr.bf16.mxu1 %v17116_v35 }
 0x305   :  { %4309 = vmatpush1.bf16.msra.mxu0 %v17113_v6  ;;  %v1196_v6 = vld [vmem:[#allocation8 + $0xe38] sm:$0xff] }
 0x306   :  { %4473 = vmatpush1.bf16.msra.mxu1 %v17115_v42  ;;  %4310 = vmatprep.subr.bf16.mxu0 %v17122_v43  ;;  %v17161_v42 = vcombine.low %v1183_v20, %v1187_v22  ;;  %v17163_v43 = vcombine.low %v1184_v23, %v1188_v37  ;;  %v17172_v45 = vcombine.high %v1192_v40, %v1196_v6  ;;  %v1231_v22 = vld [vmem:[#allocation8 + $0xf50] sm:$0xff]  ;;  %v1232_v37 = vld [vmem:[#allocation8 + $0xf58] sm:$0xff] }
 0x307   :  { %4474 = vmatprep.subr.bf16.mxu1 %v17124_v0  ;;  %v17170_v0 = vcombine.high %v1191_v33, %v1195_v34  ;;  %v1235_v23 = vld [vmem:[#allocation8 + $0xf70] sm:$0xff] }
 0x309   :  { %4311 = vmatpush1.bf16.msra.mxu0 %v17121_v49  ;;  %v1204_v49 = vld [vmem:[#allocation8 + $0xe78] sm:$0xff] }
 0x30a   :  { %4475 = vmatpush1.bf16.msra.mxu1 %v17123_v7  ;;  %4312 = vmatprep.subr.bf16.mxu0 %v17130_v16  ;;  %v17169_v7 = vcombine.low %v1191_v33, %v1195_v34  ;;  %v17171_v16 = vcombine.low %v1192_v40, %v1196_v6  ;;  %v17180_v52 = vcombine.high %v1200_v47, %v1204_v49  ;;  %v1239_v33 = vld [vmem:[#allocation8 + $0xf90] sm:$0xff] }
 0x30b   :  { %4476 = vmatprep.subr.bf16.mxu1 %v17132_v50  ;;  %v17178_v50 = vcombine.high %v1199_v46, %v1203_v48  ;;  %v1243_v34 = vld [vmem:[#allocation8 + $0xfb0] sm:$0xff]  ;;  %v17209_v6 = vcombine.low %v1231_v22, %v1235_v23 }
 0x30d   :  { %4313 = vmatpush1.bf16.msra.mxu0 %v17129_v18  ;;  %v1212_v18 = vld [vmem:[#allocation8 + $0xeb8] sm:$0xff] }
 0x30e   :  { %4477 = vmatpush1.bf16.msra.mxu1 %v17131_v55  ;;  %4314 = vmatprep.subr.bf16.mxu0 %v17138_v56  ;;  %v17177_v55 = vcombine.low %v1199_v46, %v1203_v48  ;;  %v17179_v56 = vcombine.low %v1200_v47, %v1204_v49  ;;  %v17188_v59 = vcombine.high %v1208_v39, %v1212_v18  ;;  %v1251_v46 = vld [vmem:[#allocation8 + $0xff0] sm:$0xff]  ;;  %v1248_v48 = vld [vmem:[#allocation8 + $0xfd8] sm:$0xff] }
 0x30f   :  { %4478 = vmatprep.subr.bf16.mxu1 %v17140_v58  ;;  %v17186_v58 = vcombine.high %v1207_v53, %v1211_v54  ;;  %v1252_v47 = vld [vmem:[#allocation8 + $0xff8] sm:$0xff] }
 0x311   :  { %4315 = vmatpush1.bf16.msra.mxu0 %v17137_v61  ;;  %v1220_v61 = vld [vmem:[#allocation8 + $0xef8] sm:$0xff] }
 0x312   :  { %4479 = vmatpush1.bf16.msra.mxu1 %v17139_v62  ;;  %4316 = vmatprep.subr.bf16.mxu0 %v17146_v63  ;;  %v17185_v62 = vcombine.low %v1207_v53, %v1211_v54  ;;  %v17187_v63 = vcombine.low %v1208_v39, %v1212_v18  ;;  %v17196_v3 = vcombine.high %v1216_v57, %v1220_v61  ;;  %v4544_v53 = vld [vmem:[#allocation8 + $0x1000] sm:$0xff]  ;;  %v4545_v39 = vld [vmem:[#allocation8 + $0x1008] sm:$0xff] }
 0x313   :  { %v19676_v10 = vpop.f32.mrb[8].mxu0  ;;  %v19678_v12 = vpop.f32.mrb[8].mxu1  ;;  %4480 = vmatprep.subr.bf16.mxu1 %v17148_v1  ;;  %v17194_v1 = vcombine.high %v1215_v60, %v1219_v51  ;;  %v4548_v54 = vld [vmem:[#allocation8 + $0x1020] sm:$0xff]  ;;  %v4549_v18 = vld [vmem:[#allocation8 + $0x1028] sm:$0xff] }
 0x314   :  { %v19680_v24 = vpop.f32.mrb[9].mxu0  ;;  %v19682_v14 = vpop.f32.mrb[9].mxu1 }
 0x315   :  { %v4016_v25 = vpop.f32.mrb[10].mxu0  ;;  %v4180_v26 = vpop.f32.mrb[10].mxu1  ;;  %4317 = vmatpush1.bf16.msra.mxu0 %v17145_v44  ;;  %v1228_v44 = vld [vmem:[#allocation8 + $0xf38] sm:$0xff] }
 0x316   :  { %4481 = vmatpush1.bf16.msra.mxu1 %v17147_v8  ;;  %4318 = vmatprep.subr.bf16.mxu0 %v17154_v9  ;;  %v4017_v35 = vpop.f32.mrb[11].mxu0  ;;  %v4181_v38 = vpop.f32.mrb[11].mxu1  ;;  %v17193_v8 = vcombine.low %v1215_v60, %v1219_v51  ;;  %v17195_v9 = vcombine.low %v1216_v57, %v1220_v61  ;;  %v17204_v20 = vcombine.high %v1224_v5, %v1228_v44  ;;  %v1236_v25 = vld [vmem:[#allocation8 + $0xf78] sm:$0xff]  ;;  %v4552_v60 = vld [vmem:[#allocation8 + $0x1040] sm:$0xff] }
 0x317   :  { %4482 = vmatprep.subr.bf16.mxu1 %v17156_v13  ;;  %v17202_v13 = vcombine.high %v1223_v4, %v1227_v36  ;;  %v17201_v26 = vcombine.low %v1223_v4, %v1227_v36  ;;  %v1240_v35 = vld [vmem:[#allocation8 + $0xf98] sm:$0xff]  ;;  %v4556_v51 = vld [vmem:[#allocation8 + $0x1060] sm:$0xff]  ;;  %v17229_v61 = vcombine.low %v4544_v53, %v4548_v54 }
 0x318   :  { %v1244_v38 = vld [vmem:[#allocation8 + $0xfb8] sm:$0xff]  ;;  %v4560_v4 = vld [vmem:[#allocation8 + $0x1080] sm:$0xff] }
 0x319   :  { %4319 = vmatpush1.bf16.msra.mxu0 %v17153_v28  ;;  %v19684_v28 = vld [vmem:[#allocation10] sm:$0xff] }
 0x31a   :  { %4483 = vmatpush1.bf16.msra.mxu1 %v17155_v29  ;;  %4320 = vmatprep.subr.bf16.mxu0 %v17162_v30  ;;  %v17203_v29 = vcombine.low %v1224_v5, %v1228_v44  ;;  %v17210_v30 = vcombine.high %v1231_v22, %v1235_v23  ;;  %v1262_v40 = vrot.slane %v19684_v28, %v19580_v17  ;;  %v4564_v36 = vld [vmem:[#allocation8 + $0x10a0] sm:$0xff] }
 0x31b   :  { %4484 = vmatprep.subr.bf16.mxu1 %v17164_v32  ;;  %v17212_v32 = vcombine.high %v1232_v37, %v1236_v25  ;;  %v17246_v22 = vcombine.high %v4560_v4, %v4564_v36 }
 0x31c   :  { %v18919_v49 = vadd.f32 %v19680_v24, %v1262_v40  ;;  %v17230_v24 = vcombine.high %v4544_v53, %v4548_v54  ;;  %v4581_v40 = vld [vmem:[#allocation8 + $0x1128] sm:$0xff]  ;;  %v4596_v53 = vld [vmem:[#allocation8 + $0x11a0] sm:$0xff] }
 0x31d   :  { %4321 = vmatpush1.bf16.msra.mxu0 %v17161_v42  ;;  %v17211_v42 = vcombine.low %v1232_v37, %v1236_v25  ;;  %v4568_v37 = vld [vmem:[#allocation8 + $0x10c0] sm:$0xff]  ;;  %v4593_v54 = vld [vmem:[#allocation8 + $0x1188] sm:$0xff] }
 0x31e   :  { %4485 = vmatpush1.bf16.msra.mxu1 %v17163_v43  ;;  %4322 = vmatprep.subr.bf16.mxu0 %v17170_v0  ;;  %v17218_v43 = vcombine.high %v1239_v33, %v1243_v34  ;;  %v17220_v0 = vcombine.high %v1240_v35, %v1244_v38  ;;  %vm4512_vm8 = vcmp.gt.f32.partialorder %v18919_v49, 0.0  ;;  %v4572_v25 = vld [vmem:[#allocation8 + $0x10e0] sm:$0xff] }
 0x31f   :  { %4486 = vmatprep.subr.bf16.mxu1 %v17172_v45  ;;  %v1247_v45 = vld [vmem:[#allocation8 + $0xfd0] sm:$0xff] }
 0x321   :  { %4323 = vmatpush1.bf16.msra.mxu0 %v17169_v7  ;;  %v17217_v7 = vcombine.low %v1239_v33, %v1243_v34  ;;  %v4576_v34 = vld [vmem:[#allocation8 + $0x1100] sm:$0xff] }
 0x322   :  { %4487 = vmatpush1.bf16.msra.mxu1 %v17171_v16  ;;  %4324 = vmatprep.subr.bf16.mxu0 %v17178_v50  ;;  %v17219_v16 = vcombine.low %v1240_v35, %v1244_v38  ;;  %v17226_v50 = vcombine.high %v1247_v45, %v1251_v46  ;;  %v4580_v35 = vld [vmem:[#allocation8 + $0x1120] sm:$0xff]  ;;  %v4577_v38 = vld [vmem:[#allocation8 + $0x1108] sm:$0xff] }
 0x323   :  { %4488 = vmatprep.subr.bf16.mxu1 %v17180_v52  ;;  %v17228_v52 = vcombine.high %v1248_v48, %v1252_v47 }
 0x325   :  { %4325 = vmatpush1.bf16.msra.mxu0 %v17177_v55  ;;  %v4520_v55 = vmul.f32 0.2, %v18919_v49 }
 0x326   :  { %4489 = vmatpush1.bf16.msra.mxu1 %v17179_v56  ;;  %4326 = vmatprep.subr.bf16.mxu0 %v17186_v58  ;;  %v17225_v56 = vcombine.low %v1247_v45, %v1251_v46  ;;  %v17227_v58 = vcombine.low %v1248_v48, %v1252_v47  ;;  %v4584_v45 = vld [vmem:[#allocation8 + $0x1140] sm:$0xff]  ;;  %v4585_v48 = vld [vmem:[#allocation8 + $0x1148] sm:$0xff] }
 0x327   :  { %4490 = vmatprep.subr.bf16.mxu1 %v17188_v59  ;;  %v17232_v59 = vcombine.high %v4545_v39, %v4549_v18  ;;  %v4528_v57 = vsel %vm4512_vm8, %v18919_v49, %v4520_v55  ;;  %v4588_v46 = vld [vmem:[#allocation8 + $0x1160] sm:$0xff]  ;;  %v4589_v47 = vld [vmem:[#allocation8 + $0x1168] sm:$0xff]  ;;  %v17261_v49 = vcombine.low %v4576_v34, %v4580_v35 }
 0x328   :  { %v19689_v5 = vpack.c.bf16 %v4528_v57, %v4528_v57  ;;  %v17271_v55 = vcombine.low %v4585_v48, %v4589_v47 }
 0x329   :  { %4327 = vmatpush1.bf16.msra.mxu0 %v17185_v62  ;;  %v4553_v62 = vld [vmem:[#allocation8 + $0x1048] sm:$0xff] }
 0x32a   :  { %4491 = vmatpush1.bf16.msra.mxu1 %v17187_v63  ;;  %4328 = vmatprep.subr.bf16.mxu0 %v17194_v1  ;;  %v4557_v63 = vld [vmem:[#allocation8 + $0x1068] sm:$0xff]  ;;  %v17231_v1 = vcombine.low %v4545_v39, %v4549_v18  ;;  %v17269_v18 = vcombine.low %v4584_v45, %v4588_v46 }
 0x32b   :  { %4492 = vmatprep.subr.bf16.mxu1 %v17196_v3  ;;  %v17238_v3 = vcombine.high %v4552_v60, %v4556_v51  ;;  %v17240_v44 = vcombine.high %v4553_v62, %v4557_v63  ;;  %v4597_v39 = vld [vmem:[#allocation8 + $0x11a8] sm:$0xff] }
 0x32d   :  { %4329 = vmatpush1.bf16.msra.mxu0 %v17193_v8  ;;  %v4561_v8 = vld [vmem:[#allocation8 + $0x1088] sm:$0xff] }
 0x32e   :  { %4493 = vmatpush1.bf16.msra.mxu1 %v17195_v9  ;;  %4330 = vmatprep.subr.bf16.mxu0 %v17202_v13  ;;  %v4565_v9 = vld [vmem:[#allocation8 + $0x10a8] sm:$0xff]  ;;  %v17237_v13 = vcombine.low %v4552_v60, %v4556_v51 }
 0x32f   :  { %4494 = vmatprep.subr.bf16.mxu1 %v17204_v20  ;;  %v17239_v20 = vcombine.low %v4553_v62, %v4557_v63  ;;  %v17248_v23 = vcombine.high %v4561_v8, %v4565_v9  ;;  %v4601_v60 = vld [vmem:[#allocation8 + $0x11c8] sm:$0xff] }
 0x330   :  { %v4605_v51 = vld [vmem:[#allocation8 + $0x11e8] sm:$0xff] }
 0x331   :  { %4331 = vmatpush1.bf16.msra.mxu0 %v17201_v26  ;;  %v4569_v26 = vld [vmem:[#allocation8 + $0x10c8] sm:$0xff]  ;;  %v17288_v63 = vcombine.high %v4601_v60, %v4605_v51 }
 0x332   :  { %4495 = vmatpush1.bf16.msra.mxu1 %v17203_v29  ;;  %4332 = vmatprep.subr.bf16.mxu0 %v17210_v30  ;;  %v4573_v29 = vld [vmem:[#allocation8 + $0x10e8] sm:$0xff]  ;;  %v17245_v30 = vcombine.low %v4560_v4, %v4564_v36 }
 0x333   :  { %4496 = vmatprep.subr.bf16.mxu1 %v17212_v32  ;;  %v17254_v32 = vcombine.high %v4568_v37, %v4572_v25  ;;  %v17256_v33 = vcombine.high %v4569_v26, %v4573_v29  ;;  %v4609_v4 = vld [vmem:[#allocation8 + $0x1208] sm:$0xff] }
 0x334   :  { %v4613_v36 = vld [vmem:[#allocation8 + $0x1228] sm:$0xff] }
 0x335   :  { %4333 = vmatpush1.bf16.msra.mxu0 %v17209_v6  ;;  %v17253_v6 = vcombine.low %v4568_v37, %v4572_v25  ;;  %v4621_v37 = vld [vmem:[#allocation8 + $0x1268] sm:$0xff] }
 0x336   :  { %4497 = vmatpush1.bf16.msra.mxu1 %v17211_v42  ;;  %4334 = vmatprep.subr.bf16.mxu0 %v17218_v43  ;;  %v17255_v42 = vcombine.low %v4569_v26, %v4573_v29  ;;  %v17262_v43 = vcombine.high %v4576_v34, %v4580_v35  ;;  %v17295_v26 = vcombine.low %v4609_v4, %v4613_v36  ;;  %v4629_v34 = vld [vmem:[#allocation8 + $0x12a8] sm:$0xff] }
 0x337   :  { %4498 = vmatprep.subr.bf16.mxu1 %v17220_v0  ;;  %v17264_v0 = vcombine.high %v4577_v38, %v4581_v40 }
 0x339   :  { %4335 = vmatpush1.bf16.msra.mxu0 %v17217_v7  ;;  %v17263_v7 = vcombine.low %v4577_v38, %v4581_v40 }
 0x33a   :  { %4499 = vmatpush1.bf16.msra.mxu1 %v17219_v16  ;;  %4336 = vmatprep.subr.bf16.mxu0 %v17226_v50  ;;  %v17270_v16 = vcombine.high %v4584_v45, %v4588_v46  ;;  %v17272_v50 = vcombine.high %v4585_v48, %v4589_v47  ;;  %v4637_v45 = vld [vmem:[#allocation8 + $0x12e8] sm:$0xff] }
 0x33b   :  { %4500 = vmatprep.subr.bf16.mxu1 %v17228_v52  ;;  %v4592_v52 = vld [vmem:[#allocation8 + $0x1180] sm:$0xff] }
 0x33c   :  { %v17277_v57 = vcombine.low %v4592_v52, %v4596_v53 }
 0x33d   :  { %4337 = vmatpush1.bf16.msra.mxu0 %v17225_v56  ;;  %v17278_v56 = vcombine.high %v4592_v52, %v4596_v53  ;;  %v4645_v52 = vld [vmem:[#allocation8 + $0x1328] sm:$0xff] }
 0x33e   :  { %4501 = vmatpush1.bf16.msra.mxu1 %v17227_v58  ;;  %7659 = vmatprep.subr.bf16.mxu0 %v17230_v24  ;;  %v17280_v58 = vcombine.high %v4593_v54, %v4597_v39  ;;  %v4600_v24 = vld [vmem:[#allocation8 + $0x11c0] sm:$0xff] }
 0x33f   :  { %7823 = vmatprep.subr.bf16.mxu1 %v17232_v59  ;;  %v4604_v59 = vld [vmem:[#allocation8 + $0x11e0] sm:$0xff] }
 0x340   :  { %4339 = vmatmul.mubr.bf16.vlgmr.msra.gmra.mrb[12].mxu0 %v19658_v41  ;;  %v17286_v62 = vcombine.high %v4600_v24, %v4604_v59 }
 0x341   :  { %4503 = vmatmul.mubr.bf16.vlgmr.msra.gmra.mrb[12].mxu1 %v19658_v41  ;;  %7660 = vmatpush1.bf16.msra.mxu0 %v17229_v61  ;;  %v17247_v41 = vcombine.low %v4561_v8, %v4565_v9  ;;  %v17279_v61 = vcombine.low %v4593_v54, %v4597_v39  ;;  %v17287_v8 = vcombine.low %v4601_v60, %v4605_v51 }
 0x342   :  { %7691 = vmatprep.mubr.bf16.mxu0 %v19689_v5  ;;  %7824 = vmatpush1.bf16.msra.mxu1 %v17231_v1  ;;  %v4608_v1 = vld [vmem:[#allocation8 + $0x1200] sm:$0xff] }
 0x343   :  { %7855 = vmatprep.mubr.bf16.mxu1 %v19689_v5  ;;  %7661 = vmatprep.subr.bf16.mxu0 %v17238_v3  ;;  %v4612_v3 = vld [vmem:[#allocation8 + $0x1220] sm:$0xff] }
 0x344   :  { %7825 = vmatprep.subr.bf16.mxu1 %v17240_v44  ;;  %v17285_v44 = vcombine.low %v4600_v24, %v4604_v59  ;;  %v17294_v9 = vcombine.high %v4608_v1, %v4612_v3  ;;  %v17293_v25 = vcombine.low %v4608_v1, %v4612_v3  ;;  %v4653_v24 = vld [vmem:[#allocation8 + $0x1368] sm:$0xff] }
 0x345   :  { %7662 = vmatpush1.bf16.msra.mxu0 %v17237_v13  ;;  %v17296_v13 = vcombine.high %v4609_v4, %v4613_v36  ;;  %v4657_v1 = vld [vmem:[#allocation8 + $0x1388] sm:$0xff]  ;;  %v1270_v4 = vrot.slane %v19684_v28, %v19587_v21 }
 0x346   :  { %7826 = vmatpush1.bf16.msra.mxu1 %v17239_v20  ;;  %7663 = vmatprep.subr.bf16.mxu0 %v17246_v22  ;;  %v4616_v20 = vld [vmem:[#allocation8 + $0x1240] sm:$0xff]  ;;  %v4661_v3 = vld [vmem:[#allocation8 + $0x13a8] sm:$0xff] }
 0x347   :  { %7827 = vmatprep.subr.bf16.mxu1 %v17248_v23  ;;  %v4620_v22 = vld [vmem:[#allocation8 + $0x1260] sm:$0xff]  ;;  %v4617_v23 = vld [vmem:[#allocation8 + $0x1248] sm:$0xff] }
 0x348   :  { %v17302_v29 = vcombine.high %v4616_v20, %v4620_v22  ;;  %v17301_v35 = vcombine.low %v4616_v20, %v4620_v22  ;;  %v17303_v38 = vcombine.low %v4617_v23, %v4621_v37  ;;  %v4664_v20 = vld [vmem:[#allocation8 + $0x13c0] sm:$0xff] }
 0x349   :  { %7664 = vmatpush1.bf16.msra.mxu0 %v17245_v30  ;;  %v17304_v30 = vcombine.high %v4617_v23, %v4621_v37  ;;  %v4668_v22 = vld [vmem:[#allocation8 + $0x13e0] sm:$0xff]  ;;  %v4665_v23 = vld [vmem:[#allocation8 + $0x13c8] sm:$0xff] }
 0x34a   :  { %7828 = vmatpush1.bf16.msra.mxu1 %v17247_v41  ;;  %7665 = vmatprep.subr.bf16.mxu0 %v17254_v32  ;;  %v4624_v41 = vld [vmem:[#allocation8 + $0x1280] sm:$0xff]  ;;  %v4669_v37 = vld [vmem:[#allocation8 + $0x13e8] sm:$0xff] }
 0x34b   :  { %7829 = vmatprep.subr.bf16.mxu1 %v17256_v33  ;;  %v4628_v32 = vld [vmem:[#allocation8 + $0x12a0] sm:$0xff]  ;;  %v4625_v33 = vld [vmem:[#allocation8 + $0x1288] sm:$0xff] }
 0x34c   :  { %v17310_v40 = vcombine.high %v4624_v41, %v4628_v32  ;;  %v17309_v46 = vcombine.low %v4624_v41, %v4628_v32  ;;  %v17311_v48 = vcombine.low %v4625_v33, %v4629_v34  ;;  %v17352_v32 = vcombine.high %v4665_v23, %v4669_v37 }
 0x34d   :  { %7666 = vmatpush1.bf16.msra.mxu0 %v17253_v6  ;;  %v17312_v6 = vcombine.high %v4625_v33, %v4629_v34  ;;  %v4672_v33 = vld [vmem:[#allocation8 + $0x1400] sm:$0xff] }
 0x34e   :  { %7830 = vmatpush1.bf16.msra.mxu1 %v17255_v42  ;;  %7667 = vmatprep.subr.bf16.mxu0 %v17262_v43  ;;  %v4632_v42 = vld [vmem:[#allocation8 + $0x12c0] sm:$0xff] }
 0x34f   :  { %7831 = vmatprep.subr.bf16.mxu1 %v17264_v0  ;;  %v4636_v43 = vld [vmem:[#allocation8 + $0x12e0] sm:$0xff]  ;;  %v4633_v0 = vld [vmem:[#allocation8 + $0x12c8] sm:$0xff] }
 0x350   :  { %v17318_v47 = vcombine.high %v4632_v42, %v4636_v43  ;;  %v17317_v53 = vcombine.low %v4632_v42, %v4636_v43  ;;  %v17319_v54 = vcombine.low %v4633_v0, %v4637_v45  ;;  %v4676_v34 = vld [vmem:[#allocation8 + $0x1420] sm:$0xff] }
 0x351   :  { %7668 = vmatpush1.bf16.msra.mxu0 %v17261_v49  ;;  %v17320_v49 = vcombine.high %v4633_v0, %v4637_v45  ;;  %v4680_v0 = vld [vmem:[#allocation8 + $0x1440] sm:$0xff] }
 0x352   :  { %7832 = vmatpush1.bf16.msra.mxu1 %v17263_v7  ;;  %7669 = vmatprep.subr.bf16.mxu0 %v17270_v16  ;;  %v4640_v7 = vld [vmem:[#allocation8 + $0x1300] sm:$0xff] }
 0x353   :  { %7833 = vmatprep.subr.bf16.mxu1 %v17272_v50  ;;  %v4644_v16 = vld [vmem:[#allocation8 + $0x1320] sm:$0xff]  ;;  %v4641_v50 = vld [vmem:[#allocation8 + $0x1308] sm:$0xff] }
 0x354   :  { %v17326_v39 = vcombine.high %v4640_v7, %v4644_v16  ;;  %v17325_v59 = vcombine.low %v4640_v7, %v4644_v16  ;;  %v17327_v60 = vcombine.low %v4641_v50, %v4645_v52  ;;  %v4684_v45 = vld [vmem:[#allocation8 + $0x1460] sm:$0xff] }
 0x355   :  { %7670 = vmatpush1.bf16.msra.mxu0 %v17269_v18  ;;  %v17328_v18 = vcombine.high %v4641_v50, %v4645_v52  ;;  %v17366_v50 = vcombine.high %v4680_v0, %v4684_v45  ;;  %v4688_v52 = vld [vmem:[#allocation8 + $0x1480] sm:$0xff] }
 0x356   :  { %7834 = vmatpush1.bf16.msra.mxu1 %v17271_v55  ;;  %7671 = vmatprep.subr.bf16.mxu0 %v17278_v56  ;;  %v4648_v55 = vld [vmem:[#allocation8 + $0x1340] sm:$0xff] }
 0x357   :  { %7835 = vmatprep.subr.bf16.mxu1 %v17280_v58  ;;  %v4652_v56 = vld [vmem:[#allocation8 + $0x1360] sm:$0xff]  ;;  %v4649_v58 = vld [vmem:[#allocation8 + $0x1348] sm:$0xff] }
 0x358   :  { %v17334_v51 = vcombine.high %v4648_v55, %v4652_v56  ;;  %v17333_v36 = vcombine.low %v4648_v55, %v4652_v56  ;;  %v4693_v55 = vld [vmem:[#allocation8 + $0x14a8] sm:$0xff]  ;;  %v17365_v56 = vcombine.low %v4680_v0, %v4684_v45 }
 0x359   :  { %7672 = vmatpush1.bf16.msra.mxu0 %v17277_v57  ;;  %v1258_v57 = vrot.slane %v19684_v28, %v19575_v15  ;;  %v4729_v0 = vld [vmem:[#allocation8 + $0x15c8] sm:$0xff] }
 0x35a   :  { %7836 = vmatpush1.bf16.msra.mxu1 %v17279_v61  ;;  %7673 = vmatprep.subr.bf16.mxu0 %v17286_v62  ;;  %v17336_v61 = vcombine.high %v4649_v58, %v4653_v24  ;;  %v4656_v62 = vld [vmem:[#allocation8 + $0x1380] sm:$0xff]  ;;  %v4733_v45 = vld [vmem:[#allocation8 + $0x15e8] sm:$0xff] }
 0x35b   :  { %7837 = vmatprep.subr.bf16.mxu1 %v17288_v63  ;;  %v4660_v63 = vld [vmem:[#allocation8 + $0x13a0] sm:$0xff] }
 0x35d   :  { %7674 = vmatpush1.bf16.msra.mxu0 %v17285_v44  ;;  %v17335_v44 = vcombine.low %v4649_v58, %v4653_v24 }
 0x35e   :  { %7838 = vmatpush1.bf16.msra.mxu1 %v17287_v8  ;;  %7675 = vmatprep.subr.bf16.mxu0 %v17294_v9  ;;  %v17342_v8 = vcombine.high %v4656_v62, %v4660_v63  ;;  %v18918_v9 = vadd.f32 %v19676_v10, %v1258_v57  ;;  %v4673_v10 = vld [vmem:[#allocation8 + $0x1408] sm:$0xff] }
 0x35f   :  { %7839 = vmatprep.subr.bf16.mxu1 %v17296_v13  ;;  %v17344_v13 = vcombine.high %v4657_v1, %v4661_v3  ;;  %v4697_v57 = vld [vmem:[#allocation8 + $0x14c8] sm:$0xff] }
 0x360   :  { %v4519_v41 = vmul.f32 0.2, %v18918_v9  ;;  %vm4511_vm9 = vcmp.gt.f32.partialorder %v18918_v9, 0.0 }
 0x361   :  { %7676 = vmatpush1.bf16.msra.mxu0 %v17293_v25  ;;  %v18921_v25 = vadd.f32 %v19682_v14, %v1270_v4  ;;  %v17351_v14 = vcombine.low %v4665_v23, %v4669_v37  ;;  %v4704_v4 = vld [vmem:[#allocation8 + $0x1500] sm:$0xff] }
 0x362   :  { %7840 = vmatpush1.bf16.msra.mxu1 %v17295_v26  ;;  %7677 = vmatprep.subr.bf16.mxu0 %v17302_v29  ;;  %v17341_v26 = vcombine.low %v4656_v62, %v4660_v63  ;;  %v17343_v29 = vcombine.low %v4657_v1, %v4661_v3  ;;  %v4527_v42 = vsel %vm4511_vm9, %v18918_v9, %v4519_v41  ;;  %v4712_v23 = vld [vmem:[#allocation8 + $0x1540] sm:$0xff] }
 0x363   :  { %7841 = vmatprep.subr.bf16.mxu1 %v17304_v30  ;;  %v17350_v30 = vcombine.high %v4664_v20, %v4668_v22  ;;  %vm4514_vm10 = vcmp.gt.f32.partialorder %v18921_v25, 0.0  ;;  %v19701_v7 = vpack.c.bf16 %v4527_v42, %v4527_v42  ;;  %v4716_v37 = vld [vmem:[#allocation8 + $0x1560] sm:$0xff] }
 0x364   :  { %v17398_v41 = vcombine.high %v4712_v23, %v4716_v37  ;;  %v4728_v42 = vld [vmem:[#allocation8 + $0x15c0] sm:$0xff] }
 0x365   :  { %7678 = vmatpush1.bf16.msra.mxu0 %v17301_v35  ;;  %v4677_v35 = vld [vmem:[#allocation8 + $0x1428] sm:$0xff] }
 0x366   :  { %7842 = vmatpush1.bf16.msra.mxu1 %v17303_v38  ;;  %7679 = vmatprep.subr.bf16.mxu0 %v17310_v40  ;;  %v4522_v38 = vmul.f32 0.2, %v18921_v25  ;;  %v17349_v40 = vcombine.low %v4664_v20, %v4668_v22  ;;  %v17360_v43 = vcombine.high %v4673_v10, %v4677_v35  ;;  %v17359_v16 = vcombine.low %v4673_v10, %v4677_v35  ;;  %v4721_v10 = vld [vmem:[#allocation8 + $0x1588] sm:$0xff] }
 0x367   :  { %7843 = vmatprep.subr.bf16.mxu1 %v17312_v6  ;;  %v17358_v6 = vcombine.high %v4672_v33, %v4676_v34  ;;  %v4725_v35 = vld [vmem:[#allocation8 + $0x15a8] sm:$0xff] }
 0x369   :  { %7680 = vmatpush1.bf16.msra.mxu0 %v17309_v46  ;;  %v4530_v46 = vsel %vm4514_vm10, %v18921_v25, %v4522_v38  ;;  %v4713_v25 = vld [vmem:[#allocation8 + $0x1548] sm:$0xff]  ;;  %v17397_v38 = vcombine.low %v4712_v23, %v4716_v37 }
 0x36a   :  { %7844 = vmatpush1.bf16.msra.mxu1 %v17311_v48  ;;  %7681 = vmatprep.subr.bf16.mxu0 %v17318_v47  ;;  %v17357_v48 = vcombine.low %v4672_v33, %v4676_v34  ;;  %v4681_v47 = vld [vmem:[#allocation8 + $0x1448] sm:$0xff]  ;;  %v4720_v33 = vld [vmem:[#allocation8 + $0x1580] sm:$0xff] }
 0x36b   :  { %7845 = vmatprep.subr.bf16.mxu1 %v17320_v49  ;;  %v4685_v49 = vld [vmem:[#allocation8 + $0x1468] sm:$0xff]  ;;  %v4724_v34 = vld [vmem:[#allocation8 + $0x15a0] sm:$0xff] }
 0x36c   :  { %v17367_v58 = vcombine.low %v4681_v47, %v4685_v49  ;;  %v4765_v23 = vld [vmem:[#allocation8 + $0x16e8] sm:$0xff] }
 0x36d   :  { %7682 = vmatpush1.bf16.msra.mxu0 %v17317_v53  ;;  %v4692_v53 = vld [vmem:[#allocation8 + $0x14a0] sm:$0xff] }
 0x36e   :  { %7846 = vmatpush1.bf16.msra.mxu1 %v17319_v54  ;;  %7683 = vmatprep.subr.bf16.mxu0 %v17326_v39  ;;  %v19703_v54 = vpack.c.bf16 %v4530_v46, %v4530_v46  ;;  %v17368_v39 = vcombine.high %v4681_v47, %v4685_v49  ;;  %v17374_v24 = vcombine.high %v4688_v52, %v4692_v53 }
 0x36f   :  { %7847 = vmatprep.subr.bf16.mxu1 %v17328_v18  ;;  %v4689_v18 = vld [vmem:[#allocation8 + $0x1488] sm:$0xff]  ;;  %v17373_v62 = vcombine.low %v4688_v52, %v4692_v53  ;;  %v17405_v46 = vcombine.low %v4720_v33, %v4724_v34  ;;  %v17416_v49 = vcombine.high %v4729_v0, %v4733_v45 }
 0x370   :  { %v17375_v63 = vcombine.low %v4689_v18, %v4693_v55  ;;  %v4737_v52 = vld [vmem:[#allocation8 + $0x1608] sm:$0xff] }
 0x371   :  { %7684 = vmatpush1.bf16.msra.mxu0 %v17325_v59  ;;  %v17376_v59 = vcombine.high %v4689_v18, %v4693_v55  ;;  %v4741_v53 = vld [vmem:[#allocation8 + $0x1628] sm:$0xff]  ;;  %v17415_v18 = vcombine.low %v4729_v0, %v4733_v45 }
 0x372   :  { %7848 = vmatpush1.bf16.msra.mxu1 %v17327_v60  ;;  %7685 = vmatprep.subr.bf16.mxu0 %v17334_v51  ;;  %v4696_v60 = vld [vmem:[#allocation8 + $0x14c0] sm:$0xff] }
 0x373   :  { %7849 = vmatprep.subr.bf16.mxu1 %v17336_v61  ;;  %v4700_v51 = vld [vmem:[#allocation8 + $0x14e0] sm:$0xff]  ;;  %v4701_v61 = vld [vmem:[#allocation8 + $0x14e8] sm:$0xff] }
 0x374   :  { %v17382_v1 = vcombine.high %v4696_v60, %v4700_v51  ;;  %v17384_v3 = vcombine.high %v4697_v57, %v4701_v61  ;;  %v17381_v9 = vcombine.low %v4696_v60, %v4700_v51  ;;  %v4749_v60 = vld [vmem:[#allocation8 + $0x1668] sm:$0xff] }
 0x375   :  { %7686 = vmatpush1.bf16.msra.mxu0 %v17333_v36  ;;  %v4708_v36 = vld [vmem:[#allocation8 + $0x1520] sm:$0xff] }
 0x376   :  { %7850 = vmatpush1.bf16.msra.mxu1 %v17335_v44  ;;  %7687 = vmatprep.subr.bf16.mxu0 %v17342_v8  ;;  %v4705_v44 = vld [vmem:[#allocation8 + $0x1508] sm:$0xff]  ;;  %v17390_v20 = vcombine.high %v4704_v4, %v4708_v36 }
 0x377   :  { %7851 = vmatprep.subr.bf16.mxu1 %v17344_v13  ;;  %v4709_v8 = vld [vmem:[#allocation8 + $0x1528] sm:$0xff]  ;;  %v17383_v13 = vcombine.low %v4697_v57, %v4701_v61  ;;  %v17423_v57 = vcombine.low %v4737_v52, %v4741_v53 }
 0x378   :  { %v17392_v22 = vcombine.high %v4705_v44, %v4709_v8 }
 0x379   :  { %7688 = vmatpush1.bf16.msra.mxu0 %v17341_v26  ;;  %v4717_v26 = vld [vmem:[#allocation8 + $0x1568] sm:$0xff] }
 0x37a   :  { %7852 = vmatpush1.bf16.msra.mxu1 %v17343_v29  ;;  %7689 = vmatprep.subr.bf16.mxu0 %v17350_v30  ;;  %v17389_v29 = vcombine.low %v4704_v4, %v4708_v36  ;;  %v17391_v30 = vcombine.low %v4705_v44, %v4709_v8  ;;  %v4757_v4 = vld [vmem:[#allocation8 + $0x16a8] sm:$0xff] }
 0x37b   :  { %7853 = vmatprep.subr.bf16.mxu1 %v17352_v32  ;;  %v17400_v32 = vcombine.high %v4713_v25, %v4717_v26 }
 0x37d   :  { %7690 = vmatpush1.bf16.msra.mxu0 %v17349_v40  ;;  %v17399_v40 = vcombine.low %v4713_v25, %v4717_v26 }
 0x37e   :  { %7854 = vmatpush1.bf16.msra.mxu1 %v17351_v14  ;;  %7700 = vmatprep.subr.bf16.mxu0 %v17358_v6  ;;  %v17406_v14 = vcombine.high %v4720_v33, %v4724_v34  ;;  %v17408_v6 = vcombine.high %v4721_v10, %v4725_v35  ;;  %v4773_v33 = vld [vmem:[#allocation8 + $0x1728] sm:$0xff] }
 0x37f   :  { %7864 = vmatprep.subr.bf16.mxu1 %v17360_v43  ;;  %v4732_v43 = vld [vmem:[#allocation8 + $0x15e0] sm:$0xff] }
 0x380   :  { %7692 = vmatmul.mubr.bf16.vlgmr.msra.gmra.mrb[16].mxu0 %v19701_v7  ;;  %v17414_v47 = vcombine.high %v4728_v42, %v4732_v43 }
 0x381   :  { %7856 = vmatmul.mubr.bf16.vlgmr.msra.gmra.mrb[16].mxu1 %v19701_v7  ;;  %7701 = vmatpush1.bf16.msra.mxu0 %v17357_v48  ;;  %v17407_v48 = vcombine.low %v4721_v10, %v4725_v35 }
 0x382   :  { %7732 = vmatprep.mubr.bf16.mxu0 %v19703_v54  ;;  %7865 = vmatpush1.bf16.msra.mxu1 %v17359_v16  ;;  %v4736_v16 = vld [vmem:[#allocation8 + $0x1600] sm:$0xff] }
 0x383   :  { %7896 = vmatprep.mubr.bf16.mxu1 %v19703_v54  ;;  %7702 = vmatprep.subr.bf16.mxu0 %v17366_v50  ;;  %v4740_v50 = vld [vmem:[#allocation8 + $0x1620] sm:$0xff] }
 0x384   :  { %7866 = vmatprep.subr.bf16.mxu1 %v17368_v39  ;;  %v17413_v39 = vcombine.low %v4728_v42, %v4732_v43  ;;  %v17422_v55 = vcombine.high %v4736_v16, %v4740_v50  ;;  %v17421_v51 = vcombine.low %v4736_v16, %v4740_v50  ;;  %v4781_v42 = vld [vmem:[#allocation8 + $0x1768] sm:$0xff] }
 0x385   :  { %7703 = vmatpush1.bf16.msra.mxu0 %v17365_v56  ;;  %v17424_v56 = vcombine.high %v4737_v52, %v4741_v53  ;;  %v4785_v16 = vld [vmem:[#allocation8 + $0x1788] sm:$0xff] }
 0x386   :  { %7867 = vmatpush1.bf16.msra.mxu1 %v17367_v58  ;;  %7704 = vmatprep.subr.bf16.mxu0 %v17374_v24  ;;  %v4744_v58 = vld [vmem:[#allocation8 + $0x1640] sm:$0xff]  ;;  %v4789_v50 = vld [vmem:[#allocation8 + $0x17a8] sm:$0xff] }
 0x387   :  { %7868 = vmatprep.subr.bf16.mxu1 %v17376_v59  ;;  %v4748_v24 = vld [vmem:[#allocation8 + $0x1660] sm:$0xff]  ;;  %v4745_v59 = vld [vmem:[#allocation8 + $0x1648] sm:$0xff] }
 0x388   :  { %v17430_v61 = vcombine.high %v4744_v58, %v4748_v24  ;;  %v17429_v36 = vcombine.low %v4744_v58, %v4748_v24  ;;  %v17431_v44 = vcombine.low %v4745_v59, %v4749_v60  ;;  %v4796_v58 = vld [vmem:[#allocation8 + $0x17e0] sm:$0xff]  ;;  %v4793_v24 = vld [vmem:[#allocation8 + $0x17c8] sm:$0xff] }
 0x389   :  { %7705 = vmatpush1.bf16.msra.mxu0 %v17373_v62  ;;  %v17432_v62 = vcombine.high %v4745_v59, %v4749_v60  ;;  %v17471_v60 = vcombine.low %v4785_v16, %v4789_v50 }
 0x38a   :  { %7869 = vmatpush1.bf16.msra.mxu1 %v17375_v63  ;;  %7706 = vmatprep.subr.bf16.mxu0 %v17382_v1  ;;  %v4752_v63 = vld [vmem:[#allocation8 + $0x1680] sm:$0xff] }
 0x38b   :  { %7870 = vmatprep.subr.bf16.mxu1 %v17384_v3  ;;  %v4756_v1 = vld [vmem:[#allocation8 + $0x16a0] sm:$0xff]  ;;  %v4753_v3 = vld [vmem:[#allocation8 + $0x1688] sm:$0xff] }
 0x38c   :  { %v17438_v8 = vcombine.high %v4752_v63, %v4756_v1  ;;  %v17437_v37 = vcombine.low %v4752_v63, %v4756_v1  ;;  %v17439_v25 = vcombine.low %v4753_v3, %v4757_v4  ;;  %v4804_v63 = vld [vmem:[#allocation8 + $0x1820] sm:$0xff]  ;;  %v4801_v1 = vld [vmem:[#allocation8 + $0x1808] sm:$0xff] }
 0x38d   :  { %7707 = vmatpush1.bf16.msra.mxu0 %v17381_v9  ;;  %v17440_v9 = vcombine.high %v4753_v3, %v4757_v4 }
 0x38e   :  { %7871 = vmatpush1.bf16.msra.mxu1 %v17383_v13  ;;  %7708 = vmatprep.subr.bf16.mxu0 %v17390_v20  ;;  %v4760_v13 = vld [vmem:[#allocation8 + $0x16c0] sm:$0xff] }
 0x38f   :  { %7872 = vmatprep.subr.bf16.mxu1 %v17392_v22  ;;  %v4764_v20 = vld [vmem:[#allocation8 + $0x16e0] sm:$0xff]  ;;  %v4761_v22 = vld [vmem:[#allocation8 + $0x16c8] sm:$0xff] }
 0x390   :  { %v17446_v26 = vcombine.high %v4760_v13, %v4764_v20  ;;  %v17445_v34 = vcombine.low %v4760_v13, %v4764_v20  ;;  %v17447_v10 = vcombine.low %v4761_v22, %v4765_v23  ;;  %v4812_v13 = vld [vmem:[#allocation8 + $0x1860] sm:$0xff]  ;;  %v4809_v20 = vld [vmem:[#allocation8 + $0x1848] sm:$0xff] }
 0x391   :  { %7709 = vmatpush1.bf16.msra.mxu0 %v17389_v29  ;;  %v17448_v29 = vcombine.high %v4761_v22, %v4765_v23  ;;  %v4813_v22 = vld [vmem:[#allocation8 + $0x1868] sm:$0xff] }
 0x392   :  { %7873 = vmatpush1.bf16.msra.mxu1 %v17391_v30  ;;  %7710 = vmatprep.subr.bf16.mxu0 %v17398_v41  ;;  %v4768_v30 = vld [vmem:[#allocation8 + $0x1700] sm:$0xff] }
 0x393   :  { %7874 = vmatprep.subr.bf16.mxu1 %v17400_v32  ;;  %v4772_v41 = vld [vmem:[#allocation8 + $0x1720] sm:$0xff]  ;;  %v4769_v32 = vld [vmem:[#allocation8 + $0x1708] sm:$0xff] }
 0x394   :  { %v17454_v35 = vcombine.high %v4768_v30, %v4772_v41  ;;  %v17453_v43 = vcombine.low %v4768_v30, %v4772_v41  ;;  %v17455_v0 = vcombine.low %v4769_v32, %v4773_v33  ;;  %v4816_v30 = vld [vmem:[#allocation8 + $0x1880] sm:$0xff] }
 0x395   :  { %7711 = vmatpush1.bf16.msra.mxu0 %v17397_v38  ;;  %v17456_v38 = vcombine.high %v4769_v32, %v4773_v33  ;;  %v4820_v41 = vld [vmem:[#allocation8 + $0x18a0] sm:$0xff]  ;;  %v4817_v32 = vld [vmem:[#allocation8 + $0x1888] sm:$0xff] }
 0x396   :  { %7875 = vmatpush1.bf16.msra.mxu1 %v17399_v40  ;;  %7712 = vmatprep.subr.bf16.mxu0 %v17406_v14  ;;  %v4776_v40 = vld [vmem:[#allocation8 + $0x1740] sm:$0xff]  ;;  %v4821_v33 = vld [vmem:[#allocation8 + $0x18a8] sm:$0xff] }
 0x397   :  { %7876 = vmatprep.subr.bf16.mxu1 %v17408_v6  ;;  %v4780_v14 = vld [vmem:[#allocation8 + $0x1760] sm:$0xff]  ;;  %v4777_v6 = vld [vmem:[#allocation8 + $0x1748] sm:$0xff] }
 0x398   :  { %v17462_v45 = vcombine.high %v4776_v40, %v4780_v14  ;;  %v17461_v52 = vcombine.low %v4776_v40, %v4780_v14  ;;  %v17463_v53 = vcombine.low %v4777_v6, %v4781_v42  ;;  %v4824_v40 = vld [vmem:[#allocation8 + $0x18c0] sm:$0xff] }
 0x399   :  { %7713 = vmatpush1.bf16.msra.mxu0 %v17405_v46  ;;  %v1266_v46 = vrot.slane %v19684_v28, %v19610_v27  ;;  %v4797_v28 = vld [vmem:[#allocation8 + $0x17e8] sm:$0xff]  ;;  %v4828_v14 = vld [vmem:[#allocation8 + $0x18e0] sm:$0xff] }
 0x39a   :  { %7877 = vmatpush1.bf16.msra.mxu1 %v17407_v48  ;;  %7714 = vmatprep.subr.bf16.mxu0 %v17414_v47  ;;  %v17464_v48 = vcombine.high %v4777_v6, %v4781_v42  ;;  %v4784_v47 = vld [vmem:[#allocation8 + $0x1780] sm:$0xff]  ;;  %v17479_v4 = vcombine.low %v4793_v24, %v4797_v28  ;;  %v4825_v6 = vld [vmem:[#allocation8 + $0x18c8] sm:$0xff] }
 0x39b   :  { %7878 = vmatprep.subr.bf16.mxu1 %v17416_v49  ;;  %v4788_v49 = vld [vmem:[#allocation8 + $0x17a0] sm:$0xff]  ;;  %v4829_v42 = vld [vmem:[#allocation8 + $0x18e8] sm:$0xff] }
 0x39c   :  { %v17469_v59 = vcombine.low %v4784_v47, %v4788_v49 }
 0x39d   :  { %7715 = vmatpush1.bf16.msra.mxu0 %v17413_v39  ;;  %v17470_v39 = vcombine.high %v4784_v47, %v4788_v49  ;;  %v4836_v47 = vld [vmem:[#allocation8 + $0x1920] sm:$0xff]  ;;  %v4833_v49 = vld [vmem:[#allocation8 + $0x1908] sm:$0xff] }
 0x39e   :  { %7879 = vmatpush1.bf16.msra.mxu1 %v17415_v18  ;;  %7716 = vmatprep.subr.bf16.mxu0 %v17422_v55  ;;  %v18920_v18 = vadd.f32 %v19678_v12, %v1266_v46  ;;  %v17472_v55 = vcombine.high %v4785_v16, %v4789_v50  ;;  %v4805_v12 = vld [vmem:[#allocation8 + $0x1828] sm:$0xff]  ;;  %v17512_v46 = vcombine.high %v4825_v6, %v4829_v42 }
 0x39f   :  { %7880 = vmatprep.subr.bf16.mxu1 %v17424_v56  ;;  %v4792_v56 = vld [vmem:[#allocation8 + $0x17c0] sm:$0xff]  ;;  %v4837_v16 = vld [vmem:[#allocation8 + $0x1928] sm:$0xff]  ;;  %v17509_v50 = vcombine.low %v4824_v40, %v4828_v14 }
 0x3a0   :  { %vm4513_vm11 = vcmp.gt.f32.partialorder %v18920_v18, 0.0  ;;  %v17477_v3 = vcombine.low %v4792_v56, %v4796_v58 }
 0x3a1   :  { %7717 = vmatpush1.bf16.msra.mxu0 %v17421_v51  ;;  %v17478_v51 = vcombine.high %v4792_v56, %v4796_v58  ;;  %v4841_v56 = vld [vmem:[#allocation8 + $0x1948] sm:$0xff] }
 0x3a2   :  { %7881 = vmatpush1.bf16.msra.mxu1 %v17423_v57  ;;  %7718 = vmatprep.subr.bf16.mxu0 %v17430_v61  ;;  %v4521_v57 = vmul.f32 0.2, %v18920_v18  ;;  %v17480_v61 = vcombine.high %v4793_v24, %v4797_v28  ;;  %v4845_v58 = vld [vmem:[#allocation8 + $0x1968] sm:$0xff]  ;;  %v17519_v28 = vcombine.low %v4833_v49, %v4837_v16 }
 0x3a3   :  { %7882 = vmatprep.subr.bf16.mxu1 %v17432_v62  ;;  %v4800_v62 = vld [vmem:[#allocation8 + $0x1800] sm:$0xff] }
 0x3a4   :  { %v17485_v23 = vcombine.low %v4800_v62, %v4804_v63 }
 0x3a5   :  { %7719 = vmatpush1.bf16.msra.mxu0 %v17429_v36  ;;  %v17486_v36 = vcombine.high %v4800_v62, %v4804_v63  ;;  %v4853_v62 = vld [vmem:[#allocation8 + $0x19a8] sm:$0xff] }
 0x3a6   :  { %7883 = vmatpush1.bf16.msra.mxu1 %v17431_v44  ;;  %7720 = vmatprep.subr.bf16.mxu0 %v17438_v8  ;;  %v4529_v44 = vsel %vm4513_vm11, %v18920_v18, %v4521_v57  ;;  %v17488_v8 = vcombine.high %v4801_v1, %v4805_v12  ;;  %v4840_v18 = vld [vmem:[#allocation8 + $0x1940] sm:$0xff] }
 0x3a7   :  { %7884 = vmatprep.subr.bf16.mxu1 %v17440_v9  ;;  %v4808_v9 = vld [vmem:[#allocation8 + $0x1840] sm:$0xff] }
 0x3a8   :  { %v4852_v57 = vld [vmem:[#allocation8 + $0x19a0] sm:$0xff] }
 0x3a9   :  { %7721 = vmatpush1.bf16.msra.mxu0 %v17437_v37  ;;  %v19712_v37 = vpack.c.bf16 %v4529_v44, %v4529_v44  ;;  %v4857_v44 = vld [vmem:[#allocation8 + $0x19c8] sm:$0xff] }
 0x3aa   :  { %7885 = vmatpush1.bf16.msra.mxu1 %v17439_v25  ;;  %7722 = vmatprep.subr.bf16.mxu0 %v17446_v26  ;;  %v17487_v25 = vcombine.low %v4801_v1, %v4805_v12  ;;  %v17494_v26 = vcombine.high %v4808_v9, %v4812_v13  ;;  %v17527_v1 = vcombine.low %v4841_v56, %v4845_v58 }
 0x3ab   :  { %7886 = vmatprep.subr.bf16.mxu1 %v17448_v29  ;;  %v17496_v29 = vcombine.high %v4809_v20, %v4813_v22 }
 0x3ad   :  { %7723 = vmatpush1.bf16.msra.mxu0 %v17445_v34  ;;  %v17493_v34 = vcombine.low %v4808_v9, %v4812_v13 }
 0x3ae   :  { %7887 = vmatpush1.bf16.msra.mxu1 %v17447_v10  ;;  %7724 = vmatprep.subr.bf16.mxu0 %v17454_v35  ;;  %v17495_v10 = vcombine.low %v4809_v20, %v4813_v22  ;;  %v17502_v35 = vcombine.high %v4816_v30, %v4820_v41 }
 0x3af   :  { %7888 = vmatprep.subr.bf16.mxu1 %v17456_v38  ;;  %v17504_v38 = vcombine.high %v4817_v32, %v4821_v33 }
 0x3b1   :  { %7725 = vmatpush1.bf16.msra.mxu0 %v17453_v43  ;;  %v17501_v43 = vcombine.low %v4816_v30, %v4820_v41 }
 0x3b2   :  { %7889 = vmatpush1.bf16.msra.mxu1 %v17455_v0  ;;  %7726 = vmatprep.subr.bf16.mxu0 %v17462_v45  ;;  %v17503_v0 = vcombine.low %v4817_v32, %v4821_v33  ;;  %v17510_v45 = vcombine.high %v4824_v40, %v4828_v14 }
 0x3b3   :  { %7890 = vmatprep.subr.bf16.mxu1 %v17464_v48  ;;  %v4832_v48 = vld [vmem:[#allocation8 + $0x1900] sm:$0xff] }
 0x3b4   :  { %v17517_v24 = vcombine.low %v4832_v48, %v4836_v47 }
 0x3b5   :  { %7727 = vmatpush1.bf16.msra.mxu0 %v17461_v52  ;;  %v17511_v52 = vcombine.low %v4825_v6, %v4829_v42 }
 0x3b6   :  { %7891 = vmatpush1.bf16.msra.mxu1 %v17463_v53  ;;  %7728 = vmatprep.subr.bf16.mxu0 %v17470_v39  ;;  %v17518_v53 = vcombine.high %v4832_v48, %v4836_v47  ;;  %v17520_v39 = vcombine.high %v4833_v49, %v4837_v16 }
 0x3b7   :  { %7892 = vmatprep.subr.bf16.mxu1 %v17472_v55  ;;  %v4844_v55 = vld [vmem:[#allocation8 + $0x1960] sm:$0xff] }
 0x3b8   :  { %v17525_v63 = vcombine.low %v4840_v18, %v4844_v55 }
 0x3b9   :  { %7729 = vmatpush1.bf16.msra.mxu0 %v17469_v59  ;;  %v17526_v59 = vcombine.high %v4840_v18, %v4844_v55 }
 0x3ba   :  { %7893 = vmatpush1.bf16.msra.mxu1 %v17471_v60  ;;  %7730 = vmatprep.subr.bf16.mxu0 %v17478_v51  ;;  %v17528_v60 = vcombine.high %v4841_v56, %v4845_v58  ;;  %v4848_v51 = vld [vmem:[#allocation8 + $0x1980] sm:$0xff] }
 0x3bb   :  { %7894 = vmatprep.subr.bf16.mxu1 %v17480_v61  ;;  %v4849_v61 = vld [vmem:[#allocation8 + $0x1988] sm:$0xff]  ;;  %v17534_v12 = vcombine.high %v4848_v51, %v4852_v57  ;;  %v17533_v9 = vcombine.low %v4848_v51, %v4852_v57 }
 0x3bc   :  { %v17535_v13 = vcombine.low %v4849_v61, %v4853_v62 }
 0x3bd   :  { %7731 = vmatpush1.bf16.msra.mxu0 %v17477_v3  ;;  %v17536_v3 = vcombine.high %v4849_v61, %v4853_v62 }
 0x3be   :  { %7895 = vmatpush1.bf16.msra.mxu1 %v17479_v4  ;;  %7741 = vmatprep.subr.bf16.mxu0 %v17486_v36  ;;  %v4856_v4 = vld [vmem:[#allocation8 + $0x19c0] sm:$0xff] }
 0x3bf   :  { %7905 = vmatprep.subr.bf16.mxu1 %v17488_v8  ;;  %v4860_v36 = vld [vmem:[#allocation8 + $0x19e0] sm:$0xff]  ;;  %v4861_v8 = vld [vmem:[#allocation8 + $0x19e8] sm:$0xff] }
 0x3c0   :  { %7733 = vmatmul.mubr.bf16.vlgmr.msra.gmra.mrb[16].mxu0 %v19712_v37  ;;  %v17542_v20 = vcombine.high %v4856_v4, %v4860_v36  ;;  %v17544_v22 = vcombine.high %v4857_v44, %v4861_v8  ;;  %v17541_v30 = vcombine.low %v4856_v4, %v4860_v36  ;;  %v17543_v41 = vcombine.low %v4857_v44, %v4861_v8 }
 0x3c1   :  { %7897 = vmatmul.mubr.bf16.vlgmr.msra.gmra.mrb[16].mxu1 %v19712_v37  ;;  %7742 = vmatpush1.bf16.msra.mxu0 %v17485_v23  ;;  %v4864_v23 = vld [vmem:[#allocation8 + $0x1a00] sm:$0xff] }
 0x3c2   :  { %7906 = vmatpush1.bf16.msra.mxu1 %v17487_v25  ;;  %7743 = vmatprep.subr.bf16.mxu0 %v17494_v26  ;;  %v4868_v25 = vld [vmem:[#allocation8 + $0x1a20] sm:$0xff]  ;;  %v4865_v26 = vld [vmem:[#allocation8 + $0x1a08] sm:$0xff] }
 0x3c3   :  { %7907 = vmatprep.subr.bf16.mxu1 %v17496_v29  ;;  %v4869_v29 = vld [vmem:[#allocation8 + $0x1a28] sm:$0xff]  ;;  %v17550_v32 = vcombine.high %v4864_v23, %v4868_v25  ;;  %v17549_v40 = vcombine.low %v4864_v23, %v4868_v25 }
 0x3c4   :  { %v17552_v33 = vcombine.high %v4865_v26, %v4869_v29  ;;  %v17551_v14 = vcombine.low %v4865_v26, %v4869_v29 }
 0x3c5   :  { %7744 = vmatpush1.bf16.msra.mxu0 %v17493_v34  ;;  %v4872_v34 = vld [vmem:[#allocation8 + $0x1a40] sm:$0xff] }
 0x3c6   :  { %7908 = vmatpush1.bf16.msra.mxu1 %v17495_v10  ;;  %7745 = vmatprep.subr.bf16.mxu0 %v17502_v35  ;;  %v4876_v10 = vld [vmem:[#allocation8 + $0x1a60] sm:$0xff]  ;;  %v4873_v35 = vld [vmem:[#allocation8 + $0x1a48] sm:$0xff] }
 0x3c7   :  { %7909 = vmatprep.subr.bf16.mxu1 %v17504_v38  ;;  %v4877_v38 = vld [vmem:[#allocation8 + $0x1a68] sm:$0xff]  ;;  %v17558_v6 = vcombine.high %v4872_v34, %v4876_v10  ;;  %v17557_v48 = vcombine.low %v4872_v34, %v4876_v10 }
 0x3c8   :  { %v17560_v42 = vcombine.high %v4873_v35, %v4877_v38  ;;  %v17559_v47 = vcombine.low %v4873_v35, %v4877_v38 }
 0x3c9   :  { %7746 = vmatpush1.bf16.msra.mxu0 %v17501_v43  ;;  %v4880_v43 = vld [vmem:[#allocation8 + $0x1a80] sm:$0xff] }
 0x3ca   :  { %7910 = vmatpush1.bf16.msra.mxu1 %v17503_v0  ;;  %7747 = vmatprep.subr.bf16.mxu0 %v17510_v45  ;;  %v4884_v0 = vld [vmem:[#allocation8 + $0x1aa0] sm:$0xff]  ;;  %v4881_v45 = vld [vmem:[#allocation8 + $0x1a88] sm:$0xff] }
 0x3cb   :  { %7911 = vmatprep.subr.bf16.mxu1 %v17512_v46  ;;  %v4885_v46 = vld [vmem:[#allocation8 + $0x1aa8] sm:$0xff]  ;;  %v17566_v49 = vcombine.high %v4880_v43, %v4884_v0  ;;  %v17565_v18 = vcombine.low %v4880_v43, %v4884_v0 }
 0x3cc   :  { %v17568_v16 = vcombine.high %v4881_v45, %v4885_v46  ;;  %v17567_v55 = vcombine.low %v4881_v45, %v4885_v46 }
 0x3cd   :  { %7748 = vmatpush1.bf16.msra.mxu0 %v17509_v50  ;;  %v4888_v50 = vld [vmem:[#allocation8 + $0x1ac0] sm:$0xff] }
 0x3ce   :  { %7912 = vmatpush1.bf16.msra.mxu1 %v17511_v52  ;;  %7749 = vmatprep.subr.bf16.mxu0 %v17518_v53  ;;  %v4892_v52 = vld [vmem:[#allocation8 + $0x1ae0] sm:$0xff]  ;;  %v4889_v53 = vld [vmem:[#allocation8 + $0x1ac8] sm:$0xff] }
 0x3cf   :  { %7913 = vmatprep.subr.bf16.mxu1 %v17520_v39  ;;  %v4893_v39 = vld [vmem:[#allocation8 + $0x1ae8] sm:$0xff]  ;;  %v17574_v56 = vcombine.high %v4888_v50, %v4892_v52  ;;  %v17573_v51 = vcombine.low %v4888_v50, %v4892_v52 }
 0x3d0   :  { %v17576_v58 = vcombine.high %v4889_v53, %v4893_v39  ;;  %v17575_v57 = vcombine.low %v4889_v53, %v4893_v39 }
 0x3d1   :  { %7750 = vmatpush1.bf16.msra.mxu0 %v17517_v24  ;;  %v4896_v24 = vld [vmem:[#allocation8 + $0x1b00] sm:$0xff] }
 0x3d2   :  { %7914 = vmatpush1.bf16.msra.mxu1 %v17519_v28  ;;  %7751 = vmatprep.subr.bf16.mxu0 %v17526_v59  ;;  %v4900_v28 = vld [vmem:[#allocation8 + $0x1b20] sm:$0xff]  ;;  %v4897_v59 = vld [vmem:[#allocation8 + $0x1b08] sm:$0xff] }
 0x3d3   :  { %7915 = vmatprep.subr.bf16.mxu1 %v17528_v60  ;;  %v4901_v60 = vld [vmem:[#allocation8 + $0x1b28] sm:$0xff]  ;;  %v17582_v61 = vcombine.high %v4896_v24, %v4900_v28  ;;  %v17581_v4 = vcombine.low %v4896_v24, %v4900_v28 }
 0x3d4   :  { %v17584_v62 = vcombine.high %v4897_v59, %v4901_v60  ;;  %v17583_v36 = vcombine.low %v4897_v59, %v4901_v60 }
 0x3d5   :  { %7752 = vmatpush1.bf16.msra.mxu0 %v17525_v63  ;;  %v4904_v63 = vld [vmem:[#allocation8 + $0x1b40] sm:$0xff] }
 0x3d6   :  { %7916 = vmatpush1.bf16.msra.mxu1 %v17527_v1  ;;  %7753 = vmatprep.subr.bf16.mxu0 %v17534_v12  ;;  %v4908_v1 = vld [vmem:[#allocation8 + $0x1b60] sm:$0xff]  ;;  %v4905_v12 = vld [vmem:[#allocation8 + $0x1b48] sm:$0xff] }
 0x3d7   :  { %7917 = vmatprep.subr.bf16.mxu1 %v17536_v3  ;;  %v4909_v3 = vld [vmem:[#allocation8 + $0x1b68] sm:$0xff]  ;;  %v17590_v44 = vcombine.high %v4904_v63, %v4908_v1  ;;  %v17589_v23 = vcombine.low %v4904_v63, %v4908_v1  ;;  %v4940_v1 = vld [vmem:[#allocation8 + $0x1c60] sm:$0xff] }
 0x3d8   :  { %v17592_v8 = vcombine.high %v4905_v12, %v4909_v3  ;;  %v17591_v25 = vcombine.low %v4905_v12, %v4909_v3  ;;  %v4937_v12 = vld [vmem:[#allocation8 + $0x1c48] sm:$0xff] }
 0x3d9   :  { %7754 = vmatpush1.bf16.msra.mxu0 %v17533_v9  ;;  %v4912_v9 = vld [vmem:[#allocation8 + $0x1b80] sm:$0xff]  ;;  %v4941_v3 = vld [vmem:[#allocation8 + $0x1c68] sm:$0xff] }
 0x3da   :  { %7918 = vmatpush1.bf16.msra.mxu1 %v17535_v13  ;;  %7755 = vmatprep.subr.bf16.mxu0 %v17542_v20  ;;  %v4916_v13 = vld [vmem:[#allocation8 + $0x1ba0] sm:$0xff]  ;;  %v4913_v20 = vld [vmem:[#allocation8 + $0x1b88] sm:$0xff] }
 0x3db   :  { %7919 = vmatprep.subr.bf16.mxu1 %v17544_v22  ;;  %v4917_v22 = vld [vmem:[#allocation8 + $0x1ba8] sm:$0xff]  ;;  %v17598_v26 = vcombine.high %v4912_v9, %v4916_v13  ;;  %v17597_v34 = vcombine.low %v4912_v9, %v4916_v13  ;;  %v4944_v13 = vld [vmem:[#allocation8 + $0x1c80] sm:$0xff] }
 0x3dc   :  { %v17600_v29 = vcombine.high %v4913_v20, %v4917_v22  ;;  %v17599_v10 = vcombine.low %v4913_v20, %v4917_v22  ;;  %v17624_v22 = vcombine.high %v4937_v12, %v4941_v3 }
 0x3dd   :  { %7756 = vmatpush1.bf16.msra.mxu0 %v17541_v30  ;;  %v4920_v30 = vld [vmem:[#allocation8 + $0x1bc0] sm:$0xff] }
 0x3de   :  { %7920 = vmatpush1.bf16.msra.mxu1 %v17543_v41  ;;  %7757 = vmatprep.subr.bf16.mxu0 %v17550_v32  ;;  %v4924_v41 = vld [vmem:[#allocation8 + $0x1be0] sm:$0xff]  ;;  %v4921_v32 = vld [vmem:[#allocation8 + $0x1bc8] sm:$0xff] }
 0x3df   :  { %7921 = vmatprep.subr.bf16.mxu1 %v17552_v33  ;;  %v4925_v33 = vld [vmem:[#allocation8 + $0x1be8] sm:$0xff]  ;;  %v17606_v35 = vcombine.high %v4920_v30, %v4924_v41  ;;  %v17605_v43 = vcombine.low %v4920_v30, %v4924_v41  ;;  %v17623_v41 = vcombine.low %v4937_v12, %v4941_v3  ;;  %v4984_v12 = vld [vmem:[#allocation8 + $0x1dc0] sm:$0xff] }
 0x3e0   :  { %v17608_v38 = vcombine.high %v4921_v32, %v4925_v33  ;;  %v17607_v0 = vcombine.low %v4921_v32, %v4925_v33  ;;  %v4988_v3 = vld [vmem:[#allocation8 + $0x1de0] sm:$0xff] }
 0x3e1   :  { %7758 = vmatpush1.bf16.msra.mxu0 %v17549_v40  ;;  %v4928_v40 = vld [vmem:[#allocation8 + $0x1c00] sm:$0xff] }
 0x3e2   :  { %7922 = vmatpush1.bf16.msra.mxu1 %v17551_v14  ;;  %7759 = vmatprep.subr.bf16.mxu0 %v17558_v6  ;;  %v4932_v14 = vld [vmem:[#allocation8 + $0x1c20] sm:$0xff]  ;;  %v4929_v6 = vld [vmem:[#allocation8 + $0x1c08] sm:$0xff] }
 0x3e3   :  { %7923 = vmatprep.subr.bf16.mxu1 %v17560_v42  ;;  %v4933_v42 = vld [vmem:[#allocation8 + $0x1c28] sm:$0xff]  ;;  %v17614_v45 = vcombine.high %v4928_v40, %v4932_v14 }
 0x3e4   :  { %v17616_v46 = vcombine.high %v4929_v6, %v4933_v42 }
 0x3e5   :  { %7760 = vmatpush1.bf16.msra.mxu0 %v17557_v48  ;;  %v19716_v48 = vld [vmem:[#allocation10] sm:$0xff] }
 0x3e6   :  { %7924 = vmatpush1.bf16.msra.mxu1 %v17559_v47  ;;  %7761 = vmatprep.subr.bf16.mxu0 %v17566_v49  ;;  %v1274_v47 = vrot.slane %v19716_v48, %v19634_v11  ;;  %v1278_v49 = vrot.slane %v19716_v48, %v19613_v31 }
 0x3e7   :  { %7925 = vmatprep.subr.bf16.mxu1 %v17568_v16  ;;  %v1286_v16 = vrot.slane %v19716_v48, %v19637_v19 }
 0x3e9   :  { %7762 = vmatpush1.bf16.msra.mxu0 %v17565_v18 }
 0x3ea   :  { %7926 = vmatpush1.bf16.msra.mxu1 %v17567_v55  ;;  %7763 = vmatprep.subr.bf16.mxu0 %v17574_v56 }
 0x3eb   :  { %7927 = vmatprep.subr.bf16.mxu1 %v17576_v58 }
 0x3ed   :  { %7764 = vmatpush1.bf16.msra.mxu0 %v17573_v51 }
 0x3ee   :  { %7928 = vmatpush1.bf16.msra.mxu1 %v17575_v57  ;;  %7765 = vmatprep.subr.bf16.mxu0 %v17582_v61 }
 0x3ef   :  { %7929 = vmatprep.subr.bf16.mxu1 %v17584_v62  ;;  %v4936_v62 = vld [vmem:[#allocation8 + $0x1c40] sm:$0xff] }
 0x3f0   :  { %v17622_v20 = vcombine.high %v4936_v62, %v4940_v1  ;;  %v17621_v30 = vcombine.low %v4936_v62, %v4940_v1 }
 0x3f1   :  { %7766 = vmatpush1.bf16.msra.mxu0 %v17581_v4 }
 0x3f2   :  { %7930 = vmatpush1.bf16.msra.mxu1 %v17583_v36  ;;  %7767 = vmatprep.subr.bf16.mxu0 %v17590_v44  ;;  %v17613_v44 = vcombine.low %v4928_v40, %v4932_v14 }
 0x3f3   :  { %7931 = vmatprep.subr.bf16.mxu1 %v17592_v8  ;;  %v17615_v8 = vcombine.low %v4929_v6, %v4933_v42 }
 0x3f5   :  { %7768 = vmatpush1.bf16.msra.mxu0 %v17589_v23  ;;  %v4948_v23 = vld [vmem:[#allocation8 + $0x1ca0] sm:$0xff] }
 0x3f6   :  { %7932 = vmatpush1.bf16.msra.mxu1 %v17591_v25  ;;  %7769 = vmatprep.subr.bf16.mxu0 %v17598_v26  ;;  %v4945_v25 = vld [vmem:[#allocation8 + $0x1c88] sm:$0xff]  ;;  %v17630_v32 = vcombine.high %v4944_v13, %v4948_v23  ;;  %v17629_v40 = vcombine.low %v4944_v13, %v4948_v23  ;;  %v4992_v23 = vld [vmem:[#allocation8 + $0x1e00] sm:$0xff] }
 0x3f7   :  { %7933 = vmatprep.subr.bf16.mxu1 %v17600_v29  ;;  %v4949_v26 = vld [vmem:[#allocation8 + $0x1ca8] sm:$0xff] }
 0x3f8   :  { %v17632_v33 = vcombine.high %v4945_v25, %v4949_v26  ;;  %v17631_v14 = vcombine.low %v4945_v25, %v4949_v26  ;;  %v4996_v25 = vld [vmem:[#allocation8 + $0x1e20] sm:$0xff]  ;;  %v4993_v26 = vld [vmem:[#allocation8 + $0x1e08] sm:$0xff] }
 0x3f9   :  { %7770 = vmatpush1.bf16.msra.mxu0 %v17597_v34  ;;  %v4952_v34 = vld [vmem:[#allocation8 + $0x1cc0] sm:$0xff] }
 0x3fa   :  { %7934 = vmatpush1.bf16.msra.mxu1 %v17599_v10  ;;  %7771 = vmatprep.subr.bf16.mxu0 %v17606_v35  ;;  %v4956_v10 = vld [vmem:[#allocation8 + $0x1ce0] sm:$0xff]  ;;  %v4953_v35 = vld [vmem:[#allocation8 + $0x1cc8] sm:$0xff] }
 0x3fb   :  { %7935 = vmatprep.subr.bf16.mxu1 %v17608_v38  ;;  %v4957_v38 = vld [vmem:[#allocation8 + $0x1ce8] sm:$0xff]  ;;  %v17638_v6 = vcombine.high %v4952_v34, %v4956_v10 }
 0x3fc   :  { %v17640_v42 = vcombine.high %v4953_v35, %v4957_v38 }
 0x3fd   :  { %7772 = vmatpush1.bf16.msra.mxu0 %v17605_v43  ;;  %v4960_v43 = vld [vmem:[#allocation8 + $0x1d00] sm:$0xff] }
 0x3fe   :  { %7936 = vmatpush1.bf16.msra.mxu1 %v17607_v0  ;;  %7782 = vmatprep.subr.bf16.mxu0 %v17614_v45  ;;  %v4964_v0 = vld [vmem:[#allocation8 + $0x1d20] sm:$0xff]  ;;  %v4961_v45 = vld [vmem:[#allocation8 + $0x1d08] sm:$0xff] }
 0x3ff   :  { %7946 = vmatprep.subr.bf16.mxu1 %v17616_v46  ;;  %v4965_v46 = vld [vmem:[#allocation8 + $0x1d28] sm:$0xff] }
 0x413   :  { %v4340_v50 = vpop.f32.mrb[12].mxu0 }
 0x414   :  { %v18922_v52 = vadd.f32 %v4340_v50, %v1274_v47  ;;  %v19724_v53 = vpop.f32.mrb[12].mxu1  ;;  %v4342_v39 = vpop.f32.mrb[13].mxu0  ;;  %v17637_v47 = vcombine.low %v4952_v34, %v4956_v10  ;;  %v17648_v50 = vcombine.high %v4961_v45, %v4965_v46  ;;  %v5000_v10 = vld [vmem:[#allocation8 + $0x1e40] sm:$0xff] }
 0x415   :  { %v18923_v18 = vadd.f32 %v4342_v39, %v1278_v49  ;;  %v4506_v55 = vpop.f32.mrb[13].mxu1  ;;  %v4344_v56 = vpop.f32.mrb[14].mxu0  ;;  %v17639_v49 = vcombine.low %v4953_v35, %v4957_v38  ;;  %v4972_v39 = vld [vmem:[#allocation8 + $0x1d60] sm:$0xff]  ;;  %v5001_v38 = vld [vmem:[#allocation8 + $0x1e48] sm:$0xff] }
 0x416   :  { %vm4515_vm12 = vcmp.gt.f32.partialorder %v18922_v52, 0.0  ;;  %v4523_v58 = vmul.f32 0.2, %v18922_v52  ;;  %v18925_v24 = vadd.f32 %v4506_v55, %v1286_v16  ;;  %v4508_v28 = vpop.f32.mrb[14].mxu1  ;;  %v4345_v59 = vpop.f32.mrb[15].mxu0  ;;  %v17646_v16 = vcombine.high %v4960_v43, %v4964_v0  ;;  %v4973_v55 = vld [vmem:[#allocation8 + $0x1d68] sm:$0xff] }
 0x417   :  { %vm4516_vm13 = vcmp.gt.f32.partialorder %v18923_v18, 0.0  ;;  %v4524_v60 = vmul.f32 0.2, %v18923_v18  ;;  %v4509_v61 = vpop.f32.mrb[15].mxu1  ;;  %v17645_v56 = vcombine.low %v4960_v43, %v4964_v0  ;;  %v4976_v59 = vld [vmem:[#allocation8 + $0x1d80] sm:$0xff] }
 0x418   :  { %v4531_v51 = vsel %vm4515_vm12, %v18922_v52, %v4523_v58  ;;  %vm4518_vm14 = vcmp.gt.f32.partialorder %v18925_v24, 0.0  ;;  %v4526_v57 = vmul.f32 0.2, %v18925_v24  ;;  %v4968_v52 = vld [vmem:[#allocation8 + $0x1d40] sm:$0xff]  ;;  %v17647_v58 = vcombine.low %v4961_v45, %v4965_v46  ;;  %v5009_v46 = vld [vmem:[#allocation8 + $0x1e88] sm:$0xff] }
 0x419   :  { %v4532_v63 = vsel %vm4516_vm13, %v18923_v18, %v4524_v60  ;;  %v19728_v9 = vpack.c.bf16 %v4531_v51, %v4531_v51  ;;  %v4969_v18 = vld [vmem:[#allocation8 + $0x1d48] sm:$0xff]  ;;  %v4980_v60 = vld [vmem:[#allocation8 + $0x1da0] sm:$0xff]  ;;  %v17653_v61 = vcombine.low %v4968_v52, %v4972_v39 }
 0x41a   :  { %v19726_v4 = vpack.c.bf16 %v4532_v63, %v4532_v63  ;;  %v4534_v36 = vsel %vm4518_vm14, %v18925_v24, %v4526_v57  ;;  %v17654_v24 = vcombine.high %v4968_v52, %v4972_v39  ;;  %v17656_v28 = vcombine.high %v4969_v18, %v4973_v55  ;;  %v4977_v51 = vld [vmem:[#allocation8 + $0x1d88] sm:$0xff]  ;;  %v5004_v35 = vld [vmem:[#allocation8 + $0x1e60] sm:$0xff] }
 0x41b   :  { %v19732_v29 = vpack.c.bf16 %v4534_v36, %v4534_v36  ;;  %v4981_v57 = vld [vmem:[#allocation8 + $0x1da8] sm:$0xff]  ;;  %v17655_v62 = vcombine.low %v4969_v18, %v4973_v55  ;;  %v17662_v63 = vcombine.high %v4976_v59, %v4980_v60  ;;  %v5008_v0 = vld [vmem:[#allocation8 + $0x1e80] sm:$0xff] }
 0x41c   :  { %7773 = vmatprep.mubr.bf16.mxu0 %v19726_v4  ;;  %7937 = vmatprep.mubr.bf16.mxu1 %v19726_v4  ;;  %v17664_v1 = vcombine.high %v4977_v51, %v4981_v57  ;;  %v4985_v36 = vld [vmem:[#allocation8 + $0x1dc8] sm:$0xff]  ;;  %v17663_v13 = vcombine.low %v4977_v51, %v4981_v57  ;;  %v5012_v45 = vld [vmem:[#allocation8 + $0x1ea0] sm:$0xff] }
 0x41d   :  { %7774 = vmatmul.mubr.bf16.vlgmr.msra.gmra.mrb[16].mxu0 %v19728_v9  ;;  %7938 = vmatmul.mubr.bf16.vlgmr.msra.gmra.mrb[16].mxu1 %v19728_v9  ;;  %v5016_v39 = vld [vmem:[#allocation8 + $0x1ec0] sm:$0xff]  ;;  %v5017_v55 = vld [vmem:[#allocation8 + $0x1ec8] sm:$0xff] }
 0x41e   :  { %7783 = vmatpush1.bf16.msra.mxu0 %v17613_v44  ;;  %7947 = vmatpush1.bf16.msra.mxu1 %v17615_v8  ;;  %v4989_v44 = vld [vmem:[#allocation8 + $0x1de8] sm:$0xff]  ;;  %v17661_v8 = vcombine.low %v4976_v59, %v4980_v60  ;;  %v5020_v18 = vld [vmem:[#allocation8 + $0x1ee0] sm:$0xff] }
 0x41f   :  { %7814 = vmatprep.mubr.bf16.mxu0 %v19732_v29  ;;  %7978 = vmatprep.mubr.bf16.mxu1 %v19732_v29  ;;  %v5024_v60 = vld [vmem:[#allocation8 + $0x1f00] sm:$0xff]  ;;  %v5025_v57 = vld [vmem:[#allocation8 + $0x1f08] sm:$0xff] }
 0x420   :  { %7784 = vmatprep.subr.bf16.mxu0 %v17622_v20  ;;  %7948 = vmatprep.subr.bf16.mxu1 %v17624_v22  ;;  %v17670_v20 = vcombine.high %v4984_v12, %v4988_v3  ;;  %v17672_v22 = vcombine.high %v4985_v36, %v4989_v44  ;;  %v5028_v51 = vld [vmem:[#allocation8 + $0x1f20] sm:$0xff] }
 0x422   :  { %7785 = vmatpush1.bf16.msra.mxu0 %v17621_v30  ;;  %7949 = vmatpush1.bf16.msra.mxu1 %v17623_v41  ;;  %v4997_v30 = vld [vmem:[#allocation8 + $0x1e28] sm:$0xff]  ;;  %v17669_v41 = vcombine.low %v4984_v12, %v4988_v3  ;;  %v5032_v3 = vld [vmem:[#allocation8 + $0x1f40] sm:$0xff] }
 0x423   :  { %7786 = vmatprep.subr.bf16.mxu0 %v17630_v32  ;;  %7950 = vmatprep.subr.bf16.mxu1 %v17632_v33  ;;  %v17671_v32 = vcombine.low %v4985_v36, %v4989_v44  ;;  %v17678_v33 = vcombine.high %v4992_v23, %v4996_v25  ;;  %v17680_v34 = vcombine.high %v4993_v26, %v4997_v30  ;;  %v5036_v36 = vld [vmem:[#allocation8 + $0x1f60] sm:$0xff]  ;;  %v5033_v44 = vld [vmem:[#allocation8 + $0x1f48] sm:$0xff] }
 0x426   :  { %7787 = vmatpush1.bf16.msra.mxu0 %v17629_v40  ;;  %7951 = vmatpush1.bf16.msra.mxu1 %v17631_v14  ;;  %v5005_v40 = vld [vmem:[#allocation8 + $0x1e68] sm:$0xff]  ;;  %v17677_v14 = vcombine.low %v4992_v23, %v4996_v25  ;;  %v5040_v25 = vld [vmem:[#allocation8 + $0x1f80] sm:$0xff] }
 0x427   :  { %7788 = vmatprep.subr.bf16.mxu0 %v17638_v6  ;;  %7952 = vmatprep.subr.bf16.mxu1 %v17640_v42  ;;  %v17679_v6 = vcombine.low %v4993_v26, %v4997_v30  ;;  %v17686_v42 = vcombine.high %v5000_v10, %v5004_v35  ;;  %v17688_v43 = vcombine.high %v5001_v38, %v5005_v40  ;;  %v5044_v30 = vld [vmem:[#allocation8 + $0x1fa0] sm:$0xff] }
 0x428   :  { %v1282_v26 = vrot.slane %v19716_v48, %v19654_v2  ;;  %v17725_v48 = vcombine.low %v5040_v25, %v5044_v30 }
 0x42a   :  { %7789 = vmatpush1.bf16.msra.mxu0 %v17637_v47  ;;  %7953 = vmatpush1.bf16.msra.mxu1 %v17639_v49  ;;  %v5013_v47 = vld [vmem:[#allocation8 + $0x1ea8] sm:$0xff]  ;;  %v17685_v49 = vcombine.low %v5000_v10, %v5004_v35  ;;  %v17726_v10 = vcombine.high %v5040_v25, %v5044_v30 }
 0x42b   :  { %7790 = vmatprep.subr.bf16.mxu0 %v17646_v16  ;;  %7954 = vmatprep.subr.bf16.mxu1 %v17648_v50  ;;  %v17687_v16 = vcombine.low %v5001_v38, %v5005_v40  ;;  %v17694_v50 = vcombine.high %v5008_v0, %v5012_v45  ;;  %v17696_v52 = vcombine.high %v5009_v46, %v5013_v47  ;;  %v5048_v38 = vld [vmem:[#allocation8 + $0x1fc0] sm:$0xff] }
 0x42c   :  { %v18924_v40 = vadd.f32 %v19724_v53, %v1282_v26 }
 0x42e   :  { %7791 = vmatpush1.bf16.msra.mxu0 %v17645_v56  ;;  %7955 = vmatpush1.bf16.msra.mxu1 %v17647_v58  ;;  %v5021_v56 = vld [vmem:[#allocation8 + $0x1ee8] sm:$0xff]  ;;  %v17693_v58 = vcombine.low %v5008_v0, %v5012_v45  ;;  %vm4517_vm15 = vcmp.gt.f32.partialorder %v18924_v40, 0.0 }
 0x42f   :  { %7792 = vmatprep.subr.bf16.mxu0 %v17654_v24  ;;  %7956 = vmatprep.subr.bf16.mxu1 %v17656_v28  ;;  %v17695_v24 = vcombine.low %v5009_v46, %v5013_v47  ;;  %v17702_v28 = vcombine.high %v5016_v39, %v5020_v18  ;;  %v17704_v59 = vcombine.high %v5017_v55, %v5021_v56  ;;  %v4546_v46 = vld [vmem:[#allocation8 + $0x1010] sm:$0xff]  ;;  %v4525_v47 = vmul.f32 0.2, %v18924_v40 }
 0x432   :  { %7793 = vmatpush1.bf16.msra.mxu0 %v17653_v61  ;;  %7957 = vmatpush1.bf16.msra.mxu1 %v17655_v62  ;;  %v5029_v61 = vld [vmem:[#allocation8 + $0x1f28] sm:$0xff]  ;;  %v17701_v62 = vcombine.low %v5016_v39, %v5020_v18 }
 0x433   :  { %7794 = vmatprep.subr.bf16.mxu0 %v17662_v63  ;;  %7958 = vmatprep.subr.bf16.mxu1 %v17664_v1  ;;  %v17703_v63 = vcombine.low %v5017_v55, %v5021_v56  ;;  %v17710_v1 = vcombine.high %v5024_v60, %v5028_v51  ;;  %v17712_v12 = vcombine.high %v5025_v57, %v5029_v61  ;;  %v4554_v56 = vld [vmem:[#allocation8 + $0x1050] sm:$0xff] }
 0x434   :  { %v4533_v55 = vsel %vm4517_vm15, %v18924_v40, %v4525_v47  ;;  %v4594_v47 = vld [vmem:[#allocation8 + $0x1190] sm:$0xff] }
 0x436   :  { %7795 = vmatpush1.bf16.msra.mxu0 %v17661_v8  ;;  %7959 = vmatpush1.bf16.msra.mxu1 %v17663_v13  ;;  %v5037_v8 = vld [vmem:[#allocation8 + $0x1f68] sm:$0xff]  ;;  %v17709_v13 = vcombine.low %v5024_v60, %v5028_v51  ;;  %v19741_v60 = vpack.c.bf16 %v4533_v55, %v4533_v55  ;;  %v4602_v55 = vld [vmem:[#allocation8 + $0x11d0] sm:$0xff] }
 0x437   :  { %7796 = vmatprep.subr.bf16.mxu0 %v17670_v20  ;;  %7960 = vmatprep.subr.bf16.mxu1 %v17672_v22  ;;  %v17711_v20 = vcombine.low %v5025_v57, %v5029_v61  ;;  %v17718_v22 = vcombine.high %v5032_v3, %v5036_v36  ;;  %v17720_v23 = vcombine.high %v5033_v44, %v5037_v8 }
 0x43a   :  { %7797 = vmatpush1.bf16.msra.mxu0 %v17669_v41  ;;  %7961 = vmatpush1.bf16.msra.mxu1 %v17671_v32  ;;  %v5041_v41 = vld [vmem:[#allocation8 + $0x1f88] sm:$0xff] }
 0x43b   :  { %7798 = vmatprep.subr.bf16.mxu0 %v17678_v33  ;;  %7962 = vmatprep.subr.bf16.mxu1 %v17680_v34  ;;  %v5045_v32 = vld [vmem:[#allocation8 + $0x1fa8] sm:$0xff]  ;;  %v17717_v33 = vcombine.low %v5032_v3, %v5036_v36  ;;  %v17719_v34 = vcombine.low %v5033_v44, %v5037_v8 }
 0x43c   :  { %v17728_v35 = vcombine.high %v5041_v41, %v5045_v32 }
 0x43e   :  { %7799 = vmatpush1.bf16.msra.mxu0 %v17677_v14  ;;  %7963 = vmatpush1.bf16.msra.mxu1 %v17679_v6  ;;  %v5052_v14 = vld [vmem:[#allocation8 + $0x1fe0] sm:$0xff]  ;;  %v5049_v6 = vld [vmem:[#allocation8 + $0x1fc8] sm:$0xff] }
 0x43f   :  { %7800 = vmatprep.subr.bf16.mxu0 %v17686_v42  ;;  %7964 = vmatprep.subr.bf16.mxu1 %v17688_v43  ;;  %v5053_v42 = vld [vmem:[#allocation8 + $0x1fe8] sm:$0xff]  ;;  %v17727_v43 = vcombine.low %v5041_v41, %v5045_v32  ;;  %v17734_v0 = vcombine.high %v5048_v38, %v5052_v14  ;;  %v17733_v53 = vcombine.low %v5048_v38, %v5052_v14  ;;  %v4578_v32 = vld [vmem:[#allocation8 + $0x1110] sm:$0xff] }
 0x440   :  { %v17736_v45 = vcombine.high %v5049_v6, %v5053_v42  ;;  %v4586_v14 = vld [vmem:[#allocation8 + $0x1150] sm:$0xff] }
 0x442   :  { %7801 = vmatpush1.bf16.msra.mxu0 %v17685_v49  ;;  %7965 = vmatpush1.bf16.msra.mxu1 %v17687_v16  ;;  %v4550_v49 = vld [vmem:[#allocation8 + $0x1030] sm:$0xff]  ;;  %v4547_v16 = vld [vmem:[#allocation8 + $0x1018] sm:$0xff] }
 0x443   :  { %7802 = vmatprep.subr.bf16.mxu0 %v17694_v50  ;;  %7966 = vmatprep.subr.bf16.mxu1 %v17696_v52  ;;  %v4551_v50 = vld [vmem:[#allocation8 + $0x1038] sm:$0xff]  ;;  %v17735_v52 = vcombine.low %v5049_v6, %v5053_v42  ;;  %v17234_v39 = vcombine.high %v4546_v46, %v4550_v49  ;;  %v4590_v6 = vld [vmem:[#allocation8 + $0x1170] sm:$0xff] }
 0x444   :  { %v17236_v18 = vcombine.high %v4547_v16, %v4551_v50  ;;  %v17235_v51 = vcombine.low %v4547_v16, %v4551_v50  ;;  %v4587_v42 = vld [vmem:[#allocation8 + $0x1158] sm:$0xff] }
 0x445   :  { %v4595_v16 = vld [vmem:[#allocation8 + $0x1198] sm:$0xff] }
 0x446   :  { %7803 = vmatpush1.bf16.msra.mxu0 %v17693_v58  ;;  %7967 = vmatpush1.bf16.msra.mxu1 %v17695_v24  ;;  %v4558_v58 = vld [vmem:[#allocation8 + $0x1070] sm:$0xff]  ;;  %v4555_v24 = vld [vmem:[#allocation8 + $0x1058] sm:$0xff] }
 0x447   :  { %7804 = vmatprep.subr.bf16.mxu0 %v17702_v28  ;;  %7968 = vmatprep.subr.bf16.mxu1 %v17704_v59  ;;  %v4559_v28 = vld [vmem:[#allocation8 + $0x1078] sm:$0xff]  ;;  %v17233_v59 = vcombine.low %v4546_v46, %v4550_v49  ;;  %v17242_v57 = vcombine.high %v4554_v56, %v4558_v58  ;;  %v17241_v3 = vcombine.low %v4554_v56, %v4558_v58  ;;  %v4598_v49 = vld [vmem:[#allocation8 + $0x11b0] sm:$0xff] }
 0x448   :  { %v17244_v61 = vcombine.high %v4555_v24, %v4559_v28  ;;  %v17243_v36 = vcombine.low %v4555_v24, %v4559_v28  ;;  %v4599_v50 = vld [vmem:[#allocation8 + $0x11b8] sm:$0xff]  ;;  %v4606_v56 = vld [vmem:[#allocation8 + $0x11f0] sm:$0xff]  ;;  %v17281_v28 = vcombine.low %v4594_v47, %v4598_v49 }
 0x449   :  { %v4603_v58 = vld [vmem:[#allocation8 + $0x11d8] sm:$0xff] }
 0x44a   :  { %7805 = vmatpush1.bf16.msra.mxu0 %v17701_v62  ;;  %7969 = vmatpush1.bf16.msra.mxu1 %v17703_v63  ;;  %v4562_v62 = vld [vmem:[#allocation8 + $0x1090] sm:$0xff]  ;;  %v4607_v24 = vld [vmem:[#allocation8 + $0x11f8] sm:$0xff] }
 0x44b   :  { %7806 = vmatprep.subr.bf16.mxu0 %v17710_v1  ;;  %7970 = vmatprep.subr.bf16.mxu1 %v17712_v12  ;;  %v4566_v63 = vld [vmem:[#allocation8 + $0x10b0] sm:$0xff]  ;;  %v4563_v1 = vld [vmem:[#allocation8 + $0x1098] sm:$0xff] }
 0x44c   :  { %v4567_v12 = vld [vmem:[#allocation8 + $0x10b8] sm:$0xff]  ;;  %v17250_v44 = vcombine.high %v4562_v62, %v4566_v63  ;;  %v17249_v25 = vcombine.low %v4562_v62, %v4566_v63  ;;  %v4614_v62 = vld [vmem:[#allocation8 + $0x1230] sm:$0xff] }
 0x44d   :  { %v17252_v8 = vcombine.high %v4563_v1, %v4567_v12  ;;  %v17251_v26 = vcombine.low %v4563_v1, %v4567_v12  ;;  %v4611_v63 = vld [vmem:[#allocation8 + $0x1218] sm:$0xff]  ;;  %v17289_v12 = vcombine.low %v4602_v55, %v4606_v56 }
 0x44e   :  { %7807 = vmatpush1.bf16.msra.mxu0 %v17709_v13  ;;  %7971 = vmatpush1.bf16.msra.mxu1 %v17711_v20  ;;  %v4570_v13 = vld [vmem:[#allocation8 + $0x10d0] sm:$0xff]  ;;  %v4615_v1 = vld [vmem:[#allocation8 + $0x1238] sm:$0xff] }
 0x44f   :  { %7808 = vmatprep.subr.bf16.mxu0 %v17718_v22  ;;  %7972 = vmatprep.subr.bf16.mxu1 %v17720_v23  ;;  %v4574_v20 = vld [vmem:[#allocation8 + $0x10f0] sm:$0xff]  ;;  %v4571_v22 = vld [vmem:[#allocation8 + $0x10d8] sm:$0xff] }
 0x450   :  { %v4575_v23 = vld [vmem:[#allocation8 + $0x10f8] sm:$0xff]  ;;  %v17258_v30 = vcombine.high %v4570_v13, %v4574_v20 }
 0x451   :  { %v17260_v41 = vcombine.high %v4571_v22, %v4575_v23 }
 0x452   :  { %7809 = vmatpush1.bf16.msra.mxu0 %v17717_v33  ;;  %7973 = vmatpush1.bf16.msra.mxu1 %v17719_v34  ;;  %v4582_v33 = vld [vmem:[#allocation8 + $0x1130] sm:$0xff]  ;;  %v4583_v34 = vld [vmem:[#allocation8 + $0x1138] sm:$0xff] }
 0x453   :  { %7810 = vmatprep.subr.bf16.mxu0 %v17726_v10  ;;  %7974 = vmatprep.subr.bf16.mxu1 %v17728_v35  ;;  %v17257_v10 = vcombine.low %v4570_v13, %v4574_v20  ;;  %v17259_v35 = vcombine.low %v4571_v22, %v4575_v23  ;;  %v17266_v38 = vcombine.high %v4578_v32, %v4582_v33  ;;  %v4622_v13 = vld [vmem:[#allocation8 + $0x1270] sm:$0xff]  ;;  %v4619_v20 = vld [vmem:[#allocation8 + $0x1258] sm:$0xff] }
 0x454   :  { %v4623_v22 = vld [vmem:[#allocation8 + $0x1278] sm:$0xff] }
 0x456   :  { %7811 = vmatpush1.bf16.msra.mxu0 %v17725_v48  ;;  %7975 = vmatpush1.bf16.msra.mxu1 %v17727_v43  ;;  %v4591_v48 = vld [vmem:[#allocation8 + $0x1178] sm:$0xff]  ;;  %v17265_v43 = vcombine.low %v4578_v32, %v4582_v33  ;;  %v4630_v32 = vld [vmem:[#allocation8 + $0x12b0] sm:$0xff] }
 0x457   :  { %7812 = vmatprep.subr.bf16.mxu0 %v17734_v0  ;;  %7976 = vmatprep.subr.bf16.mxu1 %v17736_v45  ;;  %v17274_v45 = vcombine.high %v4586_v14, %v4590_v6  ;;  %v17276_v46 = vcombine.high %v4587_v42, %v4591_v48  ;;  %v4627_v33 = vld [vmem:[#allocation8 + $0x1298] sm:$0xff] }
 0x45a   :  { %7813 = vmatpush1.bf16.msra.mxu0 %v17733_v53  ;;  %7977 = vmatpush1.bf16.msra.mxu1 %v17735_v52  ;;  %v17273_v53 = vcombine.low %v4586_v14, %v4590_v6  ;;  %v17275_v52 = vcombine.low %v4587_v42, %v4591_v48  ;;  %v4638_v14 = vld [vmem:[#allocation8 + $0x12f0] sm:$0xff]  ;;  %v4635_v6 = vld [vmem:[#allocation8 + $0x12d8] sm:$0xff] }
 0x45b   :  { %7987 = vmatprep.subr.bf16.mxu0 %v17234_v39  ;;  %8151 = vmatprep.subr.bf16.mxu1 %v17236_v18  ;;  %v17282_v39 = vcombine.high %v4594_v47, %v4598_v49  ;;  %v17284_v18 = vcombine.high %v4595_v16, %v4599_v50  ;;  %v4639_v42 = vld [vmem:[#allocation8 + $0x12f8] sm:$0xff]  ;;  %v4646_v47 = vld [vmem:[#allocation8 + $0x1330] sm:$0xff] }
 0x45c   :  { %v4643_v49 = vld [vmem:[#allocation8 + $0x1318] sm:$0xff] }
 0x45d   :  { %7815 = vmatmul.mubr.bf16.vlgmr.msra.gmra.mrb[16].mxu0 %v19741_v60  ;;  %7979 = vmatmul.mubr.bf16.vlgmr.msra.gmra.mrb[16].mxu1 %v19741_v60 }
 0x45e   :  { %7988 = vmatpush1.bf16.msra.mxu0 %v17233_v59  ;;  %8019 = vmatprep.mubr.bf16.mxu0 %v19689_v5  ;;  %v17283_v59 = vcombine.low %v4595_v16, %v4599_v50  ;;  %v4647_v16 = vld [vmem:[#allocation8 + $0x1338] sm:$0xff] }
 0x45f   :  { %8152 = vmatpush1.bf16.msra.mxu1 %v17235_v51  ;;  %8183 = vmatprep.mubr.bf16.mxu1 %v19689_v5  ;;  %v4579_v5 = vld [vmem:[#allocation8 + $0x1118] sm:$0xff]  ;;  %v17290_v51 = vcombine.high %v4602_v55, %v4606_v56  ;;  %v4654_v55 = vld [vmem:[#allocation8 + $0x1370] sm:$0xff] }
 0x460   :  { %7989 = vmatprep.subr.bf16.mxu0 %v17242_v57  ;;  %8153 = vmatprep.subr.bf16.mxu1 %v17244_v61  ;;  %v17268_v40 = vcombine.high %v4579_v5, %v4583_v34  ;;  %v17267_v0 = vcombine.low %v4579_v5, %v4583_v34  ;;  %v17292_v57 = vcombine.high %v4603_v58, %v4607_v24  ;;  %v4610_v61 = vld [vmem:[#allocation8 + $0x1210] sm:$0xff]  ;;  %v4631_v5 = vld [vmem:[#allocation8 + $0x12b8] sm:$0xff] }
 0x461   :  { %v17297_v23 = vcombine.low %v4610_v61, %v4614_v62  ;;  %v4651_v56 = vld [vmem:[#allocation8 + $0x1358] sm:$0xff] }
 0x462   :  { %7990 = vmatpush1.bf16.msra.mxu0 %v17241_v3  ;;  %v17291_v3 = vcombine.low %v4603_v58, %v4607_v24  ;;  %v4655_v58 = vld [vmem:[#allocation8 + $0x1378] sm:$0xff] }
 0x463   :  { %8154 = vmatpush1.bf16.msra.mxu1 %v17243_v36  ;;  %7991 = vmatprep.subr.bf16.mxu0 %v17250_v44  ;;  %v17298_v36 = vcombine.high %v4610_v61, %v4614_v62  ;;  %v17300_v44 = vcombine.high %v4611_v63, %v4615_v1  ;;  %v4662_v61 = vld [vmem:[#allocation8 + $0x13b0] sm:$0xff]  ;;  %v4659_v62 = vld [vmem:[#allocation8 + $0x1398] sm:$0xff] }
 0x464   :  { %8155 = vmatprep.subr.bf16.mxu1 %v17252_v8  ;;  %v4618_v8 = vld [vmem:[#allocation8 + $0x1250] sm:$0xff] }
 0x465   :  { %v17305_v34 = vcombine.low %v4618_v8, %v4622_v13 }
 0x466   :  { %7992 = vmatpush1.bf16.msra.mxu0 %v17249_v25  ;;  %v17299_v25 = vcombine.low %v4611_v63, %v4615_v1  ;;  %v4663_v63 = vld [vmem:[#allocation8 + $0x13b8] sm:$0xff] }
 0x467   :  { %8156 = vmatpush1.bf16.msra.mxu1 %v17251_v26  ;;  %7993 = vmatprep.subr.bf16.mxu0 %v17258_v30  ;;  %v17306_v26 = vcombine.high %v4618_v8, %v4622_v13  ;;  %v17308_v30 = vcombine.high %v4619_v20, %v4623_v22  ;;  %v4670_v8 = vld [vmem:[#allocation8 + $0x13f0] sm:$0xff]  ;;  %v4667_v13 = vld [vmem:[#allocation8 + $0x13d8] sm:$0xff] }
 0x468   :  { %8157 = vmatprep.subr.bf16.mxu1 %v17260_v41  ;;  %v4626_v41 = vld [vmem:[#allocation8 + $0x1290] sm:$0xff] }
 0x469   :  { %v17313_v48 = vcombine.low %v4626_v41, %v4630_v32 }
 0x46a   :  { %7994 = vmatpush1.bf16.msra.mxu0 %v17257_v10  ;;  %v17307_v10 = vcombine.low %v4619_v20, %v4623_v22  ;;  %v4671_v20 = vld [vmem:[#allocation8 + $0x13f8] sm:$0xff] }
 0x46b   :  { %8158 = vmatpush1.bf16.msra.mxu1 %v17259_v35  ;;  %7995 = vmatprep.subr.bf16.mxu0 %v17266_v38  ;;  %v17314_v35 = vcombine.high %v4626_v41, %v4630_v32  ;;  %v17316_v38 = vcombine.high %v4627_v33, %v4631_v5  ;;  %v4678_v41 = vld [vmem:[#allocation8 + $0x1430] sm:$0xff]  ;;  %v4675_v32 = vld [vmem:[#allocation8 + $0x1418] sm:$0xff] }
 0x46c   :  { %8159 = vmatprep.subr.bf16.mxu1 %v17268_v40  ;;  %v4634_v40 = vld [vmem:[#allocation8 + $0x12d0] sm:$0xff] }
 0x46d   :  { %v17321_v50 = vcombine.low %v4634_v40, %v4638_v14 }
 0x46e   :  { %7996 = vmatpush1.bf16.msra.mxu0 %v17265_v43  ;;  %v17315_v43 = vcombine.low %v4627_v33, %v4631_v5  ;;  %v4679_v33 = vld [vmem:[#allocation8 + $0x1438] sm:$0xff] }
 0x46f   :  { %8160 = vmatpush1.bf16.msra.mxu1 %v17267_v0  ;;  %7997 = vmatprep.subr.bf16.mxu0 %v17274_v45  ;;  %v17322_v0 = vcombine.high %v4634_v40, %v4638_v14  ;;  %v17324_v45 = vcombine.high %v4635_v6, %v4639_v42  ;;  %v4686_v40 = vld [vmem:[#allocation8 + $0x1470] sm:$0xff] }
 0x470   :  { %8161 = vmatprep.subr.bf16.mxu1 %v17276_v46  ;;  %v4642_v46 = vld [vmem:[#allocation8 + $0x1310] sm:$0xff] }
 0x471   :  { %v17329_v24 = vcombine.low %v4642_v46, %v4646_v47 }
 0x472   :  { %7998 = vmatpush1.bf16.msra.mxu0 %v17273_v53  ;;  %v17323_v53 = vcombine.low %v4635_v6, %v4639_v42  ;;  %v4683_v6 = vld [vmem:[#allocation8 + $0x1458] sm:$0xff] }
 0x473   :  { %8162 = vmatpush1.bf16.msra.mxu1 %v17275_v52  ;;  %7999 = vmatprep.subr.bf16.mxu0 %v17282_v39  ;;  %v17330_v52 = vcombine.high %v4642_v46, %v4646_v47  ;;  %v17332_v39 = vcombine.high %v4643_v49, %v4647_v16  ;;  %v4687_v42 = vld [vmem:[#allocation8 + $0x1478] sm:$0xff] }
 0x474   :  { %8163 = vmatprep.subr.bf16.mxu1 %v17284_v18  ;;  %v4650_v18 = vld [vmem:[#allocation8 + $0x1350] sm:$0xff]  ;;  %v17372_v46 = vcombine.high %v4683_v6, %v4687_v42  ;;  %v4691_v47 = vld [vmem:[#allocation8 + $0x1498] sm:$0xff] }
 0x475   :  { %v17337_v1 = vcombine.low %v4650_v18, %v4654_v55 }
 0x476   :  { %8000 = vmatpush1.bf16.msra.mxu0 %v17281_v28  ;;  %v17331_v28 = vcombine.low %v4643_v49, %v4647_v16  ;;  %v4695_v49 = vld [vmem:[#allocation8 + $0x14b8] sm:$0xff] }
 0x477   :  { %8164 = vmatpush1.bf16.msra.mxu1 %v17283_v59  ;;  %8001 = vmatprep.subr.bf16.mxu0 %v17290_v51  ;;  %v17338_v59 = vcombine.high %v4650_v18, %v4654_v55  ;;  %v17340_v51 = vcombine.high %v4651_v56, %v4655_v58  ;;  %v4702_v18 = vld [vmem:[#allocation8 + $0x14f0] sm:$0xff]  ;;  %v4699_v55 = vld [vmem:[#allocation8 + $0x14d8] sm:$0xff] }
 0x478   :  { %8165 = vmatprep.subr.bf16.mxu1 %v17292_v57  ;;  %v4658_v57 = vld [vmem:[#allocation8 + $0x1390] sm:$0xff] }
 0x479   :  { %v17345_v22 = vcombine.low %v4658_v57, %v4662_v61 }
 0x47a   :  { %8002 = vmatpush1.bf16.msra.mxu0 %v17289_v12  ;;  %v17339_v12 = vcombine.low %v4651_v56, %v4655_v58  ;;  %v4703_v56 = vld [vmem:[#allocation8 + $0x14f8] sm:$0xff] }
 0x47b   :  { %8166 = vmatpush1.bf16.msra.mxu1 %v17291_v3  ;;  %8003 = vmatprep.subr.bf16.mxu0 %v17298_v36  ;;  %v17346_v3 = vcombine.high %v4658_v57, %v4662_v61  ;;  %v17348_v36 = vcombine.high %v4659_v62, %v4663_v63  ;;  %v4707_v57 = vld [vmem:[#allocation8 + $0x1518] sm:$0xff] }
 0x47c   :  { %8167 = vmatprep.subr.bf16.mxu1 %v17300_v44  ;;  %v4666_v44 = vld [vmem:[#allocation8 + $0x13d0] sm:$0xff]  ;;  %v4711_v61 = vld [vmem:[#allocation8 + $0x1538] sm:$0xff] }
 0x47d   :  { %v17353_v5 = vcombine.low %v4666_v44, %v4670_v8 }
 0x47e   :  { %8004 = vmatpush1.bf16.msra.mxu0 %v17297_v23  ;;  %v17347_v23 = vcombine.low %v4659_v62, %v4663_v63  ;;  %v17387_v62 = vcombine.low %v4699_v55, %v4703_v56 }
 0x47f   :  { %8168 = vmatpush1.bf16.msra.mxu1 %v17299_v25  ;;  %8005 = vmatprep.subr.bf16.mxu0 %v17306_v26  ;;  %v17354_v25 = vcombine.high %v4666_v44, %v4670_v8  ;;  %v17356_v26 = vcombine.high %v4667_v13, %v4671_v20  ;;  %v4719_v44 = vld [vmem:[#allocation8 + $0x1578] sm:$0xff] }
 0x480   :  { %8169 = vmatprep.subr.bf16.mxu1 %v17308_v30  ;;  %v4674_v30 = vld [vmem:[#allocation8 + $0x1410] sm:$0xff] }
 0x481   :  { %v17361_v14 = vcombine.low %v4674_v30, %v4678_v41 }
 0x482   :  { %8006 = vmatpush1.bf16.msra.mxu0 %v17305_v34  ;;  %v17355_v34 = vcombine.low %v4667_v13, %v4671_v20  ;;  %v17395_v13 = vcombine.low %v4707_v57, %v4711_v61 }
 0x483   :  { %8170 = vmatpush1.bf16.msra.mxu1 %v17307_v10  ;;  %8007 = vmatprep.subr.bf16.mxu0 %v17314_v35  ;;  %v17362_v10 = vcombine.high %v4674_v30, %v4678_v41  ;;  %v17364_v35 = vcombine.high %v4675_v32, %v4679_v33  ;;  %v4727_v30 = vld [vmem:[#allocation8 + $0x15b8] sm:$0xff] }
 0x484   :  { %8171 = vmatprep.subr.bf16.mxu1 %v17316_v38  ;;  %v4682_v38 = vld [vmem:[#allocation8 + $0x1450] sm:$0xff] }
 0x485   :  { %v17369_v16 = vcombine.low %v4682_v38, %v4686_v40 }
 0x486   :  { %8008 = vmatpush1.bf16.msra.mxu0 %v17313_v48  ;;  %v17363_v48 = vcombine.low %v4675_v32, %v4679_v33 }
 0x487   :  { %8172 = vmatpush1.bf16.msra.mxu1 %v17315_v43  ;;  %8009 = vmatprep.subr.bf16.mxu0 %v17322_v0  ;;  %v17370_v43 = vcombine.high %v4682_v38, %v4686_v40  ;;  %v4690_v0 = vld [vmem:[#allocation8 + $0x1490] sm:$0xff]  ;;  %v4735_v38 = vld [vmem:[#allocation8 + $0x15f8] sm:$0xff] }
 0x488   :  { %8173 = vmatprep.subr.bf16.mxu1 %v17324_v45  ;;  %v4694_v45 = vld [vmem:[#allocation8 + $0x14b0] sm:$0xff] }
 0x489   :  { %v17377_v58 = vcombine.low %v4690_v0, %v4694_v45 }
 0x48a   :  { %8010 = vmatpush1.bf16.msra.mxu0 %v17321_v50  ;;  %v17371_v50 = vcombine.low %v4683_v6, %v4687_v42 }
 0x48b   :  { %8174 = vmatpush1.bf16.msra.mxu1 %v17323_v53  ;;  %8011 = vmatprep.subr.bf16.mxu0 %v17330_v52  ;;  %v17378_v53 = vcombine.high %v4690_v0, %v4694_v45  ;;  %v17380_v52 = vcombine.high %v4691_v47, %v4695_v49  ;;  %v4739_v0 = vld [vmem:[#allocation8 + $0x1618] sm:$0xff] }
 0x48c   :  { %8175 = vmatprep.subr.bf16.mxu1 %v17332_v39  ;;  %v4698_v39 = vld [vmem:[#allocation8 + $0x14d0] sm:$0xff]  ;;  %v4743_v45 = vld [vmem:[#allocation8 + $0x1638] sm:$0xff] }
 0x48e   :  { %8012 = vmatpush1.bf16.msra.mxu0 %v17329_v24  ;;  %v17386_v24 = vcombine.high %v4698_v39, %v4702_v18 }
 0x48f   :  { %8176 = vmatpush1.bf16.msra.mxu1 %v17331_v28  ;;  %8013 = vmatprep.subr.bf16.mxu0 %v17338_v59  ;;  %v17388_v28 = vcombine.high %v4699_v55, %v4703_v56  ;;  %v4706_v59 = vld [vmem:[#allocation8 + $0x1510] sm:$0xff]  ;;  %v17427_v55 = vcombine.low %v4739_v0, %v4743_v45 }
 0x490   :  { %8177 = vmatprep.subr.bf16.mxu1 %v17340_v51  ;;  %v4710_v51 = vld [vmem:[#allocation8 + $0x1530] sm:$0xff] }
 0x491   :  { %v17394_v63 = vcombine.high %v4706_v59, %v4710_v51  ;;  %v17393_v8 = vcombine.low %v4706_v59, %v4710_v51  ;;  %v4759_v59 = vld [vmem:[#allocation8 + $0x16b8] sm:$0xff] }
 0x492   :  { %8014 = vmatpush1.bf16.msra.mxu0 %v17337_v1  ;;  %v17396_v1 = vcombine.high %v4707_v57, %v4711_v61 }
 0x493   :  { %8178 = vmatpush1.bf16.msra.mxu1 %v17339_v12  ;;  %8015 = vmatprep.subr.bf16.mxu0 %v17346_v3  ;;  %v4714_v12 = vld [vmem:[#allocation8 + $0x1550] sm:$0xff] }
 0x494   :  { %8179 = vmatprep.subr.bf16.mxu1 %v17348_v36  ;;  %v4718_v3 = vld [vmem:[#allocation8 + $0x1570] sm:$0xff]  ;;  %v4715_v36 = vld [vmem:[#allocation8 + $0x1558] sm:$0xff] }
 0x495   :  { %v17402_v20 = vcombine.high %v4714_v12, %v4718_v3  ;;  %v17401_v41 = vcombine.low %v4714_v12, %v4718_v3  ;;  %v17403_v32 = vcombine.low %v4715_v36, %v4719_v44  ;;  %v4767_v12 = vld [vmem:[#allocation8 + $0x16f8] sm:$0xff] }
 0x496   :  { %8016 = vmatpush1.bf16.msra.mxu0 %v17345_v22  ;;  %v17404_v22 = vcombine.high %v4715_v36, %v4719_v44 }
 0x497   :  { %8180 = vmatpush1.bf16.msra.mxu1 %v17347_v23  ;;  %8017 = vmatprep.subr.bf16.mxu0 %v17354_v25  ;;  %v4722_v23 = vld [vmem:[#allocation8 + $0x1590] sm:$0xff] }
 0x498   :  { %8181 = vmatprep.subr.bf16.mxu1 %v17356_v26  ;;  %v4726_v25 = vld [vmem:[#allocation8 + $0x15b0] sm:$0xff]  ;;  %v4723_v26 = vld [vmem:[#allocation8 + $0x1598] sm:$0xff] }
 0x499   :  { %v17410_v33 = vcombine.high %v4722_v23, %v4726_v25  ;;  %v17409_v40 = vcombine.low %v4722_v23, %v4726_v25  ;;  %v4775_v23 = vld [vmem:[#allocation8 + $0x1738] sm:$0xff] }
 0x49a   :  { %8018 = vmatpush1.bf16.msra.mxu0 %v17353_v5  ;;  %v17412_v5 = vcombine.high %v4723_v26, %v4727_v30 }
 0x49b   :  { %8182 = vmatpush1.bf16.msra.mxu1 %v17355_v34  ;;  %8028 = vmatprep.subr.bf16.mxu0 %v17362_v10  ;;  %v4730_v34 = vld [vmem:[#allocation8 + $0x15d0] sm:$0xff] }
 0x49c   :  { %8192 = vmatprep.subr.bf16.mxu1 %v17364_v35  ;;  %v4734_v10 = vld [vmem:[#allocation8 + $0x15f0] sm:$0xff]  ;;  %v4731_v35 = vld [vmem:[#allocation8 + $0x15d8] sm:$0xff] }
 0x49d   :  { %8020 = vmatmul.mubr.bf16.vlgmr.msra.gmra.mrb[20].mxu0 %v19701_v7  ;;  %v17418_v6 = vcombine.high %v4730_v34, %v4734_v10  ;;  %v17420_v42 = vcombine.high %v4731_v35, %v4735_v38 }
 0x49e   :  { %8184 = vmatmul.mubr.bf16.vlgmr.msra.gmra.mrb[20].mxu1 %v19701_v7  ;;  %8029 = vmatpush1.bf16.msra.mxu0 %v17361_v14  ;;  %v17379_v7 = vcombine.low %v4691_v47, %v4695_v49  ;;  %v17411_v14 = vcombine.low %v4723_v26, %v4727_v30  ;;  %v17419_v47 = vcombine.low %v4731_v35, %v4735_v38 }
 0x49f   :  { %8060 = vmatprep.mubr.bf16.mxu0 %v19703_v54  ;;  %8193 = vmatpush1.bf16.msra.mxu1 %v17363_v48  ;;  %v4738_v48 = vld [vmem:[#allocation8 + $0x1610] sm:$0xff] }
 0x4a0   :  { %8224 = vmatprep.mubr.bf16.mxu1 %v19703_v54  ;;  %8030 = vmatprep.subr.bf16.mxu0 %v17370_v43  ;;  %v17385_v54 = vcombine.low %v4698_v39, %v4702_v18  ;;  %v4742_v43 = vld [vmem:[#allocation8 + $0x1630] sm:$0xff]  ;;  %v4751_v39 = vld [vmem:[#allocation8 + $0x1678] sm:$0xff] }
 0x4a1   :  { %8194 = vmatprep.subr.bf16.mxu1 %v17372_v46  ;;  %v17417_v46 = vcombine.low %v4730_v34, %v4734_v10  ;;  %v17426_v49 = vcombine.high %v4738_v48, %v4742_v43  ;;  %v17425_v18 = vcombine.low %v4738_v48, %v4742_v43  ;;  %v4783_v34 = vld [vmem:[#allocation8 + $0x1778] sm:$0xff] }
 0x4a2   :  { %8031 = vmatpush1.bf16.msra.mxu0 %v17369_v16  ;;  %v17428_v16 = vcombine.high %v4739_v0, %v4743_v45  ;;  %v4791_v48 = vld [vmem:[#allocation8 + $0x17b8] sm:$0xff] }
 0x4a3   :  { %8195 = vmatpush1.bf16.msra.mxu1 %v17371_v50  ;;  %8032 = vmatprep.subr.bf16.mxu0 %v17378_v53  ;;  %v4746_v50 = vld [vmem:[#allocation8 + $0x1650] sm:$0xff] }
 0x4a4   :  { %8196 = vmatprep.subr.bf16.mxu1 %v17380_v52  ;;  %v4750_v53 = vld [vmem:[#allocation8 + $0x1670] sm:$0xff]  ;;  %v4747_v52 = vld [vmem:[#allocation8 + $0x1658] sm:$0xff] }
 0x4a5   :  { %v17434_v56 = vcombine.high %v4746_v50, %v4750_v53  ;;  %v17433_v51 = vcombine.low %v4746_v50, %v4750_v53  ;;  %v17435_v57 = vcombine.low %v4747_v52, %v4751_v39  ;;  %v4799_v50 = vld [vmem:[#allocation8 + $0x17f8] sm:$0xff] }
 0x4a6   :  { %8033 = vmatpush1.bf16.msra.mxu0 %v17377_v58  ;;  %v17436_v58 = vcombine.high %v4747_v52, %v4751_v39 }
 0x4a7   :  { %8197 = vmatpush1.bf16.msra.mxu1 %v17379_v7  ;;  %8034 = vmatprep.subr.bf16.mxu0 %v17386_v24  ;;  %v4754_v7 = vld [vmem:[#allocation8 + $0x1690] sm:$0xff] }
 0x4a8   :  { %8198 = vmatprep.subr.bf16.mxu1 %v17388_v28  ;;  %v4758_v24 = vld [vmem:[#allocation8 + $0x16b0] sm:$0xff]  ;;  %v4755_v28 = vld [vmem:[#allocation8 + $0x1698] sm:$0xff] }
 0x4a9   :  { %v17442_v61 = vcombine.high %v4754_v7, %v4758_v24  ;;  %v17441_v3 = vcombine.low %v4754_v7, %v4758_v24  ;;  %v17443_v36 = vcombine.low %v4755_v28, %v4759_v59  ;;  %v4807_v7 = vld [vmem:[#allocation8 + $0x1838] sm:$0xff] }
 0x4aa   :  { %8035 = vmatpush1.bf16.msra.mxu0 %v17385_v54  ;;  %v17444_v54 = vcombine.high %v4755_v28, %v4759_v59 }
 0x4ab   :  { %8199 = vmatpush1.bf16.msra.mxu1 %v17387_v62  ;;  %8036 = vmatprep.subr.bf16.mxu0 %v17394_v63  ;;  %v4762_v62 = vld [vmem:[#allocation8 + $0x16d0] sm:$0xff] }
 0x4ac   :  { %8200 = vmatprep.subr.bf16.mxu1 %v17396_v1  ;;  %v4766_v63 = vld [vmem:[#allocation8 + $0x16f0] sm:$0xff]  ;;  %v4763_v1 = vld [vmem:[#allocation8 + $0x16d8] sm:$0xff] }
 0x4ad   :  { %v17450_v44 = vcombine.high %v4762_v62, %v4766_v63  ;;  %v17449_v25 = vcombine.low %v4762_v62, %v4766_v63  ;;  %v17451_v26 = vcombine.low %v4763_v1, %v4767_v12  ;;  %v4811_v62 = vld [vmem:[#allocation8 + $0x1858] sm:$0xff] }
 0x4ae   :  { %8037 = vmatpush1.bf16.msra.mxu0 %v17393_v8  ;;  %v17452_v8 = vcombine.high %v4763_v1, %v4767_v12  ;;  %v4815_v63 = vld [vmem:[#allocation8 + $0x1878] sm:$0xff] }
 0x4af   :  { %8201 = vmatpush1.bf16.msra.mxu1 %v17395_v13  ;;  %8038 = vmatprep.subr.bf16.mxu0 %v17402_v20  ;;  %v4770_v13 = vld [vmem:[#allocation8 + $0x1710] sm:$0xff] }
 0x4b0   :  { %8202 = vmatprep.subr.bf16.mxu1 %v17404_v22  ;;  %v4774_v20 = vld [vmem:[#allocation8 + $0x1730] sm:$0xff]  ;;  %v4771_v22 = vld [vmem:[#allocation8 + $0x1718] sm:$0xff] }
 0x4b1   :  { %v17458_v30 = vcombine.high %v4770_v13, %v4774_v20  ;;  %v17457_v10 = vcombine.low %v4770_v13, %v4774_v20  ;;  %v17459_v35 = vcombine.low %v4771_v22, %v4775_v23  ;;  %v4823_v13 = vld [vmem:[#allocation8 + $0x18b8] sm:$0xff] }
 0x4b2   :  { %8039 = vmatpush1.bf16.msra.mxu0 %v17401_v41  ;;  %v17460_v41 = vcombine.high %v4771_v22, %v4775_v23  ;;  %v17499_v22 = vcombine.low %v4811_v62, %v4815_v63 }
 0x4b3   :  { %8203 = vmatpush1.bf16.msra.mxu1 %v17403_v32  ;;  %8040 = vmatprep.subr.bf16.mxu0 %v17410_v33  ;;  %v4778_v32 = vld [vmem:[#allocation8 + $0x1750] sm:$0xff] }
 0x4b4   :  { %8204 = vmatprep.subr.bf16.mxu1 %v17412_v5  ;;  %v4782_v33 = vld [vmem:[#allocation8 + $0x1770] sm:$0xff]  ;;  %v4779_v5 = vld [vmem:[#allocation8 + $0x1758] sm:$0xff] }
 0x4b5   :  { %v17466_v38 = vcombine.high %v4778_v32, %v4782_v33  ;;  %v17465_v43 = vcombine.low %v4778_v32, %v4782_v33  ;;  %v17467_v0 = vcombine.low %v4779_v5, %v4783_v34  ;;  %v4831_v32 = vld [vmem:[#allocation8 + $0x18f8] sm:$0xff] }
 0x4b6   :  { %8041 = vmatpush1.bf16.msra.mxu0 %v17409_v40  ;;  %v17468_v40 = vcombine.high %v4779_v5, %v4783_v34 }
 0x4b7   :  { %8205 = vmatpush1.bf16.msra.mxu1 %v17411_v14  ;;  %8042 = vmatprep.subr.bf16.mxu0 %v17418_v6  ;;  %v4786_v14 = vld [vmem:[#allocation8 + $0x1790] sm:$0xff] }
 0x4b8   :  { %8206 = vmatprep.subr.bf16.mxu1 %v17420_v42  ;;  %v4790_v6 = vld [vmem:[#allocation8 + $0x17b0] sm:$0xff]  ;;  %v4787_v42 = vld [vmem:[#allocation8 + $0x1798] sm:$0xff] }
 0x4b9   :  { %v17474_v45 = vcombine.high %v4786_v14, %v4790_v6  ;;  %v17473_v53 = vcombine.low %v4786_v14, %v4790_v6  ;;  %v17475_v52 = vcombine.low %v4787_v42, %v4791_v48 }
 0x4ba   :  { %8043 = vmatpush1.bf16.msra.mxu0 %v17417_v46  ;;  %v17476_v46 = vcombine.high %v4787_v42, %v4791_v48  ;;  %v4842_v48 = vld [vmem:[#allocation8 + $0x1950] sm:$0xff] }
 0x4bb   :  { %8207 = vmatpush1.bf16.msra.mxu1 %v17419_v47  ;;  %8044 = vmatprep.subr.bf16.mxu0 %v17426_v49  ;;  %v4794_v47 = vld [vmem:[#allocation8 + $0x17d0] sm:$0xff] }
 0x4bc   :  { %8208 = vmatprep.subr.bf16.mxu1 %v17428_v16  ;;  %v4798_v49 = vld [vmem:[#allocation8 + $0x17f0] sm:$0xff]  ;;  %v4795_v16 = vld [vmem:[#allocation8 + $0x17d8] sm:$0xff] }
 0x4bd   :  { %v17482_v39 = vcombine.high %v4794_v47, %v4798_v49  ;;  %v17481_v24 = vcombine.low %v4794_v47, %v4798_v49  ;;  %v17483_v28 = vcombine.low %v4795_v16, %v4799_v50 }
 0x4be   :  { %8045 = vmatpush1.bf16.msra.mxu0 %v17425_v18  ;;  %v17484_v18 = vcombine.high %v4795_v16, %v4799_v50  ;;  %v4850_v50 = vld [vmem:[#allocation8 + $0x1990] sm:$0xff] }
 0x4bf   :  { %8209 = vmatpush1.bf16.msra.mxu1 %v17427_v55  ;;  %8046 = vmatprep.subr.bf16.mxu0 %v17434_v56  ;;  %v4802_v55 = vld [vmem:[#allocation8 + $0x1810] sm:$0xff] }
 0x4c0   :  { %8210 = vmatprep.subr.bf16.mxu1 %v17436_v58  ;;  %v4806_v56 = vld [vmem:[#allocation8 + $0x1830] sm:$0xff]  ;;  %v4803_v58 = vld [vmem:[#allocation8 + $0x1818] sm:$0xff] }
 0x4c1   :  { %v17490_v59 = vcombine.high %v4802_v55, %v4806_v56  ;;  %v17491_v1 = vcombine.low %v4803_v58, %v4807_v7 }
 0x4c2   :  { %8047 = vmatpush1.bf16.msra.mxu0 %v17433_v51  ;;  %v17492_v51 = vcombine.high %v4803_v58, %v4807_v7  ;;  %v4858_v7 = vld [vmem:[#allocation8 + $0x19d0] sm:$0xff] }
 0x4c3   :  { %8211 = vmatpush1.bf16.msra.mxu1 %v17435_v57  ;;  %8048 = vmatprep.subr.bf16.mxu0 %v17442_v61  ;;  %v4810_v57 = vld [vmem:[#allocation8 + $0x1850] sm:$0xff] }
 0x4c4   :  { %8212 = vmatprep.subr.bf16.mxu1 %v17444_v54  ;;  %v4814_v61 = vld [vmem:[#allocation8 + $0x1870] sm:$0xff]  ;;  %v17489_v54 = vcombine.low %v4802_v55, %v4806_v56 }
 0x4c5   :  { %v17498_v12 = vcombine.high %v4810_v57, %v4814_v61  ;;  %v17497_v20 = vcombine.low %v4810_v57, %v4814_v61 }
 0x4c6   :  { %8049 = vmatpush1.bf16.msra.mxu0 %v17441_v3  ;;  %v4818_v3 = vld [vmem:[#allocation8 + $0x1890] sm:$0xff] }
 0x4c7   :  { %8213 = vmatpush1.bf16.msra.mxu1 %v17443_v36  ;;  %8050 = vmatprep.subr.bf16.mxu0 %v17450_v44  ;;  %v4822_v36 = vld [vmem:[#allocation8 + $0x18b0] sm:$0xff]  ;;  %v17500_v44 = vcombine.high %v4811_v62, %v4815_v63 }
 0x4c8   :  { %8214 = vmatprep.subr.bf16.mxu1 %v17452_v8  ;;  %v4819_v8 = vld [vmem:[#allocation8 + $0x1898] sm:$0xff]  ;;  %v17506_v23 = vcombine.high %v4818_v3, %v4822_v36  ;;  %v17505_v33 = vcombine.low %v4818_v3, %v4822_v36  ;;  %v4866_v62 = vld [vmem:[#allocation8 + $0x1a10] sm:$0xff] }
 0x4c9   :  { %v4870_v63 = vld [vmem:[#allocation8 + $0x1a30] sm:$0xff] }
 0x4ca   :  { %8051 = vmatpush1.bf16.msra.mxu0 %v17449_v25  ;;  %v17508_v25 = vcombine.high %v4819_v8, %v4823_v13 }
 0x4cb   :  { %8215 = vmatpush1.bf16.msra.mxu1 %v17451_v26  ;;  %8052 = vmatprep.subr.bf16.mxu0 %v17458_v30  ;;  %v4826_v26 = vld [vmem:[#allocation8 + $0x18d0] sm:$0xff] }
 0x4cc   :  { %8216 = vmatprep.subr.bf16.mxu1 %v17460_v41  ;;  %v4830_v30 = vld [vmem:[#allocation8 + $0x18f0] sm:$0xff]  ;;  %v4827_v41 = vld [vmem:[#allocation8 + $0x18d8] sm:$0xff] }
 0x4cd   :  { %v17514_v5 = vcombine.high %v4826_v26, %v4830_v30  ;;  %v17516_v34 = vcombine.high %v4827_v41, %v4831_v32  ;;  %v17515_v14 = vcombine.low %v4827_v41, %v4831_v32  ;;  %v4882_v32 = vld [vmem:[#allocation8 + $0x1a90] sm:$0xff] }
 0x4ce   :  { %8053 = vmatpush1.bf16.msra.mxu0 %v17457_v10  ;;  %v4834_v10 = vld [vmem:[#allocation8 + $0x1910] sm:$0xff] }
 0x4cf   :  { %8217 = vmatpush1.bf16.msra.mxu1 %v17459_v35  ;;  %8054 = vmatprep.subr.bf16.mxu0 %v17466_v38  ;;  %v4838_v35 = vld [vmem:[#allocation8 + $0x1930] sm:$0xff]  ;;  %v4835_v38 = vld [vmem:[#allocation8 + $0x1918] sm:$0xff] }
 0x4d0   :  { %8218 = vmatprep.subr.bf16.mxu1 %v17468_v40  ;;  %v4839_v40 = vld [vmem:[#allocation8 + $0x1938] sm:$0xff]  ;;  %v17522_v6 = vcombine.high %v4834_v10, %v4838_v35 }
 0x4d1   :  { %v17524_v42 = vcombine.high %v4835_v38, %v4839_v40  ;;  %v17523_v47 = vcombine.low %v4835_v38, %v4839_v40  ;;  %v4890_v40 = vld [vmem:[#allocation8 + $0x1ad0] sm:$0xff] }
 0x4d2   :  { %8055 = vmatpush1.bf16.msra.mxu0 %v17465_v43  ;;  %v4846_v43 = vld [vmem:[#allocation8 + $0x1970] sm:$0xff] }
 0x4d3   :  { %8219 = vmatpush1.bf16.msra.mxu1 %v17467_v0  ;;  %8056 = vmatprep.subr.bf16.mxu0 %v17474_v45  ;;  %v4843_v0 = vld [vmem:[#allocation8 + $0x1958] sm:$0xff]  ;;  %v17530_v49 = vcombine.high %v4842_v48, %v4846_v43 }
 0x4d4   :  { %8220 = vmatprep.subr.bf16.mxu1 %v17476_v46  ;;  %v4847_v45 = vld [vmem:[#allocation8 + $0x1978] sm:$0xff]  ;;  %v17521_v46 = vcombine.low %v4834_v10, %v4838_v35 }
 0x4d5   :  { %v17532_v16 = vcombine.high %v4843_v0, %v4847_v45  ;;  %v17531_v55 = vcombine.low %v4843_v0, %v4847_v45  ;;  %v4898_v45 = vld [vmem:[#allocation8 + $0x1b10] sm:$0xff] }
 0x4d6   :  { %8057 = vmatpush1.bf16.msra.mxu0 %v17473_v53  ;;  %v4854_v53 = vld [vmem:[#allocation8 + $0x19b0] sm:$0xff] }
 0x4d7   :  { %8221 = vmatpush1.bf16.msra.mxu1 %v17475_v52  ;;  %8058 = vmatprep.subr.bf16.mxu0 %v17482_v39  ;;  %v4851_v52 = vld [vmem:[#allocation8 + $0x1998] sm:$0xff]  ;;  %v17538_v56 = vcombine.high %v4850_v50, %v4854_v53 }
 0x4d8   :  { %8222 = vmatprep.subr.bf16.mxu1 %v17484_v18  ;;  %v4855_v39 = vld [vmem:[#allocation8 + $0x19b8] sm:$0xff]  ;;  %v17529_v18 = vcombine.low %v4842_v48, %v4846_v43 }
 0x4d9   :  { %v17540_v58 = vcombine.high %v4851_v52, %v4855_v39  ;;  %v17539_v57 = vcombine.low %v4851_v52, %v4855_v39  ;;  %v4906_v39 = vld [vmem:[#allocation8 + $0x1b50] sm:$0xff] }
 0x4da   :  { %8059 = vmatpush1.bf16.msra.mxu0 %v17481_v24  ;;  %v4862_v24 = vld [vmem:[#allocation8 + $0x19f0] sm:$0xff] }
 0x4db   :  { %8223 = vmatpush1.bf16.msra.mxu1 %v17483_v28  ;;  %8069 = vmatprep.subr.bf16.mxu0 %v17490_v59  ;;  %v4859_v28 = vld [vmem:[#allocation8 + $0x19d8] sm:$0xff]  ;;  %v17546_v61 = vcombine.high %v4858_v7, %v4862_v24  ;;  %v17545_v3 = vcombine.low %v4858_v7, %v4862_v24 }
 0x4dc   :  { %8233 = vmatprep.subr.bf16.mxu1 %v17492_v51  ;;  %v4863_v59 = vld [vmem:[#allocation8 + $0x19f8] sm:$0xff]  ;;  %v17537_v51 = vcombine.low %v4850_v50, %v4854_v53 }
 0x4dd   :  { %8061 = vmatmul.mubr.bf16.vlgmr.msra.gmra.mrb[20].mxu0 %v19712_v37  ;;  %v17547_v36 = vcombine.low %v4859_v28, %v4863_v59 }
 0x4de   :  { %8225 = vmatmul.mubr.bf16.vlgmr.msra.gmra.mrb[20].mxu1 %v19712_v37  ;;  %8070 = vmatpush1.bf16.msra.mxu0 %v17489_v54  ;;  %v17507_v37 = vcombine.low %v4819_v8, %v4823_v13  ;;  %v17548_v54 = vcombine.high %v4859_v28, %v4863_v59  ;;  %v4874_v13 = vld [vmem:[#allocation8 + $0x1a50] sm:$0xff] }
 0x4df   :  { %8101 = vmatprep.mubr.bf16.mxu0 %v19726_v4  ;;  %8234 = vmatpush1.bf16.msra.mxu1 %v17491_v1  ;;  %v4867_v1 = vld [vmem:[#allocation8 + $0x1a18] sm:$0xff]  ;;  %v4914_v59 = vld [vmem:[#allocation8 + $0x1b90] sm:$0xff] }
 0x4e0   :  { %8265 = vmatprep.mubr.bf16.mxu1 %v19726_v4  ;;  %8071 = vmatprep.subr.bf16.mxu0 %v17498_v12  ;;  %v17513_v4 = vcombine.low %v4826_v26, %v4830_v30  ;;  %v4871_v12 = vld [vmem:[#allocation8 + $0x1a38] sm:$0xff] }
 0x4e1   :  { %8235 = vmatprep.subr.bf16.mxu1 %v17500_v44  ;;  %v17554_v44 = vcombine.high %v4866_v62, %v4870_v63  ;;  %v17556_v8 = vcombine.high %v4867_v1, %v4871_v12  ;;  %v17555_v26 = vcombine.low %v4867_v1, %v4871_v12  ;;  %v4922_v12 = vld [vmem:[#allocation8 + $0x1bd0] sm:$0xff] }
 0x4e2   :  { %8072 = vmatpush1.bf16.msra.mxu0 %v17497_v20  ;;  %v4878_v20 = vld [vmem:[#allocation8 + $0x1a70] sm:$0xff] }
 0x4e3   :  { %8236 = vmatpush1.bf16.msra.mxu1 %v17499_v22  ;;  %8073 = vmatprep.subr.bf16.mxu0 %v17506_v23  ;;  %v4875_v22 = vld [vmem:[#allocation8 + $0x1a58] sm:$0xff]  ;;  %v17562_v30 = vcombine.high %v4874_v13, %v4878_v20 }
 0x4e4   :  { %8237 = vmatprep.subr.bf16.mxu1 %v17508_v25  ;;  %v4879_v23 = vld [vmem:[#allocation8 + $0x1a78] sm:$0xff]  ;;  %v17553_v25 = vcombine.low %v4866_v62, %v4870_v63 }
 0x4e5   :  { %v17564_v41 = vcombine.high %v4875_v22, %v4879_v23  ;;  %v17563_v10 = vcombine.low %v4875_v22, %v4879_v23  ;;  %v4930_v23 = vld [vmem:[#allocation8 + $0x1c10] sm:$0xff] }
 0x4e6   :  { %8074 = vmatpush1.bf16.msra.mxu0 %v17505_v33  ;;  %v4886_v33 = vld [vmem:[#allocation8 + $0x1ab0] sm:$0xff] }
 0x4e7   :  { %8238 = vmatpush1.bf16.msra.mxu1 %v17507_v37  ;;  %8075 = vmatprep.subr.bf16.mxu0 %v17514_v5  ;;  %v4883_v37 = vld [vmem:[#allocation8 + $0x1a98] sm:$0xff]  ;;  %v17570_v35 = vcombine.high %v4882_v32, %v4886_v33 }
 0x4e8   :  { %8239 = vmatprep.subr.bf16.mxu1 %v17516_v34  ;;  %v4887_v5 = vld [vmem:[#allocation8 + $0x1ab8] sm:$0xff]  ;;  %v17561_v34 = vcombine.low %v4874_v13, %v4878_v20 }
 0x4e9   :  { %v17572_v38 = vcombine.high %v4883_v37, %v4887_v5  ;;  %v17571_v48 = vcombine.low %v4883_v37, %v4887_v5  ;;  %v4938_v5 = vld [vmem:[#allocation8 + $0x1c50] sm:$0xff] }
 0x4ea   :  { %8076 = vmatpush1.bf16.msra.mxu0 %v17513_v4  ;;  %v4894_v4 = vld [vmem:[#allocation8 + $0x1af0] sm:$0xff] }
 0x4eb   :  { %8240 = vmatpush1.bf16.msra.mxu1 %v17515_v14  ;;  %8077 = vmatprep.subr.bf16.mxu0 %v17522_v6  ;;  %v4891_v14 = vld [vmem:[#allocation8 + $0x1ad8] sm:$0xff]  ;;  %v17578_v43 = vcombine.high %v4890_v40, %v4894_v4 }
 0x4ec   :  { %8241 = vmatprep.subr.bf16.mxu1 %v17524_v42  ;;  %v4895_v6 = vld [vmem:[#allocation8 + $0x1af8] sm:$0xff]  ;;  %v17569_v42 = vcombine.low %v4882_v32, %v4886_v33 }
 0x4ed   :  { %v17580_v0 = vcombine.high %v4891_v14, %v4895_v6  ;;  %v17579_v50 = vcombine.low %v4891_v14, %v4895_v6  ;;  %v4946_v14 = vld [vmem:[#allocation8 + $0x1c90] sm:$0xff] }
 0x4ee   :  { %8078 = vmatpush1.bf16.msra.mxu0 %v17521_v46  ;;  %v4902_v46 = vld [vmem:[#allocation8 + $0x1b30] sm:$0xff] }
 0x4ef   :  { %8242 = vmatpush1.bf16.msra.mxu1 %v17523_v47  ;;  %8079 = vmatprep.subr.bf16.mxu0 %v17530_v49  ;;  %v4899_v47 = vld [vmem:[#allocation8 + $0x1b18] sm:$0xff]  ;;  %v17586_v53 = vcombine.high %v4898_v45, %v4902_v46  ;;  %v4950_v6 = vld [vmem:[#allocation8 + $0x1cb0] sm:$0xff] }
 0x4f0   :  { %8243 = vmatprep.subr.bf16.mxu1 %v17532_v16  ;;  %v4903_v49 = vld [vmem:[#allocation8 + $0x1b38] sm:$0xff]  ;;  %v17577_v16 = vcombine.low %v4890_v40, %v4894_v4 }
 0x4f1   :  { %v17588_v52 = vcombine.high %v4899_v47, %v4903_v49  ;;  %v17587_v7 = vcombine.low %v4899_v47, %v4903_v49  ;;  %v4954_v49 = vld [vmem:[#allocation8 + $0x1cd0] sm:$0xff] }
 0x4f2   :  { %8080 = vmatpush1.bf16.msra.mxu0 %v17529_v18  ;;  %v4910_v18 = vld [vmem:[#allocation8 + $0x1b70] sm:$0xff] }
 0x4f3   :  { %8244 = vmatpush1.bf16.msra.mxu1 %v17531_v55  ;;  %8081 = vmatprep.subr.bf16.mxu0 %v17538_v56  ;;  %v4907_v55 = vld [vmem:[#allocation8 + $0x1b58] sm:$0xff]  ;;  %v17594_v24 = vcombine.high %v4906_v39, %v4910_v18 }
 0x4f4   :  { %8245 = vmatprep.subr.bf16.mxu1 %v17540_v58  ;;  %v4911_v56 = vld [vmem:[#allocation8 + $0x1b78] sm:$0xff]  ;;  %v17585_v58 = vcombine.low %v4898_v45, %v4902_v46  ;;  %v17634_v46 = vcombine.high %v4946_v14, %v4950_v6 }
 0x4f5   :  { %v17596_v28 = vcombine.high %v4907_v55, %v4911_v56  ;;  %v17595_v62 = vcombine.low %v4907_v55, %v4911_v56  ;;  %v4962_v55 = vld [vmem:[#allocation8 + $0x1d10] sm:$0xff] }
 0x4f6   :  { %8082 = vmatpush1.bf16.msra.mxu0 %v17537_v51  ;;  %v4918_v51 = vld [vmem:[#allocation8 + $0x1bb0] sm:$0xff] }
 0x4f7   :  { %8246 = vmatpush1.bf16.msra.mxu1 %v17539_v57  ;;  %8083 = vmatprep.subr.bf16.mxu0 %v17546_v61  ;;  %v4915_v57 = vld [vmem:[#allocation8 + $0x1b98] sm:$0xff]  ;;  %v17602_v63 = vcombine.high %v4914_v59, %v4918_v51  ;;  %v4966_v56 = vld [vmem:[#allocation8 + $0x1d30] sm:$0xff] }
 0x4f8   :  { %8247 = vmatprep.subr.bf16.mxu1 %v17548_v54  ;;  %v4919_v61 = vld [vmem:[#allocation8 + $0x1bb8] sm:$0xff]  ;;  %v17593_v54 = vcombine.low %v4906_v39, %v4910_v18 }
 0x4f9   :  { %v17604_v1 = vcombine.high %v4915_v57, %v4919_v61  ;;  %v17603_v13 = vcombine.low %v4915_v57, %v4919_v61  ;;  %v4974_v57 = vld [vmem:[#allocation8 + $0x1d70] sm:$0xff]  ;;  %v4971_v61 = vld [vmem:[#allocation8 + $0x1d58] sm:$0xff] }
 0x4fa   :  { %8084 = vmatpush1.bf16.msra.mxu0 %v17545_v3  ;;  %v4926_v3 = vld [vmem:[#allocation8 + $0x1bf0] sm:$0xff] }
 0x4fb   :  { %8248 = vmatpush1.bf16.msra.mxu1 %v17547_v36  ;;  %8085 = vmatprep.subr.bf16.mxu0 %v17554_v44  ;;  %v4923_v36 = vld [vmem:[#allocation8 + $0x1bd8] sm:$0xff]  ;;  %v17610_v20 = vcombine.high %v4922_v12, %v4926_v3 }
 0x4fc   :  { %8249 = vmatprep.subr.bf16.mxu1 %v17556_v8  ;;  %v4927_v44 = vld [vmem:[#allocation8 + $0x1bf8] sm:$0xff]  ;;  %v17601_v8 = vcombine.low %v4914_v59, %v4918_v51  ;;  %v4970_v51 = vld [vmem:[#allocation8 + $0x1d50] sm:$0xff] }
 0x4fd   :  { %v17612_v22 = vcombine.high %v4923_v36, %v4927_v44  ;;  %v17611_v32 = vcombine.low %v4923_v36, %v4927_v44  ;;  %v4982_v36 = vld [vmem:[#allocation8 + $0x1db0] sm:$0xff]  ;;  %v4979_v44 = vld [vmem:[#allocation8 + $0x1d98] sm:$0xff] }
 0x4fe   :  { %8086 = vmatpush1.bf16.msra.mxu0 %v17553_v25  ;;  %v4934_v25 = vld [vmem:[#allocation8 + $0x1c30] sm:$0xff] }
 0x4ff   :  { %8250 = vmatpush1.bf16.msra.mxu1 %v17555_v26  ;;  %8087 = vmatprep.subr.bf16.mxu0 %v17562_v30  ;;  %v4931_v26 = vld [vmem:[#allocation8 + $0x1c18] sm:$0xff]  ;;  %v17618_v33 = vcombine.high %v4930_v23, %v4934_v25 }
 0x500   :  { %8251 = vmatprep.subr.bf16.mxu1 %v17564_v41  ;;  %v4935_v30 = vld [vmem:[#allocation8 + $0x1c38] sm:$0xff]  ;;  %v17609_v41 = vcombine.low %v4922_v12, %v4926_v3  ;;  %v4978_v3 = vld [vmem:[#allocation8 + $0x1d90] sm:$0xff] }
 0x501   :  { %v17620_v37 = vcombine.high %v4931_v26, %v4935_v30  ;;  %v17619_v40 = vcombine.low %v4931_v26, %v4935_v30  ;;  %v4986_v30 = vld [vmem:[#allocation8 + $0x1dd0] sm:$0xff] }
 0x502   :  { %8088 = vmatpush1.bf16.msra.mxu0 %v17561_v34  ;;  %v4942_v34 = vld [vmem:[#allocation8 + $0x1c70] sm:$0xff] }
 0x503   :  { %8252 = vmatpush1.bf16.msra.mxu1 %v17563_v10  ;;  %8089 = vmatprep.subr.bf16.mxu0 %v17570_v35  ;;  %v17617_v10 = vcombine.low %v4930_v23, %v4934_v25  ;;  %v4939_v35 = vld [vmem:[#allocation8 + $0x1c58] sm:$0xff]  ;;  %v17626_v4 = vcombine.high %v4938_v5, %v4942_v34 }
 0x504   :  { %8253 = vmatprep.subr.bf16.mxu1 %v17572_v38  ;;  %v4943_v38 = vld [vmem:[#allocation8 + $0x1c78] sm:$0xff] }
 0x505   :  { %v17627_v45 = vcombine.low %v4939_v35, %v4943_v38 }
 0x506   :  { %8090 = vmatpush1.bf16.msra.mxu0 %v17569_v42  ;;  %v17628_v42 = vcombine.high %v4939_v35, %v4943_v38  ;;  %v17665_v35 = vcombine.low %v4978_v3, %v4982_v36 }
 0x507   :  { %8254 = vmatpush1.bf16.msra.mxu1 %v17571_v48  ;;  %8091 = vmatprep.subr.bf16.mxu0 %v17578_v43  ;;  %v4947_v48 = vld [vmem:[#allocation8 + $0x1c98] sm:$0xff] }
 0x508   :  { %8255 = vmatprep.subr.bf16.mxu1 %v17580_v0  ;;  %v4951_v43 = vld [vmem:[#allocation8 + $0x1cb8] sm:$0xff]  ;;  %v17625_v0 = vcombine.low %v4938_v5, %v4942_v34 }
 0x509   :  { %v17636_v47 = vcombine.high %v4947_v48, %v4951_v43  ;;  %v4991_v5 = vld [vmem:[#allocation8 + $0x1df8] sm:$0xff] }
 0x50a   :  { %8092 = vmatpush1.bf16.msra.mxu0 %v17577_v16  ;;  %v4958_v16 = vld [vmem:[#allocation8 + $0x1cf0] sm:$0xff] }
 0x50b   :  { %8256 = vmatpush1.bf16.msra.mxu1 %v17579_v50  ;;  %8093 = vmatprep.subr.bf16.mxu0 %v17586_v53  ;;  %v4955_v50 = vld [vmem:[#allocation8 + $0x1cd8] sm:$0xff]  ;;  %v17642_v39 = vcombine.high %v4954_v49, %v4958_v16 }
 0x50c   :  { %8257 = vmatprep.subr.bf16.mxu1 %v17588_v52  ;;  %v4959_v53 = vld [vmem:[#allocation8 + $0x1cf8] sm:$0xff]  ;;  %v17633_v52 = vcombine.low %v4946_v14, %v4950_v6  ;;  %v4994_v14 = vld [vmem:[#allocation8 + $0x1e10] sm:$0xff] }
 0x50d   :  { %v17644_v18 = vcombine.high %v4955_v50, %v4959_v53  ;;  %v4998_v6 = vld [vmem:[#allocation8 + $0x1e30] sm:$0xff] }
 0x50e   :  { %8094 = vmatpush1.bf16.msra.mxu0 %v17585_v58  ;;  %v4963_v58 = vld [vmem:[#allocation8 + $0x1d18] sm:$0xff] }
 0x50f   :  { %8258 = vmatpush1.bf16.msra.mxu1 %v17587_v7  ;;  %8095 = vmatprep.subr.bf16.mxu0 %v17594_v24  ;;  %v4967_v7 = vld [vmem:[#allocation8 + $0x1d38] sm:$0xff]  ;;  %v17643_v24 = vcombine.low %v4955_v50, %v4959_v53  ;;  %v5006_v50 = vld [vmem:[#allocation8 + $0x1e70] sm:$0xff] }
 0x510   :  { %8259 = vmatprep.subr.bf16.mxu1 %v17596_v28  ;;  %v17650_v28 = vcombine.high %v4962_v55, %v4966_v56  ;;  %v17652_v59 = vcombine.high %v4963_v58, %v4967_v7  ;;  %v5003_v53 = vld [vmem:[#allocation8 + $0x1e58] sm:$0xff] }
 0x512   :  { %8096 = vmatpush1.bf16.msra.mxu0 %v17593_v54  ;;  %v4975_v54 = vld [vmem:[#allocation8 + $0x1d78] sm:$0xff] }
 0x513   :  { %8260 = vmatpush1.bf16.msra.mxu1 %v17595_v62  ;;  %8097 = vmatprep.subr.bf16.mxu0 %v17602_v63  ;;  %v17649_v62 = vcombine.low %v4962_v55, %v4966_v56  ;;  %v17651_v63 = vcombine.low %v4963_v58, %v4967_v7  ;;  %v17660_v12 = vcombine.high %v4971_v61, %v4975_v54  ;;  %v5010_v56 = vld [vmem:[#allocation8 + $0x1e90] sm:$0xff]  ;;  %v5011_v7 = vld [vmem:[#allocation8 + $0x1e98] sm:$0xff] }
 0x514   :  { %8261 = vmatprep.subr.bf16.mxu1 %v17604_v1  ;;  %v17658_v1 = vcombine.high %v4970_v51, %v4974_v57  ;;  %v5014_v58 = vld [vmem:[#allocation8 + $0x1eb0] sm:$0xff] }
 0x516   :  { %8098 = vmatpush1.bf16.msra.mxu0 %v17601_v8  ;;  %v4983_v8 = vld [vmem:[#allocation8 + $0x1db8] sm:$0xff] }
 0x517   :  { %8262 = vmatpush1.bf16.msra.mxu1 %v17603_v13  ;;  %8099 = vmatprep.subr.bf16.mxu0 %v17610_v20  ;;  %v17657_v13 = vcombine.low %v4970_v51, %v4974_v57  ;;  %v17659_v20 = vcombine.low %v4971_v61, %v4975_v54  ;;  %v17668_v26 = vcombine.high %v4979_v44, %v4983_v8  ;;  %v5018_v57 = vld [vmem:[#allocation8 + $0x1ed0] sm:$0xff]  ;;  %v5019_v54 = vld [vmem:[#allocation8 + $0x1ed8] sm:$0xff] }
 0x518   :  { %8263 = vmatprep.subr.bf16.mxu1 %v17612_v22  ;;  %v17666_v22 = vcombine.high %v4978_v3, %v4982_v36  ;;  %v17667_v38 = vcombine.low %v4979_v44, %v4983_v8  ;;  %v5022_v61 = vld [vmem:[#allocation8 + $0x1ef0] sm:$0xff]  ;;  %v5027_v8 = vld [vmem:[#allocation8 + $0x1f18] sm:$0xff] }
 0x519   :  { %v5026_v36 = vld [vmem:[#allocation8 + $0x1f10] sm:$0xff] }
 0x51a   :  { %8100 = vmatpush1.bf16.msra.mxu0 %v17609_v41  ;;  %v4990_v41 = vld [vmem:[#allocation8 + $0x1df0] sm:$0xff] }
 0x51b   :  { %8264 = vmatpush1.bf16.msra.mxu1 %v17611_v32  ;;  %8110 = vmatprep.subr.bf16.mxu0 %v17618_v33  ;;  %v5030_v44 = vld [vmem:[#allocation8 + $0x1f30] sm:$0xff] }
 0x51c   :  { %8274 = vmatprep.subr.bf16.mxu1 %v17620_v37  ;;  %v4987_v37 = vld [vmem:[#allocation8 + $0x1dd8] sm:$0xff] }
 0x51d   :  { %8102 = vmatmul.mubr.bf16.vlgmr.msra.gmra.mrb[20].mxu0 %v19728_v9 }
 0x51e   :  { %8266 = vmatmul.mubr.bf16.vlgmr.msra.gmra.mrb[20].mxu1 %v19728_v9  ;;  %8111 = vmatpush1.bf16.msra.mxu0 %v17617_v10  ;;  %v17635_v9 = vcombine.low %v4947_v48, %v4951_v43  ;;  %v4995_v43 = vld [vmem:[#allocation8 + $0x1e18] sm:$0xff] }
 0x51f   :  { %8142 = vmatprep.mubr.bf16.mxu0 %v19732_v29  ;;  %8275 = vmatpush1.bf16.msra.mxu1 %v17619_v40  ;;  %v17674_v40 = vcombine.high %v4986_v30, %v4990_v41 }
 0x520   :  { %8306 = vmatprep.mubr.bf16.mxu1 %v19732_v29  ;;  %8112 = vmatprep.subr.bf16.mxu0 %v17626_v4  ;;  %v17641_v29 = vcombine.low %v4954_v49, %v4958_v16  ;;  %v17676_v4 = vcombine.high %v4987_v37, %v4991_v5  ;;  %v5002_v16 = vld [vmem:[#allocation8 + $0x1e50] sm:$0xff] }
 0x521   :  { %8276 = vmatprep.subr.bf16.mxu1 %v17628_v42 }
 0x522   :  { %8113 = vmatpush1.bf16.msra.mxu0 %v17625_v0  ;;  %v4999_v0 = vld [vmem:[#allocation8 + $0x1e38] sm:$0xff] }
 0x523   :  { %8277 = vmatpush1.bf16.msra.mxu1 %v17627_v45  ;;  %8114 = vmatprep.subr.bf16.mxu0 %v17634_v46  ;;  %v17673_v45 = vcombine.low %v4986_v30, %v4990_v41  ;;  %v17675_v46 = vcombine.low %v4987_v37, %v4991_v5  ;;  %v17684_v49 = vcombine.high %v4995_v43, %v4999_v0  ;;  %v5034_v41 = vld [vmem:[#allocation8 + $0x1f50] sm:$0xff]  ;;  %v5035_v5 = vld [vmem:[#allocation8 + $0x1f58] sm:$0xff] }
 0x524   :  { %8278 = vmatprep.subr.bf16.mxu1 %v17636_v47  ;;  %v17682_v47 = vcombine.high %v4994_v14, %v4998_v6  ;;  %v5038_v37 = vld [vmem:[#allocation8 + $0x1f70] sm:$0xff] }
 0x526   :  { %8115 = vmatpush1.bf16.msra.mxu0 %v17633_v52  ;;  %v5007_v52 = vld [vmem:[#allocation8 + $0x1e78] sm:$0xff] }
 0x527   :  { %8279 = vmatpush1.bf16.msra.mxu1 %v17635_v9  ;;  %8116 = vmatprep.subr.bf16.mxu0 %v17642_v39  ;;  %v17681_v9 = vcombine.low %v4994_v14, %v4998_v6  ;;  %v17683_v39 = vcombine.low %v4995_v43, %v4999_v0  ;;  %v17692_v55 = vcombine.high %v5003_v53, %v5007_v52  ;;  %v5042_v14 = vld [vmem:[#allocation8 + $0x1f90] sm:$0xff] }
 0x528   :  { %8280 = vmatprep.subr.bf16.mxu1 %v17644_v18  ;;  %v17690_v18 = vcombine.high %v5002_v16, %v5006_v50  ;;  %v5046_v6 = vld [vmem:[#allocation8 + $0x1fb0] sm:$0xff]  ;;  %v17721_v0 = vcombine.low %v5034_v41, %v5038_v37 }
 0x52a   :  { %8117 = vmatpush1.bf16.msra.mxu0 %v17641_v29  ;;  %v5015_v29 = vld [vmem:[#allocation8 + $0x1eb8] sm:$0xff] }
 0x52b   :  { %8281 = vmatpush1.bf16.msra.mxu1 %v17643_v24  ;;  %8118 = vmatprep.subr.bf16.mxu0 %v17650_v28  ;;  %v17689_v24 = vcombine.low %v5002_v16, %v5006_v50  ;;  %v17691_v28 = vcombine.low %v5003_v53, %v5007_v52  ;;  %v17700_v51 = vcombine.high %v5011_v7, %v5015_v29  ;;  %v5054_v16 = vld [vmem:[#allocation8 + $0x1ff0] sm:$0xff]  ;;  %v5051_v50 = vld [vmem:[#allocation8 + $0x1fd8] sm:$0xff] }
 0x52c   :  { %8282 = vmatprep.subr.bf16.mxu1 %v17652_v59  ;;  %v17698_v59 = vcombine.high %v5010_v56, %v5014_v58  ;;  %v5055_v53 = vld [vmem:[#allocation8 + $0x1ff8] sm:$0xff] }
 0x52e   :  { %8119 = vmatpush1.bf16.msra.mxu0 %v17649_v62  ;;  %v5023_v62 = vld [vmem:[#allocation8 + $0x1ef8] sm:$0xff] }
 0x52f   :  { %8283 = vmatpush1.bf16.msra.mxu1 %v17651_v63  ;;  %8120 = vmatprep.subr.bf16.mxu0 %v17658_v1  ;;  %v17697_v63 = vcombine.low %v5010_v56, %v5014_v58  ;;  %v17699_v1 = vcombine.low %v5011_v7, %v5015_v29  ;;  %v17708_v3 = vcombine.high %v5019_v54, %v5023_v62  ;;  %v8348_v56 = vld [vmem:[#allocation8 + $0x2000] sm:$0xff]  ;;  %v8349_v7 = vld [vmem:[#allocation8 + $0x2008] sm:$0xff] }
 0x530   :  { %v19759_v23 = vpop.f32.mrb[16].mxu0  ;;  %v19761_v25 = vpop.f32.mrb[16].mxu1  ;;  %8284 = vmatprep.subr.bf16.mxu1 %v17660_v12  ;;  %v17706_v12 = vcombine.high %v5018_v57, %v5022_v61  ;;  %v8352_v58 = vld [vmem:[#allocation8 + $0x2020] sm:$0xff]  ;;  %v8353_v29 = vld [vmem:[#allocation8 + $0x2028] sm:$0xff] }
 0x531   :  { %v19763_v32 = vpop.f32.mrb[17].mxu0  ;;  %v19765_v33 = vpop.f32.mrb[17].mxu1 }
 0x532   :  { %v7820_v34 = vpop.f32.mrb[18].mxu0  ;;  %v7984_v10 = vpop.f32.mrb[18].mxu1  ;;  %8121 = vmatpush1.bf16.msra.mxu0 %v17657_v13  ;;  %v5031_v13 = vld [vmem:[#allocation8 + $0x1f38] sm:$0xff] }
 0x533   :  { %8285 = vmatpush1.bf16.msra.mxu1 %v17659_v20  ;;  %8122 = vmatprep.subr.bf16.mxu0 %v17666_v22  ;;  %v7821_v42 = vpop.f32.mrb[19].mxu0  ;;  %v7985_v48 = vpop.f32.mrb[19].mxu1  ;;  %v17705_v20 = vcombine.low %v5018_v57, %v5022_v61  ;;  %v17707_v22 = vcombine.low %v5019_v54, %v5023_v62  ;;  %v17716_v30 = vcombine.high %v5027_v8, %v5031_v13  ;;  %v5039_v34 = vld [vmem:[#allocation8 + $0x1f78] sm:$0xff]  ;;  %v8356_v57 = vld [vmem:[#allocation8 + $0x2040] sm:$0xff] }
 0x534   :  { %8286 = vmatprep.subr.bf16.mxu1 %v17668_v26  ;;  %v17714_v26 = vcombine.high %v5026_v36, %v5030_v44  ;;  %v17713_v10 = vcombine.low %v5026_v36, %v5030_v44  ;;  %v5043_v42 = vld [vmem:[#allocation8 + $0x1f98] sm:$0xff]  ;;  %v8360_v61 = vld [vmem:[#allocation8 + $0x2060] sm:$0xff]  ;;  %v17741_v62 = vcombine.low %v8348_v56, %v8352_v58 }
 0x535   :  { %v5047_v48 = vld [vmem:[#allocation8 + $0x1fb8] sm:$0xff]  ;;  %v8364_v36 = vld [vmem:[#allocation8 + $0x2080] sm:$0xff] }
 0x536   :  { %8123 = vmatpush1.bf16.msra.mxu0 %v17665_v35  ;;  %v19767_v35 = vld [vmem:[#allocation10 + $0x8] sm:$0xff]  ;;  %v8368_v44 = vld [vmem:[#allocation8 + $0x20a0] sm:$0xff] }
 0x537   :  { %8287 = vmatpush1.bf16.msra.mxu1 %v17667_v38  ;;  %8124 = vmatprep.subr.bf16.mxu0 %v17674_v40  ;;  %v17715_v38 = vcombine.low %v5027_v8, %v5031_v13  ;;  %v17722_v40 = vcombine.high %v5034_v41, %v5038_v37  ;;  %v5066_v43 = vrot.slane %v19767_v35, %v19580_v17 }
 0x538   :  { %8288 = vmatprep.subr.bf16.mxu1 %v17676_v4  ;;  %v17724_v4 = vcombine.high %v5035_v5, %v5039_v34  ;;  %v17758_v41 = vcombine.high %v8364_v36, %v8368_v44 }
 0x539   :  { %v18927_v52 = vadd.f32 %v19763_v32, %v5066_v43  ;;  %v17742_v32 = vcombine.high %v8348_v56, %v8352_v58  ;;  %v8385_v43 = vld [vmem:[#allocation8 + $0x2128] sm:$0xff]  ;;  %v8400_v56 = vld [vmem:[#allocation8 + $0x21a0] sm:$0xff] }
 0x53a   :  { %8125 = vmatpush1.bf16.msra.mxu0 %v17673_v45  ;;  %v17723_v45 = vcombine.low %v5035_v5, %v5039_v34  ;;  %v8372_v5 = vld [vmem:[#allocation8 + $0x20c0] sm:$0xff]  ;;  %v8397_v58 = vld [vmem:[#allocation8 + $0x2188] sm:$0xff] }
 0x53b   :  { %8289 = vmatpush1.bf16.msra.mxu1 %v17675_v46  ;;  %8126 = vmatprep.subr.bf16.mxu0 %v17682_v47  ;;  %v17730_v46 = vcombine.high %v5042_v14, %v5046_v6  ;;  %v17732_v47 = vcombine.high %v5043_v42, %v5047_v48  ;;  %vm8316_vm0 = vcmp.gt.f32.partialorder %v18927_v52, 0.0  ;;  %v8376_v34 = vld [vmem:[#allocation8 + $0x20e0] sm:$0xff] }
 0x53c   :  { %8290 = vmatprep.subr.bf16.mxu1 %v17684_v49  ;;  %v5050_v49 = vld [vmem:[#allocation8 + $0x1fd0] sm:$0xff] }
 0x53e   :  { %8127 = vmatpush1.bf16.msra.mxu0 %v17681_v9  ;;  %v17729_v9 = vcombine.low %v5042_v14, %v5046_v6  ;;  %v8380_v6 = vld [vmem:[#allocation8 + $0x2100] sm:$0xff] }
 0x53f   :  { %8291 = vmatpush1.bf16.msra.mxu1 %v17683_v39  ;;  %8128 = vmatprep.subr.bf16.mxu0 %v17690_v18  ;;  %v17731_v39 = vcombine.low %v5043_v42, %v5047_v48  ;;  %v17738_v18 = vcombine.high %v5050_v49, %v5054_v16  ;;  %v8384_v42 = vld [vmem:[#allocation8 + $0x2120] sm:$0xff]  ;;  %v8381_v48 = vld [vmem:[#allocation8 + $0x2108] sm:$0xff] }
 0x540   :  { %8292 = vmatprep.subr.bf16.mxu1 %v17692_v55  ;;  %v17740_v55 = vcombine.high %v5051_v50, %v5055_v53 }
 0x542   :  { %8129 = vmatpush1.bf16.msra.mxu0 %v17689_v24  ;;  %v8324_v24 = vmul.f32 0.2, %v18927_v52 }
 0x543   :  { %8293 = vmatpush1.bf16.msra.mxu1 %v17691_v28  ;;  %8130 = vmatprep.subr.bf16.mxu0 %v17698_v59  ;;  %v17737_v28 = vcombine.low %v5050_v49, %v5054_v16  ;;  %v17739_v59 = vcombine.low %v5051_v50, %v5055_v53  ;;  %v8388_v49 = vld [vmem:[#allocation8 + $0x2140] sm:$0xff]  ;;  %v8389_v50 = vld [vmem:[#allocation8 + $0x2148] sm:$0xff] }
 0x544   :  { %8294 = vmatprep.subr.bf16.mxu1 %v17700_v51  ;;  %v17744_v51 = vcombine.high %v8349_v7, %v8353_v29  ;;  %v8332_v54 = vsel %vm8316_vm0, %v18927_v52, %v8324_v24  ;;  %v8392_v16 = vld [vmem:[#allocation8 + $0x2160] sm:$0xff]  ;;  %v8393_v53 = vld [vmem:[#allocation8 + $0x2168] sm:$0xff]  ;;  %v17773_v52 = vcombine.low %v8380_v6, %v8384_v42 }
 0x545   :  { %v19772_v8 = vpack.c.bf16 %v8332_v54, %v8332_v54  ;;  %v17783_v24 = vcombine.low %v8389_v50, %v8393_v53 }
 0x546   :  { %8131 = vmatpush1.bf16.msra.mxu0 %v17697_v63  ;;  %v8357_v63 = vld [vmem:[#allocation8 + $0x2048] sm:$0xff] }
 0x547   :  { %8295 = vmatpush1.bf16.msra.mxu1 %v17699_v1  ;;  %8132 = vmatprep.subr.bf16.mxu0 %v17706_v12  ;;  %v8361_v1 = vld [vmem:[#allocation8 + $0x2068] sm:$0xff]  ;;  %v17743_v12 = vcombine.low %v8349_v7, %v8353_v29  ;;  %v17781_v29 = vcombine.low %v8388_v49, %v8392_v16 }
 0x548   :  { %8296 = vmatprep.subr.bf16.mxu1 %v17708_v3  ;;  %v17750_v3 = vcombine.high %v8356_v57, %v8360_v61  ;;  %v17752_v13 = vcombine.high %v8357_v63, %v8361_v1  ;;  %v8401_v7 = vld [vmem:[#allocation8 + $0x21a8] sm:$0xff] }
 0x54a   :  { %8133 = vmatpush1.bf16.msra.mxu0 %v17705_v20  ;;  %v8365_v20 = vld [vmem:[#allocation8 + $0x2088] sm:$0xff] }
 0x54b   :  { %8297 = vmatpush1.bf16.msra.mxu1 %v17707_v22  ;;  %8134 = vmatprep.subr.bf16.mxu0 %v17714_v26  ;;  %v8369_v22 = vld [vmem:[#allocation8 + $0x20a8] sm:$0xff]  ;;  %v17749_v26 = vcombine.low %v8356_v57, %v8360_v61 }
 0x54c   :  { %8298 = vmatprep.subr.bf16.mxu1 %v17716_v30  ;;  %v17751_v30 = vcombine.low %v8357_v63, %v8361_v1  ;;  %v17760_v37 = vcombine.high %v8365_v20, %v8369_v22  ;;  %v8405_v57 = vld [vmem:[#allocation8 + $0x21c8] sm:$0xff] }
 0x54d   :  { %v8409_v61 = vld [vmem:[#allocation8 + $0x21e8] sm:$0xff] }
 0x54e   :  { %8135 = vmatpush1.bf16.msra.mxu0 %v17713_v10  ;;  %v8373_v10 = vld [vmem:[#allocation8 + $0x20c8] sm:$0xff]  ;;  %v17800_v1 = vcombine.high %v8405_v57, %v8409_v61 }
 0x54f   :  { %8299 = vmatpush1.bf16.msra.mxu1 %v17715_v38  ;;  %8136 = vmatprep.subr.bf16.mxu0 %v17722_v40  ;;  %v8377_v38 = vld [vmem:[#allocation8 + $0x20e8] sm:$0xff]  ;;  %v17757_v40 = vcombine.low %v8364_v36, %v8368_v44 }
 0x550   :  { %8300 = vmatprep.subr.bf16.mxu1 %v17724_v4  ;;  %v17766_v4 = vcombine.high %v8372_v5, %v8376_v34  ;;  %v17768_v14 = vcombine.high %v8373_v10, %v8377_v38  ;;  %v8413_v36 = vld [vmem:[#allocation8 + $0x2208] sm:$0xff] }
 0x551   :  { %v8417_v44 = vld [vmem:[#allocation8 + $0x2228] sm:$0xff] }
 0x552   :  { %8137 = vmatpush1.bf16.msra.mxu0 %v17721_v0  ;;  %v17765_v0 = vcombine.low %v8372_v5, %v8376_v34  ;;  %v8425_v5 = vld [vmem:[#allocation8 + $0x2268] sm:$0xff] }
 0x553   :  { %8301 = vmatpush1.bf16.msra.mxu1 %v17723_v45  ;;  %8138 = vmatprep.subr.bf16.mxu0 %v17730_v46  ;;  %v17767_v45 = vcombine.low %v8373_v10, %v8377_v38  ;;  %v17774_v46 = vcombine.high %v8380_v6, %v8384_v42  ;;  %v17807_v10 = vcombine.low %v8413_v36, %v8417_v44  ;;  %v8433_v6 = vld [vmem:[#allocation8 + $0x22a8] sm:$0xff] }
 0x554   :  { %8302 = vmatprep.subr.bf16.mxu1 %v17732_v47  ;;  %v17776_v47 = vcombine.high %v8381_v48, %v8385_v43 }
 0x556   :  { %8139 = vmatpush1.bf16.msra.mxu0 %v17729_v9  ;;  %v17775_v9 = vcombine.low %v8381_v48, %v8385_v43 }
 0x557   :  { %8303 = vmatpush1.bf16.msra.mxu1 %v17731_v39  ;;  %8140 = vmatprep.subr.bf16.mxu0 %v17738_v18  ;;  %v17782_v39 = vcombine.high %v8388_v49, %v8392_v16  ;;  %v17784_v18 = vcombine.high %v8389_v50, %v8393_v53  ;;  %v8441_v49 = vld [vmem:[#allocation8 + $0x22e8] sm:$0xff] }
 0x558   :  { %8304 = vmatprep.subr.bf16.mxu1 %v17740_v55  ;;  %v8396_v55 = vld [vmem:[#allocation8 + $0x2180] sm:$0xff] }
 0x559   :  { %v17789_v54 = vcombine.low %v8396_v55, %v8400_v56 }
 0x55a   :  { %8141 = vmatpush1.bf16.msra.mxu0 %v17737_v28  ;;  %v17790_v28 = vcombine.high %v8396_v55, %v8400_v56  ;;  %v8449_v55 = vld [vmem:[#allocation8 + $0x2328] sm:$0xff] }
 0x55b   :  { %8305 = vmatpush1.bf16.msra.mxu1 %v17739_v59  ;;  %11463 = vmatprep.subr.bf16.mxu0 %v17742_v32  ;;  %v17792_v59 = vcombine.high %v8397_v58, %v8401_v7  ;;  %v8404_v32 = vld [vmem:[#allocation8 + $0x21c0] sm:$0xff] }
 0x55c   :  { %11627 = vmatprep.subr.bf16.mxu1 %v17744_v51  ;;  %v8408_v51 = vld [vmem:[#allocation8 + $0x21e0] sm:$0xff] }
 0x55d   :  { %8143 = vmatmul.mubr.bf16.vlgmr.msra.gmra.mrb[20].mxu0 %v19741_v60  ;;  %v17798_v63 = vcombine.high %v8404_v32, %v8408_v51 }
 0x55e   :  { %8307 = vmatmul.mubr.bf16.vlgmr.msra.gmra.mrb[20].mxu1 %v19741_v60  ;;  %11464 = vmatpush1.bf16.msra.mxu0 %v17741_v62  ;;  %v17759_v60 = vcombine.low %v8365_v20, %v8369_v22  ;;  %v17791_v62 = vcombine.low %v8397_v58, %v8401_v7  ;;  %v17799_v20 = vcombine.low %v8405_v57, %v8409_v61 }
 0x55f   :  { %11495 = vmatprep.mubr.bf16.mxu0 %v19772_v8  ;;  %11628 = vmatpush1.bf16.msra.mxu1 %v17743_v12  ;;  %v8412_v12 = vld [vmem:[#allocation8 + $0x2200] sm:$0xff] }
 0x560   :  { %11659 = vmatprep.mubr.bf16.mxu1 %v19772_v8  ;;  %11465 = vmatprep.subr.bf16.mxu0 %v17750_v3  ;;  %v8416_v3 = vld [vmem:[#allocation8 + $0x2220] sm:$0xff] }
 0x561   :  { %11629 = vmatprep.subr.bf16.mxu1 %v17752_v13  ;;  %v17797_v13 = vcombine.low %v8404_v32, %v8408_v51  ;;  %v17806_v22 = vcombine.high %v8412_v12, %v8416_v3  ;;  %v17805_v34 = vcombine.low %v8412_v12, %v8416_v3  ;;  %v8457_v32 = vld [vmem:[#allocation8 + $0x2368] sm:$0xff] }
 0x562   :  { %11466 = vmatpush1.bf16.msra.mxu0 %v17749_v26  ;;  %v17808_v26 = vcombine.high %v8413_v36, %v8417_v44  ;;  %v8461_v12 = vld [vmem:[#allocation8 + $0x2388] sm:$0xff]  ;;  %v5074_v36 = vrot.slane %v19767_v35, %v19587_v21 }
 0x563   :  { %11630 = vmatpush1.bf16.msra.mxu1 %v17751_v30  ;;  %11467 = vmatprep.subr.bf16.mxu0 %v17758_v41  ;;  %v8420_v30 = vld [vmem:[#allocation8 + $0x2240] sm:$0xff]  ;;  %v8465_v3 = vld [vmem:[#allocation8 + $0x23a8] sm:$0xff] }
 0x564   :  { %11631 = vmatprep.subr.bf16.mxu1 %v17760_v37  ;;  %v8424_v41 = vld [vmem:[#allocation8 + $0x2260] sm:$0xff]  ;;  %v8421_v37 = vld [vmem:[#allocation8 + $0x2248] sm:$0xff] }
 0x565   :  { %v17814_v38 = vcombine.high %v8420_v30, %v8424_v41  ;;  %v17813_v42 = vcombine.low %v8420_v30, %v8424_v41  ;;  %v17815_v48 = vcombine.low %v8421_v37, %v8425_v5  ;;  %v8468_v30 = vld [vmem:[#allocation8 + $0x23c0] sm:$0xff] }
 0x566   :  { %11468 = vmatpush1.bf16.msra.mxu0 %v17757_v40  ;;  %v17816_v40 = vcombine.high %v8421_v37, %v8425_v5  ;;  %v8472_v41 = vld [vmem:[#allocation8 + $0x23e0] sm:$0xff]  ;;  %v8469_v37 = vld [vmem:[#allocation8 + $0x23c8] sm:$0xff] }
 0x567   :  { %11632 = vmatpush1.bf16.msra.mxu1 %v17759_v60  ;;  %11469 = vmatprep.subr.bf16.mxu0 %v17766_v4  ;;  %v8428_v60 = vld [vmem:[#allocation8 + $0x2280] sm:$0xff]  ;;  %v8473_v5 = vld [vmem:[#allocation8 + $0x23e8] sm:$0xff] }
 0x568   :  { %11633 = vmatprep.subr.bf16.mxu1 %v17768_v14  ;;  %v8432_v4 = vld [vmem:[#allocation8 + $0x22a0] sm:$0xff]  ;;  %v8429_v14 = vld [vmem:[#allocation8 + $0x2288] sm:$0xff] }
 0x569   :  { %v17822_v43 = vcombine.high %v8428_v60, %v8432_v4  ;;  %v17821_v16 = vcombine.low %v8428_v60, %v8432_v4  ;;  %v17823_v50 = vcombine.low %v8429_v14, %v8433_v6  ;;  %v17864_v4 = vcombine.high %v8469_v37, %v8473_v5 }
 0x56a   :  { %11470 = vmatpush1.bf16.msra.mxu0 %v17765_v0  ;;  %v17824_v0 = vcombine.high %v8429_v14, %v8433_v6  ;;  %v8476_v14 = vld [vmem:[#allocation8 + $0x2400] sm:$0xff] }
 0x56b   :  { %11634 = vmatpush1.bf16.msra.mxu1 %v17767_v45  ;;  %11471 = vmatprep.subr.bf16.mxu0 %v17774_v46  ;;  %v8436_v45 = vld [vmem:[#allocation8 + $0x22c0] sm:$0xff] }
 0x56c   :  { %11635 = vmatprep.subr.bf16.mxu1 %v17776_v47  ;;  %v8440_v46 = vld [vmem:[#allocation8 + $0x22e0] sm:$0xff]  ;;  %v8437_v47 = vld [vmem:[#allocation8 + $0x22c8] sm:$0xff] }
 0x56d   :  { %v17830_v53 = vcombine.high %v8436_v45, %v8440_v46  ;;  %v17829_v56 = vcombine.low %v8436_v45, %v8440_v46  ;;  %v17831_v58 = vcombine.low %v8437_v47, %v8441_v49  ;;  %v8480_v6 = vld [vmem:[#allocation8 + $0x2420] sm:$0xff] }
 0x56e   :  { %11472 = vmatpush1.bf16.msra.mxu0 %v17773_v52  ;;  %v17832_v52 = vcombine.high %v8437_v47, %v8441_v49  ;;  %v8484_v47 = vld [vmem:[#allocation8 + $0x2440] sm:$0xff] }
 0x56f   :  { %11636 = vmatpush1.bf16.msra.mxu1 %v17775_v9  ;;  %11473 = vmatprep.subr.bf16.mxu0 %v17782_v39  ;;  %v8444_v9 = vld [vmem:[#allocation8 + $0x2300] sm:$0xff] }
 0x570   :  { %11637 = vmatprep.subr.bf16.mxu1 %v17784_v18  ;;  %v8448_v39 = vld [vmem:[#allocation8 + $0x2320] sm:$0xff]  ;;  %v8445_v18 = vld [vmem:[#allocation8 + $0x2308] sm:$0xff] }
 0x571   :  { %v17838_v7 = vcombine.high %v8444_v9, %v8448_v39  ;;  %v17837_v51 = vcombine.low %v8444_v9, %v8448_v39  ;;  %v17839_v57 = vcombine.low %v8445_v18, %v8449_v55  ;;  %v8488_v49 = vld [vmem:[#allocation8 + $0x2460] sm:$0xff] }
 0x572   :  { %11474 = vmatpush1.bf16.msra.mxu0 %v17781_v29  ;;  %v17840_v29 = vcombine.high %v8445_v18, %v8449_v55  ;;  %v17878_v18 = vcombine.high %v8484_v47, %v8488_v49  ;;  %v8492_v55 = vld [vmem:[#allocation8 + $0x2480] sm:$0xff] }
 0x573   :  { %11638 = vmatpush1.bf16.msra.mxu1 %v17783_v24  ;;  %11475 = vmatprep.subr.bf16.mxu0 %v17790_v28  ;;  %v8452_v24 = vld [vmem:[#allocation8 + $0x2340] sm:$0xff] }
 0x574   :  { %11639 = vmatprep.subr.bf16.mxu1 %v17792_v59  ;;  %v8456_v28 = vld [vmem:[#allocation8 + $0x2360] sm:$0xff]  ;;  %v8453_v59 = vld [vmem:[#allocation8 + $0x2348] sm:$0xff] }
 0x575   :  { %v17846_v61 = vcombine.high %v8452_v24, %v8456_v28  ;;  %v17845_v44 = vcombine.low %v8452_v24, %v8456_v28  ;;  %v8497_v24 = vld [vmem:[#allocation8 + $0x24a8] sm:$0xff]  ;;  %v17877_v28 = vcombine.low %v8484_v47, %v8488_v49 }
 0x576   :  { %11476 = vmatpush1.bf16.msra.mxu0 %v17789_v54  ;;  %v5062_v54 = vrot.slane %v19767_v35, %v19575_v15  ;;  %v8533_v47 = vld [vmem:[#allocation8 + $0x25c8] sm:$0xff] }
 0x577   :  { %11640 = vmatpush1.bf16.msra.mxu1 %v17791_v62  ;;  %11477 = vmatprep.subr.bf16.mxu0 %v17798_v63  ;;  %v17848_v62 = vcombine.high %v8453_v59, %v8457_v32  ;;  %v8460_v63 = vld [vmem:[#allocation8 + $0x2380] sm:$0xff]  ;;  %v8537_v49 = vld [vmem:[#allocation8 + $0x25e8] sm:$0xff] }
 0x578   :  { %11641 = vmatprep.subr.bf16.mxu1 %v17800_v1  ;;  %v8464_v1 = vld [vmem:[#allocation8 + $0x23a0] sm:$0xff] }
 0x57a   :  { %11478 = vmatpush1.bf16.msra.mxu0 %v17797_v13  ;;  %v17847_v13 = vcombine.low %v8453_v59, %v8457_v32 }
 0x57b   :  { %11642 = vmatpush1.bf16.msra.mxu1 %v17799_v20  ;;  %11479 = vmatprep.subr.bf16.mxu0 %v17806_v22  ;;  %v17854_v20 = vcombine.high %v8460_v63, %v8464_v1  ;;  %v18926_v22 = vadd.f32 %v19759_v23, %v5062_v54  ;;  %v8477_v23 = vld [vmem:[#allocation8 + $0x2408] sm:$0xff] }
 0x57c   :  { %11643 = vmatprep.subr.bf16.mxu1 %v17808_v26  ;;  %v17856_v26 = vcombine.high %v8461_v12, %v8465_v3  ;;  %v8501_v54 = vld [vmem:[#allocation8 + $0x24c8] sm:$0xff] }
 0x57d   :  { %v8323_v60 = vmul.f32 0.2, %v18926_v22  ;;  %vm8315_vm1 = vcmp.gt.f32.partialorder %v18926_v22, 0.0 }
 0x57e   :  { %11480 = vmatpush1.bf16.msra.mxu0 %v17805_v34  ;;  %v18929_v34 = vadd.f32 %v19765_v33, %v5074_v36  ;;  %v17863_v33 = vcombine.low %v8469_v37, %v8473_v5  ;;  %v8508_v36 = vld [vmem:[#allocation8 + $0x2500] sm:$0xff] }
 0x57f   :  { %11644 = vmatpush1.bf16.msra.mxu1 %v17807_v10  ;;  %11481 = vmatprep.subr.bf16.mxu0 %v17814_v38  ;;  %v17853_v10 = vcombine.low %v8460_v63, %v8464_v1  ;;  %v17855_v38 = vcombine.low %v8461_v12, %v8465_v3  ;;  %v8331_v45 = vsel %vm8315_vm1, %v18926_v22, %v8323_v60  ;;  %v8516_v37 = vld [vmem:[#allocation8 + $0x2540] sm:$0xff] }
 0x580   :  { %11645 = vmatprep.subr.bf16.mxu1 %v17816_v40  ;;  %v17862_v40 = vcombine.high %v8468_v30, %v8472_v41  ;;  %vm8318_vm2 = vcmp.gt.f32.partialorder %v18929_v34, 0.0  ;;  %v19784_v9 = vpack.c.bf16 %v8331_v45, %v8331_v45  ;;  %v8520_v5 = vld [vmem:[#allocation8 + $0x2560] sm:$0xff] }
 0x581   :  { %v17910_v60 = vcombine.high %v8516_v37, %v8520_v5  ;;  %v8532_v45 = vld [vmem:[#allocation8 + $0x25c0] sm:$0xff] }
 0x582   :  { %11482 = vmatpush1.bf16.msra.mxu0 %v17813_v42  ;;  %v8481_v42 = vld [vmem:[#allocation8 + $0x2428] sm:$0xff] }
 0x583   :  { %11646 = vmatpush1.bf16.msra.mxu1 %v17815_v48  ;;  %11483 = vmatprep.subr.bf16.mxu0 %v17822_v43  ;;  %v8326_v48 = vmul.f32 0.2, %v18929_v34  ;;  %v17861_v43 = vcombine.low %v8468_v30, %v8472_v41  ;;  %v17872_v46 = vcombine.high %v8477_v23, %v8481_v42  ;;  %v17871_v39 = vcombine.low %v8477_v23, %v8481_v42  ;;  %v8525_v23 = vld [vmem:[#allocation8 + $0x2588] sm:$0xff] }
 0x584   :  { %11647 = vmatprep.subr.bf16.mxu1 %v17824_v0  ;;  %v17870_v0 = vcombine.high %v8476_v14, %v8480_v6  ;;  %v8529_v42 = vld [vmem:[#allocation8 + $0x25a8] sm:$0xff] }
 0x586   :  { %11484 = vmatpush1.bf16.msra.mxu0 %v17821_v16  ;;  %v8334_v16 = vsel %vm8318_vm2, %v18929_v34, %v8326_v48  ;;  %v8517_v34 = vld [vmem:[#allocation8 + $0x2548] sm:$0xff]  ;;  %v17909_v48 = vcombine.low %v8516_v37, %v8520_v5 }
 0x587   :  { %11648 = vmatpush1.bf16.msra.mxu1 %v17823_v50  ;;  %11485 = vmatprep.subr.bf16.mxu0 %v17830_v53  ;;  %v17869_v50 = vcombine.low %v8476_v14, %v8480_v6  ;;  %v8485_v53 = vld [vmem:[#allocation8 + $0x2448] sm:$0xff]  ;;  %v8524_v14 = vld [vmem:[#allocation8 + $0x2580] sm:$0xff] }
 0x588   :  { %11649 = vmatprep.subr.bf16.mxu1 %v17832_v52  ;;  %v8489_v52 = vld [vmem:[#allocation8 + $0x2468] sm:$0xff]  ;;  %v8528_v6 = vld [vmem:[#allocation8 + $0x25a0] sm:$0xff] }
 0x589   :  { %v17879_v59 = vcombine.low %v8485_v53, %v8489_v52  ;;  %v8569_v37 = vld [vmem:[#allocation8 + $0x26e8] sm:$0xff] }
 0x58a   :  { %11486 = vmatpush1.bf16.msra.mxu0 %v17829_v56  ;;  %v8496_v56 = vld [vmem:[#allocation8 + $0x24a0] sm:$0xff] }
 0x58b   :  { %11650 = vmatpush1.bf16.msra.mxu1 %v17831_v58  ;;  %11487 = vmatprep.subr.bf16.mxu0 %v17838_v7  ;;  %v19786_v58 = vpack.c.bf16 %v8334_v16, %v8334_v16  ;;  %v17880_v7 = vcombine.high %v8485_v53, %v8489_v52  ;;  %v17886_v32 = vcombine.high %v8492_v55, %v8496_v56 }
 0x58c   :  { %11651 = vmatprep.subr.bf16.mxu1 %v17840_v29  ;;  %v8493_v29 = vld [vmem:[#allocation8 + $0x2488] sm:$0xff]  ;;  %v17885_v63 = vcombine.low %v8492_v55, %v8496_v56  ;;  %v17917_v16 = vcombine.low %v8524_v14, %v8528_v6  ;;  %v17928_v52 = vcombine.high %v8533_v47, %v8537_v49 }
 0x58d   :  { %v17887_v1 = vcombine.low %v8493_v29, %v8497_v24  ;;  %v8541_v55 = vld [vmem:[#allocation8 + $0x2608] sm:$0xff] }
 0x58e   :  { %11488 = vmatpush1.bf16.msra.mxu0 %v17837_v51  ;;  %v17888_v51 = vcombine.high %v8493_v29, %v8497_v24  ;;  %v8545_v56 = vld [vmem:[#allocation8 + $0x2628] sm:$0xff]  ;;  %v17927_v29 = vcombine.low %v8533_v47, %v8537_v49 }
 0x58f   :  { %11652 = vmatpush1.bf16.msra.mxu1 %v17839_v57  ;;  %11489 = vmatprep.subr.bf16.mxu0 %v17846_v61  ;;  %v8500_v57 = vld [vmem:[#allocation8 + $0x24c0] sm:$0xff] }
 0x590   :  { %11653 = vmatprep.subr.bf16.mxu1 %v17848_v62  ;;  %v8504_v61 = vld [vmem:[#allocation8 + $0x24e0] sm:$0xff]  ;;  %v8505_v62 = vld [vmem:[#allocation8 + $0x24e8] sm:$0xff] }
 0x591   :  { %v17894_v12 = vcombine.high %v8500_v57, %v8504_v61  ;;  %v17896_v3 = vcombine.high %v8501_v54, %v8505_v62  ;;  %v17893_v22 = vcombine.low %v8500_v57, %v8504_v61  ;;  %v8553_v57 = vld [vmem:[#allocation8 + $0x2668] sm:$0xff] }
 0x592   :  { %11490 = vmatpush1.bf16.msra.mxu0 %v17845_v44  ;;  %v8512_v44 = vld [vmem:[#allocation8 + $0x2520] sm:$0xff] }
 0x593   :  { %11654 = vmatpush1.bf16.msra.mxu1 %v17847_v13  ;;  %11491 = vmatprep.subr.bf16.mxu0 %v17854_v20  ;;  %v8509_v13 = vld [vmem:[#allocation8 + $0x2508] sm:$0xff]  ;;  %v17902_v30 = vcombine.high %v8508_v36, %v8512_v44 }
 0x594   :  { %11655 = vmatprep.subr.bf16.mxu1 %v17856_v26  ;;  %v8513_v20 = vld [vmem:[#allocation8 + $0x2528] sm:$0xff]  ;;  %v17895_v26 = vcombine.low %v8501_v54, %v8505_v62  ;;  %v17935_v54 = vcombine.low %v8541_v55, %v8545_v56 }
 0x595   :  { %v17904_v41 = vcombine.high %v8509_v13, %v8513_v20 }
 0x596   :  { %11492 = vmatpush1.bf16.msra.mxu0 %v17853_v10  ;;  %v8521_v10 = vld [vmem:[#allocation8 + $0x2568] sm:$0xff] }
 0x597   :  { %11656 = vmatpush1.bf16.msra.mxu1 %v17855_v38  ;;  %11493 = vmatprep.subr.bf16.mxu0 %v17862_v40  ;;  %v17901_v38 = vcombine.low %v8508_v36, %v8512_v44  ;;  %v17903_v40 = vcombine.low %v8509_v13, %v8513_v20  ;;  %v8561_v36 = vld [vmem:[#allocation8 + $0x26a8] sm:$0xff] }
 0x598   :  { %11657 = vmatprep.subr.bf16.mxu1 %v17864_v4  ;;  %v17912_v4 = vcombine.high %v8517_v34, %v8521_v10 }
 0x59a   :  { %11494 = vmatpush1.bf16.msra.mxu0 %v17861_v43  ;;  %v17911_v43 = vcombine.low %v8517_v34, %v8521_v10 }
 0x59b   :  { %11658 = vmatpush1.bf16.msra.mxu1 %v17863_v33  ;;  %11504 = vmatprep.subr.bf16.mxu0 %v17870_v0  ;;  %v17918_v33 = vcombine.high %v8524_v14, %v8528_v6  ;;  %v17920_v0 = vcombine.high %v8525_v23, %v8529_v42  ;;  %v8577_v14 = vld [vmem:[#allocation8 + $0x2728] sm:$0xff] }
 0x59c   :  { %11668 = vmatprep.subr.bf16.mxu1 %v17872_v46  ;;  %v8536_v46 = vld [vmem:[#allocation8 + $0x25e0] sm:$0xff] }
 0x59d   :  { %11496 = vmatmul.mubr.bf16.vlgmr.msra.gmra.mrb[24].mxu0 %v19784_v9  ;;  %v17926_v53 = vcombine.high %v8532_v45, %v8536_v46 }
 0x59e   :  { %11660 = vmatmul.mubr.bf16.vlgmr.msra.gmra.mrb[24].mxu1 %v19784_v9  ;;  %11505 = vmatpush1.bf16.msra.mxu0 %v17869_v50  ;;  %v17919_v50 = vcombine.low %v8525_v23, %v8529_v42 }
 0x59f   :  { %11536 = vmatprep.mubr.bf16.mxu0 %v19786_v58  ;;  %11669 = vmatpush1.bf16.msra.mxu1 %v17871_v39  ;;  %v8540_v39 = vld [vmem:[#allocation8 + $0x2600] sm:$0xff] }
 0x5a0   :  { %11700 = vmatprep.mubr.bf16.mxu1 %v19786_v58  ;;  %11506 = vmatprep.subr.bf16.mxu0 %v17878_v18  ;;  %v8544_v18 = vld [vmem:[#allocation8 + $0x2620] sm:$0xff] }
 0x5a1   :  { %11670 = vmatprep.subr.bf16.mxu1 %v17880_v7  ;;  %v17925_v7 = vcombine.low %v8532_v45, %v8536_v46  ;;  %v17934_v24 = vcombine.high %v8540_v39, %v8544_v18  ;;  %v17933_v61 = vcombine.low %v8540_v39, %v8544_v18  ;;  %v8585_v45 = vld [vmem:[#allocation8 + $0x2768] sm:$0xff] }
 0x5a2   :  { %11507 = vmatpush1.bf16.msra.mxu0 %v17877_v28  ;;  %v17936_v28 = vcombine.high %v8541_v55, %v8545_v56  ;;  %v8589_v39 = vld [vmem:[#allocation8 + $0x2788] sm:$0xff] }
 0x5a3   :  { %11671 = vmatpush1.bf16.msra.mxu1 %v17879_v59  ;;  %11508 = vmatprep.subr.bf16.mxu0 %v17886_v32  ;;  %v8548_v59 = vld [vmem:[#allocation8 + $0x2640] sm:$0xff]  ;;  %v8593_v18 = vld [vmem:[#allocation8 + $0x27a8] sm:$0xff] }
 0x5a4   :  { %11672 = vmatprep.subr.bf16.mxu1 %v17888_v51  ;;  %v8552_v32 = vld [vmem:[#allocation8 + $0x2660] sm:$0xff]  ;;  %v8549_v51 = vld [vmem:[#allocation8 + $0x2648] sm:$0xff] }
 0x5a5   :  { %v17942_v62 = vcombine.high %v8548_v59, %v8552_v32  ;;  %v17941_v44 = vcombine.low %v8548_v59, %v8552_v32  ;;  %v17943_v13 = vcombine.low %v8549_v51, %v8553_v57  ;;  %v8600_v59 = vld [vmem:[#allocation8 + $0x27e0] sm:$0xff]  ;;  %v8597_v32 = vld [vmem:[#allocation8 + $0x27c8] sm:$0xff] }
 0x5a6   :  { %11509 = vmatpush1.bf16.msra.mxu0 %v17885_v63  ;;  %v17944_v63 = vcombine.high %v8549_v51, %v8553_v57  ;;  %v17983_v57 = vcombine.low %v8589_v39, %v8593_v18 }
 0x5a7   :  { %11673 = vmatpush1.bf16.msra.mxu1 %v17887_v1  ;;  %11510 = vmatprep.subr.bf16.mxu0 %v17894_v12  ;;  %v8556_v1 = vld [vmem:[#allocation8 + $0x2680] sm:$0xff] }
 0x5a8   :  { %11674 = vmatprep.subr.bf16.mxu1 %v17896_v3  ;;  %v8560_v12 = vld [vmem:[#allocation8 + $0x26a0] sm:$0xff]  ;;  %v8557_v3 = vld [vmem:[#allocation8 + $0x2688] sm:$0xff] }
 0x5a9   :  { %v17950_v20 = vcombine.high %v8556_v1, %v8560_v12  ;;  %v17949_v5 = vcombine.low %v8556_v1, %v8560_v12  ;;  %v17951_v34 = vcombine.low %v8557_v3, %v8561_v36  ;;  %v8608_v1 = vld [vmem:[#allocation8 + $0x2820] sm:$0xff]  ;;  %v8605_v12 = vld [vmem:[#allocation8 + $0x2808] sm:$0xff] }
 0x5aa   :  { %11511 = vmatpush1.bf16.msra.mxu0 %v17893_v22  ;;  %v17952_v22 = vcombine.high %v8557_v3, %v8561_v36 }
 0x5ab   :  { %11675 = vmatpush1.bf16.msra.mxu1 %v17895_v26  ;;  %11512 = vmatprep.subr.bf16.mxu0 %v17902_v30  ;;  %v8564_v26 = vld [vmem:[#allocation8 + $0x26c0] sm:$0xff] }
 0x5ac   :  { %11676 = vmatprep.subr.bf16.mxu1 %v17904_v41  ;;  %v8568_v30 = vld [vmem:[#allocation8 + $0x26e0] sm:$0xff]  ;;  %v8565_v41 = vld [vmem:[#allocation8 + $0x26c8] sm:$0xff] }
 0x5ad   :  { %v17958_v10 = vcombine.high %v8564_v26, %v8568_v30  ;;  %v17957_v6 = vcombine.low %v8564_v26, %v8568_v30  ;;  %v17959_v23 = vcombine.low %v8565_v41, %v8569_v37  ;;  %v8616_v26 = vld [vmem:[#allocation8 + $0x2860] sm:$0xff]  ;;  %v8613_v30 = vld [vmem:[#allocation8 + $0x2848] sm:$0xff] }
 0x5ae   :  { %11513 = vmatpush1.bf16.msra.mxu0 %v17901_v38  ;;  %v17960_v38 = vcombine.high %v8565_v41, %v8569_v37  ;;  %v8617_v41 = vld [vmem:[#allocation8 + $0x2868] sm:$0xff] }
 0x5af   :  { %11677 = vmatpush1.bf16.msra.mxu1 %v17903_v40  ;;  %11514 = vmatprep.subr.bf16.mxu0 %v17910_v60  ;;  %v8572_v40 = vld [vmem:[#allocation8 + $0x2700] sm:$0xff] }
 0x5b0   :  { %11678 = vmatprep.subr.bf16.mxu1 %v17912_v4  ;;  %v8576_v60 = vld [vmem:[#allocation8 + $0x2720] sm:$0xff]  ;;  %v8573_v4 = vld [vmem:[#allocation8 + $0x2708] sm:$0xff] }
 0x5b1   :  { %v17966_v42 = vcombine.high %v8572_v40, %v8576_v60  ;;  %v17965_v46 = vcombine.low %v8572_v40, %v8576_v60  ;;  %v17967_v47 = vcombine.low %v8573_v4, %v8577_v14  ;;  %v8620_v40 = vld [vmem:[#allocation8 + $0x2880] sm:$0xff] }
 0x5b2   :  { %11515 = vmatpush1.bf16.msra.mxu0 %v17909_v48  ;;  %v17968_v48 = vcombine.high %v8573_v4, %v8577_v14  ;;  %v8624_v60 = vld [vmem:[#allocation8 + $0x28a0] sm:$0xff]  ;;  %v8621_v4 = vld [vmem:[#allocation8 + $0x2888] sm:$0xff] }
 0x5b3   :  { %11679 = vmatpush1.bf16.msra.mxu1 %v17911_v43  ;;  %11516 = vmatprep.subr.bf16.mxu0 %v17918_v33  ;;  %v8580_v43 = vld [vmem:[#allocation8 + $0x2740] sm:$0xff]  ;;  %v8625_v14 = vld [vmem:[#allocation8 + $0x28a8] sm:$0xff] }
 0x5b4   :  { %11680 = vmatprep.subr.bf16.mxu1 %v17920_v0  ;;  %v8584_v33 = vld [vmem:[#allocation8 + $0x2760] sm:$0xff]  ;;  %v8581_v0 = vld [vmem:[#allocation8 + $0x2748] sm:$0xff] }
 0x5b5   :  { %v17974_v49 = vcombine.high %v8580_v43, %v8584_v33  ;;  %v17973_v55 = vcombine.low %v8580_v43, %v8584_v33  ;;  %v17975_v56 = vcombine.low %v8581_v0, %v8585_v45  ;;  %v8628_v43 = vld [vmem:[#allocation8 + $0x28c0] sm:$0xff] }
 0x5b6   :  { %11517 = vmatpush1.bf16.msra.mxu0 %v17917_v16  ;;  %v5070_v16 = vrot.slane %v19767_v35, %v19610_v27  ;;  %v8601_v35 = vld [vmem:[#allocation8 + $0x27e8] sm:$0xff]  ;;  %v8632_v33 = vld [vmem:[#allocation8 + $0x28e0] sm:$0xff] }
 0x5b7   :  { %11681 = vmatpush1.bf16.msra.mxu1 %v17919_v50  ;;  %11518 = vmatprep.subr.bf16.mxu0 %v17926_v53  ;;  %v17976_v50 = vcombine.high %v8581_v0, %v8585_v45  ;;  %v8588_v53 = vld [vmem:[#allocation8 + $0x2780] sm:$0xff]  ;;  %v17991_v36 = vcombine.low %v8597_v32, %v8601_v35  ;;  %v8629_v0 = vld [vmem:[#allocation8 + $0x28c8] sm:$0xff] }
 0x5b8   :  { %11682 = vmatprep.subr.bf16.mxu1 %v17928_v52  ;;  %v8592_v52 = vld [vmem:[#allocation8 + $0x27a0] sm:$0xff]  ;;  %v8633_v45 = vld [vmem:[#allocation8 + $0x28e8] sm:$0xff] }
 0x5b9   :  { %v17981_v51 = vcombine.low %v8588_v53, %v8592_v52 }
 0x5ba   :  { %11519 = vmatpush1.bf16.msra.mxu0 %v17925_v7  ;;  %v17982_v7 = vcombine.high %v8588_v53, %v8592_v52  ;;  %v8640_v53 = vld [vmem:[#allocation8 + $0x2920] sm:$0xff]  ;;  %v8637_v52 = vld [vmem:[#allocation8 + $0x2908] sm:$0xff] }
 0x5bb   :  { %11683 = vmatpush1.bf16.msra.mxu1 %v17927_v29  ;;  %11520 = vmatprep.subr.bf16.mxu0 %v17934_v24  ;;  %v18928_v29 = vadd.f32 %v19761_v25, %v5070_v16  ;;  %v17984_v24 = vcombine.high %v8589_v39, %v8593_v18  ;;  %v8609_v25 = vld [vmem:[#allocation8 + $0x2828] sm:$0xff]  ;;  %v18024_v16 = vcombine.high %v8629_v0, %v8633_v45 }
 0x5bc   :  { %11684 = vmatprep.subr.bf16.mxu1 %v17936_v28  ;;  %v8596_v28 = vld [vmem:[#allocation8 + $0x27c0] sm:$0xff]  ;;  %v8641_v39 = vld [vmem:[#allocation8 + $0x2928] sm:$0xff]  ;;  %v18021_v18 = vcombine.low %v8628_v43, %v8632_v33 }
 0x5bd   :  { %vm8317_vm3 = vcmp.gt.f32.partialorder %v18928_v29, 0.0  ;;  %v17989_v3 = vcombine.low %v8596_v28, %v8600_v59 }
 0x5be   :  { %11521 = vmatpush1.bf16.msra.mxu0 %v17933_v61  ;;  %v17990_v61 = vcombine.high %v8596_v28, %v8600_v59  ;;  %v8645_v28 = vld [vmem:[#allocation8 + $0x2948] sm:$0xff] }
 0x5bf   :  { %11685 = vmatpush1.bf16.msra.mxu1 %v17935_v54  ;;  %11522 = vmatprep.subr.bf16.mxu0 %v17942_v62  ;;  %v8325_v54 = vmul.f32 0.2, %v18928_v29  ;;  %v17992_v62 = vcombine.high %v8597_v32, %v8601_v35  ;;  %v8649_v59 = vld [vmem:[#allocation8 + $0x2968] sm:$0xff]  ;;  %v18031_v35 = vcombine.low %v8637_v52, %v8641_v39 }
 0x5c0   :  { %11686 = vmatprep.subr.bf16.mxu1 %v17944_v63  ;;  %v8604_v63 = vld [vmem:[#allocation8 + $0x2800] sm:$0xff] }
 0x5c1   :  { %v17997_v37 = vcombine.low %v8604_v63, %v8608_v1 }
 0x5c2   :  { %11523 = vmatpush1.bf16.msra.mxu0 %v17941_v44  ;;  %v17998_v44 = vcombine.high %v8604_v63, %v8608_v1  ;;  %v8657_v63 = vld [vmem:[#allocation8 + $0x29a8] sm:$0xff] }
 0x5c3   :  { %11687 = vmatpush1.bf16.msra.mxu1 %v17943_v13  ;;  %11524 = vmatprep.subr.bf16.mxu0 %v17950_v20  ;;  %v8333_v13 = vsel %vm8317_vm3, %v18928_v29, %v8325_v54  ;;  %v18000_v20 = vcombine.high %v8605_v12, %v8609_v25  ;;  %v8644_v29 = vld [vmem:[#allocation8 + $0x2940] sm:$0xff] }
 0x5c4   :  { %11688 = vmatprep.subr.bf16.mxu1 %v17952_v22  ;;  %v8612_v22 = vld [vmem:[#allocation8 + $0x2840] sm:$0xff] }
 0x5c5   :  { %v8656_v54 = vld [vmem:[#allocation8 + $0x29a0] sm:$0xff] }
 0x5c6   :  { %11525 = vmatpush1.bf16.msra.mxu0 %v17949_v5  ;;  %v19795_v5 = vpack.c.bf16 %v8333_v13, %v8333_v13  ;;  %v8661_v13 = vld [vmem:[#allocation8 + $0x29c8] sm:$0xff] }
 0x5c7   :  { %11689 = vmatpush1.bf16.msra.mxu1 %v17951_v34  ;;  %11526 = vmatprep.subr.bf16.mxu0 %v17958_v10  ;;  %v17999_v34 = vcombine.low %v8605_v12, %v8609_v25  ;;  %v18006_v10 = vcombine.high %v8612_v22, %v8616_v26  ;;  %v18039_v12 = vcombine.low %v8645_v28, %v8649_v59 }
 0x5c8   :  { %11690 = vmatprep.subr.bf16.mxu1 %v17960_v38  ;;  %v18008_v38 = vcombine.high %v8613_v30, %v8617_v41 }
 0x5ca   :  { %11527 = vmatpush1.bf16.msra.mxu0 %v17957_v6  ;;  %v18005_v6 = vcombine.low %v8612_v22, %v8616_v26 }
 0x5cb   :  { %11691 = vmatpush1.bf16.msra.mxu1 %v17959_v23  ;;  %11528 = vmatprep.subr.bf16.mxu0 %v17966_v42  ;;  %v18007_v23 = vcombine.low %v8613_v30, %v8617_v41  ;;  %v18014_v42 = vcombine.high %v8620_v40, %v8624_v60 }
 0x5cc   :  { %11692 = vmatprep.subr.bf16.mxu1 %v17968_v48  ;;  %v18016_v48 = vcombine.high %v8621_v4, %v8625_v14 }
 0x5ce   :  { %11529 = vmatpush1.bf16.msra.mxu0 %v17965_v46  ;;  %v18013_v46 = vcombine.low %v8620_v40, %v8624_v60 }
 0x5cf   :  { %11693 = vmatpush1.bf16.msra.mxu1 %v17967_v47  ;;  %11530 = vmatprep.subr.bf16.mxu0 %v17974_v49  ;;  %v18015_v47 = vcombine.low %v8621_v4, %v8625_v14  ;;  %v18022_v49 = vcombine.high %v8628_v43, %v8632_v33 }
 0x5d0   :  { %11694 = vmatprep.subr.bf16.mxu1 %v17976_v50  ;;  %v8636_v50 = vld [vmem:[#allocation8 + $0x2900] sm:$0xff] }
 0x5d1   :  { %v18029_v32 = vcombine.low %v8636_v50, %v8640_v53 }
 0x5d2   :  { %11531 = vmatpush1.bf16.msra.mxu0 %v17973_v55  ;;  %v18023_v55 = vcombine.low %v8629_v0, %v8633_v45 }
 0x5d3   :  { %11695 = vmatpush1.bf16.msra.mxu1 %v17975_v56  ;;  %11532 = vmatprep.subr.bf16.mxu0 %v17982_v7  ;;  %v18030_v56 = vcombine.high %v8636_v50, %v8640_v53  ;;  %v18032_v7 = vcombine.high %v8637_v52, %v8641_v39 }
 0x5d4   :  { %11696 = vmatprep.subr.bf16.mxu1 %v17984_v24  ;;  %v8648_v24 = vld [vmem:[#allocation8 + $0x2960] sm:$0xff] }
 0x5d5   :  { %v18037_v1 = vcombine.low %v8644_v29, %v8648_v24 }
 0x5d6   :  { %11533 = vmatpush1.bf16.msra.mxu0 %v17981_v51  ;;  %v18038_v51 = vcombine.high %v8644_v29, %v8648_v24 }
 0x5d7   :  { %11697 = vmatpush1.bf16.msra.mxu1 %v17983_v57  ;;  %11534 = vmatprep.subr.bf16.mxu0 %v17990_v61  ;;  %v18040_v57 = vcombine.high %v8645_v28, %v8649_v59  ;;  %v8652_v61 = vld [vmem:[#allocation8 + $0x2980] sm:$0xff] }
 0x5d8   :  { %11698 = vmatprep.subr.bf16.mxu1 %v17992_v62  ;;  %v8653_v62 = vld [vmem:[#allocation8 + $0x2988] sm:$0xff]  ;;  %v18046_v25 = vcombine.high %v8652_v61, %v8656_v54  ;;  %v18045_v22 = vcombine.low %v8652_v61, %v8656_v54 }
 0x5d9   :  { %v18047_v26 = vcombine.low %v8653_v62, %v8657_v63 }
 0x5da   :  { %11535 = vmatpush1.bf16.msra.mxu0 %v17989_v3  ;;  %v18048_v3 = vcombine.high %v8653_v62, %v8657_v63 }
 0x5db   :  { %11699 = vmatpush1.bf16.msra.mxu1 %v17991_v36  ;;  %11545 = vmatprep.subr.bf16.mxu0 %v17998_v44  ;;  %v8660_v36 = vld [vmem:[#allocation8 + $0x29c0] sm:$0xff] }
 0x5dc   :  { %11709 = vmatprep.subr.bf16.mxu1 %v18000_v20  ;;  %v8664_v44 = vld [vmem:[#allocation8 + $0x29e0] sm:$0xff]  ;;  %v8665_v20 = vld [vmem:[#allocation8 + $0x29e8] sm:$0xff] }
 0x5dd   :  { %11537 = vmatmul.mubr.bf16.vlgmr.msra.gmra.mrb[24].mxu0 %v19795_v5  ;;  %v18054_v30 = vcombine.high %v8660_v36, %v8664_v44  ;;  %v18056_v41 = vcombine.high %v8661_v13, %v8665_v20  ;;  %v18053_v40 = vcombine.low %v8660_v36, %v8664_v44  ;;  %v18055_v60 = vcombine.low %v8661_v13, %v8665_v20 }
 0x5de   :  { %11701 = vmatmul.mubr.bf16.vlgmr.msra.gmra.mrb[24].mxu1 %v19795_v5  ;;  %11546 = vmatpush1.bf16.msra.mxu0 %v17997_v37  ;;  %v8668_v37 = vld [vmem:[#allocation8 + $0x2a00] sm:$0xff] }
 0x5df   :  { %11710 = vmatpush1.bf16.msra.mxu1 %v17999_v34  ;;  %11547 = vmatprep.subr.bf16.mxu0 %v18006_v10  ;;  %v8672_v34 = vld [vmem:[#allocation8 + $0x2a20] sm:$0xff]  ;;  %v8669_v10 = vld [vmem:[#allocation8 + $0x2a08] sm:$0xff] }
 0x5e0   :  { %11711 = vmatprep.subr.bf16.mxu1 %v18008_v38  ;;  %v8673_v38 = vld [vmem:[#allocation8 + $0x2a28] sm:$0xff]  ;;  %v18062_v4 = vcombine.high %v8668_v37, %v8672_v34  ;;  %v18061_v43 = vcombine.low %v8668_v37, %v8672_v34 }
 0x5e1   :  { %v18064_v14 = vcombine.high %v8669_v10, %v8673_v38  ;;  %v18063_v33 = vcombine.low %v8669_v10, %v8673_v38 }
 0x5e2   :  { %11548 = vmatpush1.bf16.msra.mxu0 %v18005_v6  ;;  %v8676_v6 = vld [vmem:[#allocation8 + $0x2a40] sm:$0xff] }
 0x5e3   :  { %11712 = vmatpush1.bf16.msra.mxu1 %v18007_v23  ;;  %11549 = vmatprep.subr.bf16.mxu0 %v18014_v42  ;;  %v8680_v23 = vld [vmem:[#allocation8 + $0x2a60] sm:$0xff]  ;;  %v8677_v42 = vld [vmem:[#allocation8 + $0x2a48] sm:$0xff] }
 0x5e4   :  { %11713 = vmatprep.subr.bf16.mxu1 %v18016_v48  ;;  %v8681_v48 = vld [vmem:[#allocation8 + $0x2a68] sm:$0xff]  ;;  %v18070_v0 = vcombine.high %v8676_v6, %v8680_v23  ;;  %v18069_v50 = vcombine.low %v8676_v6, %v8680_v23 }
 0x5e5   :  { %v18072_v45 = vcombine.high %v8677_v42, %v8681_v48  ;;  %v18071_v53 = vcombine.low %v8677_v42, %v8681_v48 }
 0x5e6   :  { %11550 = vmatpush1.bf16.msra.mxu0 %v18013_v46  ;;  %v8684_v46 = vld [vmem:[#allocation8 + $0x2a80] sm:$0xff] }
 0x5e7   :  { %11714 = vmatpush1.bf16.msra.mxu1 %v18015_v47  ;;  %11551 = vmatprep.subr.bf16.mxu0 %v18022_v49  ;;  %v8688_v47 = vld [vmem:[#allocation8 + $0x2aa0] sm:$0xff]  ;;  %v8685_v49 = vld [vmem:[#allocation8 + $0x2a88] sm:$0xff] }
 0x5e8   :  { %11715 = vmatprep.subr.bf16.mxu1 %v18024_v16  ;;  %v8689_v16 = vld [vmem:[#allocation8 + $0x2aa8] sm:$0xff]  ;;  %v18078_v52 = vcombine.high %v8684_v46, %v8688_v47  ;;  %v18077_v29 = vcombine.low %v8684_v46, %v8688_v47 }
 0x5e9   :  { %v18080_v39 = vcombine.high %v8685_v49, %v8689_v16  ;;  %v18079_v24 = vcombine.low %v8685_v49, %v8689_v16 }
 0x5ea   :  { %11552 = vmatpush1.bf16.msra.mxu0 %v18021_v18  ;;  %v8692_v18 = vld [vmem:[#allocation8 + $0x2ac0] sm:$0xff] }
 0x5eb   :  { %11716 = vmatpush1.bf16.msra.mxu1 %v18023_v55  ;;  %11553 = vmatprep.subr.bf16.mxu0 %v18030_v56  ;;  %v8696_v55 = vld [vmem:[#allocation8 + $0x2ae0] sm:$0xff]  ;;  %v8693_v56 = vld [vmem:[#allocation8 + $0x2ac8] sm:$0xff] }
 0x5ec   :  { %11717 = vmatprep.subr.bf16.mxu1 %v18032_v7  ;;  %v8697_v7 = vld [vmem:[#allocation8 + $0x2ae8] sm:$0xff]  ;;  %v18086_v28 = vcombine.high %v8692_v18, %v8696_v55  ;;  %v18085_v61 = vcombine.low %v8692_v18, %v8696_v55 }
 0x5ed   :  { %v18088_v59 = vcombine.high %v8693_v56, %v8697_v7  ;;  %v18087_v54 = vcombine.low %v8693_v56, %v8697_v7 }
 0x5ee   :  { %11554 = vmatpush1.bf16.msra.mxu0 %v18029_v32  ;;  %v8700_v32 = vld [vmem:[#allocation8 + $0x2b00] sm:$0xff] }
 0x5ef   :  { %11718 = vmatpush1.bf16.msra.mxu1 %v18031_v35  ;;  %11555 = vmatprep.subr.bf16.mxu0 %v18038_v51  ;;  %v8704_v35 = vld [vmem:[#allocation8 + $0x2b20] sm:$0xff]  ;;  %v8701_v51 = vld [vmem:[#allocation8 + $0x2b08] sm:$0xff] }
 0x5f0   :  { %11719 = vmatprep.subr.bf16.mxu1 %v18040_v57  ;;  %v8705_v57 = vld [vmem:[#allocation8 + $0x2b28] sm:$0xff]  ;;  %v18094_v62 = vcombine.high %v8700_v32, %v8704_v35  ;;  %v18093_v36 = vcombine.low %v8700_v32, %v8704_v35 }
 0x5f1   :  { %v18096_v63 = vcombine.high %v8701_v51, %v8705_v57  ;;  %v18095_v44 = vcombine.low %v8701_v51, %v8705_v57 }
 0x5f2   :  { %11556 = vmatpush1.bf16.msra.mxu0 %v18037_v1  ;;  %v8708_v1 = vld [vmem:[#allocation8 + $0x2b40] sm:$0xff] }
 0x5f3   :  { %11720 = vmatpush1.bf16.msra.mxu1 %v18039_v12  ;;  %11557 = vmatprep.subr.bf16.mxu0 %v18046_v25  ;;  %v8712_v12 = vld [vmem:[#allocation8 + $0x2b60] sm:$0xff]  ;;  %v8709_v25 = vld [vmem:[#allocation8 + $0x2b48] sm:$0xff] }
 0x5f4   :  { %11721 = vmatprep.subr.bf16.mxu1 %v18048_v3  ;;  %v8713_v3 = vld [vmem:[#allocation8 + $0x2b68] sm:$0xff]  ;;  %v18102_v13 = vcombine.high %v8708_v1, %v8712_v12  ;;  %v18101_v37 = vcombine.low %v8708_v1, %v8712_v12  ;;  %v8744_v12 = vld [vmem:[#allocation8 + $0x2c60] sm:$0xff] }
 0x5f5   :  { %v18104_v20 = vcombine.high %v8709_v25, %v8713_v3  ;;  %v18103_v34 = vcombine.low %v8709_v25, %v8713_v3  ;;  %v8741_v25 = vld [vmem:[#allocation8 + $0x2c48] sm:$0xff] }
 0x5f6   :  { %11558 = vmatpush1.bf16.msra.mxu0 %v18045_v22  ;;  %v8716_v22 = vld [vmem:[#allocation8 + $0x2b80] sm:$0xff]  ;;  %v8745_v3 = vld [vmem:[#allocation8 + $0x2c68] sm:$0xff] }
 0x5f7   :  { %11722 = vmatpush1.bf16.msra.mxu1 %v18047_v26  ;;  %11559 = vmatprep.subr.bf16.mxu0 %v18054_v30  ;;  %v8720_v26 = vld [vmem:[#allocation8 + $0x2ba0] sm:$0xff]  ;;  %v8717_v30 = vld [vmem:[#allocation8 + $0x2b88] sm:$0xff] }
 0x5f8   :  { %11723 = vmatprep.subr.bf16.mxu1 %v18056_v41  ;;  %v8721_v41 = vld [vmem:[#allocation8 + $0x2ba8] sm:$0xff]  ;;  %v18110_v10 = vcombine.high %v8716_v22, %v8720_v26  ;;  %v18109_v6 = vcombine.low %v8716_v22, %v8720_v26  ;;  %v8748_v26 = vld [vmem:[#allocation8 + $0x2c80] sm:$0xff] }
 0x5f9   :  { %v18112_v38 = vcombine.high %v8717_v30, %v8721_v41  ;;  %v18111_v23 = vcombine.low %v8717_v30, %v8721_v41  ;;  %v18136_v41 = vcombine.high %v8741_v25, %v8745_v3 }
 0x5fa   :  { %11560 = vmatpush1.bf16.msra.mxu0 %v18053_v40  ;;  %v8724_v40 = vld [vmem:[#allocation8 + $0x2bc0] sm:$0xff] }
 0x5fb   :  { %11724 = vmatpush1.bf16.msra.mxu1 %v18055_v60  ;;  %11561 = vmatprep.subr.bf16.mxu0 %v18062_v4  ;;  %v8728_v60 = vld [vmem:[#allocation8 + $0x2be0] sm:$0xff]  ;;  %v8725_v4 = vld [vmem:[#allocation8 + $0x2bc8] sm:$0xff] }
 0x5fc   :  { %11725 = vmatprep.subr.bf16.mxu1 %v18064_v14  ;;  %v8729_v14 = vld [vmem:[#allocation8 + $0x2be8] sm:$0xff]  ;;  %v18118_v42 = vcombine.high %v8724_v40, %v8728_v60  ;;  %v18117_v46 = vcombine.low %v8724_v40, %v8728_v60  ;;  %v18135_v60 = vcombine.low %v8741_v25, %v8745_v3  ;;  %v8788_v25 = vld [vmem:[#allocation8 + $0x2dc0] sm:$0xff] }
 0x5fd   :  { %v18120_v48 = vcombine.high %v8725_v4, %v8729_v14  ;;  %v18119_v47 = vcombine.low %v8725_v4, %v8729_v14  ;;  %v8792_v3 = vld [vmem:[#allocation8 + $0x2de0] sm:$0xff] }
 0x5fe   :  { %11562 = vmatpush1.bf16.msra.mxu0 %v18061_v43  ;;  %v8732_v43 = vld [vmem:[#allocation8 + $0x2c00] sm:$0xff] }
 0x5ff   :  { %11726 = vmatpush1.bf16.msra.mxu1 %v18063_v33  ;;  %11563 = vmatprep.subr.bf16.mxu0 %v18070_v0  ;;  %v8736_v33 = vld [vmem:[#allocation8 + $0x2c20] sm:$0xff]  ;;  %v8733_v0 = vld [vmem:[#allocation8 + $0x2c08] sm:$0xff] }
 0x600   :  { %11727 = vmatprep.subr.bf16.mxu1 %v18072_v45  ;;  %v8737_v45 = vld [vmem:[#allocation8 + $0x2c28] sm:$0xff]  ;;  %v18126_v49 = vcombine.high %v8732_v43, %v8736_v33 }
 0x601   :  { %v18128_v16 = vcombine.high %v8733_v0, %v8737_v45 }
 0x602   :  { %11564 = vmatpush1.bf16.msra.mxu0 %v18069_v50  ;;  %v19799_v50 = vld [vmem:[#allocation10 + $0x8] sm:$0xff] }
 0x603   :  { %11728 = vmatpush1.bf16.msra.mxu1 %v18071_v53  ;;  %11565 = vmatprep.subr.bf16.mxu0 %v18078_v52  ;;  %v5078_v53 = vrot.slane %v19799_v50, %v19634_v11  ;;  %v5082_v52 = vrot.slane %v19799_v50, %v19613_v31 }
 0x604   :  { %11729 = vmatprep.subr.bf16.mxu1 %v18080_v39  ;;  %v5090_v39 = vrot.slane %v19799_v50, %v19637_v19 }
 0x606   :  { %11566 = vmatpush1.bf16.msra.mxu0 %v18077_v29 }
 0x607   :  { %11730 = vmatpush1.bf16.msra.mxu1 %v18079_v24  ;;  %11567 = vmatprep.subr.bf16.mxu0 %v18086_v28 }
 0x608   :  { %11731 = vmatprep.subr.bf16.mxu1 %v18088_v59 }
 0x60a   :  { %11568 = vmatpush1.bf16.msra.mxu0 %v18085_v61 }
 0x60b   :  { %11732 = vmatpush1.bf16.msra.mxu1 %v18087_v54  ;;  %11569 = vmatprep.subr.bf16.mxu0 %v18094_v62 }
 0x60c   :  { %11733 = vmatprep.subr.bf16.mxu1 %v18096_v63  ;;  %v8740_v63 = vld [vmem:[#allocation8 + $0x2c40] sm:$0xff] }
 0x60d   :  { %v18134_v30 = vcombine.high %v8740_v63, %v8744_v12  ;;  %v18133_v40 = vcombine.low %v8740_v63, %v8744_v12 }
 0x60e   :  { %11570 = vmatpush1.bf16.msra.mxu0 %v18093_v36 }
 0x60f   :  { %11734 = vmatpush1.bf16.msra.mxu1 %v18095_v44  ;;  %11571 = vmatprep.subr.bf16.mxu0 %v18102_v13  ;;  %v18125_v13 = vcombine.low %v8732_v43, %v8736_v33 }
 0x610   :  { %11735 = vmatprep.subr.bf16.mxu1 %v18104_v20  ;;  %v18127_v20 = vcombine.low %v8733_v0, %v8737_v45 }
 0x612   :  { %11572 = vmatpush1.bf16.msra.mxu0 %v18101_v37  ;;  %v8752_v37 = vld [vmem:[#allocation8 + $0x2ca0] sm:$0xff] }
 0x613   :  { %11736 = vmatpush1.bf16.msra.mxu1 %v18103_v34  ;;  %11573 = vmatprep.subr.bf16.mxu0 %v18110_v10  ;;  %v8749_v34 = vld [vmem:[#allocation8 + $0x2c88] sm:$0xff]  ;;  %v18142_v4 = vcombine.high %v8748_v26, %v8752_v37  ;;  %v18141_v43 = vcombine.low %v8748_v26, %v8752_v37  ;;  %v8796_v37 = vld [vmem:[#allocation8 + $0x2e00] sm:$0xff] }
 0x614   :  { %11737 = vmatprep.subr.bf16.mxu1 %v18112_v38  ;;  %v8753_v10 = vld [vmem:[#allocation8 + $0x2ca8] sm:$0xff] }
 0x615   :  { %v18144_v14 = vcombine.high %v8749_v34, %v8753_v10  ;;  %v18143_v33 = vcombine.low %v8749_v34, %v8753_v10  ;;  %v8800_v34 = vld [vmem:[#allocation8 + $0x2e20] sm:$0xff]  ;;  %v8797_v10 = vld [vmem:[#allocation8 + $0x2e08] sm:$0xff] }
 0x616   :  { %11574 = vmatpush1.bf16.msra.mxu0 %v18109_v6  ;;  %v8756_v6 = vld [vmem:[#allocation8 + $0x2cc0] sm:$0xff] }
 0x617   :  { %11738 = vmatpush1.bf16.msra.mxu1 %v18111_v23  ;;  %11575 = vmatprep.subr.bf16.mxu0 %v18118_v42  ;;  %v8760_v23 = vld [vmem:[#allocation8 + $0x2ce0] sm:$0xff]  ;;  %v8757_v42 = vld [vmem:[#allocation8 + $0x2cc8] sm:$0xff] }
 0x618   :  { %11739 = vmatprep.subr.bf16.mxu1 %v18120_v48  ;;  %v8761_v48 = vld [vmem:[#allocation8 + $0x2ce8] sm:$0xff]  ;;  %v18150_v0 = vcombine.high %v8756_v6, %v8760_v23 }
 0x619   :  { %v18152_v45 = vcombine.high %v8757_v42, %v8761_v48 }
 0x61a   :  { %11576 = vmatpush1.bf16.msra.mxu0 %v18117_v46  ;;  %v8764_v46 = vld [vmem:[#allocation8 + $0x2d00] sm:$0xff] }
 0x61b   :  { %11740 = vmatpush1.bf16.msra.mxu1 %v18119_v47  ;;  %11586 = vmatprep.subr.bf16.mxu0 %v18126_v49  ;;  %v8768_v47 = vld [vmem:[#allocation8 + $0x2d20] sm:$0xff]  ;;  %v8765_v49 = vld [vmem:[#allocation8 + $0x2d08] sm:$0xff] }
 0x61c   :  { %11750 = vmatprep.subr.bf16.mxu1 %v18128_v16  ;;  %v8769_v16 = vld [vmem:[#allocation8 + $0x2d28] sm:$0xff] }
 0x630   :  { %v8144_v18 = vpop.f32.mrb[20].mxu0 }
 0x631   :  { %v18930_v55 = vadd.f32 %v8144_v18, %v5078_v53  ;;  %v19807_v56 = vpop.f32.mrb[20].mxu1  ;;  %v8146_v7 = vpop.f32.mrb[21].mxu0  ;;  %v18149_v53 = vcombine.low %v8756_v6, %v8760_v23  ;;  %v18160_v18 = vcombine.high %v8765_v49, %v8769_v16  ;;  %v8804_v23 = vld [vmem:[#allocation8 + $0x2e40] sm:$0xff] }
 0x632   :  { %v18931_v29 = vadd.f32 %v8146_v7, %v5082_v52  ;;  %v8310_v24 = vpop.f32.mrb[21].mxu1  ;;  %v8148_v28 = vpop.f32.mrb[22].mxu0  ;;  %v18151_v52 = vcombine.low %v8757_v42, %v8761_v48  ;;  %v8776_v7 = vld [vmem:[#allocation8 + $0x2d60] sm:$0xff]  ;;  %v8805_v48 = vld [vmem:[#allocation8 + $0x2e48] sm:$0xff] }
 0x633   :  { %vm8319_vm4 = vcmp.gt.f32.partialorder %v18930_v55, 0.0  ;;  %v8327_v59 = vmul.f32 0.2, %v18930_v55  ;;  %v18933_v32 = vadd.f32 %v8310_v24, %v5090_v39  ;;  %v8312_v35 = vpop.f32.mrb[22].mxu1  ;;  %v8149_v51 = vpop.f32.mrb[23].mxu0  ;;  %v18158_v39 = vcombine.high %v8764_v46, %v8768_v47  ;;  %v8777_v24 = vld [vmem:[#allocation8 + $0x2d68] sm:$0xff] }
 0x634   :  { %vm8320_vm5 = vcmp.gt.f32.partialorder %v18931_v29, 0.0  ;;  %v8328_v57 = vmul.f32 0.2, %v18931_v29  ;;  %v8313_v62 = vpop.f32.mrb[23].mxu1  ;;  %v18157_v28 = vcombine.low %v8764_v46, %v8768_v47  ;;  %v8780_v51 = vld [vmem:[#allocation8 + $0x2d80] sm:$0xff] }
 0x635   :  { %v8335_v61 = vsel %vm8319_vm4, %v18930_v55, %v8327_v59  ;;  %vm8322_vm6 = vcmp.gt.f32.partialorder %v18933_v32, 0.0  ;;  %v8330_v54 = vmul.f32 0.2, %v18933_v32  ;;  %v8772_v55 = vld [vmem:[#allocation8 + $0x2d40] sm:$0xff]  ;;  %v18159_v59 = vcombine.low %v8765_v49, %v8769_v16  ;;  %v8813_v16 = vld [vmem:[#allocation8 + $0x2e88] sm:$0xff] }
 0x636   :  { %v8336_v1 = vsel %vm8320_vm5, %v18931_v29, %v8328_v57  ;;  %v19811_v22 = vpack.c.bf16 %v8335_v61, %v8335_v61  ;;  %v8773_v29 = vld [vmem:[#allocation8 + $0x2d48] sm:$0xff]  ;;  %v8784_v57 = vld [vmem:[#allocation8 + $0x2da0] sm:$0xff]  ;;  %v18165_v62 = vcombine.low %v8772_v55, %v8776_v7 }
 0x637   :  { %v19809_v36 = vpack.c.bf16 %v8336_v1, %v8336_v1  ;;  %v8338_v44 = vsel %vm8322_vm6, %v18933_v32, %v8330_v54  ;;  %v18166_v32 = vcombine.high %v8772_v55, %v8776_v7  ;;  %v18168_v35 = vcombine.high %v8773_v29, %v8777_v24  ;;  %v8781_v61 = vld [vmem:[#allocation8 + $0x2d88] sm:$0xff]  ;;  %v8808_v42 = vld [vmem:[#allocation8 + $0x2e60] sm:$0xff] }
 0x638   :  { %v19815_v38 = vpack.c.bf16 %v8338_v44, %v8338_v44  ;;  %v8785_v54 = vld [vmem:[#allocation8 + $0x2da8] sm:$0xff]  ;;  %v18167_v63 = vcombine.low %v8773_v29, %v8777_v24  ;;  %v18174_v1 = vcombine.high %v8780_v51, %v8784_v57  ;;  %v8812_v47 = vld [vmem:[#allocation8 + $0x2e80] sm:$0xff] }
 0x639   :  { %11577 = vmatprep.mubr.bf16.mxu0 %v19809_v36  ;;  %11741 = vmatprep.mubr.bf16.mxu1 %v19809_v36  ;;  %v18176_v12 = vcombine.high %v8781_v61, %v8785_v54  ;;  %v8789_v44 = vld [vmem:[#allocation8 + $0x2dc8] sm:$0xff]  ;;  %v18175_v26 = vcombine.low %v8781_v61, %v8785_v54  ;;  %v8816_v49 = vld [vmem:[#allocation8 + $0x2ea0] sm:$0xff] }
 0x63a   :  { %11578 = vmatmul.mubr.bf16.vlgmr.msra.gmra.mrb[24].mxu0 %v19811_v22  ;;  %11742 = vmatmul.mubr.bf16.vlgmr.msra.gmra.mrb[24].mxu1 %v19811_v22  ;;  %v8820_v7 = vld [vmem:[#allocation8 + $0x2ec0] sm:$0xff]  ;;  %v8821_v24 = vld [vmem:[#allocation8 + $0x2ec8] sm:$0xff] }
 0x63b   :  { %11587 = vmatpush1.bf16.msra.mxu0 %v18125_v13  ;;  %11751 = vmatpush1.bf16.msra.mxu1 %v18127_v20  ;;  %v8793_v13 = vld [vmem:[#allocation8 + $0x2de8] sm:$0xff]  ;;  %v18173_v20 = vcombine.low %v8780_v51, %v8784_v57  ;;  %v8824_v29 = vld [vmem:[#allocation8 + $0x2ee0] sm:$0xff] }
 0x63c   :  { %11618 = vmatprep.mubr.bf16.mxu0 %v19815_v38  ;;  %11782 = vmatprep.mubr.bf16.mxu1 %v19815_v38  ;;  %v8828_v57 = vld [vmem:[#allocation8 + $0x2f00] sm:$0xff]  ;;  %v8829_v54 = vld [vmem:[#allocation8 + $0x2f08] sm:$0xff] }
 0x63d   :  { %11588 = vmatprep.subr.bf16.mxu0 %v18134_v30  ;;  %11752 = vmatprep.subr.bf16.mxu1 %v18136_v41  ;;  %v18182_v30 = vcombine.high %v8788_v25, %v8792_v3  ;;  %v18184_v41 = vcombine.high %v8789_v44, %v8793_v13  ;;  %v8832_v61 = vld [vmem:[#allocation8 + $0x2f20] sm:$0xff] }
 0x63f   :  { %11589 = vmatpush1.bf16.msra.mxu0 %v18133_v40  ;;  %11753 = vmatpush1.bf16.msra.mxu1 %v18135_v60  ;;  %v8801_v40 = vld [vmem:[#allocation8 + $0x2e28] sm:$0xff]  ;;  %v18181_v60 = vcombine.low %v8788_v25, %v8792_v3  ;;  %v8836_v3 = vld [vmem:[#allocation8 + $0x2f40] sm:$0xff] }
 0x640   :  { %11590 = vmatprep.subr.bf16.mxu0 %v18142_v4  ;;  %11754 = vmatprep.subr.bf16.mxu1 %v18144_v14  ;;  %v18183_v4 = vcombine.low %v8789_v44, %v8793_v13  ;;  %v18190_v14 = vcombine.high %v8796_v37, %v8800_v34  ;;  %v18192_v6 = vcombine.high %v8797_v10, %v8801_v40  ;;  %v8840_v44 = vld [vmem:[#allocation8 + $0x2f60] sm:$0xff]  ;;  %v8837_v13 = vld [vmem:[#allocation8 + $0x2f48] sm:$0xff] }
 0x643   :  { %11591 = vmatpush1.bf16.msra.mxu0 %v18141_v43  ;;  %11755 = vmatpush1.bf16.msra.mxu1 %v18143_v33  ;;  %v8809_v43 = vld [vmem:[#allocation8 + $0x2e68] sm:$0xff]  ;;  %v18189_v33 = vcombine.low %v8796_v37, %v8800_v34  ;;  %v8844_v34 = vld [vmem:[#allocation8 + $0x2f80] sm:$0xff] }
 0x644   :  { %11592 = vmatprep.subr.bf16.mxu0 %v18150_v0  ;;  %11756 = vmatprep.subr.bf16.mxu1 %v18152_v45  ;;  %v18191_v0 = vcombine.low %v8797_v10, %v8801_v40  ;;  %v18198_v45 = vcombine.high %v8804_v23, %v8808_v42  ;;  %v18200_v46 = vcombine.high %v8805_v48, %v8809_v43  ;;  %v8848_v40 = vld [vmem:[#allocation8 + $0x2fa0] sm:$0xff] }
 0x645   :  { %v5086_v10 = vrot.slane %v19799_v50, %v19654_v2  ;;  %v18237_v50 = vcombine.low %v8844_v34, %v8848_v40 }
 0x647   :  { %11593 = vmatpush1.bf16.msra.mxu0 %v18149_v53  ;;  %11757 = vmatpush1.bf16.msra.mxu1 %v18151_v52  ;;  %v8817_v53 = vld [vmem:[#allocation8 + $0x2ea8] sm:$0xff]  ;;  %v18197_v52 = vcombine.low %v8804_v23, %v8808_v42  ;;  %v18238_v23 = vcombine.high %v8844_v34, %v8848_v40 }
 0x648   :  { %11594 = vmatprep.subr.bf16.mxu0 %v18158_v39  ;;  %11758 = vmatprep.subr.bf16.mxu1 %v18160_v18  ;;  %v18199_v39 = vcombine.low %v8805_v48, %v8809_v43  ;;  %v18206_v18 = vcombine.high %v8812_v47, %v8816_v49  ;;  %v18208_v55 = vcombine.high %v8813_v16, %v8817_v53  ;;  %v8852_v48 = vld [vmem:[#allocation8 + $0x2fc0] sm:$0xff] }
 0x649   :  { %v18932_v43 = vadd.f32 %v19807_v56, %v5086_v10 }
 0x64b   :  { %11595 = vmatpush1.bf16.msra.mxu0 %v18157_v28  ;;  %11759 = vmatpush1.bf16.msra.mxu1 %v18159_v59  ;;  %v8825_v28 = vld [vmem:[#allocation8 + $0x2ee8] sm:$0xff]  ;;  %v18205_v59 = vcombine.low %v8812_v47, %v8816_v49  ;;  %vm8321_vm7 = vcmp.gt.f32.partialorder %v18932_v43, 0.0 }
 0x64c   :  { %11596 = vmatprep.subr.bf16.mxu0 %v18166_v32  ;;  %11760 = vmatprep.subr.bf16.mxu1 %v18168_v35  ;;  %v18207_v32 = vcombine.low %v8813_v16, %v8817_v53  ;;  %v18214_v35 = vcombine.high %v8820_v7, %v8824_v29  ;;  %v18216_v51 = vcombine.high %v8821_v24, %v8825_v28  ;;  %v8350_v16 = vld [vmem:[#allocation8 + $0x2010] sm:$0xff]  ;;  %v8329_v53 = vmul.f32 0.2, %v18932_v43 }
 0x64f   :  { %11597 = vmatpush1.bf16.msra.mxu0 %v18165_v62  ;;  %11761 = vmatpush1.bf16.msra.mxu1 %v18167_v63  ;;  %v8833_v62 = vld [vmem:[#allocation8 + $0x2f28] sm:$0xff]  ;;  %v18213_v63 = vcombine.low %v8820_v7, %v8824_v29 }
 0x650   :  { %11598 = vmatprep.subr.bf16.mxu0 %v18174_v1  ;;  %11762 = vmatprep.subr.bf16.mxu1 %v18176_v12  ;;  %v18215_v1 = vcombine.low %v8821_v24, %v8825_v28  ;;  %v18222_v12 = vcombine.high %v8828_v57, %v8832_v61  ;;  %v18224_v25 = vcombine.high %v8829_v54, %v8833_v62  ;;  %v8358_v28 = vld [vmem:[#allocation8 + $0x2050] sm:$0xff] }
 0x651   :  { %v8337_v24 = vsel %vm8321_vm7, %v18932_v43, %v8329_v53  ;;  %v8398_v53 = vld [vmem:[#allocation8 + $0x2190] sm:$0xff] }
 0x653   :  { %11599 = vmatpush1.bf16.msra.mxu0 %v18173_v20  ;;  %11763 = vmatpush1.bf16.msra.mxu1 %v18175_v26  ;;  %v8841_v20 = vld [vmem:[#allocation8 + $0x2f68] sm:$0xff]  ;;  %v18221_v26 = vcombine.low %v8828_v57, %v8832_v61  ;;  %v19824_v57 = vpack.c.bf16 %v8337_v24, %v8337_v24  ;;  %v8406_v24 = vld [vmem:[#allocation8 + $0x21d0] sm:$0xff] }
 0x654   :  { %11600 = vmatprep.subr.bf16.mxu0 %v18182_v30  ;;  %11764 = vmatprep.subr.bf16.mxu1 %v18184_v41  ;;  %v18223_v30 = vcombine.low %v8829_v54, %v8833_v62  ;;  %v18230_v41 = vcombine.high %v8836_v3, %v8840_v44  ;;  %v18232_v37 = vcombine.high %v8837_v13, %v8841_v20 }
 0x657   :  { %11601 = vmatpush1.bf16.msra.mxu0 %v18181_v60  ;;  %11765 = vmatpush1.bf16.msra.mxu1 %v18183_v4  ;;  %v8845_v60 = vld [vmem:[#allocation8 + $0x2f88] sm:$0xff] }
 0x658   :  { %11602 = vmatprep.subr.bf16.mxu0 %v18190_v14  ;;  %11766 = vmatprep.subr.bf16.mxu1 %v18192_v6  ;;  %v8849_v4 = vld [vmem:[#allocation8 + $0x2fa8] sm:$0xff]  ;;  %v18229_v14 = vcombine.low %v8836_v3, %v8840_v44  ;;  %v18231_v6 = vcombine.low %v8837_v13, %v8841_v20 }
 0x659   :  { %v18240_v42 = vcombine.high %v8845_v60, %v8849_v4 }
 0x65b   :  { %11603 = vmatpush1.bf16.msra.mxu0 %v18189_v33  ;;  %11767 = vmatpush1.bf16.msra.mxu1 %v18191_v0  ;;  %v8856_v33 = vld [vmem:[#allocation8 + $0x2fe0] sm:$0xff]  ;;  %v8853_v0 = vld [vmem:[#allocation8 + $0x2fc8] sm:$0xff] }
 0x65c   :  { %11604 = vmatprep.subr.bf16.mxu0 %v18198_v45  ;;  %11768 = vmatprep.subr.bf16.mxu1 %v18200_v46  ;;  %v8857_v45 = vld [vmem:[#allocation8 + $0x2fe8] sm:$0xff]  ;;  %v18239_v46 = vcombine.low %v8845_v60, %v8849_v4  ;;  %v18246_v47 = vcombine.high %v8852_v48, %v8856_v33  ;;  %v18245_v56 = vcombine.low %v8852_v48, %v8856_v33  ;;  %v8382_v4 = vld [vmem:[#allocation8 + $0x2110] sm:$0xff] }
 0x65d   :  { %v18248_v49 = vcombine.high %v8853_v0, %v8857_v45  ;;  %v8390_v33 = vld [vmem:[#allocation8 + $0x2150] sm:$0xff] }
 0x65f   :  { %11605 = vmatpush1.bf16.msra.mxu0 %v18197_v52  ;;  %11769 = vmatpush1.bf16.msra.mxu1 %v18199_v39  ;;  %v8354_v52 = vld [vmem:[#allocation8 + $0x2030] sm:$0xff]  ;;  %v8351_v39 = vld [vmem:[#allocation8 + $0x2018] sm:$0xff] }
 0x660   :  { %11606 = vmatprep.subr.bf16.mxu0 %v18206_v18  ;;  %11770 = vmatprep.subr.bf16.mxu1 %v18208_v55  ;;  %v8355_v18 = vld [vmem:[#allocation8 + $0x2038] sm:$0xff]  ;;  %v18247_v55 = vcombine.low %v8853_v0, %v8857_v45  ;;  %v17746_v7 = vcombine.high %v8350_v16, %v8354_v52  ;;  %v8394_v0 = vld [vmem:[#allocation8 + $0x2170] sm:$0xff] }
 0x661   :  { %v17748_v29 = vcombine.high %v8351_v39, %v8355_v18  ;;  %v17747_v61 = vcombine.low %v8351_v39, %v8355_v18  ;;  %v8391_v45 = vld [vmem:[#allocation8 + $0x2158] sm:$0xff] }
 0x662   :  { %v8399_v39 = vld [vmem:[#allocation8 + $0x2198] sm:$0xff] }
 0x663   :  { %11607 = vmatpush1.bf16.msra.mxu0 %v18205_v59  ;;  %11771 = vmatpush1.bf16.msra.mxu1 %v18207_v32  ;;  %v8362_v59 = vld [vmem:[#allocation8 + $0x2070] sm:$0xff]  ;;  %v8359_v32 = vld [vmem:[#allocation8 + $0x2058] sm:$0xff] }
 0x664   :  { %11608 = vmatprep.subr.bf16.mxu0 %v18214_v35  ;;  %11772 = vmatprep.subr.bf16.mxu1 %v18216_v51  ;;  %v8363_v35 = vld [vmem:[#allocation8 + $0x2078] sm:$0xff]  ;;  %v17745_v51 = vcombine.low %v8350_v16, %v8354_v52  ;;  %v17754_v54 = vcombine.high %v8358_v28, %v8362_v59  ;;  %v17753_v3 = vcombine.low %v8358_v28, %v8362_v59  ;;  %v8402_v52 = vld [vmem:[#allocation8 + $0x21b0] sm:$0xff] }
 0x665   :  { %v17756_v62 = vcombine.high %v8359_v32, %v8363_v35  ;;  %v17755_v44 = vcombine.low %v8359_v32, %v8363_v35  ;;  %v8403_v18 = vld [vmem:[#allocation8 + $0x21b8] sm:$0xff]  ;;  %v8410_v28 = vld [vmem:[#allocation8 + $0x21f0] sm:$0xff]  ;;  %v17793_v35 = vcombine.low %v8398_v53, %v8402_v52 }
 0x666   :  { %v8407_v59 = vld [vmem:[#allocation8 + $0x21d8] sm:$0xff] }
 0x667   :  { %11609 = vmatpush1.bf16.msra.mxu0 %v18213_v63  ;;  %11773 = vmatpush1.bf16.msra.mxu1 %v18215_v1  ;;  %v8366_v63 = vld [vmem:[#allocation8 + $0x2090] sm:$0xff]  ;;  %v8411_v32 = vld [vmem:[#allocation8 + $0x21f8] sm:$0xff] }
 0x668   :  { %11610 = vmatprep.subr.bf16.mxu0 %v18222_v12  ;;  %11774 = vmatprep.subr.bf16.mxu1 %v18224_v25  ;;  %v8370_v1 = vld [vmem:[#allocation8 + $0x20b0] sm:$0xff]  ;;  %v8367_v12 = vld [vmem:[#allocation8 + $0x2098] sm:$0xff] }
 0x669   :  { %v8371_v25 = vld [vmem:[#allocation8 + $0x20b8] sm:$0xff]  ;;  %v17762_v13 = vcombine.high %v8366_v63, %v8370_v1  ;;  %v17761_v34 = vcombine.low %v8366_v63, %v8370_v1  ;;  %v8418_v63 = vld [vmem:[#allocation8 + $0x2230] sm:$0xff] }
 0x66a   :  { %v17764_v20 = vcombine.high %v8367_v12, %v8371_v25  ;;  %v17763_v10 = vcombine.low %v8367_v12, %v8371_v25  ;;  %v8415_v1 = vld [vmem:[#allocation8 + $0x2218] sm:$0xff]  ;;  %v17801_v25 = vcombine.low %v8406_v24, %v8410_v28 }
 0x66b   :  { %11611 = vmatpush1.bf16.msra.mxu0 %v18221_v26  ;;  %11775 = vmatpush1.bf16.msra.mxu1 %v18223_v30  ;;  %v8374_v26 = vld [vmem:[#allocation8 + $0x20d0] sm:$0xff]  ;;  %v8419_v12 = vld [vmem:[#allocation8 + $0x2238] sm:$0xff] }
 0x66c   :  { %11612 = vmatprep.subr.bf16.mxu0 %v18230_v41  ;;  %11776 = vmatprep.subr.bf16.mxu1 %v18232_v37  ;;  %v8378_v30 = vld [vmem:[#allocation8 + $0x20f0] sm:$0xff]  ;;  %v8375_v41 = vld [vmem:[#allocation8 + $0x20d8] sm:$0xff] }
 0x66d   :  { %v8379_v37 = vld [vmem:[#allocation8 + $0x20f8] sm:$0xff]  ;;  %v17770_v40 = vcombine.high %v8374_v26, %v8378_v30 }
 0x66e   :  { %v17772_v60 = vcombine.high %v8375_v41, %v8379_v37 }
 0x66f   :  { %11613 = vmatpush1.bf16.msra.mxu0 %v18229_v14  ;;  %11777 = vmatpush1.bf16.msra.mxu1 %v18231_v6  ;;  %v8386_v14 = vld [vmem:[#allocation8 + $0x2130] sm:$0xff]  ;;  %v8387_v6 = vld [vmem:[#allocation8 + $0x2138] sm:$0xff] }
 0x670   :  { %11614 = vmatprep.subr.bf16.mxu0 %v18238_v23  ;;  %11778 = vmatprep.subr.bf16.mxu1 %v18240_v42  ;;  %v17769_v23 = vcombine.low %v8374_v26, %v8378_v30  ;;  %v17771_v42 = vcombine.low %v8375_v41, %v8379_v37  ;;  %v17778_v48 = vcombine.high %v8382_v4, %v8386_v14  ;;  %v8426_v26 = vld [vmem:[#allocation8 + $0x2270] sm:$0xff]  ;;  %v8423_v30 = vld [vmem:[#allocation8 + $0x2258] sm:$0xff] }
 0x671   :  { %v8427_v41 = vld [vmem:[#allocation8 + $0x2278] sm:$0xff] }
 0x673   :  { %11615 = vmatpush1.bf16.msra.mxu0 %v18237_v50  ;;  %11779 = vmatpush1.bf16.msra.mxu1 %v18239_v46  ;;  %v8395_v50 = vld [vmem:[#allocation8 + $0x2178] sm:$0xff]  ;;  %v17777_v46 = vcombine.low %v8382_v4, %v8386_v14  ;;  %v8434_v4 = vld [vmem:[#allocation8 + $0x22b0] sm:$0xff] }
 0x674   :  { %11616 = vmatprep.subr.bf16.mxu0 %v18246_v47  ;;  %11780 = vmatprep.subr.bf16.mxu1 %v18248_v49  ;;  %v17786_v49 = vcombine.high %v8390_v33, %v8394_v0  ;;  %v17788_v16 = vcombine.high %v8391_v45, %v8395_v50  ;;  %v8431_v14 = vld [vmem:[#allocation8 + $0x2298] sm:$0xff] }
 0x677   :  { %11617 = vmatpush1.bf16.msra.mxu0 %v18245_v56  ;;  %11781 = vmatpush1.bf16.msra.mxu1 %v18247_v55  ;;  %v17785_v56 = vcombine.low %v8390_v33, %v8394_v0  ;;  %v17787_v55 = vcombine.low %v8391_v45, %v8395_v50  ;;  %v8442_v33 = vld [vmem:[#allocation8 + $0x22f0] sm:$0xff]  ;;  %v8439_v0 = vld [vmem:[#allocation8 + $0x22d8] sm:$0xff] }
 0x678   :  { %11791 = vmatprep.subr.bf16.mxu0 %v17746_v7  ;;  %11955 = vmatprep.subr.bf16.mxu1 %v17748_v29  ;;  %v17794_v7 = vcombine.high %v8398_v53, %v8402_v52  ;;  %v17796_v29 = vcombine.high %v8399_v39, %v8403_v18  ;;  %v8443_v45 = vld [vmem:[#allocation8 + $0x22f8] sm:$0xff]  ;;  %v8450_v53 = vld [vmem:[#allocation8 + $0x2330] sm:$0xff] }
 0x679   :  { %v8447_v52 = vld [vmem:[#allocation8 + $0x2318] sm:$0xff] }
 0x67a   :  { %11619 = vmatmul.mubr.bf16.vlgmr.msra.gmra.mrb[24].mxu0 %v19824_v57  ;;  %11783 = vmatmul.mubr.bf16.vlgmr.msra.gmra.mrb[24].mxu1 %v19824_v57 }
 0x67b   :  { %11792 = vmatpush1.bf16.msra.mxu0 %v17745_v51  ;;  %11823 = vmatprep.mubr.bf16.mxu0 %v19772_v8  ;;  %v17795_v51 = vcombine.low %v8399_v39, %v8403_v18  ;;  %v8451_v39 = vld [vmem:[#allocation8 + $0x2338] sm:$0xff] }
 0x67c   :  { %11956 = vmatpush1.bf16.msra.mxu1 %v17747_v61  ;;  %11987 = vmatprep.mubr.bf16.mxu1 %v19772_v8  ;;  %v8383_v8 = vld [vmem:[#allocation8 + $0x2118] sm:$0xff]  ;;  %v17802_v61 = vcombine.high %v8406_v24, %v8410_v28  ;;  %v8458_v24 = vld [vmem:[#allocation8 + $0x2370] sm:$0xff] }
 0x67d   :  { %11793 = vmatprep.subr.bf16.mxu0 %v17754_v54  ;;  %11957 = vmatprep.subr.bf16.mxu1 %v17756_v62  ;;  %v17780_v43 = vcombine.high %v8383_v8, %v8387_v6  ;;  %v17779_v47 = vcombine.low %v8383_v8, %v8387_v6  ;;  %v17804_v54 = vcombine.high %v8407_v59, %v8411_v32  ;;  %v8414_v62 = vld [vmem:[#allocation8 + $0x2210] sm:$0xff]  ;;  %v8435_v8 = vld [vmem:[#allocation8 + $0x22b8] sm:$0xff] }
 0x67e   :  { %v17809_v37 = vcombine.low %v8414_v62, %v8418_v63  ;;  %v8455_v28 = vld [vmem:[#allocation8 + $0x2358] sm:$0xff] }
 0x67f   :  { %11794 = vmatpush1.bf16.msra.mxu0 %v17753_v3  ;;  %v17803_v3 = vcombine.low %v8407_v59, %v8411_v32  ;;  %v8459_v59 = vld [vmem:[#allocation8 + $0x2378] sm:$0xff] }
 0x680   :  { %11958 = vmatpush1.bf16.msra.mxu1 %v17755_v44  ;;  %11795 = vmatprep.subr.bf16.mxu0 %v17762_v13  ;;  %v17810_v44 = vcombine.high %v8414_v62, %v8418_v63  ;;  %v17812_v13 = vcombine.high %v8415_v1, %v8419_v12  ;;  %v8466_v62 = vld [vmem:[#allocation8 + $0x23b0] sm:$0xff]  ;;  %v8463_v63 = vld [vmem:[#allocation8 + $0x2398] sm:$0xff] }
 0x681   :  { %11959 = vmatprep.subr.bf16.mxu1 %v17764_v20  ;;  %v8422_v20 = vld [vmem:[#allocation8 + $0x2250] sm:$0xff] }
 0x682   :  { %v17817_v6 = vcombine.low %v8422_v20, %v8426_v26 }
 0x683   :  { %11796 = vmatpush1.bf16.msra.mxu0 %v17761_v34  ;;  %v17811_v34 = vcombine.low %v8415_v1, %v8419_v12  ;;  %v8467_v1 = vld [vmem:[#allocation8 + $0x23b8] sm:$0xff] }
 0x684   :  { %11960 = vmatpush1.bf16.msra.mxu1 %v17763_v10  ;;  %11797 = vmatprep.subr.bf16.mxu0 %v17770_v40  ;;  %v17818_v10 = vcombine.high %v8422_v20, %v8426_v26  ;;  %v17820_v40 = vcombine.high %v8423_v30, %v8427_v41  ;;  %v8474_v20 = vld [vmem:[#allocation8 + $0x23f0] sm:$0xff]  ;;  %v8471_v26 = vld [vmem:[#allocation8 + $0x23d8] sm:$0xff] }
 0x685   :  { %11961 = vmatprep.subr.bf16.mxu1 %v17772_v60  ;;  %v8430_v60 = vld [vmem:[#allocation8 + $0x2290] sm:$0xff] }
 0x686   :  { %v17825_v50 = vcombine.low %v8430_v60, %v8434_v4 }
 0x687   :  { %11798 = vmatpush1.bf16.msra.mxu0 %v17769_v23  ;;  %v17819_v23 = vcombine.low %v8423_v30, %v8427_v41  ;;  %v8475_v30 = vld [vmem:[#allocation8 + $0x23f8] sm:$0xff] }
 0x688   :  { %11962 = vmatpush1.bf16.msra.mxu1 %v17771_v42  ;;  %11799 = vmatprep.subr.bf16.mxu0 %v17778_v48  ;;  %v17826_v42 = vcombine.high %v8430_v60, %v8434_v4  ;;  %v17828_v48 = vcombine.high %v8431_v14, %v8435_v8  ;;  %v8482_v60 = vld [vmem:[#allocation8 + $0x2430] sm:$0xff]  ;;  %v8479_v4 = vld [vmem:[#allocation8 + $0x2418] sm:$0xff] }
 0x689   :  { %11963 = vmatprep.subr.bf16.mxu1 %v17780_v43  ;;  %v8438_v43 = vld [vmem:[#allocation8 + $0x22d0] sm:$0xff] }
 0x68a   :  { %v17833_v18 = vcombine.low %v8438_v43, %v8442_v33 }
 0x68b   :  { %11800 = vmatpush1.bf16.msra.mxu0 %v17777_v46  ;;  %v17827_v46 = vcombine.low %v8431_v14, %v8435_v8  ;;  %v8483_v14 = vld [vmem:[#allocation8 + $0x2438] sm:$0xff] }
 0x68c   :  { %11964 = vmatpush1.bf16.msra.mxu1 %v17779_v47  ;;  %11801 = vmatprep.subr.bf16.mxu0 %v17786_v49  ;;  %v17834_v47 = vcombine.high %v8438_v43, %v8442_v33  ;;  %v17836_v49 = vcombine.high %v8439_v0, %v8443_v45  ;;  %v8490_v43 = vld [vmem:[#allocation8 + $0x2470] sm:$0xff] }
 0x68d   :  { %11965 = vmatprep.subr.bf16.mxu1 %v17788_v16  ;;  %v8446_v16 = vld [vmem:[#allocation8 + $0x2310] sm:$0xff] }
 0x68e   :  { %v17841_v32 = vcombine.low %v8446_v16, %v8450_v53 }
 0x68f   :  { %11802 = vmatpush1.bf16.msra.mxu0 %v17785_v56  ;;  %v17835_v56 = vcombine.low %v8439_v0, %v8443_v45  ;;  %v8487_v0 = vld [vmem:[#allocation8 + $0x2458] sm:$0xff] }
 0x690   :  { %11966 = vmatpush1.bf16.msra.mxu1 %v17787_v55  ;;  %11803 = vmatprep.subr.bf16.mxu0 %v17794_v7  ;;  %v17842_v55 = vcombine.high %v8446_v16, %v8450_v53  ;;  %v17844_v7 = vcombine.high %v8447_v52, %v8451_v39  ;;  %v8491_v45 = vld [vmem:[#allocation8 + $0x2478] sm:$0xff] }
 0x691   :  { %11967 = vmatprep.subr.bf16.mxu1 %v17796_v29  ;;  %v8454_v29 = vld [vmem:[#allocation8 + $0x2350] sm:$0xff]  ;;  %v17884_v16 = vcombine.high %v8487_v0, %v8491_v45  ;;  %v8495_v53 = vld [vmem:[#allocation8 + $0x2498] sm:$0xff] }
 0x692   :  { %v17849_v12 = vcombine.low %v8454_v29, %v8458_v24 }
 0x693   :  { %11804 = vmatpush1.bf16.msra.mxu0 %v17793_v35  ;;  %v17843_v35 = vcombine.low %v8447_v52, %v8451_v39  ;;  %v8499_v52 = vld [vmem:[#allocation8 + $0x24b8] sm:$0xff] }
 0x694   :  { %11968 = vmatpush1.bf16.msra.mxu1 %v17795_v51  ;;  %11805 = vmatprep.subr.bf16.mxu0 %v17802_v61  ;;  %v17850_v51 = vcombine.high %v8454_v29, %v8458_v24  ;;  %v17852_v61 = vcombine.high %v8455_v28, %v8459_v59  ;;  %v8506_v29 = vld [vmem:[#allocation8 + $0x24f0] sm:$0xff]  ;;  %v8503_v24 = vld [vmem:[#allocation8 + $0x24d8] sm:$0xff] }
 0x695   :  { %11969 = vmatprep.subr.bf16.mxu1 %v17804_v54  ;;  %v8462_v54 = vld [vmem:[#allocation8 + $0x2390] sm:$0xff] }
 0x696   :  { %v17857_v41 = vcombine.low %v8462_v54, %v8466_v62 }
 0x697   :  { %11806 = vmatpush1.bf16.msra.mxu0 %v17801_v25  ;;  %v17851_v25 = vcombine.low %v8455_v28, %v8459_v59  ;;  %v8507_v28 = vld [vmem:[#allocation8 + $0x24f8] sm:$0xff] }
 0x698   :  { %11970 = vmatpush1.bf16.msra.mxu1 %v17803_v3  ;;  %11807 = vmatprep.subr.bf16.mxu0 %v17810_v44  ;;  %v17858_v3 = vcombine.high %v8462_v54, %v8466_v62  ;;  %v17860_v44 = vcombine.high %v8463_v63, %v8467_v1  ;;  %v8511_v54 = vld [vmem:[#allocation8 + $0x2518] sm:$0xff] }
 0x699   :  { %11971 = vmatprep.subr.bf16.mxu1 %v17812_v13  ;;  %v8470_v13 = vld [vmem:[#allocation8 + $0x23d0] sm:$0xff]  ;;  %v8515_v62 = vld [vmem:[#allocation8 + $0x2538] sm:$0xff] }
 0x69a   :  { %v17865_v8 = vcombine.low %v8470_v13, %v8474_v20 }
 0x69b   :  { %11808 = vmatpush1.bf16.msra.mxu0 %v17809_v37  ;;  %v17859_v37 = vcombine.low %v8463_v63, %v8467_v1  ;;  %v17899_v63 = vcombine.low %v8503_v24, %v8507_v28 }
 0x69c   :  { %11972 = vmatpush1.bf16.msra.mxu1 %v17811_v34  ;;  %11809 = vmatprep.subr.bf16.mxu0 %v17818_v10  ;;  %v17866_v34 = vcombine.high %v8470_v13, %v8474_v20  ;;  %v17868_v10 = vcombine.high %v8471_v26, %v8475_v30  ;;  %v8523_v13 = vld [vmem:[#allocation8 + $0x2578] sm:$0xff] }
 0x69d   :  { %11973 = vmatprep.subr.bf16.mxu1 %v17820_v40  ;;  %v8478_v40 = vld [vmem:[#allocation8 + $0x2410] sm:$0xff] }
 0x69e   :  { %v17873_v33 = vcombine.low %v8478_v40, %v8482_v60 }
 0x69f   :  { %11810 = vmatpush1.bf16.msra.mxu0 %v17817_v6  ;;  %v17867_v6 = vcombine.low %v8471_v26, %v8475_v30  ;;  %v17907_v26 = vcombine.low %v8511_v54, %v8515_v62 }
 0x6a0   :  { %11974 = vmatpush1.bf16.msra.mxu1 %v17819_v23  ;;  %11811 = vmatprep.subr.bf16.mxu0 %v17826_v42  ;;  %v17874_v23 = vcombine.high %v8478_v40, %v8482_v60  ;;  %v17876_v42 = vcombine.high %v8479_v4, %v8483_v14  ;;  %v8531_v40 = vld [vmem:[#allocation8 + $0x25b8] sm:$0xff] }
 0x6a1   :  { %11975 = vmatprep.subr.bf16.mxu1 %v17828_v48  ;;  %v8486_v48 = vld [vmem:[#allocation8 + $0x2450] sm:$0xff] }
 0x6a2   :  { %v17881_v39 = vcombine.low %v8486_v48, %v8490_v43 }
 0x6a3   :  { %11812 = vmatpush1.bf16.msra.mxu0 %v17825_v50  ;;  %v17875_v50 = vcombine.low %v8479_v4, %v8483_v14 }
 0x6a4   :  { %11976 = vmatpush1.bf16.msra.mxu1 %v17827_v46  ;;  %11813 = vmatprep.subr.bf16.mxu0 %v17834_v47  ;;  %v17882_v46 = vcombine.high %v8486_v48, %v8490_v43  ;;  %v8494_v47 = vld [vmem:[#allocation8 + $0x2490] sm:$0xff]  ;;  %v8539_v48 = vld [vmem:[#allocation8 + $0x25f8] sm:$0xff] }
 0x6a5   :  { %11977 = vmatprep.subr.bf16.mxu1 %v17836_v49  ;;  %v8498_v49 = vld [vmem:[#allocation8 + $0x24b0] sm:$0xff] }
 0x6a6   :  { %v17889_v59 = vcombine.low %v8494_v47, %v8498_v49 }
 0x6a7   :  { %11814 = vmatpush1.bf16.msra.mxu0 %v17833_v18  ;;  %v17883_v18 = vcombine.low %v8487_v0, %v8491_v45 }
 0x6a8   :  { %11978 = vmatpush1.bf16.msra.mxu1 %v17835_v56  ;;  %11815 = vmatprep.subr.bf16.mxu0 %v17842_v55  ;;  %v17890_v56 = vcombine.high %v8494_v47, %v8498_v49  ;;  %v17892_v55 = vcombine.high %v8495_v53, %v8499_v52  ;;  %v8543_v47 = vld [vmem:[#allocation8 + $0x2618] sm:$0xff] }
 0x6a9   :  { %11979 = vmatprep.subr.bf16.mxu1 %v17844_v7  ;;  %v8502_v7 = vld [vmem:[#allocation8 + $0x24d0] sm:$0xff]  ;;  %v8547_v49 = vld [vmem:[#allocation8 + $0x2638] sm:$0xff] }
 0x6ab   :  { %11816 = vmatpush1.bf16.msra.mxu0 %v17841_v32  ;;  %v17898_v32 = vcombine.high %v8502_v7, %v8506_v29 }
 0x6ac   :  { %11980 = vmatpush1.bf16.msra.mxu1 %v17843_v35  ;;  %11817 = vmatprep.subr.bf16.mxu0 %v17850_v51  ;;  %v17900_v35 = vcombine.high %v8503_v24, %v8507_v28  ;;  %v8510_v51 = vld [vmem:[#allocation8 + $0x2510] sm:$0xff]  ;;  %v17939_v24 = vcombine.low %v8543_v47, %v8547_v49 }
 0x6ad   :  { %11981 = vmatprep.subr.bf16.mxu1 %v17852_v61  ;;  %v8514_v61 = vld [vmem:[#allocation8 + $0x2530] sm:$0xff] }
 0x6ae   :  { %v17906_v1 = vcombine.high %v8510_v51, %v8514_v61  ;;  %v17905_v20 = vcombine.low %v8510_v51, %v8514_v61  ;;  %v8563_v51 = vld [vmem:[#allocation8 + $0x26b8] sm:$0xff] }
 0x6af   :  { %11818 = vmatpush1.bf16.msra.mxu0 %v17849_v12  ;;  %v17908_v12 = vcombine.high %v8511_v54, %v8515_v62 }
 0x6b0   :  { %11982 = vmatpush1.bf16.msra.mxu1 %v17851_v25  ;;  %11819 = vmatprep.subr.bf16.mxu0 %v17858_v3  ;;  %v8518_v25 = vld [vmem:[#allocation8 + $0x2550] sm:$0xff] }
 0x6b1   :  { %11983 = vmatprep.subr.bf16.mxu1 %v17860_v44  ;;  %v8522_v3 = vld [vmem:[#allocation8 + $0x2570] sm:$0xff]  ;;  %v8519_v44 = vld [vmem:[#allocation8 + $0x2558] sm:$0xff] }
 0x6b2   :  { %v17914_v30 = vcombine.high %v8518_v25, %v8522_v3  ;;  %v17913_v60 = vcombine.low %v8518_v25, %v8522_v3  ;;  %v17915_v4 = vcombine.low %v8519_v44, %v8523_v13  ;;  %v8571_v25 = vld [vmem:[#allocation8 + $0x26f8] sm:$0xff] }
 0x6b3   :  { %11820 = vmatpush1.bf16.msra.mxu0 %v17857_v41  ;;  %v17916_v41 = vcombine.high %v8519_v44, %v8523_v13 }
 0x6b4   :  { %11984 = vmatpush1.bf16.msra.mxu1 %v17859_v37  ;;  %11821 = vmatprep.subr.bf16.mxu0 %v17866_v34  ;;  %v8526_v37 = vld [vmem:[#allocation8 + $0x2590] sm:$0xff] }
 0x6b5   :  { %11985 = vmatprep.subr.bf16.mxu1 %v17868_v10  ;;  %v8530_v34 = vld [vmem:[#allocation8 + $0x25b0] sm:$0xff]  ;;  %v8527_v10 = vld [vmem:[#allocation8 + $0x2598] sm:$0xff] }
 0x6b6   :  { %v17922_v14 = vcombine.high %v8526_v37, %v8530_v34  ;;  %v17921_v43 = vcombine.low %v8526_v37, %v8530_v34  ;;  %v8579_v37 = vld [vmem:[#allocation8 + $0x2738] sm:$0xff] }
 0x6b7   :  { %11822 = vmatpush1.bf16.msra.mxu0 %v17865_v8  ;;  %v17924_v8 = vcombine.high %v8527_v10, %v8531_v40 }
 0x6b8   :  { %11986 = vmatpush1.bf16.msra.mxu1 %v17867_v6  ;;  %11832 = vmatprep.subr.bf16.mxu0 %v17874_v23  ;;  %v8534_v6 = vld [vmem:[#allocation8 + $0x25d0] sm:$0xff] }
 0x6b9   :  { %11996 = vmatprep.subr.bf16.mxu1 %v17876_v42  ;;  %v8538_v23 = vld [vmem:[#allocation8 + $0x25f0] sm:$0xff]  ;;  %v8535_v42 = vld [vmem:[#allocation8 + $0x25d8] sm:$0xff] }
 0x6ba   :  { %11824 = vmatmul.mubr.bf16.vlgmr.msra.gmra.mrb[28].mxu0 %v19784_v9  ;;  %v17930_v0 = vcombine.high %v8534_v6, %v8538_v23  ;;  %v17932_v45 = vcombine.high %v8535_v42, %v8539_v48 }
 0x6bb   :  { %11988 = vmatmul.mubr.bf16.vlgmr.msra.gmra.mrb[28].mxu1 %v19784_v9  ;;  %11833 = vmatpush1.bf16.msra.mxu0 %v17873_v33  ;;  %v17891_v9 = vcombine.low %v8495_v53, %v8499_v52  ;;  %v17923_v33 = vcombine.low %v8527_v10, %v8531_v40  ;;  %v17931_v53 = vcombine.low %v8535_v42, %v8539_v48 }
 0x6bc   :  { %11864 = vmatprep.mubr.bf16.mxu0 %v19786_v58  ;;  %11997 = vmatpush1.bf16.msra.mxu1 %v17875_v50  ;;  %v8542_v50 = vld [vmem:[#allocation8 + $0x2610] sm:$0xff] }
 0x6bd   :  { %12028 = vmatprep.mubr.bf16.mxu1 %v19786_v58  ;;  %11834 = vmatprep.subr.bf16.mxu0 %v17882_v46  ;;  %v17897_v58 = vcombine.low %v8502_v7, %v8506_v29  ;;  %v8546_v46 = vld [vmem:[#allocation8 + $0x2630] sm:$0xff]  ;;  %v8555_v7 = vld [vmem:[#allocation8 + $0x2678] sm:$0xff] }
 0x6be   :  { %11998 = vmatprep.subr.bf16.mxu1 %v17884_v16  ;;  %v17929_v16 = vcombine.low %v8534_v6, %v8538_v23  ;;  %v17938_v52 = vcombine.high %v8542_v50, %v8546_v46  ;;  %v17937_v29 = vcombine.low %v8542_v50, %v8546_v46  ;;  %v8587_v6 = vld [vmem:[#allocation8 + $0x2778] sm:$0xff] }
 0x6bf   :  { %11835 = vmatpush1.bf16.msra.mxu0 %v17881_v39  ;;  %v17940_v39 = vcombine.high %v8543_v47, %v8547_v49  ;;  %v8595_v50 = vld [vmem:[#allocation8 + $0x27b8] sm:$0xff] }
 0x6c0   :  { %11999 = vmatpush1.bf16.msra.mxu1 %v17883_v18  ;;  %11836 = vmatprep.subr.bf16.mxu0 %v17890_v56  ;;  %v8550_v18 = vld [vmem:[#allocation8 + $0x2650] sm:$0xff] }
 0x6c1   :  { %12000 = vmatprep.subr.bf16.mxu1 %v17892_v55  ;;  %v8554_v56 = vld [vmem:[#allocation8 + $0x2670] sm:$0xff]  ;;  %v8551_v55 = vld [vmem:[#allocation8 + $0x2658] sm:$0xff] }
 0x6c2   :  { %v17946_v28 = vcombine.high %v8550_v18, %v8554_v56  ;;  %v17945_v61 = vcombine.low %v8550_v18, %v8554_v56  ;;  %v17947_v54 = vcombine.low %v8551_v55, %v8555_v7  ;;  %v8603_v18 = vld [vmem:[#allocation8 + $0x27f8] sm:$0xff] }
 0x6c3   :  { %11837 = vmatpush1.bf16.msra.mxu0 %v17889_v59  ;;  %v17948_v59 = vcombine.high %v8551_v55, %v8555_v7 }
 0x6c4   :  { %12001 = vmatpush1.bf16.msra.mxu1 %v17891_v9  ;;  %11838 = vmatprep.subr.bf16.mxu0 %v17898_v32  ;;  %v8558_v9 = vld [vmem:[#allocation8 + $0x2690] sm:$0xff] }
 0x6c5   :  { %12002 = vmatprep.subr.bf16.mxu1 %v17900_v35  ;;  %v8562_v32 = vld [vmem:[#allocation8 + $0x26b0] sm:$0xff]  ;;  %v8559_v35 = vld [vmem:[#allocation8 + $0x2698] sm:$0xff] }
 0x6c6   :  { %v17954_v62 = vcombine.high %v8558_v9, %v8562_v32  ;;  %v17953_v3 = vcombine.low %v8558_v9, %v8562_v32  ;;  %v17955_v44 = vcombine.low %v8559_v35, %v8563_v51  ;;  %v8611_v9 = vld [vmem:[#allocation8 + $0x2838] sm:$0xff] }
 0x6c7   :  { %11839 = vmatpush1.bf16.msra.mxu0 %v17897_v58  ;;  %v17956_v58 = vcombine.high %v8559_v35, %v8563_v51 }
 0x6c8   :  { %12003 = vmatpush1.bf16.msra.mxu1 %v17899_v63  ;;  %11840 = vmatprep.subr.bf16.mxu0 %v17906_v1  ;;  %v8566_v63 = vld [vmem:[#allocation8 + $0x26d0] sm:$0xff] }
 0x6c9   :  { %12004 = vmatprep.subr.bf16.mxu1 %v17908_v12  ;;  %v8570_v1 = vld [vmem:[#allocation8 + $0x26f0] sm:$0xff]  ;;  %v8567_v12 = vld [vmem:[#allocation8 + $0x26d8] sm:$0xff] }
 0x6ca   :  { %v17962_v13 = vcombine.high %v8566_v63, %v8570_v1  ;;  %v17961_v34 = vcombine.low %v8566_v63, %v8570_v1  ;;  %v17963_v10 = vcombine.low %v8567_v12, %v8571_v25  ;;  %v8615_v63 = vld [vmem:[#allocation8 + $0x2858] sm:$0xff] }
 0x6cb   :  { %11841 = vmatpush1.bf16.msra.mxu0 %v17905_v20  ;;  %v17964_v20 = vcombine.high %v8567_v12, %v8571_v25  ;;  %v8619_v1 = vld [vmem:[#allocation8 + $0x2878] sm:$0xff] }
 0x6cc   :  { %12005 = vmatpush1.bf16.msra.mxu1 %v17907_v26  ;;  %11842 = vmatprep.subr.bf16.mxu0 %v17914_v30  ;;  %v8574_v26 = vld [vmem:[#allocation8 + $0x2710] sm:$0xff] }
 0x6cd   :  { %12006 = vmatprep.subr.bf16.mxu1 %v17916_v41  ;;  %v8578_v30 = vld [vmem:[#allocation8 + $0x2730] sm:$0xff]  ;;  %v8575_v41 = vld [vmem:[#allocation8 + $0x2718] sm:$0xff] }
 0x6ce   :  { %v17970_v40 = vcombine.high %v8574_v26, %v8578_v30  ;;  %v17969_v23 = vcombine.low %v8574_v26, %v8578_v30  ;;  %v17971_v42 = vcombine.low %v8575_v41, %v8579_v37  ;;  %v8627_v26 = vld [vmem:[#allocation8 + $0x28b8] sm:$0xff] }
 0x6cf   :  { %11843 = vmatpush1.bf16.msra.mxu0 %v17913_v60  ;;  %v17972_v60 = vcombine.high %v8575_v41, %v8579_v37  ;;  %v18011_v41 = vcombine.low %v8615_v63, %v8619_v1 }
 0x6d0   :  { %12007 = vmatpush1.bf16.msra.mxu1 %v17915_v4  ;;  %11844 = vmatprep.subr.bf16.mxu0 %v17922_v14  ;;  %v8582_v4 = vld [vmem:[#allocation8 + $0x2750] sm:$0xff] }
 0x6d1   :  { %12008 = vmatprep.subr.bf16.mxu1 %v17924_v8  ;;  %v8586_v14 = vld [vmem:[#allocation8 + $0x2770] sm:$0xff]  ;;  %v8583_v8 = vld [vmem:[#allocation8 + $0x2758] sm:$0xff] }
 0x6d2   :  { %v17978_v48 = vcombine.high %v8582_v4, %v8586_v14  ;;  %v17977_v46 = vcombine.low %v8582_v4, %v8586_v14  ;;  %v17979_v47 = vcombine.low %v8583_v8, %v8587_v6  ;;  %v8635_v4 = vld [vmem:[#allocation8 + $0x28f8] sm:$0xff] }
 0x6d3   :  { %11845 = vmatpush1.bf16.msra.mxu0 %v17921_v43  ;;  %v17980_v43 = vcombine.high %v8583_v8, %v8587_v6 }
 0x6d4   :  { %12009 = vmatpush1.bf16.msra.mxu1 %v17923_v33  ;;  %11846 = vmatprep.subr.bf16.mxu0 %v17930_v0  ;;  %v8590_v33 = vld [vmem:[#allocation8 + $0x2790] sm:$0xff] }
 0x6d5   :  { %12010 = vmatprep.subr.bf16.mxu1 %v17932_v45  ;;  %v8594_v0 = vld [vmem:[#allocation8 + $0x27b0] sm:$0xff]  ;;  %v8591_v45 = vld [vmem:[#allocation8 + $0x2798] sm:$0xff] }
 0x6d6   :  { %v17986_v49 = vcombine.high %v8590_v33, %v8594_v0  ;;  %v17985_v56 = vcombine.low %v8590_v33, %v8594_v0  ;;  %v17987_v55 = vcombine.low %v8591_v45, %v8595_v50 }
 0x6d7   :  { %11847 = vmatpush1.bf16.msra.mxu0 %v17929_v16  ;;  %v17988_v16 = vcombine.high %v8591_v45, %v8595_v50  ;;  %v8646_v50 = vld [vmem:[#allocation8 + $0x2950] sm:$0xff] }
 0x6d8   :  { %12011 = vmatpush1.bf16.msra.mxu1 %v17931_v53  ;;  %11848 = vmatprep.subr.bf16.mxu0 %v17938_v52  ;;  %v8598_v53 = vld [vmem:[#allocation8 + $0x27d0] sm:$0xff] }
 0x6d9   :  { %12012 = vmatprep.subr.bf16.mxu1 %v17940_v39  ;;  %v8602_v52 = vld [vmem:[#allocation8 + $0x27f0] sm:$0xff]  ;;  %v8599_v39 = vld [vmem:[#allocation8 + $0x27d8] sm:$0xff] }
 0x6da   :  { %v17994_v7 = vcombine.high %v8598_v53, %v8602_v52  ;;  %v17993_v32 = vcombine.low %v8598_v53, %v8602_v52  ;;  %v17995_v35 = vcombine.low %v8599_v39, %v8603_v18 }
 0x6db   :  { %11849 = vmatpush1.bf16.msra.mxu0 %v17937_v29  ;;  %v17996_v29 = vcombine.high %v8599_v39, %v8603_v18  ;;  %v8654_v18 = vld [vmem:[#allocation8 + $0x2990] sm:$0xff] }
 0x6dc   :  { %12013 = vmatpush1.bf16.msra.mxu1 %v17939_v24  ;;  %11850 = vmatprep.subr.bf16.mxu0 %v17946_v28  ;;  %v8606_v24 = vld [vmem:[#allocation8 + $0x2810] sm:$0xff] }
 0x6dd   :  { %12014 = vmatprep.subr.bf16.mxu1 %v17948_v59  ;;  %v8610_v28 = vld [vmem:[#allocation8 + $0x2830] sm:$0xff]  ;;  %v8607_v59 = vld [vmem:[#allocation8 + $0x2818] sm:$0xff] }
 0x6de   :  { %v18002_v51 = vcombine.high %v8606_v24, %v8610_v28  ;;  %v18003_v12 = vcombine.low %v8607_v59, %v8611_v9 }
 0x6df   :  { %11851 = vmatpush1.bf16.msra.mxu0 %v17945_v61  ;;  %v18004_v61 = vcombine.high %v8607_v59, %v8611_v9  ;;  %v8662_v9 = vld [vmem:[#allocation8 + $0x29d0] sm:$0xff] }
 0x6e0   :  { %12015 = vmatpush1.bf16.msra.mxu1 %v17947_v54  ;;  %11852 = vmatprep.subr.bf16.mxu0 %v17954_v62  ;;  %v8614_v54 = vld [vmem:[#allocation8 + $0x2850] sm:$0xff] }
 0x6e1   :  { %12016 = vmatprep.subr.bf16.mxu1 %v17956_v58  ;;  %v8618_v62 = vld [vmem:[#allocation8 + $0x2870] sm:$0xff]  ;;  %v18001_v58 = vcombine.low %v8606_v24, %v8610_v28 }
 0x6e2   :  { %v18010_v25 = vcombine.high %v8614_v54, %v8618_v62  ;;  %v18009_v30 = vcombine.low %v8614_v54, %v8618_v62 }
 0x6e3   :  { %11853 = vmatpush1.bf16.msra.mxu0 %v17953_v3  ;;  %v8622_v3 = vld [vmem:[#allocation8 + $0x2890] sm:$0xff] }
 0x6e4   :  { %12017 = vmatpush1.bf16.msra.mxu1 %v17955_v44  ;;  %11854 = vmatprep.subr.bf16.mxu0 %v17962_v13  ;;  %v8626_v44 = vld [vmem:[#allocation8 + $0x28b0] sm:$0xff]  ;;  %v18012_v13 = vcombine.high %v8615_v63, %v8619_v1 }
 0x6e5   :  { %12018 = vmatprep.subr.bf16.mxu1 %v17964_v20  ;;  %v8623_v20 = vld [vmem:[#allocation8 + $0x2898] sm:$0xff]  ;;  %v18018_v37 = vcombine.high %v8622_v3, %v8626_v44  ;;  %v18017_v14 = vcombine.low %v8622_v3, %v8626_v44  ;;  %v8670_v63 = vld [vmem:[#allocation8 + $0x2a10] sm:$0xff] }
 0x6e6   :  { %v8674_v1 = vld [vmem:[#allocation8 + $0x2a30] sm:$0xff] }
 0x6e7   :  { %11855 = vmatpush1.bf16.msra.mxu0 %v17961_v34  ;;  %v18020_v34 = vcombine.high %v8623_v20, %v8627_v26 }
 0x6e8   :  { %12019 = vmatpush1.bf16.msra.mxu1 %v17963_v10  ;;  %11856 = vmatprep.subr.bf16.mxu0 %v17970_v40  ;;  %v8630_v10 = vld [vmem:[#allocation8 + $0x28d0] sm:$0xff] }
 0x6e9   :  { %12020 = vmatprep.subr.bf16.mxu1 %v17972_v60  ;;  %v8634_v40 = vld [vmem:[#allocation8 + $0x28f0] sm:$0xff]  ;;  %v8631_v60 = vld [vmem:[#allocation8 + $0x28d8] sm:$0xff] }
 0x6ea   :  { %v18026_v8 = vcombine.high %v8630_v10, %v8634_v40  ;;  %v18028_v6 = vcombine.high %v8631_v60, %v8635_v4  ;;  %v18027_v33 = vcombine.low %v8631_v60, %v8635_v4  ;;  %v8686_v4 = vld [vmem:[#allocation8 + $0x2a90] sm:$0xff] }
 0x6eb   :  { %11857 = vmatpush1.bf16.msra.mxu0 %v17969_v23  ;;  %v8638_v23 = vld [vmem:[#allocation8 + $0x2910] sm:$0xff] }
 0x6ec   :  { %12021 = vmatpush1.bf16.msra.mxu1 %v17971_v42  ;;  %11858 = vmatprep.subr.bf16.mxu0 %v17978_v48  ;;  %v8642_v42 = vld [vmem:[#allocation8 + $0x2930] sm:$0xff]  ;;  %v8639_v48 = vld [vmem:[#allocation8 + $0x2918] sm:$0xff] }
 0x6ed   :  { %12022 = vmatprep.subr.bf16.mxu1 %v17980_v43  ;;  %v8643_v43 = vld [vmem:[#allocation8 + $0x2938] sm:$0xff]  ;;  %v18034_v0 = vcombine.high %v8638_v23, %v8642_v42 }
 0x6ee   :  { %v18036_v45 = vcombine.high %v8639_v48, %v8643_v43  ;;  %v18035_v53 = vcombine.low %v8639_v48, %v8643_v43  ;;  %v8694_v43 = vld [vmem:[#allocation8 + $0x2ad0] sm:$0xff] }
 0x6ef   :  { %11859 = vmatpush1.bf16.msra.mxu0 %v17977_v46  ;;  %v8650_v46 = vld [vmem:[#allocation8 + $0x2970] sm:$0xff] }
 0x6f0   :  { %12023 = vmatpush1.bf16.msra.mxu1 %v17979_v47  ;;  %11860 = vmatprep.subr.bf16.mxu0 %v17986_v49  ;;  %v8647_v47 = vld [vmem:[#allocation8 + $0x2958] sm:$0xff]  ;;  %v18042_v52 = vcombine.high %v8646_v50, %v8650_v46 }
 0x6f1   :  { %12024 = vmatprep.subr.bf16.mxu1 %v17988_v16  ;;  %v8651_v49 = vld [vmem:[#allocation8 + $0x2978] sm:$0xff]  ;;  %v18033_v16 = vcombine.low %v8638_v23, %v8642_v42 }
 0x6f2   :  { %v18044_v39 = vcombine.high %v8647_v47, %v8651_v49  ;;  %v18043_v24 = vcombine.low %v8647_v47, %v8651_v49  ;;  %v8702_v49 = vld [vmem:[#allocation8 + $0x2b10] sm:$0xff] }
 0x6f3   :  { %11861 = vmatpush1.bf16.msra.mxu0 %v17985_v56  ;;  %v8658_v56 = vld [vmem:[#allocation8 + $0x29b0] sm:$0xff] }
 0x6f4   :  { %12025 = vmatpush1.bf16.msra.mxu1 %v17987_v55  ;;  %11862 = vmatprep.subr.bf16.mxu0 %v17994_v7  ;;  %v8655_v55 = vld [vmem:[#allocation8 + $0x2998] sm:$0xff]  ;;  %v18050_v28 = vcombine.high %v8654_v18, %v8658_v56 }
 0x6f5   :  { %12026 = vmatprep.subr.bf16.mxu1 %v17996_v29  ;;  %v8659_v7 = vld [vmem:[#allocation8 + $0x29b8] sm:$0xff]  ;;  %v18041_v29 = vcombine.low %v8646_v50, %v8650_v46 }
 0x6f6   :  { %v18052_v59 = vcombine.high %v8655_v55, %v8659_v7  ;;  %v18051_v54 = vcombine.low %v8655_v55, %v8659_v7  ;;  %v8710_v7 = vld [vmem:[#allocation8 + $0x2b50] sm:$0xff] }
 0x6f7   :  { %11863 = vmatpush1.bf16.msra.mxu0 %v17993_v32  ;;  %v8666_v32 = vld [vmem:[#allocation8 + $0x29f0] sm:$0xff] }
 0x6f8   :  { %12027 = vmatpush1.bf16.msra.mxu1 %v17995_v35  ;;  %11873 = vmatprep.subr.bf16.mxu0 %v18002_v51  ;;  %v8663_v35 = vld [vmem:[#allocation8 + $0x29d8] sm:$0xff]  ;;  %v18058_v62 = vcombine.high %v8662_v9, %v8666_v32  ;;  %v18057_v3 = vcombine.low %v8662_v9, %v8666_v32 }
 0x6f9   :  { %12037 = vmatprep.subr.bf16.mxu1 %v18004_v61  ;;  %v8667_v51 = vld [vmem:[#allocation8 + $0x29f8] sm:$0xff]  ;;  %v18049_v61 = vcombine.low %v8654_v18, %v8658_v56 }
 0x6fa   :  { %11865 = vmatmul.mubr.bf16.vlgmr.msra.gmra.mrb[28].mxu0 %v19795_v5  ;;  %v18059_v44 = vcombine.low %v8663_v35, %v8667_v51 }
 0x6fb   :  { %12029 = vmatmul.mubr.bf16.vlgmr.msra.gmra.mrb[28].mxu1 %v19795_v5  ;;  %11874 = vmatpush1.bf16.msra.mxu0 %v18001_v58  ;;  %v18019_v5 = vcombine.low %v8623_v20, %v8627_v26  ;;  %v18060_v58 = vcombine.high %v8663_v35, %v8667_v51  ;;  %v8678_v26 = vld [vmem:[#allocation8 + $0x2a50] sm:$0xff] }
 0x6fc   :  { %11905 = vmatprep.mubr.bf16.mxu0 %v19809_v36  ;;  %12038 = vmatpush1.bf16.msra.mxu1 %v18003_v12  ;;  %v8671_v12 = vld [vmem:[#allocation8 + $0x2a18] sm:$0xff]  ;;  %v8718_v51 = vld [vmem:[#allocation8 + $0x2b90] sm:$0xff] }
 0x6fd   :  { %12069 = vmatprep.mubr.bf16.mxu1 %v19809_v36  ;;  %11875 = vmatprep.subr.bf16.mxu0 %v18010_v25  ;;  %v18025_v36 = vcombine.low %v8630_v10, %v8634_v40  ;;  %v8675_v25 = vld [vmem:[#allocation8 + $0x2a38] sm:$0xff] }
 0x6fe   :  { %12039 = vmatprep.subr.bf16.mxu1 %v18012_v13  ;;  %v18066_v13 = vcombine.high %v8670_v63, %v8674_v1  ;;  %v18068_v20 = vcombine.high %v8671_v12, %v8675_v25  ;;  %v18067_v10 = vcombine.low %v8671_v12, %v8675_v25  ;;  %v8726_v25 = vld [vmem:[#allocation8 + $0x2bd0] sm:$0xff] }
 0x6ff   :  { %11876 = vmatpush1.bf16.msra.mxu0 %v18009_v30  ;;  %v8682_v30 = vld [vmem:[#allocation8 + $0x2a70] sm:$0xff] }
 0x700   :  { %12040 = vmatpush1.bf16.msra.mxu1 %v18011_v41  ;;  %11877 = vmatprep.subr.bf16.mxu0 %v18018_v37  ;;  %v8679_v41 = vld [vmem:[#allocation8 + $0x2a58] sm:$0xff]  ;;  %v18074_v40 = vcombine.high %v8678_v26, %v8682_v30 }
 0x701   :  { %12041 = vmatprep.subr.bf16.mxu1 %v18020_v34  ;;  %v8683_v37 = vld [vmem:[#allocation8 + $0x2a78] sm:$0xff]  ;;  %v18065_v34 = vcombine.low %v8670_v63, %v8674_v1 }
 0x702   :  { %v18076_v60 = vcombine.high %v8679_v41, %v8683_v37  ;;  %v18075_v23 = vcombine.low %v8679_v41, %v8683_v37  ;;  %v8734_v37 = vld [vmem:[#allocation8 + $0x2c10] sm:$0xff] }
 0x703   :  { %11878 = vmatpush1.bf16.msra.mxu0 %v18017_v14  ;;  %v8690_v14 = vld [vmem:[#allocation8 + $0x2ab0] sm:$0xff] }
 0x704   :  { %12042 = vmatpush1.bf16.msra.mxu1 %v18019_v5  ;;  %11879 = vmatprep.subr.bf16.mxu0 %v18026_v8  ;;  %v8687_v5 = vld [vmem:[#allocation8 + $0x2a98] sm:$0xff]  ;;  %v18082_v42 = vcombine.high %v8686_v4, %v8690_v14 }
 0x705   :  { %12043 = vmatprep.subr.bf16.mxu1 %v18028_v6  ;;  %v8691_v8 = vld [vmem:[#allocation8 + $0x2ab8] sm:$0xff]  ;;  %v18073_v6 = vcombine.low %v8678_v26, %v8682_v30 }
 0x706   :  { %v18084_v48 = vcombine.high %v8687_v5, %v8691_v8  ;;  %v18083_v50 = vcombine.low %v8687_v5, %v8691_v8  ;;  %v8742_v8 = vld [vmem:[#allocation8 + $0x2c50] sm:$0xff] }
 0x707   :  { %11880 = vmatpush1.bf16.msra.mxu0 %v18025_v36  ;;  %v8698_v36 = vld [vmem:[#allocation8 + $0x2af0] sm:$0xff] }
 0x708   :  { %12044 = vmatpush1.bf16.msra.mxu1 %v18027_v33  ;;  %11881 = vmatprep.subr.bf16.mxu0 %v18034_v0  ;;  %v8695_v33 = vld [vmem:[#allocation8 + $0x2ad8] sm:$0xff]  ;;  %v18090_v46 = vcombine.high %v8694_v43, %v8698_v36 }
 0x709   :  { %12045 = vmatprep.subr.bf16.mxu1 %v18036_v45  ;;  %v8699_v0 = vld [vmem:[#allocation8 + $0x2af8] sm:$0xff]  ;;  %v18081_v45 = vcombine.low %v8686_v4, %v8690_v14 }
 0x70a   :  { %v18092_v47 = vcombine.high %v8695_v33, %v8699_v0  ;;  %v18091_v18 = vcombine.low %v8695_v33, %v8699_v0  ;;  %v8750_v33 = vld [vmem:[#allocation8 + $0x2c90] sm:$0xff] }
 0x70b   :  { %11882 = vmatpush1.bf16.msra.mxu0 %v18033_v16  ;;  %v8706_v16 = vld [vmem:[#allocation8 + $0x2b30] sm:$0xff] }
 0x70c   :  { %12046 = vmatpush1.bf16.msra.mxu1 %v18035_v53  ;;  %11883 = vmatprep.subr.bf16.mxu0 %v18042_v52  ;;  %v8703_v53 = vld [vmem:[#allocation8 + $0x2b18] sm:$0xff]  ;;  %v18098_v56 = vcombine.high %v8702_v49, %v8706_v16  ;;  %v8754_v0 = vld [vmem:[#allocation8 + $0x2cb0] sm:$0xff] }
 0x70d   :  { %12047 = vmatprep.subr.bf16.mxu1 %v18044_v39  ;;  %v8707_v52 = vld [vmem:[#allocation8 + $0x2b38] sm:$0xff]  ;;  %v18089_v39 = vcombine.low %v8694_v43, %v8698_v36 }
 0x70e   :  { %v18100_v55 = vcombine.high %v8703_v53, %v8707_v52  ;;  %v18099_v9 = vcombine.low %v8703_v53, %v8707_v52  ;;  %v8758_v52 = vld [vmem:[#allocation8 + $0x2cd0] sm:$0xff] }
 0x70f   :  { %11884 = vmatpush1.bf16.msra.mxu0 %v18041_v29  ;;  %v8714_v29 = vld [vmem:[#allocation8 + $0x2b70] sm:$0xff] }
 0x710   :  { %12048 = vmatpush1.bf16.msra.mxu1 %v18043_v24  ;;  %11885 = vmatprep.subr.bf16.mxu0 %v18050_v28  ;;  %v8711_v24 = vld [vmem:[#allocation8 + $0x2b58] sm:$0xff]  ;;  %v18106_v32 = vcombine.high %v8710_v7, %v8714_v29 }
 0x711   :  { %12049 = vmatprep.subr.bf16.mxu1 %v18052_v59  ;;  %v8715_v28 = vld [vmem:[#allocation8 + $0x2b78] sm:$0xff]  ;;  %v18097_v59 = vcombine.low %v8702_v49, %v8706_v16  ;;  %v18146_v16 = vcombine.high %v8750_v33, %v8754_v0 }
 0x712   :  { %v18108_v35 = vcombine.high %v8711_v24, %v8715_v28  ;;  %v18107_v63 = vcombine.low %v8711_v24, %v8715_v28  ;;  %v8766_v24 = vld [vmem:[#allocation8 + $0x2d10] sm:$0xff] }
 0x713   :  { %11886 = vmatpush1.bf16.msra.mxu0 %v18049_v61  ;;  %v8722_v61 = vld [vmem:[#allocation8 + $0x2bb0] sm:$0xff] }
 0x714   :  { %12050 = vmatpush1.bf16.msra.mxu1 %v18051_v54  ;;  %11887 = vmatprep.subr.bf16.mxu0 %v18058_v62  ;;  %v8719_v54 = vld [vmem:[#allocation8 + $0x2b98] sm:$0xff]  ;;  %v18114_v1 = vcombine.high %v8718_v51, %v8722_v61  ;;  %v8770_v28 = vld [vmem:[#allocation8 + $0x2d30] sm:$0xff] }
 0x715   :  { %12051 = vmatprep.subr.bf16.mxu1 %v18060_v58  ;;  %v8723_v62 = vld [vmem:[#allocation8 + $0x2bb8] sm:$0xff]  ;;  %v18105_v58 = vcombine.low %v8710_v7, %v8714_v29 }
 0x716   :  { %v18116_v12 = vcombine.high %v8719_v54, %v8723_v62  ;;  %v18115_v26 = vcombine.low %v8719_v54, %v8723_v62  ;;  %v8778_v54 = vld [vmem:[#allocation8 + $0x2d70] sm:$0xff]  ;;  %v8775_v62 = vld [vmem:[#allocation8 + $0x2d58] sm:$0xff] }
 0x717   :  { %11888 = vmatpush1.bf16.msra.mxu0 %v18057_v3  ;;  %v8730_v3 = vld [vmem:[#allocation8 + $0x2bf0] sm:$0xff] }
 0x718   :  { %12052 = vmatpush1.bf16.msra.mxu1 %v18059_v44  ;;  %11889 = vmatprep.subr.bf16.mxu0 %v18066_v13  ;;  %v8727_v44 = vld [vmem:[#allocation8 + $0x2bd8] sm:$0xff]  ;;  %v18122_v30 = vcombine.high %v8726_v25, %v8730_v3 }
 0x719   :  { %12053 = vmatprep.subr.bf16.mxu1 %v18068_v20  ;;  %v8731_v13 = vld [vmem:[#allocation8 + $0x2bf8] sm:$0xff]  ;;  %v18113_v20 = vcombine.low %v8718_v51, %v8722_v61  ;;  %v8774_v61 = vld [vmem:[#allocation8 + $0x2d50] sm:$0xff] }
 0x71a   :  { %v18124_v41 = vcombine.high %v8727_v44, %v8731_v13  ;;  %v18123_v4 = vcombine.low %v8727_v44, %v8731_v13  ;;  %v8786_v44 = vld [vmem:[#allocation8 + $0x2db0] sm:$0xff]  ;;  %v8783_v13 = vld [vmem:[#allocation8 + $0x2d98] sm:$0xff] }
 0x71b   :  { %11890 = vmatpush1.bf16.msra.mxu0 %v18065_v34  ;;  %v8738_v34 = vld [vmem:[#allocation8 + $0x2c30] sm:$0xff] }
 0x71c   :  { %12054 = vmatpush1.bf16.msra.mxu1 %v18067_v10  ;;  %11891 = vmatprep.subr.bf16.mxu0 %v18074_v40  ;;  %v8735_v10 = vld [vmem:[#allocation8 + $0x2c18] sm:$0xff]  ;;  %v18130_v14 = vcombine.high %v8734_v37, %v8738_v34 }
 0x71d   :  { %12055 = vmatprep.subr.bf16.mxu1 %v18076_v60  ;;  %v8739_v40 = vld [vmem:[#allocation8 + $0x2c38] sm:$0xff]  ;;  %v18121_v60 = vcombine.low %v8726_v25, %v8730_v3  ;;  %v8782_v3 = vld [vmem:[#allocation8 + $0x2d90] sm:$0xff] }
 0x71e   :  { %v18132_v5 = vcombine.high %v8735_v10, %v8739_v40  ;;  %v18131_v43 = vcombine.low %v8735_v10, %v8739_v40  ;;  %v8790_v40 = vld [vmem:[#allocation8 + $0x2dd0] sm:$0xff] }
 0x71f   :  { %11892 = vmatpush1.bf16.msra.mxu0 %v18073_v6  ;;  %v8746_v6 = vld [vmem:[#allocation8 + $0x2c70] sm:$0xff] }
 0x720   :  { %12056 = vmatpush1.bf16.msra.mxu1 %v18075_v23  ;;  %11893 = vmatprep.subr.bf16.mxu0 %v18082_v42  ;;  %v18129_v23 = vcombine.low %v8734_v37, %v8738_v34  ;;  %v8743_v42 = vld [vmem:[#allocation8 + $0x2c58] sm:$0xff]  ;;  %v18138_v36 = vcombine.high %v8742_v8, %v8746_v6 }
 0x721   :  { %12057 = vmatprep.subr.bf16.mxu1 %v18084_v48  ;;  %v8747_v48 = vld [vmem:[#allocation8 + $0x2c78] sm:$0xff] }
 0x722   :  { %v18139_v49 = vcombine.low %v8743_v42, %v8747_v48 }
 0x723   :  { %11894 = vmatpush1.bf16.msra.mxu0 %v18081_v45  ;;  %v18140_v45 = vcombine.high %v8743_v42, %v8747_v48  ;;  %v18177_v42 = vcombine.low %v8782_v3, %v8786_v44 }
 0x724   :  { %12058 = vmatpush1.bf16.msra.mxu1 %v18083_v50  ;;  %11895 = vmatprep.subr.bf16.mxu0 %v18090_v46  ;;  %v8751_v50 = vld [vmem:[#allocation8 + $0x2c98] sm:$0xff] }
 0x725   :  { %12059 = vmatprep.subr.bf16.mxu1 %v18092_v47  ;;  %v8755_v46 = vld [vmem:[#allocation8 + $0x2cb8] sm:$0xff]  ;;  %v18137_v47 = vcombine.low %v8742_v8, %v8746_v6 }
 0x726   :  { %v18148_v53 = vcombine.high %v8751_v50, %v8755_v46  ;;  %v8795_v8 = vld [vmem:[#allocation8 + $0x2df8] sm:$0xff] }
 0x727   :  { %11896 = vmatpush1.bf16.msra.mxu0 %v18089_v39  ;;  %v8762_v39 = vld [vmem:[#allocation8 + $0x2cf0] sm:$0xff] }
 0x728   :  { %12060 = vmatpush1.bf16.msra.mxu1 %v18091_v18  ;;  %11897 = vmatprep.subr.bf16.mxu0 %v18098_v56  ;;  %v8759_v18 = vld [vmem:[#allocation8 + $0x2cd8] sm:$0xff]  ;;  %v18154_v7 = vcombine.high %v8758_v52, %v8762_v39 }
 0x729   :  { %12061 = vmatprep.subr.bf16.mxu1 %v18100_v55  ;;  %v8763_v56 = vld [vmem:[#allocation8 + $0x2cf8] sm:$0xff]  ;;  %v18145_v55 = vcombine.low %v8750_v33, %v8754_v0  ;;  %v8798_v33 = vld [vmem:[#allocation8 + $0x2e10] sm:$0xff] }
 0x72a   :  { %v18156_v29 = vcombine.high %v8759_v18, %v8763_v56  ;;  %v8802_v0 = vld [vmem:[#allocation8 + $0x2e30] sm:$0xff] }
 0x72b   :  { %11898 = vmatpush1.bf16.msra.mxu0 %v18097_v59  ;;  %v8767_v59 = vld [vmem:[#allocation8 + $0x2d18] sm:$0xff] }
 0x72c   :  { %12062 = vmatpush1.bf16.msra.mxu1 %v18099_v9  ;;  %11899 = vmatprep.subr.bf16.mxu0 %v18106_v32  ;;  %v8771_v9 = vld [vmem:[#allocation8 + $0x2d38] sm:$0xff]  ;;  %v18155_v32 = vcombine.low %v8759_v18, %v8763_v56  ;;  %v8810_v18 = vld [vmem:[#allocation8 + $0x2e70] sm:$0xff] }
 0x72d   :  { %12063 = vmatprep.subr.bf16.mxu1 %v18108_v35  ;;  %v18162_v35 = vcombine.high %v8766_v24, %v8770_v28  ;;  %v18164_v51 = vcombine.high %v8767_v59, %v8771_v9  ;;  %v8807_v56 = vld [vmem:[#allocation8 + $0x2e58] sm:$0xff] }
 0x72f   :  { %11900 = vmatpush1.bf16.msra.mxu0 %v18105_v58  ;;  %v8779_v58 = vld [vmem:[#allocation8 + $0x2d78] sm:$0xff] }
 0x730   :  { %12064 = vmatpush1.bf16.msra.mxu1 %v18107_v63  ;;  %11901 = vmatprep.subr.bf16.mxu0 %v18114_v1  ;;  %v18161_v63 = vcombine.low %v8766_v24, %v8770_v28  ;;  %v18163_v1 = vcombine.low %v8767_v59, %v8771_v9  ;;  %v18172_v25 = vcombine.high %v8775_v62, %v8779_v58  ;;  %v8814_v28 = vld [vmem:[#allocation8 + $0x2e90] sm:$0xff]  ;;  %v8815_v9 = vld [vmem:[#allocation8 + $0x2e98] sm:$0xff] }
 0x731   :  { %12065 = vmatprep.subr.bf16.mxu1 %v18116_v12  ;;  %v18170_v12 = vcombine.high %v8774_v61, %v8778_v54  ;;  %v8818_v59 = vld [vmem:[#allocation8 + $0x2eb0] sm:$0xff] }
 0x733   :  { %11902 = vmatpush1.bf16.msra.mxu0 %v18113_v20  ;;  %v8787_v20 = vld [vmem:[#allocation8 + $0x2db8] sm:$0xff] }
 0x734   :  { %12066 = vmatpush1.bf16.msra.mxu1 %v18115_v26  ;;  %11903 = vmatprep.subr.bf16.mxu0 %v18122_v30  ;;  %v18169_v26 = vcombine.low %v8774_v61, %v8778_v54  ;;  %v18171_v30 = vcombine.low %v8775_v62, %v8779_v58  ;;  %v18180_v10 = vcombine.high %v8783_v13, %v8787_v20  ;;  %v8822_v54 = vld [vmem:[#allocation8 + $0x2ed0] sm:$0xff]  ;;  %v8823_v58 = vld [vmem:[#allocation8 + $0x2ed8] sm:$0xff] }
 0x735   :  { %12067 = vmatprep.subr.bf16.mxu1 %v18124_v41  ;;  %v18178_v41 = vcombine.high %v8782_v3, %v8786_v44  ;;  %v18179_v48 = vcombine.low %v8783_v13, %v8787_v20  ;;  %v8826_v62 = vld [vmem:[#allocation8 + $0x2ef0] sm:$0xff]  ;;  %v8831_v20 = vld [vmem:[#allocation8 + $0x2f18] sm:$0xff] }
 0x736   :  { %v8830_v44 = vld [vmem:[#allocation8 + $0x2f10] sm:$0xff] }
 0x737   :  { %11904 = vmatpush1.bf16.msra.mxu0 %v18121_v60  ;;  %v8794_v60 = vld [vmem:[#allocation8 + $0x2df0] sm:$0xff] }
 0x738   :  { %12068 = vmatpush1.bf16.msra.mxu1 %v18123_v4  ;;  %11914 = vmatprep.subr.bf16.mxu0 %v18130_v14  ;;  %v8834_v13 = vld [vmem:[#allocation8 + $0x2f30] sm:$0xff] }
 0x739   :  { %12078 = vmatprep.subr.bf16.mxu1 %v18132_v5  ;;  %v8791_v5 = vld [vmem:[#allocation8 + $0x2dd8] sm:$0xff] }
 0x73a   :  { %11906 = vmatmul.mubr.bf16.vlgmr.msra.gmra.mrb[28].mxu0 %v19811_v22 }
 0x73b   :  { %12070 = vmatmul.mubr.bf16.vlgmr.msra.gmra.mrb[28].mxu1 %v19811_v22  ;;  %11915 = vmatpush1.bf16.msra.mxu0 %v18129_v23  ;;  %v18147_v22 = vcombine.low %v8751_v50, %v8755_v46  ;;  %v8799_v46 = vld [vmem:[#allocation8 + $0x2e18] sm:$0xff] }
 0x73c   :  { %11946 = vmatprep.mubr.bf16.mxu0 %v19815_v38  ;;  %12079 = vmatpush1.bf16.msra.mxu1 %v18131_v43  ;;  %v18186_v43 = vcombine.high %v8790_v40, %v8794_v60 }
 0x73d   :  { %12110 = vmatprep.mubr.bf16.mxu1 %v19815_v38  ;;  %11916 = vmatprep.subr.bf16.mxu0 %v18138_v36  ;;  %v18153_v38 = vcombine.low %v8758_v52, %v8762_v39  ;;  %v18188_v36 = vcombine.high %v8791_v5, %v8795_v8  ;;  %v8806_v39 = vld [vmem:[#allocation8 + $0x2e50] sm:$0xff] }
 0x73e   :  { %12080 = vmatprep.subr.bf16.mxu1 %v18140_v45 }
 0x73f   :  { %11917 = vmatpush1.bf16.msra.mxu0 %v18137_v47  ;;  %v8803_v47 = vld [vmem:[#allocation8 + $0x2e38] sm:$0xff] }
 0x740   :  { %12081 = vmatpush1.bf16.msra.mxu1 %v18139_v49  ;;  %11918 = vmatprep.subr.bf16.mxu0 %v18146_v16  ;;  %v18185_v49 = vcombine.low %v8790_v40, %v8794_v60  ;;  %v18187_v16 = vcombine.low %v8791_v5, %v8795_v8  ;;  %v18196_v52 = vcombine.high %v8799_v46, %v8803_v47  ;;  %v8838_v60 = vld [vmem:[#allocation8 + $0x2f50] sm:$0xff]  ;;  %v8839_v8 = vld [vmem:[#allocation8 + $0x2f58] sm:$0xff] }
 0x741   :  { %12082 = vmatprep.subr.bf16.mxu1 %v18148_v53  ;;  %v18194_v53 = vcombine.high %v8798_v33, %v8802_v0  ;;  %v8842_v5 = vld [vmem:[#allocation8 + $0x2f70] sm:$0xff] }
 0x743   :  { %11919 = vmatpush1.bf16.msra.mxu0 %v18145_v55  ;;  %v8811_v55 = vld [vmem:[#allocation8 + $0x2e78] sm:$0xff] }
 0x744   :  { %12083 = vmatpush1.bf16.msra.mxu1 %v18147_v22  ;;  %11920 = vmatprep.subr.bf16.mxu0 %v18154_v7  ;;  %v18193_v22 = vcombine.low %v8798_v33, %v8802_v0  ;;  %v18195_v7 = vcombine.low %v8799_v46, %v8803_v47  ;;  %v18204_v24 = vcombine.high %v8807_v56, %v8811_v55  ;;  %v8846_v33 = vld [vmem:[#allocation8 + $0x2f90] sm:$0xff] }
 0x745   :  { %12084 = vmatprep.subr.bf16.mxu1 %v18156_v29  ;;  %v18202_v29 = vcombine.high %v8806_v39, %v8810_v18  ;;  %v8850_v0 = vld [vmem:[#allocation8 + $0x2fb0] sm:$0xff]  ;;  %v18233_v47 = vcombine.low %v8838_v60, %v8842_v5 }
 0x747   :  { %11921 = vmatpush1.bf16.msra.mxu0 %v18153_v38  ;;  %v8819_v38 = vld [vmem:[#allocation8 + $0x2eb8] sm:$0xff] }
 0x748   :  { %12085 = vmatpush1.bf16.msra.mxu1 %v18155_v32  ;;  %11922 = vmatprep.subr.bf16.mxu0 %v18162_v35  ;;  %v18201_v32 = vcombine.low %v8806_v39, %v8810_v18  ;;  %v18203_v35 = vcombine.low %v8807_v56, %v8811_v55  ;;  %v18212_v61 = vcombine.high %v8815_v9, %v8819_v38  ;;  %v8858_v39 = vld [vmem:[#allocation8 + $0x2ff0] sm:$0xff]  ;;  %v8855_v18 = vld [vmem:[#allocation8 + $0x2fd8] sm:$0xff] }
 0x749   :  { %12086 = vmatprep.subr.bf16.mxu1 %v18164_v51  ;;  %v18210_v51 = vcombine.high %v8814_v28, %v8818_v59  ;;  %v8859_v56 = vld [vmem:[#allocation8 + $0x2ff8] sm:$0xff] }
 0x74b   :  { %11923 = vmatpush1.bf16.msra.mxu0 %v18161_v63  ;;  %v8827_v63 = vld [vmem:[#allocation8 + $0x2ef8] sm:$0xff] }
 0x74c   :  { %12087 = vmatpush1.bf16.msra.mxu1 %v18163_v1  ;;  %11924 = vmatprep.subr.bf16.mxu0 %v18170_v12  ;;  %v18209_v1 = vcombine.low %v8814_v28, %v8818_v59  ;;  %v18211_v12 = vcombine.low %v8815_v9, %v8819_v38  ;;  %v18220_v3 = vcombine.high %v8823_v58, %v8827_v63  ;;  %v12152_v28 = vld [vmem:[#allocation8 + $0x3000] sm:$0xff]  ;;  %v12153_v9 = vld [vmem:[#allocation8 + $0x3008] sm:$0xff] }
 0x74d   :  { %v19842_v37 = vpop.f32.mrb[24].mxu0  ;;  %v19844_v34 = vpop.f32.mrb[24].mxu1  ;;  %12088 = vmatprep.subr.bf16.mxu1 %v18172_v25  ;;  %v18218_v25 = vcombine.high %v8822_v54, %v8826_v62  ;;  %v12156_v59 = vld [vmem:[#allocation8 + $0x3020] sm:$0xff]  ;;  %v12157_v38 = vld [vmem:[#allocation8 + $0x3028] sm:$0xff] }
 0x74e   :  { %v19846_v4 = vpop.f32.mrb[25].mxu0  ;;  %v19848_v14 = vpop.f32.mrb[25].mxu1 }
 0x74f   :  { %v11624_v6 = vpop.f32.mrb[26].mxu0  ;;  %v11788_v23 = vpop.f32.mrb[26].mxu1  ;;  %11925 = vmatpush1.bf16.msra.mxu0 %v18169_v26  ;;  %v8835_v26 = vld [vmem:[#allocation8 + $0x2f38] sm:$0xff] }
 0x750   :  { %12089 = vmatpush1.bf16.msra.mxu1 %v18171_v30  ;;  %11926 = vmatprep.subr.bf16.mxu0 %v18178_v41  ;;  %v11625_v45 = vpop.f32.mrb[27].mxu0  ;;  %v11789_v50 = vpop.f32.mrb[27].mxu1  ;;  %v18217_v30 = vcombine.low %v8822_v54, %v8826_v62  ;;  %v18219_v41 = vcombine.low %v8823_v58, %v8827_v63  ;;  %v18228_v40 = vcombine.high %v8831_v20, %v8835_v26  ;;  %v8843_v6 = vld [vmem:[#allocation8 + $0x2f78] sm:$0xff]  ;;  %v12160_v54 = vld [vmem:[#allocation8 + $0x3040] sm:$0xff] }
 0x751   :  { %12090 = vmatprep.subr.bf16.mxu1 %v18180_v10  ;;  %v18226_v10 = vcombine.high %v8830_v44, %v8834_v13  ;;  %v18225_v23 = vcombine.low %v8830_v44, %v8834_v13  ;;  %v8847_v45 = vld [vmem:[#allocation8 + $0x2f98] sm:$0xff]  ;;  %v12164_v62 = vld [vmem:[#allocation8 + $0x3060] sm:$0xff]  ;;  %v18253_v63 = vcombine.low %v12152_v28, %v12156_v59 }
 0x752   :  { %v8851_v50 = vld [vmem:[#allocation8 + $0x2fb8] sm:$0xff]  ;;  %v12168_v44 = vld [vmem:[#allocation8 + $0x3080] sm:$0xff] }
 0x753   :  { %11927 = vmatpush1.bf16.msra.mxu0 %v18177_v42  ;;  %v19850_v42 = vld [vmem:[#allocation10 + $0x10] sm:$0xff]  ;;  %v12172_v13 = vld [vmem:[#allocation8 + $0x30a0] sm:$0xff] }
 0x754   :  { %12091 = vmatpush1.bf16.msra.mxu1 %v18179_v48  ;;  %11928 = vmatprep.subr.bf16.mxu0 %v18186_v43  ;;  %v18227_v48 = vcombine.low %v8831_v20, %v8835_v26  ;;  %v18234_v43 = vcombine.high %v8838_v60, %v8842_v5  ;;  %v8870_v46 = vrot.slane %v19850_v42, %v19580_v17 }
 0x755   :  { %12092 = vmatprep.subr.bf16.mxu1 %v18188_v36  ;;  %v18236_v36 = vcombine.high %v8839_v8, %v8843_v6  ;;  %v18270_v60 = vcombine.high %v12168_v44, %v12172_v13 }
 0x756   :  { %v18935_v55 = vadd.f32 %v19846_v4, %v8870_v46  ;;  %v18254_v4 = vcombine.high %v12152_v28, %v12156_v59  ;;  %v12189_v46 = vld [vmem:[#allocation8 + $0x3128] sm:$0xff]  ;;  %v12204_v28 = vld [vmem:[#allocation8 + $0x31a0] sm:$0xff] }
 0x757   :  { %11929 = vmatpush1.bf16.msra.mxu0 %v18185_v49  ;;  %v18235_v49 = vcombine.low %v8839_v8, %v8843_v6  ;;  %v12176_v8 = vld [vmem:[#allocation8 + $0x30c0] sm:$0xff]  ;;  %v12201_v59 = vld [vmem:[#allocation8 + $0x3188] sm:$0xff] }
 0x758   :  { %12093 = vmatpush1.bf16.msra.mxu1 %v18187_v16  ;;  %11930 = vmatprep.subr.bf16.mxu0 %v18194_v53  ;;  %v18242_v16 = vcombine.high %v8846_v33, %v8850_v0  ;;  %v18244_v53 = vcombine.high %v8847_v45, %v8851_v50  ;;  %vm12120_vm8 = vcmp.gt.f32.partialorder %v18935_v55, 0.0  ;;  %v12180_v6 = vld [vmem:[#allocation8 + $0x30e0] sm:$0xff] }
 0x759   :  { %12094 = vmatprep.subr.bf16.mxu1 %v18196_v52  ;;  %v8854_v52 = vld [vmem:[#allocation8 + $0x2fd0] sm:$0xff] }
 0x75b   :  { %11931 = vmatpush1.bf16.msra.mxu0 %v18193_v22  ;;  %v18241_v22 = vcombine.low %v8846_v33, %v8850_v0  ;;  %v12184_v0 = vld [vmem:[#allocation8 + $0x3100] sm:$0xff] }
 0x75c   :  { %12095 = vmatpush1.bf16.msra.mxu1 %v18195_v7  ;;  %11932 = vmatprep.subr.bf16.mxu0 %v18202_v29  ;;  %v18243_v7 = vcombine.low %v8847_v45, %v8851_v50  ;;  %v18250_v29 = vcombine.high %v8854_v52, %v8858_v39  ;;  %v12188_v45 = vld [vmem:[#allocation8 + $0x3120] sm:$0xff]  ;;  %v12185_v50 = vld [vmem:[#allocation8 + $0x3108] sm:$0xff] }
 0x75d   :  { %12096 = vmatprep.subr.bf16.mxu1 %v18204_v24  ;;  %v18252_v24 = vcombine.high %v8855_v18, %v8859_v56 }
 0x75f   :  { %11933 = vmatpush1.bf16.msra.mxu0 %v18201_v32  ;;  %v12128_v32 = vmul.f32 0.2, %v18935_v55 }
 0x760   :  { %12097 = vmatpush1.bf16.msra.mxu1 %v18203_v35  ;;  %11934 = vmatprep.subr.bf16.mxu0 %v18210_v51  ;;  %v18249_v35 = vcombine.low %v8854_v52, %v8858_v39  ;;  %v18251_v51 = vcombine.low %v8855_v18, %v8859_v56  ;;  %v12192_v52 = vld [vmem:[#allocation8 + $0x3140] sm:$0xff]  ;;  %v12193_v18 = vld [vmem:[#allocation8 + $0x3148] sm:$0xff] }
 0x761   :  { %12098 = vmatprep.subr.bf16.mxu1 %v18212_v61  ;;  %v18256_v61 = vcombine.high %v12153_v9, %v12157_v38  ;;  %v12136_v58 = vsel %vm12120_vm8, %v18935_v55, %v12128_v32  ;;  %v12196_v39 = vld [vmem:[#allocation8 + $0x3160] sm:$0xff]  ;;  %v12197_v56 = vld [vmem:[#allocation8 + $0x3168] sm:$0xff]  ;;  %v18285_v55 = vcombine.low %v12184_v0, %v12188_v45 }
 0x762   :  { %v19855_v20 = vpack.c.bf16 %v12136_v58, %v12136_v58  ;;  %v18295_v32 = vcombine.low %v12193_v18, %v12197_v56 }
 0x763   :  { %11935 = vmatpush1.bf16.msra.mxu0 %v18209_v1  ;;  %v12161_v1 = vld [vmem:[#allocation8 + $0x3048] sm:$0xff] }
 0x764   :  { %12099 = vmatpush1.bf16.msra.mxu1 %v18211_v12  ;;  %11936 = vmatprep.subr.bf16.mxu0 %v18218_v25  ;;  %v12165_v12 = vld [vmem:[#allocation8 + $0x3068] sm:$0xff]  ;;  %v18255_v25 = vcombine.low %v12153_v9, %v12157_v38  ;;  %v18293_v38 = vcombine.low %v12192_v52, %v12196_v39 }
 0x765   :  { %12100 = vmatprep.subr.bf16.mxu1 %v18220_v3  ;;  %v18262_v3 = vcombine.high %v12160_v54, %v12164_v62  ;;  %v18264_v26 = vcombine.high %v12161_v1, %v12165_v12  ;;  %v12205_v9 = vld [vmem:[#allocation8 + $0x31a8] sm:$0xff] }
 0x767   :  { %11937 = vmatpush1.bf16.msra.mxu0 %v18217_v30  ;;  %v12169_v30 = vld [vmem:[#allocation8 + $0x3088] sm:$0xff] }
 0x768   :  { %12101 = vmatpush1.bf16.msra.mxu1 %v18219_v41  ;;  %11938 = vmatprep.subr.bf16.mxu0 %v18226_v10  ;;  %v12173_v41 = vld [vmem:[#allocation8 + $0x30a8] sm:$0xff]  ;;  %v18261_v10 = vcombine.low %v12160_v54, %v12164_v62 }
 0x769   :  { %12102 = vmatprep.subr.bf16.mxu1 %v18228_v40  ;;  %v18263_v40 = vcombine.low %v12161_v1, %v12165_v12  ;;  %v18272_v5 = vcombine.high %v12169_v30, %v12173_v41  ;;  %v12209_v54 = vld [vmem:[#allocation8 + $0x31c8] sm:$0xff] }
 0x76a   :  { %v12213_v62 = vld [vmem:[#allocation8 + $0x31e8] sm:$0xff] }
 0x76b   :  { %11939 = vmatpush1.bf16.msra.mxu0 %v18225_v23  ;;  %v12177_v23 = vld [vmem:[#allocation8 + $0x30c8] sm:$0xff]  ;;  %v18312_v12 = vcombine.high %v12209_v54, %v12213_v62 }
 0x76c   :  { %12103 = vmatpush1.bf16.msra.mxu1 %v18227_v48  ;;  %11940 = vmatprep.subr.bf16.mxu0 %v18234_v43  ;;  %v12181_v48 = vld [vmem:[#allocation8 + $0x30e8] sm:$0xff]  ;;  %v18269_v43 = vcombine.low %v12168_v44, %v12172_v13 }
 0x76d   :  { %12104 = vmatprep.subr.bf16.mxu1 %v18236_v36  ;;  %v18278_v36 = vcombine.high %v12176_v8, %v12180_v6  ;;  %v18280_v33 = vcombine.high %v12177_v23, %v12181_v48  ;;  %v12217_v44 = vld [vmem:[#allocation8 + $0x3208] sm:$0xff] }
 0x76e   :  { %v12221_v13 = vld [vmem:[#allocation8 + $0x3228] sm:$0xff] }
 0x76f   :  { %11941 = vmatpush1.bf16.msra.mxu0 %v18233_v47  ;;  %v18277_v47 = vcombine.low %v12176_v8, %v12180_v6  ;;  %v12229_v8 = vld [vmem:[#allocation8 + $0x3268] sm:$0xff] }
 0x770   :  { %12105 = vmatpush1.bf16.msra.mxu1 %v18235_v49  ;;  %11942 = vmatprep.subr.bf16.mxu0 %v18242_v16  ;;  %v18279_v49 = vcombine.low %v12177_v23, %v12181_v48  ;;  %v18286_v16 = vcombine.high %v12184_v0, %v12188_v45  ;;  %v18319_v23 = vcombine.low %v12217_v44, %v12221_v13  ;;  %v12237_v0 = vld [vmem:[#allocation8 + $0x32a8] sm:$0xff] }
 0x771   :  { %12106 = vmatprep.subr.bf16.mxu1 %v18244_v53  ;;  %v18288_v53 = vcombine.high %v12185_v50, %v12189_v46 }
 0x773   :  { %11943 = vmatpush1.bf16.msra.mxu0 %v18241_v22  ;;  %v18287_v22 = vcombine.low %v12185_v50, %v12189_v46 }
 0x774   :  { %12107 = vmatpush1.bf16.msra.mxu1 %v18243_v7  ;;  %11944 = vmatprep.subr.bf16.mxu0 %v18250_v29  ;;  %v18294_v7 = vcombine.high %v12192_v52, %v12196_v39  ;;  %v18296_v29 = vcombine.high %v12193_v18, %v12197_v56  ;;  %v12245_v52 = vld [vmem:[#allocation8 + $0x32e8] sm:$0xff] }
 0x775   :  { %12108 = vmatprep.subr.bf16.mxu1 %v18252_v24  ;;  %v12200_v24 = vld [vmem:[#allocation8 + $0x3180] sm:$0xff] }
 0x776   :  { %v18301_v58 = vcombine.low %v12200_v24, %v12204_v28 }
 0x777   :  { %11945 = vmatpush1.bf16.msra.mxu0 %v18249_v35  ;;  %v18302_v35 = vcombine.high %v12200_v24, %v12204_v28  ;;  %v12253_v24 = vld [vmem:[#allocation8 + $0x3328] sm:$0xff] }
 0x778   :  { %12109 = vmatpush1.bf16.msra.mxu1 %v18251_v51  ;;  %15267 = vmatprep.subr.bf16.mxu0 %v18254_v4  ;;  %v18304_v51 = vcombine.high %v12201_v59, %v12205_v9  ;;  %v12208_v4 = vld [vmem:[#allocation8 + $0x31c0] sm:$0xff] }
 0x779   :  { %15431 = vmatprep.subr.bf16.mxu1 %v18256_v61  ;;  %v12212_v61 = vld [vmem:[#allocation8 + $0x31e0] sm:$0xff] }
 0x77a   :  { %11947 = vmatmul.mubr.bf16.vlgmr.msra.gmra.mrb[28].mxu0 %v19824_v57  ;;  %v18310_v1 = vcombine.high %v12208_v4, %v12212_v61 }
 0x77b   :  { %12111 = vmatmul.mubr.bf16.vlgmr.msra.gmra.mrb[28].mxu1 %v19824_v57  ;;  %15268 = vmatpush1.bf16.msra.mxu0 %v18253_v63  ;;  %v18271_v57 = vcombine.low %v12169_v30, %v12173_v41  ;;  %v18303_v63 = vcombine.low %v12201_v59, %v12205_v9  ;;  %v18311_v30 = vcombine.low %v12209_v54, %v12213_v62 }
 0x77c   :  { %15299 = vmatprep.mubr.bf16.mxu0 %v19855_v20  ;;  %15432 = vmatpush1.bf16.msra.mxu1 %v18255_v25  ;;  %v12216_v25 = vld [vmem:[#allocation8 + $0x3200] sm:$0xff] }
 0x77d   :  { %15463 = vmatprep.mubr.bf16.mxu1 %v19855_v20  ;;  %15269 = vmatprep.subr.bf16.mxu0 %v18262_v3  ;;  %v12220_v3 = vld [vmem:[#allocation8 + $0x3220] sm:$0xff] }
 0x77e   :  { %15433 = vmatprep.subr.bf16.mxu1 %v18264_v26  ;;  %v18309_v26 = vcombine.low %v12208_v4, %v12212_v61  ;;  %v18318_v41 = vcombine.high %v12216_v25, %v12220_v3  ;;  %v18317_v6 = vcombine.low %v12216_v25, %v12220_v3  ;;  %v12261_v4 = vld [vmem:[#allocation8 + $0x3368] sm:$0xff] }
 0x77f   :  { %15270 = vmatpush1.bf16.msra.mxu0 %v18261_v10  ;;  %v18320_v10 = vcombine.high %v12217_v44, %v12221_v13  ;;  %v12265_v25 = vld [vmem:[#allocation8 + $0x3388] sm:$0xff]  ;;  %v8878_v44 = vrot.slane %v19850_v42, %v19587_v21 }
 0x780   :  { %15434 = vmatpush1.bf16.msra.mxu1 %v18263_v40  ;;  %15271 = vmatprep.subr.bf16.mxu0 %v18270_v60  ;;  %v12224_v40 = vld [vmem:[#allocation8 + $0x3240] sm:$0xff]  ;;  %v12269_v3 = vld [vmem:[#allocation8 + $0x33a8] sm:$0xff] }
 0x781   :  { %15435 = vmatprep.subr.bf16.mxu1 %v18272_v5  ;;  %v12228_v60 = vld [vmem:[#allocation8 + $0x3260] sm:$0xff]  ;;  %v12225_v5 = vld [vmem:[#allocation8 + $0x3248] sm:$0xff] }
 0x782   :  { %v18326_v48 = vcombine.high %v12224_v40, %v12228_v60  ;;  %v18325_v45 = vcombine.low %v12224_v40, %v12228_v60  ;;  %v18327_v50 = vcombine.low %v12225_v5, %v12229_v8  ;;  %v12272_v40 = vld [vmem:[#allocation8 + $0x33c0] sm:$0xff] }
 0x783   :  { %15272 = vmatpush1.bf16.msra.mxu0 %v18269_v43  ;;  %v18328_v43 = vcombine.high %v12225_v5, %v12229_v8  ;;  %v12276_v60 = vld [vmem:[#allocation8 + $0x33e0] sm:$0xff]  ;;  %v12273_v5 = vld [vmem:[#allocation8 + $0x33c8] sm:$0xff] }
 0x784   :  { %15436 = vmatpush1.bf16.msra.mxu1 %v18271_v57  ;;  %15273 = vmatprep.subr.bf16.mxu0 %v18278_v36  ;;  %v12232_v57 = vld [vmem:[#allocation8 + $0x3280] sm:$0xff]  ;;  %v12277_v8 = vld [vmem:[#allocation8 + $0x33e8] sm:$0xff] }
 0x785   :  { %15437 = vmatprep.subr.bf16.mxu1 %v18280_v33  ;;  %v12236_v36 = vld [vmem:[#allocation8 + $0x32a0] sm:$0xff]  ;;  %v12233_v33 = vld [vmem:[#allocation8 + $0x3288] sm:$0xff] }
 0x786   :  { %v18334_v46 = vcombine.high %v12232_v57, %v12236_v36  ;;  %v18333_v39 = vcombine.low %v12232_v57, %v12236_v36  ;;  %v18335_v18 = vcombine.low %v12233_v33, %v12237_v0  ;;  %v18376_v36 = vcombine.high %v12273_v5, %v12277_v8 }
 0x787   :  { %15274 = vmatpush1.bf16.msra.mxu0 %v18277_v47  ;;  %v18336_v47 = vcombine.high %v12233_v33, %v12237_v0  ;;  %v12280_v33 = vld [vmem:[#allocation8 + $0x3400] sm:$0xff] }
 0x788   :  { %15438 = vmatpush1.bf16.msra.mxu1 %v18279_v49  ;;  %15275 = vmatprep.subr.bf16.mxu0 %v18286_v16  ;;  %v12240_v49 = vld [vmem:[#allocation8 + $0x32c0] sm:$0xff] }
 0x789   :  { %15439 = vmatprep.subr.bf16.mxu1 %v18288_v53  ;;  %v12244_v16 = vld [vmem:[#allocation8 + $0x32e0] sm:$0xff]  ;;  %v12241_v53 = vld [vmem:[#allocation8 + $0x32c8] sm:$0xff] }
 0x78a   :  { %v18342_v56 = vcombine.high %v12240_v49, %v12244_v16  ;;  %v18341_v28 = vcombine.low %v12240_v49, %v12244_v16  ;;  %v18343_v59 = vcombine.low %v12241_v53, %v12245_v52  ;;  %v12284_v0 = vld [vmem:[#allocation8 + $0x3420] sm:$0xff] }
 0x78b   :  { %15276 = vmatpush1.bf16.msra.mxu0 %v18285_v55  ;;  %v18344_v55 = vcombine.high %v12241_v53, %v12245_v52  ;;  %v12288_v53 = vld [vmem:[#allocation8 + $0x3440] sm:$0xff] }
 0x78c   :  { %15440 = vmatpush1.bf16.msra.mxu1 %v18287_v22  ;;  %15277 = vmatprep.subr.bf16.mxu0 %v18294_v7  ;;  %v12248_v22 = vld [vmem:[#allocation8 + $0x3300] sm:$0xff] }
 0x78d   :  { %15441 = vmatprep.subr.bf16.mxu1 %v18296_v29  ;;  %v12252_v7 = vld [vmem:[#allocation8 + $0x3320] sm:$0xff]  ;;  %v12249_v29 = vld [vmem:[#allocation8 + $0x3308] sm:$0xff] }
 0x78e   :  { %v18350_v9 = vcombine.high %v12248_v22, %v12252_v7  ;;  %v18349_v61 = vcombine.low %v12248_v22, %v12252_v7  ;;  %v18351_v54 = vcombine.low %v12249_v29, %v12253_v24  ;;  %v12292_v52 = vld [vmem:[#allocation8 + $0x3460] sm:$0xff] }
 0x78f   :  { %15278 = vmatpush1.bf16.msra.mxu0 %v18293_v38  ;;  %v18352_v38 = vcombine.high %v12249_v29, %v12253_v24  ;;  %v18390_v29 = vcombine.high %v12288_v53, %v12292_v52  ;;  %v12296_v24 = vld [vmem:[#allocation8 + $0x3480] sm:$0xff] }
 0x790   :  { %15442 = vmatpush1.bf16.msra.mxu1 %v18295_v32  ;;  %15279 = vmatprep.subr.bf16.mxu0 %v18302_v35  ;;  %v12256_v32 = vld [vmem:[#allocation8 + $0x3340] sm:$0xff] }
 0x791   :  { %15443 = vmatprep.subr.bf16.mxu1 %v18304_v51  ;;  %v12260_v35 = vld [vmem:[#allocation8 + $0x3360] sm:$0xff]  ;;  %v12257_v51 = vld [vmem:[#allocation8 + $0x3348] sm:$0xff] }
 0x792   :  { %v18358_v62 = vcombine.high %v12256_v32, %v12260_v35  ;;  %v18357_v13 = vcombine.low %v12256_v32, %v12260_v35  ;;  %v12301_v32 = vld [vmem:[#allocation8 + $0x34a8] sm:$0xff]  ;;  %v18389_v35 = vcombine.low %v12288_v53, %v12292_v52 }
 0x793   :  { %15280 = vmatpush1.bf16.msra.mxu0 %v18301_v58  ;;  %v8866_v58 = vrot.slane %v19850_v42, %v19575_v15  ;;  %v12337_v53 = vld [vmem:[#allocation8 + $0x35c8] sm:$0xff] }
 0x794   :  { %15444 = vmatpush1.bf16.msra.mxu1 %v18303_v63  ;;  %15281 = vmatprep.subr.bf16.mxu0 %v18310_v1  ;;  %v18360_v63 = vcombine.high %v12257_v51, %v12261_v4  ;;  %v12264_v1 = vld [vmem:[#allocation8 + $0x3380] sm:$0xff]  ;;  %v12341_v52 = vld [vmem:[#allocation8 + $0x35e8] sm:$0xff] }
 0x795   :  { %15445 = vmatprep.subr.bf16.mxu1 %v18312_v12  ;;  %v12268_v12 = vld [vmem:[#allocation8 + $0x33a0] sm:$0xff] }
 0x797   :  { %15282 = vmatpush1.bf16.msra.mxu0 %v18309_v26  ;;  %v18359_v26 = vcombine.low %v12257_v51, %v12261_v4 }
 0x798   :  { %15446 = vmatpush1.bf16.msra.mxu1 %v18311_v30  ;;  %15283 = vmatprep.subr.bf16.mxu0 %v18318_v41  ;;  %v18366_v30 = vcombine.high %v12264_v1, %v12268_v12  ;;  %v18934_v41 = vadd.f32 %v19842_v37, %v8866_v58  ;;  %v12281_v37 = vld [vmem:[#allocation8 + $0x3408] sm:$0xff] }
 0x799   :  { %15447 = vmatprep.subr.bf16.mxu1 %v18320_v10  ;;  %v18368_v10 = vcombine.high %v12265_v25, %v12269_v3  ;;  %v12305_v58 = vld [vmem:[#allocation8 + $0x34c8] sm:$0xff] }
 0x79a   :  { %v12127_v57 = vmul.f32 0.2, %v18934_v41  ;;  %vm12119_vm9 = vcmp.gt.f32.partialorder %v18934_v41, 0.0 }
 0x79b   :  { %15284 = vmatpush1.bf16.msra.mxu0 %v18317_v6  ;;  %v18937_v6 = vadd.f32 %v19848_v14, %v8878_v44  ;;  %v18375_v14 = vcombine.low %v12273_v5, %v12277_v8  ;;  %v12312_v44 = vld [vmem:[#allocation8 + $0x3500] sm:$0xff] }
 0x79c   :  { %15448 = vmatpush1.bf16.msra.mxu1 %v18319_v23  ;;  %15285 = vmatprep.subr.bf16.mxu0 %v18326_v48  ;;  %v18365_v23 = vcombine.low %v12264_v1, %v12268_v12  ;;  %v18367_v48 = vcombine.low %v12265_v25, %v12269_v3  ;;  %v12135_v49 = vsel %vm12119_vm9, %v18934_v41, %v12127_v57  ;;  %v12320_v5 = vld [vmem:[#allocation8 + $0x3540] sm:$0xff] }
 0x79d   :  { %15449 = vmatprep.subr.bf16.mxu1 %v18328_v43  ;;  %v18374_v43 = vcombine.high %v12272_v40, %v12276_v60  ;;  %vm12122_vm10 = vcmp.gt.f32.partialorder %v18937_v6, 0.0  ;;  %v19867_v22 = vpack.c.bf16 %v12135_v49, %v12135_v49  ;;  %v12324_v8 = vld [vmem:[#allocation8 + $0x3560] sm:$0xff] }
 0x79e   :  { %v18422_v57 = vcombine.high %v12320_v5, %v12324_v8  ;;  %v12336_v49 = vld [vmem:[#allocation8 + $0x35c0] sm:$0xff] }
 0x79f   :  { %15286 = vmatpush1.bf16.msra.mxu0 %v18325_v45  ;;  %v12285_v45 = vld [vmem:[#allocation8 + $0x3428] sm:$0xff] }
 0x7a0   :  { %15450 = vmatpush1.bf16.msra.mxu1 %v18327_v50  ;;  %15287 = vmatprep.subr.bf16.mxu0 %v18334_v46  ;;  %v12130_v50 = vmul.f32 0.2, %v18937_v6  ;;  %v18373_v46 = vcombine.low %v12272_v40, %v12276_v60  ;;  %v18384_v16 = vcombine.high %v12281_v37, %v12285_v45  ;;  %v18383_v7 = vcombine.low %v12281_v37, %v12285_v45  ;;  %v12329_v37 = vld [vmem:[#allocation8 + $0x3588] sm:$0xff] }
 0x7a1   :  { %15451 = vmatprep.subr.bf16.mxu1 %v18336_v47  ;;  %v18382_v47 = vcombine.high %v12280_v33, %v12284_v0  ;;  %v12333_v45 = vld [vmem:[#allocation8 + $0x35a8] sm:$0xff] }
 0x7a3   :  { %15288 = vmatpush1.bf16.msra.mxu0 %v18333_v39  ;;  %v12138_v39 = vsel %vm12122_vm10, %v18937_v6, %v12130_v50  ;;  %v12321_v6 = vld [vmem:[#allocation8 + $0x3548] sm:$0xff]  ;;  %v18421_v50 = vcombine.low %v12320_v5, %v12324_v8 }
 0x7a4   :  { %15452 = vmatpush1.bf16.msra.mxu1 %v18335_v18  ;;  %15289 = vmatprep.subr.bf16.mxu0 %v18342_v56  ;;  %v18381_v18 = vcombine.low %v12280_v33, %v12284_v0  ;;  %v12289_v56 = vld [vmem:[#allocation8 + $0x3448] sm:$0xff]  ;;  %v12328_v33 = vld [vmem:[#allocation8 + $0x3580] sm:$0xff] }
 0x7a5   :  { %15453 = vmatprep.subr.bf16.mxu1 %v18344_v55  ;;  %v12293_v55 = vld [vmem:[#allocation8 + $0x3468] sm:$0xff]  ;;  %v12332_v0 = vld [vmem:[#allocation8 + $0x35a0] sm:$0xff] }
 0x7a6   :  { %v18391_v51 = vcombine.low %v12289_v56, %v12293_v55  ;;  %v12373_v5 = vld [vmem:[#allocation8 + $0x36e8] sm:$0xff] }
 0x7a7   :  { %15290 = vmatpush1.bf16.msra.mxu0 %v18341_v28  ;;  %v12300_v28 = vld [vmem:[#allocation8 + $0x34a0] sm:$0xff] }
 0x7a8   :  { %15454 = vmatpush1.bf16.msra.mxu1 %v18343_v59  ;;  %15291 = vmatprep.subr.bf16.mxu0 %v18350_v9  ;;  %v19869_v59 = vpack.c.bf16 %v12138_v39, %v12138_v39  ;;  %v18392_v9 = vcombine.high %v12289_v56, %v12293_v55  ;;  %v18398_v4 = vcombine.high %v12296_v24, %v12300_v28 }
 0x7a9   :  { %15455 = vmatprep.subr.bf16.mxu1 %v18352_v38  ;;  %v12297_v38 = vld [vmem:[#allocation8 + $0x3488] sm:$0xff]  ;;  %v18397_v1 = vcombine.low %v12296_v24, %v12300_v28  ;;  %v18429_v39 = vcombine.low %v12328_v33, %v12332_v0  ;;  %v18440_v55 = vcombine.high %v12337_v53, %v12341_v52 }
 0x7aa   :  { %v18399_v12 = vcombine.low %v12297_v38, %v12301_v32  ;;  %v12345_v24 = vld [vmem:[#allocation8 + $0x3608] sm:$0xff] }
 0x7ab   :  { %15292 = vmatpush1.bf16.msra.mxu0 %v18349_v61  ;;  %v18400_v61 = vcombine.high %v12297_v38, %v12301_v32  ;;  %v12349_v28 = vld [vmem:[#allocation8 + $0x3628] sm:$0xff]  ;;  %v18439_v38 = vcombine.low %v12337_v53, %v12341_v52 }
 0x7ac   :  { %15456 = vmatpush1.bf16.msra.mxu1 %v18351_v54  ;;  %15293 = vmatprep.subr.bf16.mxu0 %v18358_v62  ;;  %v12304_v54 = vld [vmem:[#allocation8 + $0x34c0] sm:$0xff] }
 0x7ad   :  { %15457 = vmatprep.subr.bf16.mxu1 %v18360_v63  ;;  %v12308_v62 = vld [vmem:[#allocation8 + $0x34e0] sm:$0xff]  ;;  %v12309_v63 = vld [vmem:[#allocation8 + $0x34e8] sm:$0xff] }
 0x7ae   :  { %v18406_v25 = vcombine.high %v12304_v54, %v12308_v62  ;;  %v18408_v3 = vcombine.high %v12305_v58, %v12309_v63  ;;  %v18405_v41 = vcombine.low %v12304_v54, %v12308_v62  ;;  %v12357_v54 = vld [vmem:[#allocation8 + $0x3668] sm:$0xff] }
 0x7af   :  { %15294 = vmatpush1.bf16.msra.mxu0 %v18357_v13  ;;  %v12316_v13 = vld [vmem:[#allocation8 + $0x3520] sm:$0xff] }
 0x7b0   :  { %15458 = vmatpush1.bf16.msra.mxu1 %v18359_v26  ;;  %15295 = vmatprep.subr.bf16.mxu0 %v18366_v30  ;;  %v12313_v26 = vld [vmem:[#allocation8 + $0x3508] sm:$0xff]  ;;  %v18414_v40 = vcombine.high %v12312_v44, %v12316_v13 }
 0x7b1   :  { %15459 = vmatprep.subr.bf16.mxu1 %v18368_v10  ;;  %v12317_v30 = vld [vmem:[#allocation8 + $0x3528] sm:$0xff]  ;;  %v18407_v10 = vcombine.low %v12305_v58, %v12309_v63  ;;  %v18447_v58 = vcombine.low %v12345_v24, %v12349_v28 }
 0x7b2   :  { %v18416_v60 = vcombine.high %v12313_v26, %v12317_v30 }
 0x7b3   :  { %15296 = vmatpush1.bf16.msra.mxu0 %v18365_v23  ;;  %v12325_v23 = vld [vmem:[#allocation8 + $0x3568] sm:$0xff] }
 0x7b4   :  { %15460 = vmatpush1.bf16.msra.mxu1 %v18367_v48  ;;  %15297 = vmatprep.subr.bf16.mxu0 %v18374_v43  ;;  %v18413_v48 = vcombine.low %v12312_v44, %v12316_v13  ;;  %v18415_v43 = vcombine.low %v12313_v26, %v12317_v30  ;;  %v12365_v44 = vld [vmem:[#allocation8 + $0x36a8] sm:$0xff] }
 0x7b5   :  { %15461 = vmatprep.subr.bf16.mxu1 %v18376_v36  ;;  %v18424_v36 = vcombine.high %v12321_v6, %v12325_v23 }
 0x7b7   :  { %15298 = vmatpush1.bf16.msra.mxu0 %v18373_v46  ;;  %v18423_v46 = vcombine.low %v12321_v6, %v12325_v23 }
 0x7b8   :  { %15462 = vmatpush1.bf16.msra.mxu1 %v18375_v14  ;;  %15308 = vmatprep.subr.bf16.mxu0 %v18382_v47  ;;  %v18430_v14 = vcombine.high %v12328_v33, %v12332_v0  ;;  %v18432_v47 = vcombine.high %v12329_v37, %v12333_v45  ;;  %v12381_v33 = vld [vmem:[#allocation8 + $0x3728] sm:$0xff] }
 0x7b9   :  { %15472 = vmatprep.subr.bf16.mxu1 %v18384_v16  ;;  %v12340_v16 = vld [vmem:[#allocation8 + $0x35e0] sm:$0xff] }
 0x7ba   :  { %15300 = vmatmul.mubr.bf16.vlgmr.msra.gmra.mrb[32].mxu0 %v19867_v22  ;;  %v18438_v56 = vcombine.high %v12336_v49, %v12340_v16 }
 0x7bb   :  { %15464 = vmatmul.mubr.bf16.vlgmr.msra.gmra.mrb[32].mxu1 %v19867_v22  ;;  %15309 = vmatpush1.bf16.msra.mxu0 %v18381_v18  ;;  %v18431_v18 = vcombine.low %v12329_v37, %v12333_v45 }
 0x7bc   :  { %15340 = vmatprep.mubr.bf16.mxu0 %v19869_v59  ;;  %15473 = vmatpush1.bf16.msra.mxu1 %v18383_v7  ;;  %v12344_v7 = vld [vmem:[#allocation8 + $0x3600] sm:$0xff] }
 0x7bd   :  { %15504 = vmatprep.mubr.bf16.mxu1 %v19869_v59  ;;  %15310 = vmatprep.subr.bf16.mxu0 %v18390_v29  ;;  %v12348_v29 = vld [vmem:[#allocation8 + $0x3620] sm:$0xff] }
 0x7be   :  { %15474 = vmatprep.subr.bf16.mxu1 %v18392_v9  ;;  %v18437_v9 = vcombine.low %v12336_v49, %v12340_v16  ;;  %v18446_v32 = vcombine.high %v12344_v7, %v12348_v29  ;;  %v18445_v62 = vcombine.low %v12344_v7, %v12348_v29  ;;  %v12389_v49 = vld [vmem:[#allocation8 + $0x3768] sm:$0xff] }
 0x7bf   :  { %15311 = vmatpush1.bf16.msra.mxu0 %v18389_v35  ;;  %v18448_v35 = vcombine.high %v12345_v24, %v12349_v28  ;;  %v12393_v7 = vld [vmem:[#allocation8 + $0x3788] sm:$0xff] }
 0x7c0   :  { %15475 = vmatpush1.bf16.msra.mxu1 %v18391_v51  ;;  %15312 = vmatprep.subr.bf16.mxu0 %v18398_v4  ;;  %v12352_v51 = vld [vmem:[#allocation8 + $0x3640] sm:$0xff]  ;;  %v12397_v29 = vld [vmem:[#allocation8 + $0x37a8] sm:$0xff] }
 0x7c1   :  { %15476 = vmatprep.subr.bf16.mxu1 %v18400_v61  ;;  %v12356_v4 = vld [vmem:[#allocation8 + $0x3660] sm:$0xff]  ;;  %v12353_v61 = vld [vmem:[#allocation8 + $0x3648] sm:$0xff] }
 0x7c2   :  { %v18454_v63 = vcombine.high %v12352_v51, %v12356_v4  ;;  %v18453_v13 = vcombine.low %v12352_v51, %v12356_v4  ;;  %v18455_v26 = vcombine.low %v12353_v61, %v12357_v54  ;;  %v12404_v51 = vld [vmem:[#allocation8 + $0x37e0] sm:$0xff]  ;;  %v12401_v4 = vld [vmem:[#allocation8 + $0x37c8] sm:$0xff] }
 0x7c3   :  { %15313 = vmatpush1.bf16.msra.mxu0 %v18397_v1  ;;  %v18456_v1 = vcombine.high %v12353_v61, %v12357_v54  ;;  %v18495_v54 = vcombine.low %v12393_v7, %v12397_v29 }
 0x7c4   :  { %15477 = vmatpush1.bf16.msra.mxu1 %v18399_v12  ;;  %15314 = vmatprep.subr.bf16.mxu0 %v18406_v25  ;;  %v12360_v12 = vld [vmem:[#allocation8 + $0x3680] sm:$0xff] }
 0x7c5   :  { %15478 = vmatprep.subr.bf16.mxu1 %v18408_v3  ;;  %v12364_v25 = vld [vmem:[#allocation8 + $0x36a0] sm:$0xff]  ;;  %v12361_v3 = vld [vmem:[#allocation8 + $0x3688] sm:$0xff] }
 0x7c6   :  { %v18462_v30 = vcombine.high %v12360_v12, %v12364_v25  ;;  %v18461_v8 = vcombine.low %v12360_v12, %v12364_v25  ;;  %v18463_v6 = vcombine.low %v12361_v3, %v12365_v44  ;;  %v12412_v12 = vld [vmem:[#allocation8 + $0x3820] sm:$0xff]  ;;  %v12409_v25 = vld [vmem:[#allocation8 + $0x3808] sm:$0xff] }
 0x7c7   :  { %15315 = vmatpush1.bf16.msra.mxu0 %v18405_v41  ;;  %v18464_v41 = vcombine.high %v12361_v3, %v12365_v44 }
 0x7c8   :  { %15479 = vmatpush1.bf16.msra.mxu1 %v18407_v10  ;;  %15316 = vmatprep.subr.bf16.mxu0 %v18414_v40  ;;  %v12368_v10 = vld [vmem:[#allocation8 + $0x36c0] sm:$0xff] }
 0x7c9   :  { %15480 = vmatprep.subr.bf16.mxu1 %v18416_v60  ;;  %v12372_v40 = vld [vmem:[#allocation8 + $0x36e0] sm:$0xff]  ;;  %v12369_v60 = vld [vmem:[#allocation8 + $0x36c8] sm:$0xff] }
 0x7ca   :  { %v18470_v23 = vcombine.high %v12368_v10, %v12372_v40  ;;  %v18469_v0 = vcombine.low %v12368_v10, %v12372_v40  ;;  %v18471_v37 = vcombine.low %v12369_v60, %v12373_v5  ;;  %v12420_v10 = vld [vmem:[#allocation8 + $0x3860] sm:$0xff]  ;;  %v12417_v40 = vld [vmem:[#allocation8 + $0x3848] sm:$0xff] }
 0x7cb   :  { %15317 = vmatpush1.bf16.msra.mxu0 %v18413_v48  ;;  %v18472_v48 = vcombine.high %v12369_v60, %v12373_v5  ;;  %v12421_v60 = vld [vmem:[#allocation8 + $0x3868] sm:$0xff] }
 0x7cc   :  { %15481 = vmatpush1.bf16.msra.mxu1 %v18415_v43  ;;  %15318 = vmatprep.subr.bf16.mxu0 %v18422_v57  ;;  %v12376_v43 = vld [vmem:[#allocation8 + $0x3700] sm:$0xff] }
 0x7cd   :  { %15482 = vmatprep.subr.bf16.mxu1 %v18424_v36  ;;  %v12380_v57 = vld [vmem:[#allocation8 + $0x3720] sm:$0xff]  ;;  %v12377_v36 = vld [vmem:[#allocation8 + $0x3708] sm:$0xff] }
 0x7ce   :  { %v18478_v45 = vcombine.high %v12376_v43, %v12380_v57  ;;  %v18477_v16 = vcombine.low %v12376_v43, %v12380_v57  ;;  %v18479_v53 = vcombine.low %v12377_v36, %v12381_v33  ;;  %v12424_v43 = vld [vmem:[#allocation8 + $0x3880] sm:$0xff] }
 0x7cf   :  { %15319 = vmatpush1.bf16.msra.mxu0 %v18421_v50  ;;  %v18480_v50 = vcombine.high %v12377_v36, %v12381_v33  ;;  %v12428_v57 = vld [vmem:[#allocation8 + $0x38a0] sm:$0xff]  ;;  %v12425_v36 = vld [vmem:[#allocation8 + $0x3888] sm:$0xff] }
 0x7d0   :  { %15483 = vmatpush1.bf16.msra.mxu1 %v18423_v46  ;;  %15320 = vmatprep.subr.bf16.mxu0 %v18430_v14  ;;  %v12384_v46 = vld [vmem:[#allocation8 + $0x3740] sm:$0xff]  ;;  %v12429_v33 = vld [vmem:[#allocation8 + $0x38a8] sm:$0xff] }
 0x7d1   :  { %15484 = vmatprep.subr.bf16.mxu1 %v18432_v47  ;;  %v12388_v14 = vld [vmem:[#allocation8 + $0x3760] sm:$0xff]  ;;  %v12385_v47 = vld [vmem:[#allocation8 + $0x3748] sm:$0xff] }
 0x7d2   :  { %v18486_v52 = vcombine.high %v12384_v46, %v12388_v14  ;;  %v18485_v24 = vcombine.low %v12384_v46, %v12388_v14  ;;  %v18487_v28 = vcombine.low %v12385_v47, %v12389_v49  ;;  %v12432_v46 = vld [vmem:[#allocation8 + $0x38c0] sm:$0xff] }
 0x7d3   :  { %15321 = vmatpush1.bf16.msra.mxu0 %v18429_v39  ;;  %v8874_v39 = vrot.slane %v19850_v42, %v19610_v27  ;;  %v12405_v42 = vld [vmem:[#allocation8 + $0x37e8] sm:$0xff]  ;;  %v12436_v14 = vld [vmem:[#allocation8 + $0x38e0] sm:$0xff] }
 0x7d4   :  { %15485 = vmatpush1.bf16.msra.mxu1 %v18431_v18  ;;  %15322 = vmatprep.subr.bf16.mxu0 %v18438_v56  ;;  %v18488_v18 = vcombine.high %v12385_v47, %v12389_v49  ;;  %v12392_v56 = vld [vmem:[#allocation8 + $0x3780] sm:$0xff]  ;;  %v18503_v44 = vcombine.low %v12401_v4, %v12405_v42  ;;  %v12433_v47 = vld [vmem:[#allocation8 + $0x38c8] sm:$0xff] }
 0x7d5   :  { %15486 = vmatprep.subr.bf16.mxu1 %v18440_v55  ;;  %v12396_v55 = vld [vmem:[#allocation8 + $0x37a0] sm:$0xff]  ;;  %v12437_v49 = vld [vmem:[#allocation8 + $0x38e8] sm:$0xff] }
 0x7d6   :  { %v18493_v61 = vcombine.low %v12392_v56, %v12396_v55 }
 0x7d7   :  { %15323 = vmatpush1.bf16.msra.mxu0 %v18437_v9  ;;  %v18494_v9 = vcombine.high %v12392_v56, %v12396_v55  ;;  %v12444_v56 = vld [vmem:[#allocation8 + $0x3920] sm:$0xff]  ;;  %v12441_v55 = vld [vmem:[#allocation8 + $0x3908] sm:$0xff] }
 0x7d8   :  { %15487 = vmatpush1.bf16.msra.mxu1 %v18439_v38  ;;  %15324 = vmatprep.subr.bf16.mxu0 %v18446_v32  ;;  %v18936_v38 = vadd.f32 %v19844_v34, %v8874_v39  ;;  %v18496_v32 = vcombine.high %v12393_v7, %v12397_v29  ;;  %v12413_v34 = vld [vmem:[#allocation8 + $0x3828] sm:$0xff]  ;;  %v18536_v39 = vcombine.high %v12433_v47, %v12437_v49 }
 0x7d9   :  { %15488 = vmatprep.subr.bf16.mxu1 %v18448_v35  ;;  %v12400_v35 = vld [vmem:[#allocation8 + $0x37c0] sm:$0xff]  ;;  %v12445_v7 = vld [vmem:[#allocation8 + $0x3928] sm:$0xff]  ;;  %v18533_v29 = vcombine.low %v12432_v46, %v12436_v14 }
 0x7da   :  { %vm12121_vm11 = vcmp.gt.f32.partialorder %v18936_v38, 0.0  ;;  %v18501_v3 = vcombine.low %v12400_v35, %v12404_v51 }
 0x7db   :  { %15325 = vmatpush1.bf16.msra.mxu0 %v18445_v62  ;;  %v18502_v62 = vcombine.high %v12400_v35, %v12404_v51  ;;  %v12449_v35 = vld [vmem:[#allocation8 + $0x3948] sm:$0xff] }
 0x7dc   :  { %15489 = vmatpush1.bf16.msra.mxu1 %v18447_v58  ;;  %15326 = vmatprep.subr.bf16.mxu0 %v18454_v63  ;;  %v12129_v58 = vmul.f32 0.2, %v18936_v38  ;;  %v18504_v63 = vcombine.high %v12401_v4, %v12405_v42  ;;  %v12453_v51 = vld [vmem:[#allocation8 + $0x3968] sm:$0xff]  ;;  %v18543_v42 = vcombine.low %v12441_v55, %v12445_v7 }
 0x7dd   :  { %15490 = vmatprep.subr.bf16.mxu1 %v18456_v1  ;;  %v12408_v1 = vld [vmem:[#allocation8 + $0x3800] sm:$0xff] }
 0x7de   :  { %v18509_v5 = vcombine.low %v12408_v1, %v12412_v12 }
 0x7df   :  { %15327 = vmatpush1.bf16.msra.mxu0 %v18453_v13  ;;  %v18510_v13 = vcombine.high %v12408_v1, %v12412_v12  ;;  %v12461_v1 = vld [vmem:[#allocation8 + $0x39a8] sm:$0xff] }
 0x7e0   :  { %15491 = vmatpush1.bf16.msra.mxu1 %v18455_v26  ;;  %15328 = vmatprep.subr.bf16.mxu0 %v18462_v30  ;;  %v12137_v26 = vsel %vm12121_vm11, %v18936_v38, %v12129_v58  ;;  %v18512_v30 = vcombine.high %v12409_v25, %v12413_v34  ;;  %v12448_v38 = vld [vmem:[#allocation8 + $0x3940] sm:$0xff] }
 0x7e1   :  { %15492 = vmatprep.subr.bf16.mxu1 %v18464_v41  ;;  %v12416_v41 = vld [vmem:[#allocation8 + $0x3840] sm:$0xff] }
 0x7e2   :  { %v12460_v58 = vld [vmem:[#allocation8 + $0x39a0] sm:$0xff] }
 0x7e3   :  { %15329 = vmatpush1.bf16.msra.mxu0 %v18461_v8  ;;  %v19878_v8 = vpack.c.bf16 %v12137_v26, %v12137_v26  ;;  %v12465_v26 = vld [vmem:[#allocation8 + $0x39c8] sm:$0xff] }
 0x7e4   :  { %15493 = vmatpush1.bf16.msra.mxu1 %v18463_v6  ;;  %15330 = vmatprep.subr.bf16.mxu0 %v18470_v23  ;;  %v18511_v6 = vcombine.low %v12409_v25, %v12413_v34  ;;  %v18518_v23 = vcombine.high %v12416_v41, %v12420_v10  ;;  %v18551_v25 = vcombine.low %v12449_v35, %v12453_v51 }
 0x7e5   :  { %15494 = vmatprep.subr.bf16.mxu1 %v18472_v48  ;;  %v18520_v48 = vcombine.high %v12417_v40, %v12421_v60 }
 0x7e7   :  { %15331 = vmatpush1.bf16.msra.mxu0 %v18469_v0  ;;  %v18517_v0 = vcombine.low %v12416_v41, %v12420_v10 }
 0x7e8   :  { %15495 = vmatpush1.bf16.msra.mxu1 %v18471_v37  ;;  %15332 = vmatprep.subr.bf16.mxu0 %v18478_v45  ;;  %v18519_v37 = vcombine.low %v12417_v40, %v12421_v60  ;;  %v18526_v45 = vcombine.high %v12424_v43, %v12428_v57 }
 0x7e9   :  { %15496 = vmatprep.subr.bf16.mxu1 %v18480_v50  ;;  %v18528_v50 = vcombine.high %v12425_v36, %v12429_v33 }
 0x7eb   :  { %15333 = vmatpush1.bf16.msra.mxu0 %v18477_v16  ;;  %v18525_v16 = vcombine.low %v12424_v43, %v12428_v57 }
 0x7ec   :  { %15497 = vmatpush1.bf16.msra.mxu1 %v18479_v53  ;;  %15334 = vmatprep.subr.bf16.mxu0 %v18486_v52  ;;  %v18527_v53 = vcombine.low %v12425_v36, %v12429_v33  ;;  %v18534_v52 = vcombine.high %v12432_v46, %v12436_v14 }
 0x7ed   :  { %15498 = vmatprep.subr.bf16.mxu1 %v18488_v18  ;;  %v12440_v18 = vld [vmem:[#allocation8 + $0x3900] sm:$0xff] }
 0x7ee   :  { %v18541_v4 = vcombine.low %v12440_v18, %v12444_v56 }
 0x7ef   :  { %15335 = vmatpush1.bf16.msra.mxu0 %v18485_v24  ;;  %v18535_v24 = vcombine.low %v12433_v47, %v12437_v49 }
 0x7f0   :  { %15499 = vmatpush1.bf16.msra.mxu1 %v18487_v28  ;;  %15336 = vmatprep.subr.bf16.mxu0 %v18494_v9  ;;  %v18542_v28 = vcombine.high %v12440_v18, %v12444_v56  ;;  %v18544_v9 = vcombine.high %v12441_v55, %v12445_v7 }
 0x7f1   :  { %15500 = vmatprep.subr.bf16.mxu1 %v18496_v32  ;;  %v12452_v32 = vld [vmem:[#allocation8 + $0x3960] sm:$0xff] }
 0x7f2   :  { %v18549_v12 = vcombine.low %v12448_v38, %v12452_v32 }
 0x7f3   :  { %15337 = vmatpush1.bf16.msra.mxu0 %v18493_v61  ;;  %v18550_v61 = vcombine.high %v12448_v38, %v12452_v32 }
 0x7f4   :  { %15501 = vmatpush1.bf16.msra.mxu1 %v18495_v54  ;;  %15338 = vmatprep.subr.bf16.mxu0 %v18502_v62  ;;  %v18552_v54 = vcombine.high %v12449_v35, %v12453_v51  ;;  %v12456_v62 = vld [vmem:[#allocation8 + $0x3980] sm:$0xff] }
 0x7f5   :  { %15502 = vmatprep.subr.bf16.mxu1 %v18504_v63  ;;  %v12457_v63 = vld [vmem:[#allocation8 + $0x3988] sm:$0xff]  ;;  %v18558_v34 = vcombine.high %v12456_v62, %v12460_v58  ;;  %v18557_v41 = vcombine.low %v12456_v62, %v12460_v58 }
 0x7f6   :  { %v18559_v10 = vcombine.low %v12457_v63, %v12461_v1 }
 0x7f7   :  { %15339 = vmatpush1.bf16.msra.mxu0 %v18501_v3  ;;  %v18560_v3 = vcombine.high %v12457_v63, %v12461_v1 }
 0x7f8   :  { %15503 = vmatpush1.bf16.msra.mxu1 %v18503_v44  ;;  %15349 = vmatprep.subr.bf16.mxu0 %v18510_v13  ;;  %v12464_v44 = vld [vmem:[#allocation8 + $0x39c0] sm:$0xff] }
 0x7f9   :  { %15513 = vmatprep.subr.bf16.mxu1 %v18512_v30  ;;  %v12468_v13 = vld [vmem:[#allocation8 + $0x39e0] sm:$0xff]  ;;  %v12469_v30 = vld [vmem:[#allocation8 + $0x39e8] sm:$0xff] }
 0x7fa   :  { %15341 = vmatmul.mubr.bf16.vlgmr.msra.gmra.mrb[32].mxu0 %v19878_v8  ;;  %v18566_v40 = vcombine.high %v12464_v44, %v12468_v13  ;;  %v18568_v60 = vcombine.high %v12465_v26, %v12469_v30  ;;  %v18565_v43 = vcombine.low %v12464_v44, %v12468_v13  ;;  %v18567_v57 = vcombine.low %v12465_v26, %v12469_v30 }
 0x7fb   :  { %15505 = vmatmul.mubr.bf16.vlgmr.msra.gmra.mrb[32].mxu1 %v19878_v8  ;;  %15350 = vmatpush1.bf16.msra.mxu0 %v18509_v5  ;;  %v12472_v5 = vld [vmem:[#allocation8 + $0x3a00] sm:$0xff] }
 0x7fc   :  { %15514 = vmatpush1.bf16.msra.mxu1 %v18511_v6  ;;  %15351 = vmatprep.subr.bf16.mxu0 %v18518_v23  ;;  %v12476_v6 = vld [vmem:[#allocation8 + $0x3a20] sm:$0xff]  ;;  %v12473_v23 = vld [vmem:[#allocation8 + $0x3a08] sm:$0xff] }
 0x7fd   :  { %15515 = vmatprep.subr.bf16.mxu1 %v18520_v48  ;;  %v12477_v48 = vld [vmem:[#allocation8 + $0x3a28] sm:$0xff]  ;;  %v18574_v36 = vcombine.high %v12472_v5, %v12476_v6  ;;  %v18573_v46 = vcombine.low %v12472_v5, %v12476_v6 }
 0x7fe   :  { %v18576_v33 = vcombine.high %v12473_v23, %v12477_v48  ;;  %v18575_v14 = vcombine.low %v12473_v23, %v12477_v48 }
 0x7ff   :  { %15352 = vmatpush1.bf16.msra.mxu0 %v18517_v0  ;;  %v12480_v0 = vld [vmem:[#allocation8 + $0x3a40] sm:$0xff] }
 0x800   :  { %15516 = vmatpush1.bf16.msra.mxu1 %v18519_v37  ;;  %15353 = vmatprep.subr.bf16.mxu0 %v18526_v45  ;;  %v12484_v37 = vld [vmem:[#allocation8 + $0x3a60] sm:$0xff]  ;;  %v12481_v45 = vld [vmem:[#allocation8 + $0x3a48] sm:$0xff] }
 0x801   :  { %15517 = vmatprep.subr.bf16.mxu1 %v18528_v50  ;;  %v12485_v50 = vld [vmem:[#allocation8 + $0x3a68] sm:$0xff]  ;;  %v18582_v47 = vcombine.high %v12480_v0, %v12484_v37  ;;  %v18581_v18 = vcombine.low %v12480_v0, %v12484_v37 }
 0x802   :  { %v18584_v49 = vcombine.high %v12481_v45, %v12485_v50  ;;  %v18583_v56 = vcombine.low %v12481_v45, %v12485_v50 }
 0x803   :  { %15354 = vmatpush1.bf16.msra.mxu0 %v18525_v16  ;;  %v12488_v16 = vld [vmem:[#allocation8 + $0x3a80] sm:$0xff] }
 0x804   :  { %15518 = vmatpush1.bf16.msra.mxu1 %v18527_v53  ;;  %15355 = vmatprep.subr.bf16.mxu0 %v18534_v52  ;;  %v12492_v53 = vld [vmem:[#allocation8 + $0x3aa0] sm:$0xff]  ;;  %v12489_v52 = vld [vmem:[#allocation8 + $0x3a88] sm:$0xff] }
 0x805   :  { %15519 = vmatprep.subr.bf16.mxu1 %v18536_v39  ;;  %v12493_v39 = vld [vmem:[#allocation8 + $0x3aa8] sm:$0xff]  ;;  %v18590_v55 = vcombine.high %v12488_v16, %v12492_v53  ;;  %v18589_v38 = vcombine.low %v12488_v16, %v12492_v53 }
 0x806   :  { %v18592_v7 = vcombine.high %v12489_v52, %v12493_v39  ;;  %v18591_v32 = vcombine.low %v12489_v52, %v12493_v39 }
 0x807   :  { %15356 = vmatpush1.bf16.msra.mxu0 %v18533_v29  ;;  %v12496_v29 = vld [vmem:[#allocation8 + $0x3ac0] sm:$0xff] }
 0x808   :  { %15520 = vmatpush1.bf16.msra.mxu1 %v18535_v24  ;;  %15357 = vmatprep.subr.bf16.mxu0 %v18542_v28  ;;  %v12500_v24 = vld [vmem:[#allocation8 + $0x3ae0] sm:$0xff]  ;;  %v12497_v28 = vld [vmem:[#allocation8 + $0x3ac8] sm:$0xff] }
 0x809   :  { %15521 = vmatprep.subr.bf16.mxu1 %v18544_v9  ;;  %v12501_v9 = vld [vmem:[#allocation8 + $0x3ae8] sm:$0xff]  ;;  %v18598_v35 = vcombine.high %v12496_v29, %v12500_v24  ;;  %v18597_v62 = vcombine.low %v12496_v29, %v12500_v24 }
 0x80a   :  { %v18600_v51 = vcombine.high %v12497_v28, %v12501_v9  ;;  %v18599_v58 = vcombine.low %v12497_v28, %v12501_v9 }
 0x80b   :  { %15358 = vmatpush1.bf16.msra.mxu0 %v18541_v4  ;;  %v12504_v4 = vld [vmem:[#allocation8 + $0x3b00] sm:$0xff] }
 0x80c   :  { %15522 = vmatpush1.bf16.msra.mxu1 %v18543_v42  ;;  %15359 = vmatprep.subr.bf16.mxu0 %v18550_v61  ;;  %v12508_v42 = vld [vmem:[#allocation8 + $0x3b20] sm:$0xff]  ;;  %v12505_v61 = vld [vmem:[#allocation8 + $0x3b08] sm:$0xff] }
 0x80d   :  { %15523 = vmatprep.subr.bf16.mxu1 %v18552_v54  ;;  %v12509_v54 = vld [vmem:[#allocation8 + $0x3b28] sm:$0xff]  ;;  %v18606_v63 = vcombine.high %v12504_v4, %v12508_v42  ;;  %v18605_v44 = vcombine.low %v12504_v4, %v12508_v42 }
 0x80e   :  { %v18608_v1 = vcombine.high %v12505_v61, %v12509_v54  ;;  %v18607_v13 = vcombine.low %v12505_v61, %v12509_v54 }
 0x80f   :  { %15360 = vmatpush1.bf16.msra.mxu0 %v18549_v12  ;;  %v12512_v12 = vld [vmem:[#allocation8 + $0x3b40] sm:$0xff] }
 0x810   :  { %15524 = vmatpush1.bf16.msra.mxu1 %v18551_v25  ;;  %15361 = vmatprep.subr.bf16.mxu0 %v18558_v34  ;;  %v12516_v25 = vld [vmem:[#allocation8 + $0x3b60] sm:$0xff]  ;;  %v12513_v34 = vld [vmem:[#allocation8 + $0x3b48] sm:$0xff] }
 0x811   :  { %15525 = vmatprep.subr.bf16.mxu1 %v18560_v3  ;;  %v12517_v3 = vld [vmem:[#allocation8 + $0x3b68] sm:$0xff]  ;;  %v18614_v26 = vcombine.high %v12512_v12, %v12516_v25  ;;  %v18613_v5 = vcombine.low %v12512_v12, %v12516_v25  ;;  %v12548_v25 = vld [vmem:[#allocation8 + $0x3c60] sm:$0xff] }
 0x812   :  { %v18616_v30 = vcombine.high %v12513_v34, %v12517_v3  ;;  %v18615_v6 = vcombine.low %v12513_v34, %v12517_v3  ;;  %v12545_v34 = vld [vmem:[#allocation8 + $0x3c48] sm:$0xff] }
 0x813   :  { %15362 = vmatpush1.bf16.msra.mxu0 %v18557_v41  ;;  %v12520_v41 = vld [vmem:[#allocation8 + $0x3b80] sm:$0xff]  ;;  %v12549_v3 = vld [vmem:[#allocation8 + $0x3c68] sm:$0xff] }
 0x814   :  { %15526 = vmatpush1.bf16.msra.mxu1 %v18559_v10  ;;  %15363 = vmatprep.subr.bf16.mxu0 %v18566_v40  ;;  %v12524_v10 = vld [vmem:[#allocation8 + $0x3ba0] sm:$0xff]  ;;  %v12521_v40 = vld [vmem:[#allocation8 + $0x3b88] sm:$0xff] }
 0x815   :  { %15527 = vmatprep.subr.bf16.mxu1 %v18568_v60  ;;  %v12525_v60 = vld [vmem:[#allocation8 + $0x3ba8] sm:$0xff]  ;;  %v18622_v23 = vcombine.high %v12520_v41, %v12524_v10  ;;  %v18621_v0 = vcombine.low %v12520_v41, %v12524_v10  ;;  %v12552_v10 = vld [vmem:[#allocation8 + $0x3c80] sm:$0xff] }
 0x816   :  { %v18624_v48 = vcombine.high %v12521_v40, %v12525_v60  ;;  %v18623_v37 = vcombine.low %v12521_v40, %v12525_v60  ;;  %v18648_v60 = vcombine.high %v12545_v34, %v12549_v3 }
 0x817   :  { %15364 = vmatpush1.bf16.msra.mxu0 %v18565_v43  ;;  %v12528_v43 = vld [vmem:[#allocation8 + $0x3bc0] sm:$0xff] }
 0x818   :  { %15528 = vmatpush1.bf16.msra.mxu1 %v18567_v57  ;;  %15365 = vmatprep.subr.bf16.mxu0 %v18574_v36  ;;  %v12532_v57 = vld [vmem:[#allocation8 + $0x3be0] sm:$0xff]  ;;  %v12529_v36 = vld [vmem:[#allocation8 + $0x3bc8] sm:$0xff] }
 0x819   :  { %15529 = vmatprep.subr.bf16.mxu1 %v18576_v33  ;;  %v12533_v33 = vld [vmem:[#allocation8 + $0x3be8] sm:$0xff]  ;;  %v18630_v45 = vcombine.high %v12528_v43, %v12532_v57  ;;  %v18629_v16 = vcombine.low %v12528_v43, %v12532_v57  ;;  %v18647_v57 = vcombine.low %v12545_v34, %v12549_v3  ;;  %v12592_v34 = vld [vmem:[#allocation8 + $0x3dc0] sm:$0xff] }
 0x81a   :  { %v18632_v50 = vcombine.high %v12529_v36, %v12533_v33  ;;  %v18631_v53 = vcombine.low %v12529_v36, %v12533_v33  ;;  %v12596_v3 = vld [vmem:[#allocation8 + $0x3de0] sm:$0xff] }
 0x81b   :  { %15366 = vmatpush1.bf16.msra.mxu0 %v18573_v46  ;;  %v12536_v46 = vld [vmem:[#allocation8 + $0x3c00] sm:$0xff] }
 0x81c   :  { %15530 = vmatpush1.bf16.msra.mxu1 %v18575_v14  ;;  %15367 = vmatprep.subr.bf16.mxu0 %v18582_v47  ;;  %v12540_v14 = vld [vmem:[#allocation8 + $0x3c20] sm:$0xff]  ;;  %v12537_v47 = vld [vmem:[#allocation8 + $0x3c08] sm:$0xff] }
 0x81d   :  { %15531 = vmatprep.subr.bf16.mxu1 %v18584_v49  ;;  %v12541_v49 = vld [vmem:[#allocation8 + $0x3c28] sm:$0xff]  ;;  %v18638_v52 = vcombine.high %v12536_v46, %v12540_v14 }
 0x81e   :  { %v18640_v39 = vcombine.high %v12537_v47, %v12541_v49 }
 0x81f   :  { %15368 = vmatpush1.bf16.msra.mxu0 %v18581_v18  ;;  %v19882_v18 = vld [vmem:[#allocation10 + $0x10] sm:$0xff] }
 0x820   :  { %15532 = vmatpush1.bf16.msra.mxu1 %v18583_v56  ;;  %15369 = vmatprep.subr.bf16.mxu0 %v18590_v55  ;;  %v8882_v56 = vrot.slane %v19882_v18, %v19634_v11  ;;  %v8886_v55 = vrot.slane %v19882_v18, %v19613_v31 }
 0x821   :  { %15533 = vmatprep.subr.bf16.mxu1 %v18592_v7  ;;  %v8894_v7 = vrot.slane %v19882_v18, %v19637_v19 }
 0x823   :  { %15370 = vmatpush1.bf16.msra.mxu0 %v18589_v38 }
 0x824   :  { %15534 = vmatpush1.bf16.msra.mxu1 %v18591_v32  ;;  %15371 = vmatprep.subr.bf16.mxu0 %v18598_v35 }
 0x825   :  { %15535 = vmatprep.subr.bf16.mxu1 %v18600_v51 }
 0x827   :  { %15372 = vmatpush1.bf16.msra.mxu0 %v18597_v62 }
 0x828   :  { %15536 = vmatpush1.bf16.msra.mxu1 %v18599_v58  ;;  %15373 = vmatprep.subr.bf16.mxu0 %v18606_v63 }
 0x829   :  { %15537 = vmatprep.subr.bf16.mxu1 %v18608_v1  ;;  %v12544_v1 = vld [vmem:[#allocation8 + $0x3c40] sm:$0xff] }
 0x82a   :  { %v18646_v40 = vcombine.high %v12544_v1, %v12548_v25  ;;  %v18645_v43 = vcombine.low %v12544_v1, %v12548_v25 }
 0x82b   :  { %15374 = vmatpush1.bf16.msra.mxu0 %v18605_v44 }
 0x82c   :  { %15538 = vmatpush1.bf16.msra.mxu1 %v18607_v13  ;;  %15375 = vmatprep.subr.bf16.mxu0 %v18614_v26  ;;  %v18637_v26 = vcombine.low %v12536_v46, %v12540_v14 }
 0x82d   :  { %15539 = vmatprep.subr.bf16.mxu1 %v18616_v30  ;;  %v18639_v30 = vcombine.low %v12537_v47, %v12541_v49 }
 0x82f   :  { %15376 = vmatpush1.bf16.msra.mxu0 %v18613_v5  ;;  %v12556_v5 = vld [vmem:[#allocation8 + $0x3ca0] sm:$0xff] }
 0x830   :  { %15540 = vmatpush1.bf16.msra.mxu1 %v18615_v6  ;;  %15377 = vmatprep.subr.bf16.mxu0 %v18622_v23  ;;  %v12553_v6 = vld [vmem:[#allocation8 + $0x3c88] sm:$0xff]  ;;  %v18654_v36 = vcombine.high %v12552_v10, %v12556_v5  ;;  %v18653_v46 = vcombine.low %v12552_v10, %v12556_v5  ;;  %v12600_v5 = vld [vmem:[#allocation8 + $0x3e00] sm:$0xff] }
 0x831   :  { %15541 = vmatprep.subr.bf16.mxu1 %v18624_v48  ;;  %v12557_v23 = vld [vmem:[#allocation8 + $0x3ca8] sm:$0xff] }
 0x832   :  { %v18656_v33 = vcombine.high %v12553_v6, %v12557_v23  ;;  %v18655_v14 = vcombine.low %v12553_v6, %v12557_v23  ;;  %v12604_v6 = vld [vmem:[#allocation8 + $0x3e20] sm:$0xff]  ;;  %v12601_v23 = vld [vmem:[#allocation8 + $0x3e08] sm:$0xff] }
 0x833   :  { %15378 = vmatpush1.bf16.msra.mxu0 %v18621_v0  ;;  %v12560_v0 = vld [vmem:[#allocation8 + $0x3cc0] sm:$0xff] }
 0x834   :  { %15542 = vmatpush1.bf16.msra.mxu1 %v18623_v37  ;;  %15379 = vmatprep.subr.bf16.mxu0 %v18630_v45  ;;  %v12564_v37 = vld [vmem:[#allocation8 + $0x3ce0] sm:$0xff]  ;;  %v12561_v45 = vld [vmem:[#allocation8 + $0x3cc8] sm:$0xff] }
 0x835   :  { %15543 = vmatprep.subr.bf16.mxu1 %v18632_v50  ;;  %v12565_v50 = vld [vmem:[#allocation8 + $0x3ce8] sm:$0xff]  ;;  %v18662_v47 = vcombine.high %v12560_v0, %v12564_v37 }
 0x836   :  { %v18664_v49 = vcombine.high %v12561_v45, %v12565_v50 }
 0x837   :  { %15380 = vmatpush1.bf16.msra.mxu0 %v18629_v16  ;;  %v12568_v16 = vld [vmem:[#allocation8 + $0x3d00] sm:$0xff] }
 0x838   :  { %15544 = vmatpush1.bf16.msra.mxu1 %v18631_v53  ;;  %15390 = vmatprep.subr.bf16.mxu0 %v18638_v52  ;;  %v12572_v53 = vld [vmem:[#allocation8 + $0x3d20] sm:$0xff]  ;;  %v12569_v52 = vld [vmem:[#allocation8 + $0x3d08] sm:$0xff] }
 0x839   :  { %15554 = vmatprep.subr.bf16.mxu1 %v18640_v39  ;;  %v12573_v39 = vld [vmem:[#allocation8 + $0x3d28] sm:$0xff] }
 0x84d   :  { %v11948_v29 = vpop.f32.mrb[28].mxu0 }
 0x84e   :  { %v18938_v24 = vadd.f32 %v11948_v29, %v8882_v56  ;;  %v19890_v28 = vpop.f32.mrb[28].mxu1  ;;  %v11950_v9 = vpop.f32.mrb[29].mxu0  ;;  %v18661_v56 = vcombine.low %v12560_v0, %v12564_v37  ;;  %v18672_v29 = vcombine.high %v12569_v52, %v12573_v39  ;;  %v12608_v37 = vld [vmem:[#allocation8 + $0x3e40] sm:$0xff] }
 0x84f   :  { %v18939_v38 = vadd.f32 %v11950_v9, %v8886_v55  ;;  %v12114_v32 = vpop.f32.mrb[29].mxu1  ;;  %v11952_v35 = vpop.f32.mrb[30].mxu0  ;;  %v18663_v55 = vcombine.low %v12561_v45, %v12565_v50  ;;  %v12580_v9 = vld [vmem:[#allocation8 + $0x3d60] sm:$0xff]  ;;  %v12609_v50 = vld [vmem:[#allocation8 + $0x3e48] sm:$0xff] }
 0x850   :  { %vm12123_vm12 = vcmp.gt.f32.partialorder %v18938_v24, 0.0  ;;  %v12131_v51 = vmul.f32 0.2, %v18938_v24  ;;  %v18941_v4 = vadd.f32 %v12114_v32, %v8894_v7  ;;  %v12116_v42 = vpop.f32.mrb[30].mxu1  ;;  %v11953_v61 = vpop.f32.mrb[31].mxu0  ;;  %v18670_v7 = vcombine.high %v12568_v16, %v12572_v53  ;;  %v12581_v32 = vld [vmem:[#allocation8 + $0x3d68] sm:$0xff] }
 0x851   :  { %vm12124_vm13 = vcmp.gt.f32.partialorder %v18939_v38, 0.0  ;;  %v12132_v54 = vmul.f32 0.2, %v18939_v38  ;;  %v12117_v63 = vpop.f32.mrb[31].mxu1  ;;  %v18669_v35 = vcombine.low %v12568_v16, %v12572_v53  ;;  %v12584_v61 = vld [vmem:[#allocation8 + $0x3d80] sm:$0xff] }
 0x852   :  { %v12139_v62 = vsel %vm12123_vm12, %v18938_v24, %v12131_v51  ;;  %vm12126_vm14 = vcmp.gt.f32.partialorder %v18941_v4, 0.0  ;;  %v12134_v58 = vmul.f32 0.2, %v18941_v4  ;;  %v12576_v24 = vld [vmem:[#allocation8 + $0x3d40] sm:$0xff]  ;;  %v18671_v51 = vcombine.low %v12569_v52, %v12573_v39  ;;  %v12617_v39 = vld [vmem:[#allocation8 + $0x3e88] sm:$0xff] }
 0x853   :  { %v12140_v12 = vsel %vm12124_vm13, %v18939_v38, %v12132_v54  ;;  %v19894_v41 = vpack.c.bf16 %v12139_v62, %v12139_v62  ;;  %v12577_v38 = vld [vmem:[#allocation8 + $0x3d48] sm:$0xff]  ;;  %v12588_v54 = vld [vmem:[#allocation8 + $0x3da0] sm:$0xff]  ;;  %v18677_v63 = vcombine.low %v12576_v24, %v12580_v9 }
 0x854   :  { %v19892_v44 = vpack.c.bf16 %v12140_v12, %v12140_v12  ;;  %v12142_v13 = vsel %vm12126_vm14, %v18941_v4, %v12134_v58  ;;  %v18678_v4 = vcombine.high %v12576_v24, %v12580_v9  ;;  %v18680_v42 = vcombine.high %v12577_v38, %v12581_v32  ;;  %v12585_v62 = vld [vmem:[#allocation8 + $0x3d88] sm:$0xff]  ;;  %v12612_v45 = vld [vmem:[#allocation8 + $0x3e60] sm:$0xff] }
 0x855   :  { %v19898_v48 = vpack.c.bf16 %v12142_v13, %v12142_v13  ;;  %v12589_v58 = vld [vmem:[#allocation8 + $0x3da8] sm:$0xff]  ;;  %v18679_v1 = vcombine.low %v12577_v38, %v12581_v32  ;;  %v18686_v12 = vcombine.high %v12584_v61, %v12588_v54  ;;  %v12616_v53 = vld [vmem:[#allocation8 + $0x3e80] sm:$0xff] }
 0x856   :  { %15381 = vmatprep.mubr.bf16.mxu0 %v19892_v44  ;;  %15545 = vmatprep.mubr.bf16.mxu1 %v19892_v44  ;;  %v18688_v25 = vcombine.high %v12585_v62, %v12589_v58  ;;  %v12593_v13 = vld [vmem:[#allocation8 + $0x3dc8] sm:$0xff]  ;;  %v18687_v10 = vcombine.low %v12585_v62, %v12589_v58  ;;  %v12620_v52 = vld [vmem:[#allocation8 + $0x3ea0] sm:$0xff] }
 0x857   :  { %15382 = vmatmul.mubr.bf16.vlgmr.msra.gmra.mrb[32].mxu0 %v19894_v41  ;;  %15546 = vmatmul.mubr.bf16.vlgmr.msra.gmra.mrb[32].mxu1 %v19894_v41  ;;  %v12624_v9 = vld [vmem:[#allocation8 + $0x3ec0] sm:$0xff]  ;;  %v12625_v32 = vld [vmem:[#allocation8 + $0x3ec8] sm:$0xff] }
 0x858   :  { %15391 = vmatpush1.bf16.msra.mxu0 %v18637_v26  ;;  %15555 = vmatpush1.bf16.msra.mxu1 %v18639_v30  ;;  %v12597_v26 = vld [vmem:[#allocation8 + $0x3de8] sm:$0xff]  ;;  %v18685_v30 = vcombine.low %v12584_v61, %v12588_v54  ;;  %v12628_v38 = vld [vmem:[#allocation8 + $0x3ee0] sm:$0xff] }
 0x859   :  { %15422 = vmatprep.mubr.bf16.mxu0 %v19898_v48  ;;  %15586 = vmatprep.mubr.bf16.mxu1 %v19898_v48  ;;  %v12632_v54 = vld [vmem:[#allocation8 + $0x3f00] sm:$0xff]  ;;  %v12633_v58 = vld [vmem:[#allocation8 + $0x3f08] sm:$0xff] }
 0x85a   :  { %15392 = vmatprep.subr.bf16.mxu0 %v18646_v40  ;;  %15556 = vmatprep.subr.bf16.mxu1 %v18648_v60  ;;  %v18694_v40 = vcombine.high %v12592_v34, %v12596_v3  ;;  %v18696_v60 = vcombine.high %v12593_v13, %v12597_v26  ;;  %v12636_v62 = vld [vmem:[#allocation8 + $0x3f20] sm:$0xff] }
 0x85c   :  { %15393 = vmatpush1.bf16.msra.mxu0 %v18645_v43  ;;  %15557 = vmatpush1.bf16.msra.mxu1 %v18647_v57  ;;  %v12605_v43 = vld [vmem:[#allocation8 + $0x3e28] sm:$0xff]  ;;  %v18693_v57 = vcombine.low %v12592_v34, %v12596_v3  ;;  %v12640_v3 = vld [vmem:[#allocation8 + $0x3f40] sm:$0xff] }
 0x85d   :  { %15394 = vmatprep.subr.bf16.mxu0 %v18654_v36  ;;  %15558 = vmatprep.subr.bf16.mxu1 %v18656_v33  ;;  %v18695_v36 = vcombine.low %v12593_v13, %v12597_v26  ;;  %v18702_v33 = vcombine.high %v12600_v5, %v12604_v6  ;;  %v18704_v0 = vcombine.high %v12601_v23, %v12605_v43  ;;  %v12644_v13 = vld [vmem:[#allocation8 + $0x3f60] sm:$0xff]  ;;  %v12641_v26 = vld [vmem:[#allocation8 + $0x3f48] sm:$0xff] }
 0x860   :  { %15395 = vmatpush1.bf16.msra.mxu0 %v18653_v46  ;;  %15559 = vmatpush1.bf16.msra.mxu1 %v18655_v14  ;;  %v12613_v46 = vld [vmem:[#allocation8 + $0x3e68] sm:$0xff]  ;;  %v18701_v14 = vcombine.low %v12600_v5, %v12604_v6  ;;  %v12648_v6 = vld [vmem:[#allocation8 + $0x3f80] sm:$0xff] }
 0x861   :  { %15396 = vmatprep.subr.bf16.mxu0 %v18662_v47  ;;  %15560 = vmatprep.subr.bf16.mxu1 %v18664_v49  ;;  %v18703_v47 = vcombine.low %v12601_v23, %v12605_v43  ;;  %v18710_v49 = vcombine.high %v12608_v37, %v12612_v45  ;;  %v18712_v16 = vcombine.high %v12609_v50, %v12613_v46  ;;  %v12652_v43 = vld [vmem:[#allocation8 + $0x3fa0] sm:$0xff] }
 0x862   :  { %v8890_v23 = vrot.slane %v19882_v18, %v19654_v2  ;;  %v18749_v18 = vcombine.low %v12648_v6, %v12652_v43 }
 0x864   :  { %15397 = vmatpush1.bf16.msra.mxu0 %v18661_v56  ;;  %15561 = vmatpush1.bf16.msra.mxu1 %v18663_v55  ;;  %v12621_v56 = vld [vmem:[#allocation8 + $0x3ea8] sm:$0xff]  ;;  %v18709_v55 = vcombine.low %v12608_v37, %v12612_v45  ;;  %v18750_v37 = vcombine.high %v12648_v6, %v12652_v43 }
 0x865   :  { %15398 = vmatprep.subr.bf16.mxu0 %v18670_v7  ;;  %15562 = vmatprep.subr.bf16.mxu1 %v18672_v29  ;;  %v18711_v7 = vcombine.low %v12609_v50, %v12613_v46  ;;  %v18718_v29 = vcombine.high %v12616_v53, %v12620_v52  ;;  %v18720_v24 = vcombine.high %v12617_v39, %v12621_v56  ;;  %v12656_v50 = vld [vmem:[#allocation8 + $0x3fc0] sm:$0xff] }
 0x866   :  { %v18940_v46 = vadd.f32 %v19890_v28, %v8890_v23 }
 0x868   :  { %15399 = vmatpush1.bf16.msra.mxu0 %v18669_v35  ;;  %15563 = vmatpush1.bf16.msra.mxu1 %v18671_v51  ;;  %v12629_v35 = vld [vmem:[#allocation8 + $0x3ee8] sm:$0xff]  ;;  %v18717_v51 = vcombine.low %v12616_v53, %v12620_v52  ;;  %vm12125_vm15 = vcmp.gt.f32.partialorder %v18940_v46, 0.0 }
 0x869   :  { %15400 = vmatprep.subr.bf16.mxu0 %v18678_v4  ;;  %15564 = vmatprep.subr.bf16.mxu1 %v18680_v42  ;;  %v18719_v4 = vcombine.low %v12617_v39, %v12621_v56  ;;  %v18726_v42 = vcombine.high %v12624_v9, %v12628_v38  ;;  %v18728_v61 = vcombine.high %v12625_v32, %v12629_v35  ;;  %v12154_v39 = vld [vmem:[#allocation8 + $0x3010] sm:$0xff]  ;;  %v12133_v56 = vmul.f32 0.2, %v18940_v46 }
 0x86c   :  { %15401 = vmatpush1.bf16.msra.mxu0 %v18677_v63  ;;  %15565 = vmatpush1.bf16.msra.mxu1 %v18679_v1  ;;  %v12637_v63 = vld [vmem:[#allocation8 + $0x3f28] sm:$0xff]  ;;  %v18725_v1 = vcombine.low %v12624_v9, %v12628_v38 }
 0x86d   :  { %15402 = vmatprep.subr.bf16.mxu0 %v18686_v12  ;;  %15566 = vmatprep.subr.bf16.mxu1 %v18688_v25  ;;  %v18727_v12 = vcombine.low %v12625_v32, %v12629_v35  ;;  %v18734_v25 = vcombine.high %v12632_v54, %v12636_v62  ;;  %v18736_v34 = vcombine.high %v12633_v58, %v12637_v63  ;;  %v12162_v35 = vld [vmem:[#allocation8 + $0x3050] sm:$0xff] }
 0x86e   :  { %v12141_v32 = vsel %vm12125_vm15, %v18940_v46, %v12133_v56  ;;  %v12202_v56 = vld [vmem:[#allocation8 + $0x3190] sm:$0xff] }
 0x870   :  { %15403 = vmatpush1.bf16.msra.mxu0 %v18685_v30  ;;  %15567 = vmatpush1.bf16.msra.mxu1 %v18687_v10  ;;  %v12645_v30 = vld [vmem:[#allocation8 + $0x3f68] sm:$0xff]  ;;  %v18733_v10 = vcombine.low %v12632_v54, %v12636_v62  ;;  %v19907_v54 = vpack.c.bf16 %v12141_v32, %v12141_v32  ;;  %v12210_v32 = vld [vmem:[#allocation8 + $0x31d0] sm:$0xff] }
 0x871   :  { %15404 = vmatprep.subr.bf16.mxu0 %v18694_v40  ;;  %15568 = vmatprep.subr.bf16.mxu1 %v18696_v60  ;;  %v18735_v40 = vcombine.low %v12633_v58, %v12637_v63  ;;  %v18742_v60 = vcombine.high %v12640_v3, %v12644_v13  ;;  %v18744_v5 = vcombine.high %v12641_v26, %v12645_v30 }
 0x874   :  { %15405 = vmatpush1.bf16.msra.mxu0 %v18693_v57  ;;  %15569 = vmatpush1.bf16.msra.mxu1 %v18695_v36  ;;  %v12649_v57 = vld [vmem:[#allocation8 + $0x3f88] sm:$0xff] }
 0x875   :  { %15406 = vmatprep.subr.bf16.mxu0 %v18702_v33  ;;  %15570 = vmatprep.subr.bf16.mxu1 %v18704_v0  ;;  %v12653_v36 = vld [vmem:[#allocation8 + $0x3fa8] sm:$0xff]  ;;  %v18741_v33 = vcombine.low %v12640_v3, %v12644_v13  ;;  %v18743_v0 = vcombine.low %v12641_v26, %v12645_v30 }
 0x876   :  { %v18752_v45 = vcombine.high %v12649_v57, %v12653_v36 }
 0x878   :  { %15407 = vmatpush1.bf16.msra.mxu0 %v18701_v14  ;;  %15571 = vmatpush1.bf16.msra.mxu1 %v18703_v47  ;;  %v12660_v14 = vld [vmem:[#allocation8 + $0x3fe0] sm:$0xff]  ;;  %v12657_v47 = vld [vmem:[#allocation8 + $0x3fc8] sm:$0xff] }
 0x879   :  { %15408 = vmatprep.subr.bf16.mxu0 %v18710_v49  ;;  %15572 = vmatprep.subr.bf16.mxu1 %v18712_v16  ;;  %v12661_v49 = vld [vmem:[#allocation8 + $0x3fe8] sm:$0xff]  ;;  %v18751_v16 = vcombine.low %v12649_v57, %v12653_v36  ;;  %v18758_v53 = vcombine.high %v12656_v50, %v12660_v14  ;;  %v18757_v28 = vcombine.low %v12656_v50, %v12660_v14  ;;  %v12186_v36 = vld [vmem:[#allocation8 + $0x3110] sm:$0xff] }
 0x87a   :  { %v18760_v52 = vcombine.high %v12657_v47, %v12661_v49  ;;  %v12194_v14 = vld [vmem:[#allocation8 + $0x3150] sm:$0xff] }
 0x87c   :  { %15409 = vmatpush1.bf16.msra.mxu0 %v18709_v55  ;;  %15573 = vmatpush1.bf16.msra.mxu1 %v18711_v7  ;;  %v12158_v55 = vld [vmem:[#allocation8 + $0x3030] sm:$0xff]  ;;  %v12155_v7 = vld [vmem:[#allocation8 + $0x3018] sm:$0xff] }
 0x87d   :  { %15410 = vmatprep.subr.bf16.mxu0 %v18718_v29  ;;  %15574 = vmatprep.subr.bf16.mxu1 %v18720_v24  ;;  %v12159_v29 = vld [vmem:[#allocation8 + $0x3038] sm:$0xff]  ;;  %v18759_v24 = vcombine.low %v12657_v47, %v12661_v49  ;;  %v18258_v9 = vcombine.high %v12154_v39, %v12158_v55  ;;  %v12198_v47 = vld [vmem:[#allocation8 + $0x3170] sm:$0xff] }
 0x87e   :  { %v18260_v38 = vcombine.high %v12155_v7, %v12159_v29  ;;  %v18259_v62 = vcombine.low %v12155_v7, %v12159_v29  ;;  %v12195_v49 = vld [vmem:[#allocation8 + $0x3158] sm:$0xff] }
 0x87f   :  { %v12203_v7 = vld [vmem:[#allocation8 + $0x3198] sm:$0xff] }
 0x880   :  { %15411 = vmatpush1.bf16.msra.mxu0 %v18717_v51  ;;  %15575 = vmatpush1.bf16.msra.mxu1 %v18719_v4  ;;  %v12166_v51 = vld [vmem:[#allocation8 + $0x3070] sm:$0xff]  ;;  %v12163_v4 = vld [vmem:[#allocation8 + $0x3058] sm:$0xff] }
 0x881   :  { %15412 = vmatprep.subr.bf16.mxu0 %v18726_v42  ;;  %15576 = vmatprep.subr.bf16.mxu1 %v18728_v61  ;;  %v12167_v42 = vld [vmem:[#allocation8 + $0x3078] sm:$0xff]  ;;  %v18257_v61 = vcombine.low %v12154_v39, %v12158_v55  ;;  %v18266_v58 = vcombine.high %v12162_v35, %v12166_v51  ;;  %v18265_v3 = vcombine.low %v12162_v35, %v12166_v51  ;;  %v12206_v55 = vld [vmem:[#allocation8 + $0x31b0] sm:$0xff] }
 0x882   :  { %v18268_v63 = vcombine.high %v12163_v4, %v12167_v42  ;;  %v18267_v13 = vcombine.low %v12163_v4, %v12167_v42  ;;  %v12207_v29 = vld [vmem:[#allocation8 + $0x31b8] sm:$0xff]  ;;  %v12214_v35 = vld [vmem:[#allocation8 + $0x31f0] sm:$0xff]  ;;  %v18305_v42 = vcombine.low %v12202_v56, %v12206_v55 }
 0x883   :  { %v12211_v51 = vld [vmem:[#allocation8 + $0x31d8] sm:$0xff] }
 0x884   :  { %15413 = vmatpush1.bf16.msra.mxu0 %v18725_v1  ;;  %15577 = vmatpush1.bf16.msra.mxu1 %v18727_v12  ;;  %v12170_v1 = vld [vmem:[#allocation8 + $0x3090] sm:$0xff]  ;;  %v12215_v4 = vld [vmem:[#allocation8 + $0x31f8] sm:$0xff] }
 0x885   :  { %15414 = vmatprep.subr.bf16.mxu0 %v18734_v25  ;;  %15578 = vmatprep.subr.bf16.mxu1 %v18736_v34  ;;  %v12174_v12 = vld [vmem:[#allocation8 + $0x30b0] sm:$0xff]  ;;  %v12171_v25 = vld [vmem:[#allocation8 + $0x3098] sm:$0xff] }
 0x886   :  { %v12175_v34 = vld [vmem:[#allocation8 + $0x30b8] sm:$0xff]  ;;  %v18274_v26 = vcombine.high %v12170_v1, %v12174_v12  ;;  %v18273_v6 = vcombine.low %v12170_v1, %v12174_v12  ;;  %v12222_v1 = vld [vmem:[#allocation8 + $0x3230] sm:$0xff] }
 0x887   :  { %v18276_v30 = vcombine.high %v12171_v25, %v12175_v34  ;;  %v18275_v23 = vcombine.low %v12171_v25, %v12175_v34  ;;  %v12219_v12 = vld [vmem:[#allocation8 + $0x3218] sm:$0xff]  ;;  %v18313_v34 = vcombine.low %v12210_v32, %v12214_v35 }
 0x888   :  { %15415 = vmatpush1.bf16.msra.mxu0 %v18733_v10  ;;  %15579 = vmatpush1.bf16.msra.mxu1 %v18735_v40  ;;  %v12178_v10 = vld [vmem:[#allocation8 + $0x30d0] sm:$0xff]  ;;  %v12223_v25 = vld [vmem:[#allocation8 + $0x3238] sm:$0xff] }
 0x889   :  { %15416 = vmatprep.subr.bf16.mxu0 %v18742_v60  ;;  %15580 = vmatprep.subr.bf16.mxu1 %v18744_v5  ;;  %v12182_v40 = vld [vmem:[#allocation8 + $0x30f0] sm:$0xff]  ;;  %v12179_v60 = vld [vmem:[#allocation8 + $0x30d8] sm:$0xff] }
 0x88a   :  { %v12183_v5 = vld [vmem:[#allocation8 + $0x30f8] sm:$0xff]  ;;  %v18282_v43 = vcombine.high %v12178_v10, %v12182_v40 }
 0x88b   :  { %v18284_v57 = vcombine.high %v12179_v60, %v12183_v5 }
 0x88c   :  { %15417 = vmatpush1.bf16.msra.mxu0 %v18741_v33  ;;  %15581 = vmatpush1.bf16.msra.mxu1 %v18743_v0  ;;  %v12190_v33 = vld [vmem:[#allocation8 + $0x3130] sm:$0xff]  ;;  %v12191_v0 = vld [vmem:[#allocation8 + $0x3138] sm:$0xff] }
 0x88d   :  { %15418 = vmatprep.subr.bf16.mxu0 %v18750_v37  ;;  %15582 = vmatprep.subr.bf16.mxu1 %v18752_v45  ;;  %v18281_v37 = vcombine.low %v12178_v10, %v12182_v40  ;;  %v18283_v45 = vcombine.low %v12179_v60, %v12183_v5  ;;  %v18290_v50 = vcombine.high %v12186_v36, %v12190_v33  ;;  %v12230_v10 = vld [vmem:[#allocation8 + $0x3270] sm:$0xff]  ;;  %v12227_v40 = vld [vmem:[#allocation8 + $0x3258] sm:$0xff] }
 0x88e   :  { %v12231_v60 = vld [vmem:[#allocation8 + $0x3278] sm:$0xff] }
 0x890   :  { %15419 = vmatpush1.bf16.msra.mxu0 %v18749_v18  ;;  %15583 = vmatpush1.bf16.msra.mxu1 %v18751_v16  ;;  %v12199_v18 = vld [vmem:[#allocation8 + $0x3178] sm:$0xff]  ;;  %v18289_v16 = vcombine.low %v12186_v36, %v12190_v33  ;;  %v12238_v36 = vld [vmem:[#allocation8 + $0x32b0] sm:$0xff] }
 0x891   :  { %15420 = vmatprep.subr.bf16.mxu0 %v18758_v53  ;;  %15584 = vmatprep.subr.bf16.mxu1 %v18760_v52  ;;  %v18298_v52 = vcombine.high %v12194_v14, %v12198_v47  ;;  %v18300_v39 = vcombine.high %v12195_v49, %v12199_v18  ;;  %v12235_v33 = vld [vmem:[#allocation8 + $0x3298] sm:$0xff] }
 0x894   :  { %15421 = vmatpush1.bf16.msra.mxu0 %v18757_v28  ;;  %15585 = vmatpush1.bf16.msra.mxu1 %v18759_v24  ;;  %v18297_v28 = vcombine.low %v12194_v14, %v12198_v47  ;;  %v18299_v24 = vcombine.low %v12195_v49, %v12199_v18  ;;  %v12246_v14 = vld [vmem:[#allocation8 + $0x32f0] sm:$0xff]  ;;  %v12243_v47 = vld [vmem:[#allocation8 + $0x32d8] sm:$0xff] }
 0x895   :  { %15595 = vmatprep.subr.bf16.mxu0 %v18258_v9  ;;  %15759 = vmatprep.subr.bf16.mxu1 %v18260_v38  ;;  %v18306_v9 = vcombine.high %v12202_v56, %v12206_v55  ;;  %v18308_v38 = vcombine.high %v12203_v7, %v12207_v29  ;;  %v12247_v49 = vld [vmem:[#allocation8 + $0x32f8] sm:$0xff]  ;;  %v12254_v56 = vld [vmem:[#allocation8 + $0x3330] sm:$0xff] }
 0x896   :  { %v12251_v55 = vld [vmem:[#allocation8 + $0x3318] sm:$0xff] }
 0x897   :  { %15423 = vmatmul.mubr.bf16.vlgmr.msra.gmra.mrb[32].mxu0 %v19907_v54  ;;  %15587 = vmatmul.mubr.bf16.vlgmr.msra.gmra.mrb[32].mxu1 %v19907_v54 }
 0x898   :  { %15596 = vmatpush1.bf16.msra.mxu0 %v18257_v61  ;;  %15627 = vmatprep.mubr.bf16.mxu0 %v19855_v20  ;;  %v18307_v61 = vcombine.low %v12203_v7, %v12207_v29  ;;  %v12255_v7 = vld [vmem:[#allocation8 + $0x3338] sm:$0xff] }
 0x899   :  { %15760 = vmatpush1.bf16.msra.mxu1 %v18259_v62  ;;  %15791 = vmatprep.mubr.bf16.mxu1 %v19855_v20  ;;  %v12187_v20 = vld [vmem:[#allocation8 + $0x3118] sm:$0xff]  ;;  %v18314_v62 = vcombine.high %v12210_v32, %v12214_v35  ;;  %v12262_v32 = vld [vmem:[#allocation8 + $0x3370] sm:$0xff] }
 0x89a   :  { %15597 = vmatprep.subr.bf16.mxu0 %v18266_v58  ;;  %15761 = vmatprep.subr.bf16.mxu1 %v18268_v63  ;;  %v18292_v46 = vcombine.high %v12187_v20, %v12191_v0  ;;  %v18291_v53 = vcombine.low %v12187_v20, %v12191_v0  ;;  %v18316_v58 = vcombine.high %v12211_v51, %v12215_v4  ;;  %v12218_v63 = vld [vmem:[#allocation8 + $0x3210] sm:$0xff]  ;;  %v12239_v20 = vld [vmem:[#allocation8 + $0x32b8] sm:$0xff] }
 0x89b   :  { %v18321_v5 = vcombine.low %v12218_v63, %v12222_v1  ;;  %v12259_v35 = vld [vmem:[#allocation8 + $0x3358] sm:$0xff] }
 0x89c   :  { %15598 = vmatpush1.bf16.msra.mxu0 %v18265_v3  ;;  %v18315_v3 = vcombine.low %v12211_v51, %v12215_v4  ;;  %v12263_v51 = vld [vmem:[#allocation8 + $0x3378] sm:$0xff] }
 0x89d   :  { %15762 = vmatpush1.bf16.msra.mxu1 %v18267_v13  ;;  %15599 = vmatprep.subr.bf16.mxu0 %v18274_v26  ;;  %v18322_v13 = vcombine.high %v12218_v63, %v12222_v1  ;;  %v18324_v26 = vcombine.high %v12219_v12, %v12223_v25  ;;  %v12270_v63 = vld [vmem:[#allocation8 + $0x33b0] sm:$0xff]  ;;  %v12267_v1 = vld [vmem:[#allocation8 + $0x3398] sm:$0xff] }
 0x89e   :  { %15763 = vmatprep.subr.bf16.mxu1 %v18276_v30  ;;  %v12226_v30 = vld [vmem:[#allocation8 + $0x3250] sm:$0xff] }
 0x89f   :  { %v18329_v0 = vcombine.low %v12226_v30, %v12230_v10 }
 0x8a0   :  { %15600 = vmatpush1.bf16.msra.mxu0 %v18273_v6  ;;  %v18323_v6 = vcombine.low %v12219_v12, %v12223_v25  ;;  %v12271_v12 = vld [vmem:[#allocation8 + $0x33b8] sm:$0xff] }
 0x8a1   :  { %15764 = vmatpush1.bf16.msra.mxu1 %v18275_v23  ;;  %15601 = vmatprep.subr.bf16.mxu0 %v18282_v43  ;;  %v18330_v23 = vcombine.high %v12226_v30, %v12230_v10  ;;  %v18332_v43 = vcombine.high %v12227_v40, %v12231_v60  ;;  %v12278_v30 = vld [vmem:[#allocation8 + $0x33f0] sm:$0xff]  ;;  %v12275_v10 = vld [vmem:[#allocation8 + $0x33d8] sm:$0xff] }
 0x8a2   :  { %15765 = vmatprep.subr.bf16.mxu1 %v18284_v57  ;;  %v12234_v57 = vld [vmem:[#allocation8 + $0x3290] sm:$0xff] }
 0x8a3   :  { %v18337_v18 = vcombine.low %v12234_v57, %v12238_v36 }
 0x8a4   :  { %15602 = vmatpush1.bf16.msra.mxu0 %v18281_v37  ;;  %v18331_v37 = vcombine.low %v12227_v40, %v12231_v60  ;;  %v12279_v40 = vld [vmem:[#allocation8 + $0x33f8] sm:$0xff] }
 0x8a5   :  { %15766 = vmatpush1.bf16.msra.mxu1 %v18283_v45  ;;  %15603 = vmatprep.subr.bf16.mxu0 %v18290_v50  ;;  %v18338_v45 = vcombine.high %v12234_v57, %v12238_v36  ;;  %v18340_v50 = vcombine.high %v12235_v33, %v12239_v20  ;;  %v12286_v57 = vld [vmem:[#allocation8 + $0x3430] sm:$0xff]  ;;  %v12283_v36 = vld [vmem:[#allocation8 + $0x3418] sm:$0xff] }
 0x8a6   :  { %15767 = vmatprep.subr.bf16.mxu1 %v18292_v46  ;;  %v12242_v46 = vld [vmem:[#allocation8 + $0x32d0] sm:$0xff] }
 0x8a7   :  { %v18345_v29 = vcombine.low %v12242_v46, %v12246_v14 }
 0x8a8   :  { %15604 = vmatpush1.bf16.msra.mxu0 %v18289_v16  ;;  %v18339_v16 = vcombine.low %v12235_v33, %v12239_v20  ;;  %v12287_v33 = vld [vmem:[#allocation8 + $0x3438] sm:$0xff] }
 0x8a9   :  { %15768 = vmatpush1.bf16.msra.mxu1 %v18291_v53  ;;  %15605 = vmatprep.subr.bf16.mxu0 %v18298_v52  ;;  %v18346_v53 = vcombine.high %v12242_v46, %v12246_v14  ;;  %v18348_v52 = vcombine.high %v12243_v47, %v12247_v49  ;;  %v12294_v46 = vld [vmem:[#allocation8 + $0x3470] sm:$0xff] }
 0x8aa   :  { %15769 = vmatprep.subr.bf16.mxu1 %v18300_v39  ;;  %v12250_v39 = vld [vmem:[#allocation8 + $0x3310] sm:$0xff] }
 0x8ab   :  { %v18353_v4 = vcombine.low %v12250_v39, %v12254_v56 }
 0x8ac   :  { %15606 = vmatpush1.bf16.msra.mxu0 %v18297_v28  ;;  %v18347_v28 = vcombine.low %v12243_v47, %v12247_v49  ;;  %v12291_v47 = vld [vmem:[#allocation8 + $0x3458] sm:$0xff] }
 0x8ad   :  { %15770 = vmatpush1.bf16.msra.mxu1 %v18299_v24  ;;  %15607 = vmatprep.subr.bf16.mxu0 %v18306_v9  ;;  %v18354_v24 = vcombine.high %v12250_v39, %v12254_v56  ;;  %v18356_v9 = vcombine.high %v12251_v55, %v12255_v7  ;;  %v12295_v49 = vld [vmem:[#allocation8 + $0x3478] sm:$0xff] }
 0x8ae   :  { %15771 = vmatprep.subr.bf16.mxu1 %v18308_v38  ;;  %v12258_v38 = vld [vmem:[#allocation8 + $0x3350] sm:$0xff]  ;;  %v18396_v39 = vcombine.high %v12291_v47, %v12295_v49  ;;  %v12299_v56 = vld [vmem:[#allocation8 + $0x3498] sm:$0xff] }
 0x8af   :  { %v18361_v25 = vcombine.low %v12258_v38, %v12262_v32 }
 0x8b0   :  { %15608 = vmatpush1.bf16.msra.mxu0 %v18305_v42  ;;  %v18355_v42 = vcombine.low %v12251_v55, %v12255_v7  ;;  %v12303_v55 = vld [vmem:[#allocation8 + $0x34b8] sm:$0xff] }
 0x8b1   :  { %15772 = vmatpush1.bf16.msra.mxu1 %v18307_v61  ;;  %15609 = vmatprep.subr.bf16.mxu0 %v18314_v62  ;;  %v18362_v61 = vcombine.high %v12258_v38, %v12262_v32  ;;  %v18364_v62 = vcombine.high %v12259_v35, %v12263_v51  ;;  %v12310_v38 = vld [vmem:[#allocation8 + $0x34f0] sm:$0xff]  ;;  %v12307_v32 = vld [vmem:[#allocation8 + $0x34d8] sm:$0xff] }
 0x8b2   :  { %15773 = vmatprep.subr.bf16.mxu1 %v18316_v58  ;;  %v12266_v58 = vld [vmem:[#allocation8 + $0x3390] sm:$0xff] }
 0x8b3   :  { %v18369_v60 = vcombine.low %v12266_v58, %v12270_v63 }
 0x8b4   :  { %15610 = vmatpush1.bf16.msra.mxu0 %v18313_v34  ;;  %v18363_v34 = vcombine.low %v12259_v35, %v12263_v51  ;;  %v12311_v35 = vld [vmem:[#allocation8 + $0x34f8] sm:$0xff] }
 0x8b5   :  { %15774 = vmatpush1.bf16.msra.mxu1 %v18315_v3  ;;  %15611 = vmatprep.subr.bf16.mxu0 %v18322_v13  ;;  %v18370_v3 = vcombine.high %v12266_v58, %v12270_v63  ;;  %v18372_v13 = vcombine.high %v12267_v1, %v12271_v12  ;;  %v12315_v58 = vld [vmem:[#allocation8 + $0x3518] sm:$0xff] }
 0x8b6   :  { %15775 = vmatprep.subr.bf16.mxu1 %v18324_v26  ;;  %v12274_v26 = vld [vmem:[#allocation8 + $0x33d0] sm:$0xff]  ;;  %v12319_v63 = vld [vmem:[#allocation8 + $0x3538] sm:$0xff] }
 0x8b7   :  { %v18377_v20 = vcombine.low %v12274_v26, %v12278_v30 }
 0x8b8   :  { %15612 = vmatpush1.bf16.msra.mxu0 %v18321_v5  ;;  %v18371_v5 = vcombine.low %v12267_v1, %v12271_v12  ;;  %v18411_v1 = vcombine.low %v12307_v32, %v12311_v35 }
 0x8b9   :  { %15776 = vmatpush1.bf16.msra.mxu1 %v18323_v6  ;;  %15613 = vmatprep.subr.bf16.mxu0 %v18330_v23  ;;  %v18378_v6 = vcombine.high %v12274_v26, %v12278_v30  ;;  %v18380_v23 = vcombine.high %v12275_v10, %v12279_v40  ;;  %v12327_v26 = vld [vmem:[#allocation8 + $0x3578] sm:$0xff] }
 0x8ba   :  { %15777 = vmatprep.subr.bf16.mxu1 %v18332_v43  ;;  %v12282_v43 = vld [vmem:[#allocation8 + $0x3410] sm:$0xff] }
 0x8bb   :  { %v18385_v14 = vcombine.low %v12282_v43, %v12286_v57 }
 0x8bc   :  { %15614 = vmatpush1.bf16.msra.mxu0 %v18329_v0  ;;  %v18379_v0 = vcombine.low %v12275_v10, %v12279_v40  ;;  %v18419_v10 = vcombine.low %v12315_v58, %v12319_v63 }
 0x8bd   :  { %15778 = vmatpush1.bf16.msra.mxu1 %v18331_v37  ;;  %15615 = vmatprep.subr.bf16.mxu0 %v18338_v45  ;;  %v18386_v37 = vcombine.high %v12282_v43, %v12286_v57  ;;  %v18388_v45 = vcombine.high %v12283_v36, %v12287_v33  ;;  %v12335_v43 = vld [vmem:[#allocation8 + $0x35b8] sm:$0xff] }
 0x8be   :  { %15779 = vmatprep.subr.bf16.mxu1 %v18340_v50  ;;  %v12290_v50 = vld [vmem:[#allocation8 + $0x3450] sm:$0xff] }
 0x8bf   :  { %v18393_v7 = vcombine.low %v12290_v50, %v12294_v46 }
 0x8c0   :  { %15616 = vmatpush1.bf16.msra.mxu0 %v18337_v18  ;;  %v18387_v18 = vcombine.low %v12283_v36, %v12287_v33 }
 0x8c1   :  { %15780 = vmatpush1.bf16.msra.mxu1 %v18339_v16  ;;  %15617 = vmatprep.subr.bf16.mxu0 %v18346_v53  ;;  %v18394_v16 = vcombine.high %v12290_v50, %v12294_v46  ;;  %v12298_v53 = vld [vmem:[#allocation8 + $0x3490] sm:$0xff]  ;;  %v12343_v50 = vld [vmem:[#allocation8 + $0x35f8] sm:$0xff] }
 0x8c2   :  { %15781 = vmatprep.subr.bf16.mxu1 %v18348_v52  ;;  %v12302_v52 = vld [vmem:[#allocation8 + $0x34b0] sm:$0xff] }
 0x8c3   :  { %v18401_v51 = vcombine.low %v12298_v53, %v12302_v52 }
 0x8c4   :  { %15618 = vmatpush1.bf16.msra.mxu0 %v18345_v29  ;;  %v18395_v29 = vcombine.low %v12291_v47, %v12295_v49 }
 0x8c5   :  { %15782 = vmatpush1.bf16.msra.mxu1 %v18347_v28  ;;  %15619 = vmatprep.subr.bf16.mxu0 %v18354_v24  ;;  %v18402_v28 = vcombine.high %v12298_v53, %v12302_v52  ;;  %v18404_v24 = vcombine.high %v12299_v56, %v12303_v55  ;;  %v12347_v53 = vld [vmem:[#allocation8 + $0x3618] sm:$0xff] }
 0x8c6   :  { %15783 = vmatprep.subr.bf16.mxu1 %v18356_v9  ;;  %v12306_v9 = vld [vmem:[#allocation8 + $0x34d0] sm:$0xff]  ;;  %v12351_v52 = vld [vmem:[#allocation8 + $0x3638] sm:$0xff] }
 0x8c8   :  { %15620 = vmatpush1.bf16.msra.mxu0 %v18353_v4  ;;  %v18410_v4 = vcombine.high %v12306_v9, %v12310_v38 }
 0x8c9   :  { %15784 = vmatpush1.bf16.msra.mxu1 %v18355_v42  ;;  %15621 = vmatprep.subr.bf16.mxu0 %v18362_v61  ;;  %v18412_v42 = vcombine.high %v12307_v32, %v12311_v35  ;;  %v12314_v61 = vld [vmem:[#allocation8 + $0x3510] sm:$0xff]  ;;  %v18451_v32 = vcombine.low %v12347_v53, %v12351_v52 }
 0x8ca   :  { %15785 = vmatprep.subr.bf16.mxu1 %v18364_v62  ;;  %v12318_v62 = vld [vmem:[#allocation8 + $0x3530] sm:$0xff] }
 0x8cb   :  { %v18418_v12 = vcombine.high %v12314_v61, %v12318_v62  ;;  %v18417_v30 = vcombine.low %v12314_v61, %v12318_v62  ;;  %v12367_v61 = vld [vmem:[#allocation8 + $0x36b8] sm:$0xff] }
 0x8cc   :  { %15622 = vmatpush1.bf16.msra.mxu0 %v18361_v25  ;;  %v18420_v25 = vcombine.high %v12315_v58, %v12319_v63 }
 0x8cd   :  { %15786 = vmatpush1.bf16.msra.mxu1 %v18363_v34  ;;  %15623 = vmatprep.subr.bf16.mxu0 %v18370_v3  ;;  %v12322_v34 = vld [vmem:[#allocation8 + $0x3550] sm:$0xff] }
 0x8ce   :  { %15787 = vmatprep.subr.bf16.mxu1 %v18372_v13  ;;  %v12326_v3 = vld [vmem:[#allocation8 + $0x3570] sm:$0xff]  ;;  %v12323_v13 = vld [vmem:[#allocation8 + $0x3558] sm:$0xff] }
 0x8cf   :  { %v18426_v40 = vcombine.high %v12322_v34, %v12326_v3  ;;  %v18425_v57 = vcombine.low %v12322_v34, %v12326_v3  ;;  %v18427_v36 = vcombine.low %v12323_v13, %v12327_v26  ;;  %v12375_v34 = vld [vmem:[#allocation8 + $0x36f8] sm:$0xff] }
 0x8d0   :  { %15624 = vmatpush1.bf16.msra.mxu0 %v18369_v60  ;;  %v18428_v60 = vcombine.high %v12323_v13, %v12327_v26 }
 0x8d1   :  { %15788 = vmatpush1.bf16.msra.mxu1 %v18371_v5  ;;  %15625 = vmatprep.subr.bf16.mxu0 %v18378_v6  ;;  %v12330_v5 = vld [vmem:[#allocation8 + $0x3590] sm:$0xff] }
 0x8d2   :  { %15789 = vmatprep.subr.bf16.mxu1 %v18380_v23  ;;  %v12334_v6 = vld [vmem:[#allocation8 + $0x35b0] sm:$0xff]  ;;  %v12331_v23 = vld [vmem:[#allocation8 + $0x3598] sm:$0xff] }
 0x8d3   :  { %v18434_v33 = vcombine.high %v12330_v5, %v12334_v6  ;;  %v18433_v46 = vcombine.low %v12330_v5, %v12334_v6  ;;  %v12383_v5 = vld [vmem:[#allocation8 + $0x3738] sm:$0xff] }
 0x8d4   :  { %15626 = vmatpush1.bf16.msra.mxu0 %v18377_v20  ;;  %v18436_v20 = vcombine.high %v12331_v23, %v12335_v43 }
 0x8d5   :  { %15790 = vmatpush1.bf16.msra.mxu1 %v18379_v0  ;;  %15636 = vmatprep.subr.bf16.mxu0 %v18386_v37  ;;  %v12338_v0 = vld [vmem:[#allocation8 + $0x35d0] sm:$0xff] }
 0x8d6   :  { %15800 = vmatprep.subr.bf16.mxu1 %v18388_v45  ;;  %v12342_v37 = vld [vmem:[#allocation8 + $0x35f0] sm:$0xff]  ;;  %v12339_v45 = vld [vmem:[#allocation8 + $0x35d8] sm:$0xff] }
 0x8d7   :  { %15628 = vmatmul.mubr.bf16.vlgmr.msra.gmra.mrb[36].mxu0 %v19867_v22  ;;  %v18442_v47 = vcombine.high %v12338_v0, %v12342_v37  ;;  %v18444_v49 = vcombine.high %v12339_v45, %v12343_v50 }
 0x8d8   :  { %15792 = vmatmul.mubr.bf16.vlgmr.msra.gmra.mrb[36].mxu1 %v19867_v22  ;;  %15637 = vmatpush1.bf16.msra.mxu0 %v18385_v14  ;;  %v18403_v22 = vcombine.low %v12299_v56, %v12303_v55  ;;  %v18435_v14 = vcombine.low %v12331_v23, %v12335_v43  ;;  %v18443_v56 = vcombine.low %v12339_v45, %v12343_v50 }
 0x8d9   :  { %15668 = vmatprep.mubr.bf16.mxu0 %v19869_v59  ;;  %15801 = vmatpush1.bf16.msra.mxu1 %v18387_v18  ;;  %v12346_v18 = vld [vmem:[#allocation8 + $0x3610] sm:$0xff] }
 0x8da   :  { %15832 = vmatprep.mubr.bf16.mxu1 %v19869_v59  ;;  %15638 = vmatprep.subr.bf16.mxu0 %v18394_v16  ;;  %v18409_v59 = vcombine.low %v12306_v9, %v12310_v38  ;;  %v12350_v16 = vld [vmem:[#allocation8 + $0x3630] sm:$0xff]  ;;  %v12359_v9 = vld [vmem:[#allocation8 + $0x3678] sm:$0xff] }
 0x8db   :  { %15802 = vmatprep.subr.bf16.mxu1 %v18396_v39  ;;  %v18441_v39 = vcombine.low %v12338_v0, %v12342_v37  ;;  %v18450_v55 = vcombine.high %v12346_v18, %v12350_v16  ;;  %v18449_v38 = vcombine.low %v12346_v18, %v12350_v16  ;;  %v12391_v0 = vld [vmem:[#allocation8 + $0x3778] sm:$0xff] }
 0x8dc   :  { %15639 = vmatpush1.bf16.msra.mxu0 %v18393_v7  ;;  %v18452_v7 = vcombine.high %v12347_v53, %v12351_v52  ;;  %v12399_v18 = vld [vmem:[#allocation8 + $0x37b8] sm:$0xff] }
 0x8dd   :  { %15803 = vmatpush1.bf16.msra.mxu1 %v18395_v29  ;;  %15640 = vmatprep.subr.bf16.mxu0 %v18402_v28  ;;  %v12354_v29 = vld [vmem:[#allocation8 + $0x3650] sm:$0xff] }
 0x8de   :  { %15804 = vmatprep.subr.bf16.mxu1 %v18404_v24  ;;  %v12358_v28 = vld [vmem:[#allocation8 + $0x3670] sm:$0xff]  ;;  %v12355_v24 = vld [vmem:[#allocation8 + $0x3658] sm:$0xff] }
 0x8df   :  { %v18458_v35 = vcombine.high %v12354_v29, %v12358_v28  ;;  %v18457_v62 = vcombine.low %v12354_v29, %v12358_v28  ;;  %v18459_v58 = vcombine.low %v12355_v24, %v12359_v9  ;;  %v12407_v29 = vld [vmem:[#allocation8 + $0x37f8] sm:$0xff] }
 0x8e0   :  { %15641 = vmatpush1.bf16.msra.mxu0 %v18401_v51  ;;  %v18460_v51 = vcombine.high %v12355_v24, %v12359_v9 }
 0x8e1   :  { %15805 = vmatpush1.bf16.msra.mxu1 %v18403_v22  ;;  %15642 = vmatprep.subr.bf16.mxu0 %v18410_v4  ;;  %v12362_v22 = vld [vmem:[#allocation8 + $0x3690] sm:$0xff] }
 0x8e2   :  { %15806 = vmatprep.subr.bf16.mxu1 %v18412_v42  ;;  %v12366_v4 = vld [vmem:[#allocation8 + $0x36b0] sm:$0xff]  ;;  %v12363_v42 = vld [vmem:[#allocation8 + $0x3698] sm:$0xff] }
 0x8e3   :  { %v18466_v63 = vcombine.high %v12362_v22, %v12366_v4  ;;  %v18465_v3 = vcombine.low %v12362_v22, %v12366_v4  ;;  %v18467_v13 = vcombine.low %v12363_v42, %v12367_v61  ;;  %v12415_v22 = vld [vmem:[#allocation8 + $0x3838] sm:$0xff] }
 0x8e4   :  { %15643 = vmatpush1.bf16.msra.mxu0 %v18409_v59  ;;  %v18468_v59 = vcombine.high %v12363_v42, %v12367_v61 }
 0x8e5   :  { %15807 = vmatpush1.bf16.msra.mxu1 %v18411_v1  ;;  %15644 = vmatprep.subr.bf16.mxu0 %v18418_v12  ;;  %v12370_v1 = vld [vmem:[#allocation8 + $0x36d0] sm:$0xff] }
 0x8e6   :  { %15808 = vmatprep.subr.bf16.mxu1 %v18420_v25  ;;  %v12374_v12 = vld [vmem:[#allocation8 + $0x36f0] sm:$0xff]  ;;  %v12371_v25 = vld [vmem:[#allocation8 + $0x36d8] sm:$0xff] }
 0x8e7   :  { %v18474_v26 = vcombine.high %v12370_v1, %v12374_v12  ;;  %v18473_v6 = vcombine.low %v12370_v1, %v12374_v12  ;;  %v18475_v23 = vcombine.low %v12371_v25, %v12375_v34  ;;  %v12419_v1 = vld [vmem:[#allocation8 + $0x3858] sm:$0xff] }
 0x8e8   :  { %15645 = vmatpush1.bf16.msra.mxu0 %v18417_v30  ;;  %v18476_v30 = vcombine.high %v12371_v25, %v12375_v34  ;;  %v12423_v12 = vld [vmem:[#allocation8 + $0x3878] sm:$0xff] }
 0x8e9   :  { %15809 = vmatpush1.bf16.msra.mxu1 %v18419_v10  ;;  %15646 = vmatprep.subr.bf16.mxu0 %v18426_v40  ;;  %v12378_v10 = vld [vmem:[#allocation8 + $0x3710] sm:$0xff] }
 0x8ea   :  { %15810 = vmatprep.subr.bf16.mxu1 %v18428_v60  ;;  %v12382_v40 = vld [vmem:[#allocation8 + $0x3730] sm:$0xff]  ;;  %v12379_v60 = vld [vmem:[#allocation8 + $0x3718] sm:$0xff] }
 0x8eb   :  { %v18482_v43 = vcombine.high %v12378_v10, %v12382_v40  ;;  %v18481_v37 = vcombine.low %v12378_v10, %v12382_v40  ;;  %v18483_v45 = vcombine.low %v12379_v60, %v12383_v5  ;;  %v12431_v10 = vld [vmem:[#allocation8 + $0x38b8] sm:$0xff] }
 0x8ec   :  { %15647 = vmatpush1.bf16.msra.mxu0 %v18425_v57  ;;  %v18484_v57 = vcombine.high %v12379_v60, %v12383_v5  ;;  %v18523_v60 = vcombine.low %v12419_v1, %v12423_v12 }
 0x8ed   :  { %15811 = vmatpush1.bf16.msra.mxu1 %v18427_v36  ;;  %15648 = vmatprep.subr.bf16.mxu0 %v18434_v33  ;;  %v12386_v36 = vld [vmem:[#allocation8 + $0x3750] sm:$0xff] }
 0x8ee   :  { %15812 = vmatprep.subr.bf16.mxu1 %v18436_v20  ;;  %v12390_v33 = vld [vmem:[#allocation8 + $0x3770] sm:$0xff]  ;;  %v12387_v20 = vld [vmem:[#allocation8 + $0x3758] sm:$0xff] }
 0x8ef   :  { %v18490_v50 = vcombine.high %v12386_v36, %v12390_v33  ;;  %v18489_v16 = vcombine.low %v12386_v36, %v12390_v33  ;;  %v18491_v53 = vcombine.low %v12387_v20, %v12391_v0  ;;  %v12439_v36 = vld [vmem:[#allocation8 + $0x38f8] sm:$0xff] }
 0x8f0   :  { %15649 = vmatpush1.bf16.msra.mxu0 %v18433_v46  ;;  %v18492_v46 = vcombine.high %v12387_v20, %v12391_v0 }
 0x8f1   :  { %15813 = vmatpush1.bf16.msra.mxu1 %v18435_v14  ;;  %15650 = vmatprep.subr.bf16.mxu0 %v18442_v47  ;;  %v12394_v14 = vld [vmem:[#allocation8 + $0x3790] sm:$0xff] }
 0x8f2   :  { %15814 = vmatprep.subr.bf16.mxu1 %v18444_v49  ;;  %v12398_v47 = vld [vmem:[#allocation8 + $0x37b0] sm:$0xff]  ;;  %v12395_v49 = vld [vmem:[#allocation8 + $0x3798] sm:$0xff] }
 0x8f3   :  { %v18498_v52 = vcombine.high %v12394_v14, %v12398_v47  ;;  %v18497_v28 = vcombine.low %v12394_v14, %v12398_v47  ;;  %v18499_v24 = vcombine.low %v12395_v49, %v12399_v18 }
 0x8f4   :  { %15651 = vmatpush1.bf16.msra.mxu0 %v18441_v39  ;;  %v18500_v39 = vcombine.high %v12395_v49, %v12399_v18  ;;  %v12450_v18 = vld [vmem:[#allocation8 + $0x3950] sm:$0xff] }
 0x8f5   :  { %15815 = vmatpush1.bf16.msra.mxu1 %v18443_v56  ;;  %15652 = vmatprep.subr.bf16.mxu0 %v18450_v55  ;;  %v12402_v56 = vld [vmem:[#allocation8 + $0x37d0] sm:$0xff] }
 0x8f6   :  { %15816 = vmatprep.subr.bf16.mxu1 %v18452_v7  ;;  %v12406_v55 = vld [vmem:[#allocation8 + $0x37f0] sm:$0xff]  ;;  %v12403_v7 = vld [vmem:[#allocation8 + $0x37d8] sm:$0xff] }
 0x8f7   :  { %v18506_v9 = vcombine.high %v12402_v56, %v12406_v55  ;;  %v18505_v4 = vcombine.low %v12402_v56, %v12406_v55  ;;  %v18507_v42 = vcombine.low %v12403_v7, %v12407_v29 }
 0x8f8   :  { %15653 = vmatpush1.bf16.msra.mxu0 %v18449_v38  ;;  %v18508_v38 = vcombine.high %v12403_v7, %v12407_v29  ;;  %v12458_v29 = vld [vmem:[#allocation8 + $0x3990] sm:$0xff] }
 0x8f9   :  { %15817 = vmatpush1.bf16.msra.mxu1 %v18451_v32  ;;  %15654 = vmatprep.subr.bf16.mxu0 %v18458_v35  ;;  %v12410_v32 = vld [vmem:[#allocation8 + $0x3810] sm:$0xff] }
 0x8fa   :  { %15818 = vmatprep.subr.bf16.mxu1 %v18460_v51  ;;  %v12414_v35 = vld [vmem:[#allocation8 + $0x3830] sm:$0xff]  ;;  %v12411_v51 = vld [vmem:[#allocation8 + $0x3818] sm:$0xff] }
 0x8fb   :  { %v18514_v61 = vcombine.high %v12410_v32, %v12414_v35  ;;  %v18515_v25 = vcombine.low %v12411_v51, %v12415_v22 }
 0x8fc   :  { %15655 = vmatpush1.bf16.msra.mxu0 %v18457_v62  ;;  %v18516_v62 = vcombine.high %v12411_v51, %v12415_v22  ;;  %v12466_v22 = vld [vmem:[#allocation8 + $0x39d0] sm:$0xff] }
 0x8fd   :  { %15819 = vmatpush1.bf16.msra.mxu1 %v18459_v58  ;;  %15656 = vmatprep.subr.bf16.mxu0 %v18466_v63  ;;  %v12418_v58 = vld [vmem:[#allocation8 + $0x3850] sm:$0xff] }
 0x8fe   :  { %15820 = vmatprep.subr.bf16.mxu1 %v18468_v59  ;;  %v12422_v63 = vld [vmem:[#allocation8 + $0x3870] sm:$0xff]  ;;  %v18513_v59 = vcombine.low %v12410_v32, %v12414_v35 }
 0x8ff   :  { %v18522_v34 = vcombine.high %v12418_v58, %v12422_v63  ;;  %v18521_v40 = vcombine.low %v12418_v58, %v12422_v63 }
 0x900   :  { %15657 = vmatpush1.bf16.msra.mxu0 %v18465_v3  ;;  %v12426_v3 = vld [vmem:[#allocation8 + $0x3890] sm:$0xff] }
 0x901   :  { %15821 = vmatpush1.bf16.msra.mxu1 %v18467_v13  ;;  %15658 = vmatprep.subr.bf16.mxu0 %v18474_v26  ;;  %v12430_v13 = vld [vmem:[#allocation8 + $0x38b0] sm:$0xff]  ;;  %v18524_v26 = vcombine.high %v12419_v1, %v12423_v12 }
 0x902   :  { %15822 = vmatprep.subr.bf16.mxu1 %v18476_v30  ;;  %v12427_v30 = vld [vmem:[#allocation8 + $0x3898] sm:$0xff]  ;;  %v18530_v5 = vcombine.high %v12426_v3, %v12430_v13  ;;  %v18529_v33 = vcombine.low %v12426_v3, %v12430_v13  ;;  %v12474_v1 = vld [vmem:[#allocation8 + $0x3a10] sm:$0xff] }
 0x903   :  { %v12478_v12 = vld [vmem:[#allocation8 + $0x3a30] sm:$0xff] }
 0x904   :  { %15659 = vmatpush1.bf16.msra.mxu0 %v18473_v6  ;;  %v18532_v6 = vcombine.high %v12427_v30, %v12431_v10 }
 0x905   :  { %15823 = vmatpush1.bf16.msra.mxu1 %v18475_v23  ;;  %15660 = vmatprep.subr.bf16.mxu0 %v18482_v43  ;;  %v12434_v23 = vld [vmem:[#allocation8 + $0x38d0] sm:$0xff] }
 0x906   :  { %15824 = vmatprep.subr.bf16.mxu1 %v18484_v57  ;;  %v12438_v43 = vld [vmem:[#allocation8 + $0x38f0] sm:$0xff]  ;;  %v12435_v57 = vld [vmem:[#allocation8 + $0x38d8] sm:$0xff] }
 0x907   :  { %v18538_v20 = vcombine.high %v12434_v23, %v12438_v43  ;;  %v18540_v0 = vcombine.high %v12435_v57, %v12439_v36  ;;  %v18539_v14 = vcombine.low %v12435_v57, %v12439_v36  ;;  %v12490_v36 = vld [vmem:[#allocation8 + $0x3a90] sm:$0xff] }
 0x908   :  { %15661 = vmatpush1.bf16.msra.mxu0 %v18481_v37  ;;  %v12442_v37 = vld [vmem:[#allocation8 + $0x3910] sm:$0xff] }
 0x909   :  { %15825 = vmatpush1.bf16.msra.mxu1 %v18483_v45  ;;  %15662 = vmatprep.subr.bf16.mxu0 %v18490_v50  ;;  %v12446_v45 = vld [vmem:[#allocation8 + $0x3930] sm:$0xff]  ;;  %v12443_v50 = vld [vmem:[#allocation8 + $0x3918] sm:$0xff] }
 0x90a   :  { %15826 = vmatprep.subr.bf16.mxu1 %v18492_v46  ;;  %v12447_v46 = vld [vmem:[#allocation8 + $0x3938] sm:$0xff]  ;;  %v18546_v47 = vcombine.high %v12442_v37, %v12446_v45 }
 0x90b   :  { %v18548_v49 = vcombine.high %v12443_v50, %v12447_v46  ;;  %v18547_v56 = vcombine.low %v12443_v50, %v12447_v46  ;;  %v12498_v46 = vld [vmem:[#allocation8 + $0x3ad0] sm:$0xff] }
 0x90c   :  { %15663 = vmatpush1.bf16.msra.mxu0 %v18489_v16  ;;  %v12454_v16 = vld [vmem:[#allocation8 + $0x3970] sm:$0xff] }
 0x90d   :  { %15827 = vmatpush1.bf16.msra.mxu1 %v18491_v53  ;;  %15664 = vmatprep.subr.bf16.mxu0 %v18498_v52  ;;  %v12451_v53 = vld [vmem:[#allocation8 + $0x3958] sm:$0xff]  ;;  %v18554_v55 = vcombine.high %v12450_v18, %v12454_v16 }
 0x90e   :  { %15828 = vmatprep.subr.bf16.mxu1 %v18500_v39  ;;  %v12455_v52 = vld [vmem:[#allocation8 + $0x3978] sm:$0xff]  ;;  %v18545_v39 = vcombine.low %v12442_v37, %v12446_v45 }
 0x90f   :  { %v18556_v7 = vcombine.high %v12451_v53, %v12455_v52  ;;  %v18555_v32 = vcombine.low %v12451_v53, %v12455_v52  ;;  %v12506_v52 = vld [vmem:[#allocation8 + $0x3b10] sm:$0xff] }
 0x910   :  { %15665 = vmatpush1.bf16.msra.mxu0 %v18497_v28  ;;  %v12462_v28 = vld [vmem:[#allocation8 + $0x39b0] sm:$0xff] }
 0x911   :  { %15829 = vmatpush1.bf16.msra.mxu1 %v18499_v24  ;;  %15666 = vmatprep.subr.bf16.mxu0 %v18506_v9  ;;  %v12459_v24 = vld [vmem:[#allocation8 + $0x3998] sm:$0xff]  ;;  %v18562_v35 = vcombine.high %v12458_v29, %v12462_v28 }
 0x912   :  { %15830 = vmatprep.subr.bf16.mxu1 %v18508_v38  ;;  %v12463_v9 = vld [vmem:[#allocation8 + $0x39b8] sm:$0xff]  ;;  %v18553_v38 = vcombine.low %v12450_v18, %v12454_v16 }
 0x913   :  { %v18564_v51 = vcombine.high %v12459_v24, %v12463_v9  ;;  %v18563_v58 = vcombine.low %v12459_v24, %v12463_v9  ;;  %v12514_v9 = vld [vmem:[#allocation8 + $0x3b50] sm:$0xff] }
 0x914   :  { %15667 = vmatpush1.bf16.msra.mxu0 %v18505_v4  ;;  %v12470_v4 = vld [vmem:[#allocation8 + $0x39f0] sm:$0xff] }
 0x915   :  { %15831 = vmatpush1.bf16.msra.mxu1 %v18507_v42  ;;  %15677 = vmatprep.subr.bf16.mxu0 %v18514_v61  ;;  %v12467_v42 = vld [vmem:[#allocation8 + $0x39d8] sm:$0xff]  ;;  %v18570_v63 = vcombine.high %v12466_v22, %v12470_v4  ;;  %v18569_v3 = vcombine.low %v12466_v22, %v12470_v4 }
 0x916   :  { %15841 = vmatprep.subr.bf16.mxu1 %v18516_v62  ;;  %v12471_v61 = vld [vmem:[#allocation8 + $0x39f8] sm:$0xff]  ;;  %v18561_v62 = vcombine.low %v12458_v29, %v12462_v28 }
 0x917   :  { %15669 = vmatmul.mubr.bf16.vlgmr.msra.gmra.mrb[36].mxu0 %v19878_v8  ;;  %v18571_v13 = vcombine.low %v12467_v42, %v12471_v61 }
 0x918   :  { %15833 = vmatmul.mubr.bf16.vlgmr.msra.gmra.mrb[36].mxu1 %v19878_v8  ;;  %15678 = vmatpush1.bf16.msra.mxu0 %v18513_v59  ;;  %v18531_v8 = vcombine.low %v12427_v30, %v12431_v10  ;;  %v18572_v59 = vcombine.high %v12467_v42, %v12471_v61  ;;  %v12482_v10 = vld [vmem:[#allocation8 + $0x3a50] sm:$0xff] }
 0x919   :  { %15709 = vmatprep.mubr.bf16.mxu0 %v19892_v44  ;;  %15842 = vmatpush1.bf16.msra.mxu1 %v18515_v25  ;;  %v12475_v25 = vld [vmem:[#allocation8 + $0x3a18] sm:$0xff]  ;;  %v12522_v61 = vld [vmem:[#allocation8 + $0x3b90] sm:$0xff] }
 0x91a   :  { %15873 = vmatprep.mubr.bf16.mxu1 %v19892_v44  ;;  %15679 = vmatprep.subr.bf16.mxu0 %v18522_v34  ;;  %v18537_v44 = vcombine.low %v12434_v23, %v12438_v43  ;;  %v12479_v34 = vld [vmem:[#allocation8 + $0x3a38] sm:$0xff] }
 0x91b   :  { %15843 = vmatprep.subr.bf16.mxu1 %v18524_v26  ;;  %v18578_v26 = vcombine.high %v12474_v1, %v12478_v12  ;;  %v18580_v30 = vcombine.high %v12475_v25, %v12479_v34  ;;  %v18579_v23 = vcombine.low %v12475_v25, %v12479_v34  ;;  %v12530_v34 = vld [vmem:[#allocation8 + $0x3bd0] sm:$0xff] }
 0x91c   :  { %15680 = vmatpush1.bf16.msra.mxu0 %v18521_v40  ;;  %v12486_v40 = vld [vmem:[#allocation8 + $0x3a70] sm:$0xff] }
 0x91d   :  { %15844 = vmatpush1.bf16.msra.mxu1 %v18523_v60  ;;  %15681 = vmatprep.subr.bf16.mxu0 %v18530_v5  ;;  %v12483_v60 = vld [vmem:[#allocation8 + $0x3a58] sm:$0xff]  ;;  %v18586_v43 = vcombine.high %v12482_v10, %v12486_v40 }
 0x91e   :  { %15845 = vmatprep.subr.bf16.mxu1 %v18532_v6  ;;  %v12487_v5 = vld [vmem:[#allocation8 + $0x3a78] sm:$0xff]  ;;  %v18577_v6 = vcombine.low %v12474_v1, %v12478_v12 }
 0x91f   :  { %v18588_v57 = vcombine.high %v12483_v60, %v12487_v5  ;;  %v18587_v37 = vcombine.low %v12483_v60, %v12487_v5  ;;  %v12538_v5 = vld [vmem:[#allocation8 + $0x3c10] sm:$0xff] }
 0x920   :  { %15682 = vmatpush1.bf16.msra.mxu0 %v18529_v33  ;;  %v12494_v33 = vld [vmem:[#allocation8 + $0x3ab0] sm:$0xff] }
 0x921   :  { %15846 = vmatpush1.bf16.msra.mxu1 %v18531_v8  ;;  %15683 = vmatprep.subr.bf16.mxu0 %v18538_v20  ;;  %v12491_v8 = vld [vmem:[#allocation8 + $0x3a98] sm:$0xff]  ;;  %v18594_v45 = vcombine.high %v12490_v36, %v12494_v33 }
 0x922   :  { %15847 = vmatprep.subr.bf16.mxu1 %v18540_v0  ;;  %v12495_v20 = vld [vmem:[#allocation8 + $0x3ab8] sm:$0xff]  ;;  %v18585_v0 = vcombine.low %v12482_v10, %v12486_v40 }
 0x923   :  { %v18596_v50 = vcombine.high %v12491_v8, %v12495_v20  ;;  %v18595_v18 = vcombine.low %v12491_v8, %v12495_v20  ;;  %v12546_v20 = vld [vmem:[#allocation8 + $0x3c50] sm:$0xff] }
 0x924   :  { %15684 = vmatpush1.bf16.msra.mxu0 %v18537_v44  ;;  %v12502_v44 = vld [vmem:[#allocation8 + $0x3af0] sm:$0xff] }
 0x925   :  { %15848 = vmatpush1.bf16.msra.mxu1 %v18539_v14  ;;  %15685 = vmatprep.subr.bf16.mxu0 %v18546_v47  ;;  %v12499_v14 = vld [vmem:[#allocation8 + $0x3ad8] sm:$0xff]  ;;  %v18602_v16 = vcombine.high %v12498_v46, %v12502_v44 }
 0x926   :  { %15849 = vmatprep.subr.bf16.mxu1 %v18548_v49  ;;  %v12503_v47 = vld [vmem:[#allocation8 + $0x3af8] sm:$0xff]  ;;  %v18593_v49 = vcombine.low %v12490_v36, %v12494_v33 }
 0x927   :  { %v18604_v53 = vcombine.high %v12499_v14, %v12503_v47  ;;  %v18603_v29 = vcombine.low %v12499_v14, %v12503_v47  ;;  %v12554_v14 = vld [vmem:[#allocation8 + $0x3c90] sm:$0xff] }
 0x928   :  { %15686 = vmatpush1.bf16.msra.mxu0 %v18545_v39  ;;  %v12510_v39 = vld [vmem:[#allocation8 + $0x3b30] sm:$0xff] }
 0x929   :  { %15850 = vmatpush1.bf16.msra.mxu1 %v18547_v56  ;;  %15687 = vmatprep.subr.bf16.mxu0 %v18554_v55  ;;  %v12507_v56 = vld [vmem:[#allocation8 + $0x3b18] sm:$0xff]  ;;  %v18610_v28 = vcombine.high %v12506_v52, %v12510_v39  ;;  %v12558_v47 = vld [vmem:[#allocation8 + $0x3cb0] sm:$0xff] }
 0x92a   :  { %15851 = vmatprep.subr.bf16.mxu1 %v18556_v7  ;;  %v12511_v55 = vld [vmem:[#allocation8 + $0x3b38] sm:$0xff]  ;;  %v18601_v7 = vcombine.low %v12498_v46, %v12502_v44 }
 0x92b   :  { %v18612_v24 = vcombine.high %v12507_v56, %v12511_v55  ;;  %v18611_v22 = vcombine.low %v12507_v56, %v12511_v55  ;;  %v12562_v55 = vld [vmem:[#allocation8 + $0x3cd0] sm:$0xff] }
 0x92c   :  { %15688 = vmatpush1.bf16.msra.mxu0 %v18553_v38  ;;  %v12518_v38 = vld [vmem:[#allocation8 + $0x3b70] sm:$0xff] }
 0x92d   :  { %15852 = vmatpush1.bf16.msra.mxu1 %v18555_v32  ;;  %15689 = vmatprep.subr.bf16.mxu0 %v18562_v35  ;;  %v12515_v32 = vld [vmem:[#allocation8 + $0x3b58] sm:$0xff]  ;;  %v18618_v4 = vcombine.high %v12514_v9, %v12518_v38 }
 0x92e   :  { %15853 = vmatprep.subr.bf16.mxu1 %v18564_v51  ;;  %v12519_v35 = vld [vmem:[#allocation8 + $0x3b78] sm:$0xff]  ;;  %v18609_v51 = vcombine.low %v12506_v52, %v12510_v39  ;;  %v18658_v39 = vcombine.high %v12554_v14, %v12558_v47 }
 0x92f   :  { %v18620_v42 = vcombine.high %v12515_v32, %v12519_v35  ;;  %v18619_v1 = vcombine.low %v12515_v32, %v12519_v35  ;;  %v12570_v32 = vld [vmem:[#allocation8 + $0x3d10] sm:$0xff] }
 0x930   :  { %15690 = vmatpush1.bf16.msra.mxu0 %v18561_v62  ;;  %v12526_v62 = vld [vmem:[#allocation8 + $0x3bb0] sm:$0xff] }
 0x931   :  { %15854 = vmatpush1.bf16.msra.mxu1 %v18563_v58  ;;  %15691 = vmatprep.subr.bf16.mxu0 %v18570_v63  ;;  %v12523_v58 = vld [vmem:[#allocation8 + $0x3b98] sm:$0xff]  ;;  %v18626_v12 = vcombine.high %v12522_v61, %v12526_v62  ;;  %v12574_v35 = vld [vmem:[#allocation8 + $0x3d30] sm:$0xff] }
 0x932   :  { %15855 = vmatprep.subr.bf16.mxu1 %v18572_v59  ;;  %v12527_v63 = vld [vmem:[#allocation8 + $0x3bb8] sm:$0xff]  ;;  %v18617_v59 = vcombine.low %v12514_v9, %v12518_v38 }
 0x933   :  { %v18628_v25 = vcombine.high %v12523_v58, %v12527_v63  ;;  %v18627_v10 = vcombine.low %v12523_v58, %v12527_v63  ;;  %v12582_v58 = vld [vmem:[#allocation8 + $0x3d70] sm:$0xff]  ;;  %v12579_v63 = vld [vmem:[#allocation8 + $0x3d58] sm:$0xff] }
 0x934   :  { %15692 = vmatpush1.bf16.msra.mxu0 %v18569_v3  ;;  %v12534_v3 = vld [vmem:[#allocation8 + $0x3bf0] sm:$0xff] }
 0x935   :  { %15856 = vmatpush1.bf16.msra.mxu1 %v18571_v13  ;;  %15693 = vmatprep.subr.bf16.mxu0 %v18578_v26  ;;  %v12531_v13 = vld [vmem:[#allocation8 + $0x3bd8] sm:$0xff]  ;;  %v18634_v40 = vcombine.high %v12530_v34, %v12534_v3 }
 0x936   :  { %15857 = vmatprep.subr.bf16.mxu1 %v18580_v30  ;;  %v12535_v26 = vld [vmem:[#allocation8 + $0x3bf8] sm:$0xff]  ;;  %v18625_v30 = vcombine.low %v12522_v61, %v12526_v62  ;;  %v12578_v62 = vld [vmem:[#allocation8 + $0x3d50] sm:$0xff] }
 0x937   :  { %v18636_v60 = vcombine.high %v12531_v13, %v12535_v26  ;;  %v18635_v36 = vcombine.low %v12531_v13, %v12535_v26  ;;  %v12590_v13 = vld [vmem:[#allocation8 + $0x3db0] sm:$0xff]  ;;  %v12587_v26 = vld [vmem:[#allocation8 + $0x3d98] sm:$0xff] }
 0x938   :  { %15694 = vmatpush1.bf16.msra.mxu0 %v18577_v6  ;;  %v12542_v6 = vld [vmem:[#allocation8 + $0x3c30] sm:$0xff] }
 0x939   :  { %15858 = vmatpush1.bf16.msra.mxu1 %v18579_v23  ;;  %15695 = vmatprep.subr.bf16.mxu0 %v18586_v43  ;;  %v12539_v23 = vld [vmem:[#allocation8 + $0x3c18] sm:$0xff]  ;;  %v18642_v33 = vcombine.high %v12538_v5, %v12542_v6 }
 0x93a   :  { %15859 = vmatprep.subr.bf16.mxu1 %v18588_v57  ;;  %v12543_v43 = vld [vmem:[#allocation8 + $0x3c38] sm:$0xff]  ;;  %v18633_v57 = vcombine.low %v12530_v34, %v12534_v3  ;;  %v12586_v3 = vld [vmem:[#allocation8 + $0x3d90] sm:$0xff] }
 0x93b   :  { %v18644_v8 = vcombine.high %v12539_v23, %v12543_v43  ;;  %v18643_v46 = vcombine.low %v12539_v23, %v12543_v43  ;;  %v12594_v43 = vld [vmem:[#allocation8 + $0x3dd0] sm:$0xff] }
 0x93c   :  { %15696 = vmatpush1.bf16.msra.mxu0 %v18585_v0  ;;  %v12550_v0 = vld [vmem:[#allocation8 + $0x3c70] sm:$0xff] }
 0x93d   :  { %15860 = vmatpush1.bf16.msra.mxu1 %v18587_v37  ;;  %15697 = vmatprep.subr.bf16.mxu0 %v18594_v45  ;;  %v18641_v37 = vcombine.low %v12538_v5, %v12542_v6  ;;  %v12547_v45 = vld [vmem:[#allocation8 + $0x3c58] sm:$0xff]  ;;  %v18650_v44 = vcombine.high %v12546_v20, %v12550_v0 }
 0x93e   :  { %15861 = vmatprep.subr.bf16.mxu1 %v18596_v50  ;;  %v12551_v50 = vld [vmem:[#allocation8 + $0x3c78] sm:$0xff] }
 0x93f   :  { %v18651_v52 = vcombine.low %v12547_v45, %v12551_v50 }
 0x940   :  { %15698 = vmatpush1.bf16.msra.mxu0 %v18593_v49  ;;  %v18652_v49 = vcombine.high %v12547_v45, %v12551_v50  ;;  %v18689_v45 = vcombine.low %v12586_v3, %v12590_v13 }
 0x941   :  { %15862 = vmatpush1.bf16.msra.mxu1 %v18595_v18  ;;  %15699 = vmatprep.subr.bf16.mxu0 %v18602_v16  ;;  %v12555_v18 = vld [vmem:[#allocation8 + $0x3c98] sm:$0xff] }
 0x942   :  { %15863 = vmatprep.subr.bf16.mxu1 %v18604_v53  ;;  %v12559_v16 = vld [vmem:[#allocation8 + $0x3cb8] sm:$0xff]  ;;  %v18649_v53 = vcombine.low %v12546_v20, %v12550_v0 }
 0x943   :  { %v18660_v56 = vcombine.high %v12555_v18, %v12559_v16  ;;  %v12599_v20 = vld [vmem:[#allocation8 + $0x3df8] sm:$0xff] }
 0x944   :  { %15700 = vmatpush1.bf16.msra.mxu0 %v18601_v7  ;;  %v12566_v7 = vld [vmem:[#allocation8 + $0x3cf0] sm:$0xff] }
 0x945   :  { %15864 = vmatpush1.bf16.msra.mxu1 %v18603_v29  ;;  %15701 = vmatprep.subr.bf16.mxu0 %v18610_v28  ;;  %v12563_v29 = vld [vmem:[#allocation8 + $0x3cd8] sm:$0xff]  ;;  %v18666_v9 = vcombine.high %v12562_v55, %v12566_v7 }
 0x946   :  { %15865 = vmatprep.subr.bf16.mxu1 %v18612_v24  ;;  %v12567_v28 = vld [vmem:[#allocation8 + $0x3cf8] sm:$0xff]  ;;  %v18657_v24 = vcombine.low %v12554_v14, %v12558_v47  ;;  %v12602_v14 = vld [vmem:[#allocation8 + $0x3e10] sm:$0xff] }
 0x947   :  { %v18668_v38 = vcombine.high %v12563_v29, %v12567_v28  ;;  %v12606_v47 = vld [vmem:[#allocation8 + $0x3e30] sm:$0xff] }
 0x948   :  { %15702 = vmatpush1.bf16.msra.mxu0 %v18609_v51  ;;  %v12571_v51 = vld [vmem:[#allocation8 + $0x3d18] sm:$0xff] }
 0x949   :  { %15866 = vmatpush1.bf16.msra.mxu1 %v18611_v22  ;;  %15703 = vmatprep.subr.bf16.mxu0 %v18618_v4  ;;  %v12575_v22 = vld [vmem:[#allocation8 + $0x3d38] sm:$0xff]  ;;  %v18667_v4 = vcombine.low %v12563_v29, %v12567_v28  ;;  %v12614_v29 = vld [vmem:[#allocation8 + $0x3e70] sm:$0xff] }
 0x94a   :  { %15867 = vmatprep.subr.bf16.mxu1 %v18620_v42  ;;  %v18674_v42 = vcombine.high %v12570_v32, %v12574_v35  ;;  %v18676_v61 = vcombine.high %v12571_v51, %v12575_v22  ;;  %v12611_v28 = vld [vmem:[#allocation8 + $0x3e58] sm:$0xff] }
 0x94c   :  { %15704 = vmatpush1.bf16.msra.mxu0 %v18617_v59  ;;  %v12583_v59 = vld [vmem:[#allocation8 + $0x3d78] sm:$0xff] }
 0x94d   :  { %15868 = vmatpush1.bf16.msra.mxu1 %v18619_v1  ;;  %15705 = vmatprep.subr.bf16.mxu0 %v18626_v12  ;;  %v18673_v1 = vcombine.low %v12570_v32, %v12574_v35  ;;  %v18675_v12 = vcombine.low %v12571_v51, %v12575_v22  ;;  %v18684_v34 = vcombine.high %v12579_v63, %v12583_v59  ;;  %v12618_v35 = vld [vmem:[#allocation8 + $0x3e90] sm:$0xff]  ;;  %v12619_v22 = vld [vmem:[#allocation8 + $0x3e98] sm:$0xff] }
 0x94e   :  { %15869 = vmatprep.subr.bf16.mxu1 %v18628_v25  ;;  %v18682_v25 = vcombine.high %v12578_v62, %v12582_v58  ;;  %v12622_v51 = vld [vmem:[#allocation8 + $0x3eb0] sm:$0xff] }
 0x950   :  { %15706 = vmatpush1.bf16.msra.mxu0 %v18625_v30  ;;  %v12591_v30 = vld [vmem:[#allocation8 + $0x3db8] sm:$0xff] }
 0x951   :  { %15870 = vmatpush1.bf16.msra.mxu1 %v18627_v10  ;;  %15707 = vmatprep.subr.bf16.mxu0 %v18634_v40  ;;  %v18681_v10 = vcombine.low %v12578_v62, %v12582_v58  ;;  %v18683_v40 = vcombine.low %v12579_v63, %v12583_v59  ;;  %v18692_v23 = vcombine.high %v12587_v26, %v12591_v30  ;;  %v12626_v58 = vld [vmem:[#allocation8 + $0x3ed0] sm:$0xff]  ;;  %v12627_v59 = vld [vmem:[#allocation8 + $0x3ed8] sm:$0xff] }
 0x952   :  { %15871 = vmatprep.subr.bf16.mxu1 %v18636_v60  ;;  %v18690_v60 = vcombine.high %v12586_v3, %v12590_v13  ;;  %v18691_v50 = vcombine.low %v12587_v26, %v12591_v30  ;;  %v12630_v63 = vld [vmem:[#allocation8 + $0x3ef0] sm:$0xff]  ;;  %v12635_v30 = vld [vmem:[#allocation8 + $0x3f18] sm:$0xff] }
 0x953   :  { %v12634_v13 = vld [vmem:[#allocation8 + $0x3f10] sm:$0xff] }
 0x954   :  { %15708 = vmatpush1.bf16.msra.mxu0 %v18633_v57  ;;  %v12598_v57 = vld [vmem:[#allocation8 + $0x3df0] sm:$0xff] }
 0x955   :  { %15872 = vmatpush1.bf16.msra.mxu1 %v18635_v36  ;;  %15718 = vmatprep.subr.bf16.mxu0 %v18642_v33  ;;  %v12638_v26 = vld [vmem:[#allocation8 + $0x3f30] sm:$0xff] }
 0x956   :  { %15882 = vmatprep.subr.bf16.mxu1 %v18644_v8  ;;  %v12595_v8 = vld [vmem:[#allocation8 + $0x3dd8] sm:$0xff] }
 0x957   :  { %15710 = vmatmul.mubr.bf16.vlgmr.msra.gmra.mrb[36].mxu0 %v19894_v41 }
 0x958   :  { %15874 = vmatmul.mubr.bf16.vlgmr.msra.gmra.mrb[36].mxu1 %v19894_v41  ;;  %15719 = vmatpush1.bf16.msra.mxu0 %v18641_v37  ;;  %v18659_v41 = vcombine.low %v12555_v18, %v12559_v16  ;;  %v12603_v16 = vld [vmem:[#allocation8 + $0x3e18] sm:$0xff] }
 0x959   :  { %15750 = vmatprep.mubr.bf16.mxu0 %v19898_v48  ;;  %15883 = vmatpush1.bf16.msra.mxu1 %v18643_v46  ;;  %v18698_v46 = vcombine.high %v12594_v43, %v12598_v57 }
 0x95a   :  { %15914 = vmatprep.mubr.bf16.mxu1 %v19898_v48  ;;  %15720 = vmatprep.subr.bf16.mxu0 %v18650_v44  ;;  %v18665_v48 = vcombine.low %v12562_v55, %v12566_v7  ;;  %v18700_v44 = vcombine.high %v12595_v8, %v12599_v20  ;;  %v12610_v7 = vld [vmem:[#allocation8 + $0x3e50] sm:$0xff] }
 0x95b   :  { %15884 = vmatprep.subr.bf16.mxu1 %v18652_v49 }
 0x95c   :  { %15721 = vmatpush1.bf16.msra.mxu0 %v18649_v53  ;;  %v12607_v53 = vld [vmem:[#allocation8 + $0x3e38] sm:$0xff] }
 0x95d   :  { %15885 = vmatpush1.bf16.msra.mxu1 %v18651_v52  ;;  %15722 = vmatprep.subr.bf16.mxu0 %v18658_v39  ;;  %v18697_v52 = vcombine.low %v12594_v43, %v12598_v57  ;;  %v18699_v39 = vcombine.low %v12595_v8, %v12599_v20  ;;  %v18708_v55 = vcombine.high %v12603_v16, %v12607_v53  ;;  %v12642_v57 = vld [vmem:[#allocation8 + $0x3f50] sm:$0xff]  ;;  %v12643_v20 = vld [vmem:[#allocation8 + $0x3f58] sm:$0xff] }
 0x95e   :  { %15886 = vmatprep.subr.bf16.mxu1 %v18660_v56  ;;  %v18706_v56 = vcombine.high %v12602_v14, %v12606_v47  ;;  %v12646_v8 = vld [vmem:[#allocation8 + $0x3f70] sm:$0xff] }
 0x960   :  { %15723 = vmatpush1.bf16.msra.mxu0 %v18657_v24  ;;  %v12615_v24 = vld [vmem:[#allocation8 + $0x3e78] sm:$0xff] }
 0x961   :  { %15887 = vmatpush1.bf16.msra.mxu1 %v18659_v41  ;;  %15724 = vmatprep.subr.bf16.mxu0 %v18666_v9  ;;  %v18705_v41 = vcombine.low %v12602_v14, %v12606_v47  ;;  %v18707_v9 = vcombine.low %v12603_v16, %v12607_v53  ;;  %v18716_v32 = vcombine.high %v12611_v28, %v12615_v24  ;;  %v12650_v14 = vld [vmem:[#allocation8 + $0x3f90] sm:$0xff] }
 0x962   :  { %15888 = vmatprep.subr.bf16.mxu1 %v18668_v38  ;;  %v18714_v38 = vcombine.high %v12610_v7, %v12614_v29  ;;  %v12654_v47 = vld [vmem:[#allocation8 + $0x3fb0] sm:$0xff]  ;;  %v18745_v53 = vcombine.low %v12642_v57, %v12646_v8 }
 0x964   :  { %15725 = vmatpush1.bf16.msra.mxu0 %v18665_v48  ;;  %v12623_v48 = vld [vmem:[#allocation8 + $0x3eb8] sm:$0xff] }
 0x965   :  { %15889 = vmatpush1.bf16.msra.mxu1 %v18667_v4  ;;  %15726 = vmatprep.subr.bf16.mxu0 %v18674_v42  ;;  %v18713_v4 = vcombine.low %v12610_v7, %v12614_v29  ;;  %v18715_v42 = vcombine.low %v12611_v28, %v12615_v24  ;;  %v18724_v62 = vcombine.high %v12619_v22, %v12623_v48  ;;  %v12658_v7 = vld [vmem:[#allocation8 + $0x3fd0] sm:$0xff]  ;;  %v12659_v28 = vld [vmem:[#allocation8 + $0x3fd8] sm:$0xff] }
 0x966   :  { %15890 = vmatprep.subr.bf16.mxu1 %v18676_v61  ;;  %v18722_v61 = vcombine.high %v12618_v35, %v12622_v51  ;;  %v12662_v29 = vld [vmem:[#allocation8 + $0x3ff0] sm:$0xff]  ;;  %v12663_v24 = vld [vmem:[#allocation8 + $0x3ff8] sm:$0xff] }
 0x968   :  { %15727 = vmatpush1.bf16.msra.mxu0 %v18673_v1  ;;  %v12631_v1 = vld [vmem:[#allocation8 + $0x3ef8] sm:$0xff] }
 0x969   :  { %15891 = vmatpush1.bf16.msra.mxu1 %v18675_v12  ;;  %15728 = vmatprep.subr.bf16.mxu0 %v18682_v25  ;;  %v18721_v12 = vcombine.low %v12618_v35, %v12622_v51  ;;  %v18723_v25 = vcombine.low %v12619_v22, %v12623_v48  ;;  %v18732_v3 = vcombine.high %v12627_v59, %v12631_v1 }
 0x96a   :  { %v19925_v5 = vpop.f32.mrb[32].mxu0  ;;  %v19927_v6 = vpop.f32.mrb[32].mxu1  ;;  %15892 = vmatprep.subr.bf16.mxu1 %v18684_v34  ;;  %v18730_v34 = vcombine.high %v12626_v58, %v12630_v63  ;;  %v18761_v51 = vcombine.low %v12658_v7, %v12662_v29  ;;  %v18763_v48 = vcombine.low %v12659_v28, %v12663_v24 }
 0x96b   :  { %v19929_v36 = vpop.f32.mrb[33].mxu0  ;;  %v19931_v33 = vpop.f32.mrb[33].mxu1 }
 0x96c   :  { %v15428_v0 = vpop.f32.mrb[34].mxu0  ;;  %v15592_v37 = vpop.f32.mrb[34].mxu1  ;;  %15729 = vmatpush1.bf16.msra.mxu0 %v18681_v10  ;;  %v12639_v10 = vld [vmem:[#allocation8 + $0x3f38] sm:$0xff] }
 0x96d   :  { %15893 = vmatpush1.bf16.msra.mxu1 %v18683_v40  ;;  %15730 = vmatprep.subr.bf16.mxu0 %v18690_v60  ;;  %v15429_v49 = vpop.f32.mrb[35].mxu0  ;;  %v15593_v18 = vpop.f32.mrb[35].mxu1  ;;  %v18729_v40 = vcombine.low %v12626_v58, %v12630_v63  ;;  %v18731_v60 = vcombine.low %v12627_v59, %v12631_v1  ;;  %v18740_v43 = vcombine.high %v12635_v30, %v12639_v10  ;;  %v12647_v0 = vld [vmem:[#allocation8 + $0x3f78] sm:$0xff]  ;;  %v19161_v58 = vld [vmem:[#allocation11 + $0x48] sm:$0xff]  }
 0x96e   :  { %15894 = vmatprep.subr.bf16.mxu1 %v18692_v23  ;;  %v18738_v23 = vcombine.high %v12634_v13, %v12638_v26  ;;  %v18737_v37 = vcombine.low %v12634_v13, %v12638_v26  ;;  %v12651_v49 = vld [vmem:[#allocation8 + $0x3f98] sm:$0xff]  ;;  %v19162_v59 = vld [vmem:[#allocation11 + $0xc8] sm:$0xff]   ;;  %v19167_v13 = vld [vmem:[#allocation11 + $0x10] sm:$0xff]  }
 0x96f   :  { %v12655_v18 = vld [vmem:[#allocation8 + $0x3fb8] sm:$0xff]  ;;  %v19168_v26 = vld [vmem:[#allocation11 + $0x90] sm:$0xff]  }
 0x970   :  { %15731 = vmatpush1.bf16.msra.mxu0 %v18689_v45  ;;  %v19933_v45 = vld [vmem:[#allocation10 + $0x18] sm:$0xff] }
 0x971   :  { %15895 = vmatpush1.bf16.msra.mxu1 %v18691_v50  ;;  %15732 = vmatprep.subr.bf16.mxu0 %v18698_v46  ;;  %v18739_v50 = vcombine.low %v12635_v30, %v12639_v10  ;;  %v18746_v46 = vcombine.high %v12642_v57, %v12646_v8  ;;  %v12674_v16 = vrot.slane %v19933_v45, %v19580_v17  ;;  %v19169_v30 = vld [vmem:[#allocation11 + $0x58] sm:$0xff]   ;;  %v19176_v57 = vld [vmem:[#allocation11 + $0xa0] sm:$0xff]   ;;  %v19177_v8 = vld [vmem:[#allocation11 + $0x68] sm:$0xff]  }
 0x972   :  { %15896 = vmatprep.subr.bf16.mxu1 %v18700_v44  ;;  %v18748_v44 = vcombine.high %v12643_v20, %v12647_v0  ;;  %v19170_v10 = vld [vmem:[#allocation11 + $0xd8] sm:$0xff]  }
 0x974   :  { %15733 = vmatpush1.bf16.msra.mxu0 %v18697_v52  ;;  %v12682_v52 = vrot.slane %v19933_v45, %v19587_v21  ;;  %v18762_v21 = vcombine.high %v12658_v7, %v12662_v29  ;;  %v19191_v29 = vld [vmem:[#allocation11 + $0x100] sm:$0xff]  }
 0x975   :  { %15897 = vmatpush1.bf16.msra.mxu1 %v18699_v39  ;;  %15734 = vmatprep.subr.bf16.mxu0 %v18706_v56  ;;  %v18747_v39 = vcombine.low %v12643_v20, %v12647_v0  ;;  %v18754_v56 = vcombine.high %v12650_v14, %v12654_v47  ;;  %v12670_v20 = vrot.slane %v19933_v45, %v19575_v15  ;;  %v19178_v0 = vld [vmem:[#allocation11 + $0xe8] sm:$0xff]   ;;  %v19184_v15 = vld [vmem:[#allocation11 + $0xb0] sm:$0xff]  }
 0x976   :  { %15898 = vmatprep.subr.bf16.mxu1 %v18708_v55  ;;  %v18756_v55 = vcombine.high %v12651_v49, %v12655_v18  ;;  %v18945_v17 = vadd.f32 %v19931_v33, %v12682_v52  ;;  %v19159_v33 = vld [vmem:[#allocation11] sm:$0xff]  }
 0x978   :  { %15735 = vmatpush1.bf16.msra.mxu0 %v18705_v41  ;;  %v18943_v41 = vadd.f32 %v19929_v36, %v12674_v16  ;;  %v15934_v22 = vmul.f32 0.2, %v18945_v17  ;;  %vm15926_vm1 = vcmp.gt.f32.partialorder %v18945_v17, 0.0  ;;  %v19158_v36 = vld [vmem:[#allocation11 + $0xc0] sm:$0xff]   ;;  %v19185_v16 = vld [vmem:[#allocation11 + $0x78] sm:$0xff]  }
 0x979   :  { %15899 = vmatpush1.bf16.msra.mxu1 %v18707_v9  ;;  %15736 = vmatprep.subr.bf16.mxu0 %v18714_v38  ;;  %v18753_v9 = vcombine.low %v12650_v14, %v12654_v47  ;;  %v18755_v38 = vcombine.low %v12651_v49, %v12655_v18  ;;  %v18942_v14 = vadd.f32 %v19925_v5, %v12670_v20  ;;  %v19182_v47 = vld [vmem:[#allocation11 + $0xf0] sm:$0xff]   ;;  %v19188_v5 = vld [vmem:[#allocation11 + $0xb8] sm:$0xff]  }
 0x97a   :  { %15900 = vmatprep.subr.bf16.mxu1 %v18716_v32  ;;  %v18764_v32 = vcombine.high %v12659_v28, %v12663_v24  ;;  %v15932_v35 = vmul.f32 0.2, %v18943_v41  ;;  %vm15924_vm0 = vcmp.gt.f32.partialorder %v18943_v41, 0.0  ;;  %v19183_v18 = vld [vmem:[#allocation11 + $0x30] sm:$0xff]   ;;  %v19192_v24 = vld [vmem:[#allocation11 + $0x180] sm:$0xff]  }
 0x97b   :  { %vm15923_vm2 = vcmp.gt.f32.partialorder %v18942_v14, 0.0 }
 0x97c   :  { %15737 = vmatpush1.bf16.msra.mxu0 %v18713_v4  ;;  %v19157_v4 = vld [vmem:[#allocation11 + $0x40] sm:$0xff]  }
 0x97d   :  { %15901 = vmatpush1.bf16.msra.mxu1 %v18715_v42  ;;  %15738 = vmatprep.subr.bf16.mxu0 %v18722_v61  ;;  %v15940_v42 = vsel %vm15924_vm0, %v18943_v41, %v15932_v35  ;;  %v19160_v61 = vld [vmem:[#allocation11 + $0x80] sm:$0xff]   ;;  %v19193_v41 = vld [vmem:[#allocation11 + $0x148] sm:$0xff]   ;;  %v19198_v35 = vld [vmem:[#allocation11 + $0x1d0] sm:$0xff]  }
 0x97e   :  { %15902 = vmatprep.subr.bf16.mxu1 %v18724_v62  ;;  %v15942_v62 = vsel %vm15926_vm1, %v18945_v17, %v15934_v22  ;;  %v15948_v63 = vpack.c.bf16 %v15940_v42, %v15940_v42  ;;  %v19194_v17 = vld [vmem:[#allocation11 + $0x1c8] sm:$0xff]   ;;  %v19200_v22 = vld [vmem:[#allocation11 + $0x190] sm:$0xff]   ;;  %v19205_v42 = vld [vmem:[#allocation11 + $0x160] sm:$0xff]  }
 0x97f   :  { %v15950_v1 = vpack.c.bf16 %v15942_v62, %v15942_v62  ;;  %v19207_v62 = vld [vmem:[#allocation11 + $0x120] sm:$0xff]  }
 0x980   :  { %15739 = vmatpush1.bf16.msra.mxu0 %v18721_v12  ;;  %v19163_v12 = vld [vmem:[#allocation11 + $0x8] sm:$0xff]  }
 0x981   :  { %15903 = vmatpush1.bf16.msra.mxu1 %v18723_v25  ;;  %15740 = vmatprep.subr.bf16.mxu0 %v18730_v34  ;;  %v19164_v25 = vld [vmem:[#allocation11 + $0x88] sm:$0xff]   ;;  %v19165_v34 = vld [vmem:[#allocation11 + $0x50] sm:$0xff]  }
 0x982   :  { %15904 = vmatprep.subr.bf16.mxu1 %v18732_v3  ;;  %v19166_v3 = vld [vmem:[#allocation11 + $0xd0] sm:$0xff]  }
 0x984   :  { %15741 = vmatpush1.bf16.msra.mxu0 %v18729_v40  ;;  %v19172_v40 = vld [vmem:[#allocation11 + $0x98] sm:$0xff]  }
 0x985   :  { %15905 = vmatpush1.bf16.msra.mxu1 %v18731_v60  ;;  %15742 = vmatprep.subr.bf16.mxu0 %v18738_v23  ;;  %v19173_v60 = vld [vmem:[#allocation11 + $0x60] sm:$0xff]  }
 0x986   :  { %15906 = vmatprep.subr.bf16.mxu1 %v18740_v43  ;;  %v19174_v23 = vld [vmem:[#allocation11 + $0xe0] sm:$0xff]  }
 0x987   :  { %v19175_v43 = vld [vmem:[#allocation11 + $0x20] sm:$0xff]  }
 0x988   :  { %15743 = vmatpush1.bf16.msra.mxu0 %v18737_v37  ;;  %v12678_v37 = vrot.slane %v19933_v45, %v19610_v27  ;;  %v19186_v27 = vld [vmem:[#allocation11 + $0xf8] sm:$0xff]  }
 0x989   :  { %15907 = vmatpush1.bf16.msra.mxu1 %v18739_v50  ;;  %15744 = vmatprep.subr.bf16.mxu0 %v18746_v46  ;;  %v19179_v50 = vld [vmem:[#allocation11 + $0x28] sm:$0xff]  }
 0x98a   :  { %15908 = vmatprep.subr.bf16.mxu1 %v18748_v44  ;;  %v19180_v46 = vld [vmem:[#allocation11 + $0xa8] sm:$0xff]   ;;  %v19181_v44 = vld [vmem:[#allocation11 + $0x70] sm:$0xff]   ;;  %v18944_v49 = vadd.f32 %v19927_v6, %v12678_v37  ;;  %v19190_v6 = vld [vmem:[#allocation11 + $0x1c0] sm:$0xff]  }
 0x98c   :  { %15745 = vmatpush1.bf16.msra.mxu0 %v18745_v53  ;;  %v15931_v53 = vmul.f32 0.2, %v18942_v14  ;;  %v15933_v52 = vmul.f32 0.2, %v18944_v49  ;;  %vm15925_vm3 = vcmp.gt.f32.partialorder %v18944_v49, 0.0 }
 0x98d   :  { %15909 = vmatpush1.bf16.msra.mxu1 %v18747_v39  ;;  %15746 = vmatprep.subr.bf16.mxu0 %v18754_v56  ;;  %v19187_v39 = vld [vmem:[#allocation11 + $0x38] sm:$0xff]   ;;  %v19189_v56 = vld [vmem:[#allocation11 + $0x140] sm:$0xff]  }
 0x98e   :  { %15910 = vmatprep.subr.bf16.mxu1 %v18756_v55  ;;  %v15939_v55 = vsel %vm15923_vm2, %v18942_v14, %v15931_v53  ;;  %v15941_v7 = vsel %vm15925_vm3, %v18944_v49, %v15933_v52 }
 0x98f   :  { %v15947_v28 = vpack.c.bf16 %v15939_v55, %v15939_v55 }
 0x990   :  { %15747 = vmatpush1.bf16.msra.mxu0 %v18753_v9  ;;  %v15949_v9 = vpack.c.bf16 %v15941_v7, %v15941_v7 }
 0x991   :  { %15911 = vmatpush1.bf16.msra.mxu1 %v18755_v38  ;;  %15748 = vmatprep.subr.bf16.mxu0 %v18762_v21  ;;  %v19195_v38 = vld [vmem:[#allocation11 + $0x108] sm:$0xff]  }
 0x992   :  { %15912 = vmatprep.subr.bf16.mxu1 %v18764_v32  ;;  %v19196_v21 = vld [vmem:[#allocation11 + $0x188] sm:$0xff]   ;;  %v19197_v32 = vld [vmem:[#allocation11 + $0x150] sm:$0xff]  }
 0x994   :  { %15749 = vmatpush1.bf16.msra.mxu0 %v18761_v51  ;;  %v19199_v51 = vld [vmem:[#allocation11 + $0x110] sm:$0xff]  }
 0x995   :  { %15913 = vmatpush1.bf16.msra.mxu1 %v18763_v48  ;;  %18830 = vmatprep.subr.bf16.mxu0 %v19157_v4  ;;  %v19201_v48 = vld [vmem:[#allocation11 + $0x158] sm:$0xff]  }
 0x996   :  { %18852 = vmatprep.subr.bf16.mxu1 %v19158_v36  ;;  %v19202_v4 = vld [vmem:[#allocation11 + $0x1d8] sm:$0xff]  }
 0x997   :  { %15751 = vmatmul.mubr.bf16.vlgmr.msra.gmra.mrb[36].mxu0 %v19907_v54  ;;  %v19203_v36 = vld [vmem:[#allocation11 + $0x118] sm:$0xff]  }
 0x998   :  { %15915 = vmatmul.mubr.bf16.vlgmr.msra.gmra.mrb[36].mxu1 %v19907_v54  ;;  %18831 = vmatpush3.bf16.msra.mxu0 %v19159_v33  ;;  %v19171_v54 = vld [vmem:[#allocation11 + $0x18] sm:$0xff]  }
 0x999   :  { %16506 = vmatprep.mubr.bf16.mxu0 %v15948_v63  ;;  %18853 = vmatpush3.bf16.msra.mxu1 %v19160_v61  ;;  %v19204_v33 = vld [vmem:[#allocation11 + $0x198] sm:$0xff]   ;;  %v19206_v61 = vld [vmem:[#allocation11 + $0x1e0] sm:$0xff]   ;;  %v19209_v63 = vld [vmem:[#allocation11 + $0x168] sm:$0xff]  }
 0x99a   :  { %16546 = vmatprep.mubr.bf16.mxu1 %v15950_v1  ;;  %18832 = vmatprep.subr.bf16.mxu0 %v19161_v58  ;;  %v19208_v58 = vld [vmem:[#allocation11 + $0x1a0] sm:$0xff]   ;;  %v19211_v1 = vld [vmem:[#allocation11 + $0x128] sm:$0xff]  }
 0x99b   :  { %18854 = vmatprep.subr.bf16.mxu1 %v19162_v59  ;;  %v19210_v59 = vld [vmem:[#allocation11 + $0x1e8] sm:$0xff]  }
 0x99c   :  { %18833 = vmatpush3.bf16.msra.mxu0 %v19163_v12  ;;  %v19212_v12 = vld [vmem:[#allocation11 + $0x1a8] sm:$0xff]  }
 0x99d   :  { %18855 = vmatpush3.bf16.msra.mxu1 %v19164_v25  ;;  %18834 = vmatprep.subr.bf16.mxu0 %v19165_v34  ;;  %v19213_v25 = vld [vmem:[#allocation11 + $0x170] sm:$0xff]  }
 0x99e   :  { %18856 = vmatprep.subr.bf16.mxu1 %v19166_v3  ;;  %v19214_v34 = vld [vmem:[#allocation11 + $0x1f0] sm:$0xff]  }
 0x99f   :  { %v19215_v3 = vld [vmem:[#allocation11 + $0x130] sm:$0xff]  }
 0x9a0   :  { %18835 = vmatpush3.bf16.msra.mxu0 %v19167_v13  ;;  %v19216_v13 = vld [vmem:[#allocation11 + $0x1b0] sm:$0xff]  }
 0x9a1   :  { %18857 = vmatpush3.bf16.msra.mxu1 %v19168_v26  ;;  %18836 = vmatprep.subr.bf16.mxu0 %v19169_v30  ;;  %v19217_v26 = vld [vmem:[#allocation11 + $0x178] sm:$0xff]  }
 0x9a2   :  { %18858 = vmatprep.subr.bf16.mxu1 %v19170_v10  ;;  %v19218_v30 = vld [vmem:[#allocation11 + $0x1f8] sm:$0xff]  }
 0x9a3   :  { %v19219_v10 = vld [vmem:[#allocation11 + $0x138] sm:$0xff]  }
 0x9a4   :  { %18837 = vmatpush3.bf16.msra.mxu0 %v19171_v54  ;;  %v19220_v54 = vld [vmem:[#allocation11 + $0x1b8] sm:$0xff]  }
 0x9a5   :  { %18859 = vmatpush3.bf16.msra.mxu1 %v19172_v40  ;;  %18838 = vmatprep.subr.bf16.mxu0 %v19173_v60  ;;  %v12686_v40 = vrot.slane %v19933_v45, %v19634_v11  ;;  %v12694_v60 = vrot.slane %v19933_v45, %v19654_v2 }
 0x9a6   :  { %18860 = vmatprep.subr.bf16.mxu1 %v19174_v23  ;;  %v12690_v23 = vrot.slane %v19933_v45, %v19613_v31 }
 0x9a8   :  { %18839 = vmatpush3.bf16.msra.mxu0 %v19175_v43  ;;  %v12698_v43 = vrot.slane %v19933_v45, %v19637_v19 }
 0x9a9   :  { %18861 = vmatpush3.bf16.msra.mxu1 %v19176_v57  ;;  %18840 = vmatprep.subr.bf16.mxu0 %v19177_v8 }
 0x9aa   :  { %18862 = vmatprep.subr.bf16.mxu1 %v19178_v0 }
 0x9ac   :  { %18841 = vmatpush3.bf16.msra.mxu0 %v19179_v50 }
 0x9ad   :  { %18863 = vmatpush3.bf16.msra.mxu1 %v19180_v46  ;;  %18842 = vmatprep.subr.bf16.mxu0 %v19181_v44 }
 0x9ae   :  { %18864 = vmatprep.subr.bf16.mxu1 %v19182_v47 }
 0x9b0   :  { %18843 = vmatpush3.bf16.msra.mxu0 %v19183_v18 }
 0x9b1   :  { %18865 = vmatpush3.bf16.msra.mxu1 %v19184_v15  ;;  %18844 = vmatprep.subr.bf16.mxu0 %v19185_v16 }
 0x9b2   :  { %18866 = vmatprep.subr.bf16.mxu1 %v19186_v27 }
 0x9b4   :  { %18845 = vmatpush3.bf16.msra.mxu0 %v19187_v39 }
 0x9b5   :  { %18867 = vmatpush3.bf16.msra.mxu1 %v19188_v5  ;;  %18874 = vmatprep.subr.bf16.mxu0 %v19189_v56 }
 0x9b6   :  { %18896 = vmatprep.subr.bf16.mxu1 %v19190_v6  ;;  %v18765_v6 = vld [vmem:[#allocation13] ss:$0 sm:$0xff] }
 0x9b7   :  { %16507 = vmatmul.mubr.bf16.vlgmr.msra.gmra.mrb[40].mxu0 %v15947_v28 }
 0x9b8   :  { %16547 = vmatmul.mubr.bf16.vlgmr.msra.gmra.mrb[40].mxu1 %v15949_v9  ;;  %18875 = vmatpush3.bf16.msra.mxu0 %v19191_v29 }
 0x9b9   :  { %18897 = vmatpush3.bf16.msra.mxu1 %v19192_v24  ;;  %18876 = vmatprep.subr.bf16.mxu0 %v19193_v41 }
 0x9ba   :  { %18898 = vmatprep.subr.bf16.mxu1 %v19194_v17 }
 0x9bc   :  { %18877 = vmatpush3.bf16.msra.mxu0 %v19195_v38 }
 0x9bd   :  { %18899 = vmatpush3.bf16.msra.mxu1 %v19196_v21  ;;  %18878 = vmatprep.subr.bf16.mxu0 %v19197_v32 }
 0x9be   :  { %18900 = vmatprep.subr.bf16.mxu1 %v19198_v35 }
 0x9c0   :  { %18879 = vmatpush3.bf16.msra.mxu0 %v19199_v51 }
 0x9c1   :  { %18901 = vmatpush3.bf16.msra.mxu1 %v19200_v22  ;;  %18880 = vmatprep.subr.bf16.mxu0 %v19201_v48 }
 0x9c2   :  { %18902 = vmatprep.subr.bf16.mxu1 %v19202_v4 }
 0x9c4   :  { %18881 = vmatpush3.bf16.msra.mxu0 %v19203_v36 }
 0x9c5   :  { %18903 = vmatpush3.bf16.msra.mxu1 %v19204_v33  ;;  %18882 = vmatprep.subr.bf16.mxu0 %v19205_v42 }
 0x9c6   :  { %18904 = vmatprep.subr.bf16.mxu1 %v19206_v61 }
 0x9c8   :  { %18883 = vmatpush3.bf16.msra.mxu0 %v19207_v62 }
 0x9c9   :  { %18905 = vmatpush3.bf16.msra.mxu1 %v19208_v58  ;;  %18884 = vmatprep.subr.bf16.mxu0 %v19209_v63 }
 0x9ca   :  { %18906 = vmatprep.subr.bf16.mxu1 %v19210_v59 }
 0x9cc   :  { %18885 = vmatpush3.bf16.msra.mxu0 %v19211_v1 }
 0x9cd   :  { %18907 = vmatpush3.bf16.msra.mxu1 %v19212_v12  ;;  %18886 = vmatprep.subr.bf16.mxu0 %v19213_v25 }
 0x9ce   :  { %18908 = vmatprep.subr.bf16.mxu1 %v19214_v34 }
 0x9d0   :  { %18887 = vmatpush3.bf16.msra.mxu0 %v19215_v3 }
 0x9d1   :  { %18909 = vmatpush3.bf16.msra.mxu1 %v19216_v13  ;;  %18888 = vmatprep.subr.bf16.mxu0 %v19217_v26 }
 0x9d2   :  { %18910 = vmatprep.subr.bf16.mxu1 %v19218_v30 }
 0x9d4   :  { %18889 = vmatpush3.bf16.msra.mxu0 %v19219_v10 }
 0x9d5   :  { %18911 = vmatpush3.bf16.msra.mxu1 %v19220_v54 }
 0xa6a   :  { %v15752_v57 = vpop.f32.mrb[36].mxu0 }
 0xa6b   :  { %v18946_v8 = vadd.f32 %v15752_v57, %v12686_v40  ;;  %v15916_v20 = vpop.f32.mrb[36].mxu1  ;;  %v15754_v0 = vpop.f32.mrb[37].mxu0 }
 0xa6c   :  { %v18948_v37 = vadd.f32 %v15916_v20, %v12694_v60  ;;  %v18947_v50 = vadd.f32 %v15754_v0, %v12690_v23  ;;  %v15918_v46 = vpop.f32.mrb[37].mxu1  ;;  %v15756_v44 = vpop.f32.mrb[38].mxu0 }
 0xa6d   :  { %vm15927_vm4 = vcmp.gt.f32.partialorder %v18946_v8, 0.0  ;;  %v15935_v14 = vmul.f32 0.2, %v18946_v8  ;;  %v18949_v11 = vadd.f32 %v15918_v46, %v12698_v43  ;;  %v15920_v47 = vpop.f32.mrb[38].mxu1  ;;  %v15757_v49 = vpop.f32.mrb[39].mxu0 }
 0xa6e   :  { %vm15929_vm5 = vcmp.gt.f32.partialorder %v18948_v37, 0.0  ;;  %v15937_v2 = vmul.f32 0.2, %v18948_v37  ;;  %vm15928_vm6 = vcmp.gt.f32.partialorder %v18947_v50, 0.0  ;;  %v15936_v31 = vmul.f32 0.2, %v18947_v50 }
 0xa6f   :  { %v15943_v18 = vsel %vm15927_vm4, %v18946_v8, %v15935_v14  ;;  %vm15930_vm7 = vcmp.gt.f32.partialorder %v18949_v11, 0.0  ;;  %v15938_v19 = vmul.f32 0.2, %v18949_v11  ;;  %v15921_v45 = vpop.f32.mrb[39].mxu1 }
 0xa70   :  { %v15945_v15 = vsel %vm15929_vm5, %v18948_v37, %v15937_v2  ;;  %v15944_v16 = vsel %vm15928_vm6, %v18947_v50, %v15936_v31  ;;  %v15951_v52 = vpack.c.bf16 %v15943_v18, %v15943_v18 }
 0xa71   :  { %v15952_v53 = vpack.c.bf16 %v15944_v16, %v15944_v16  ;;  %v15946_v27 = vsel %vm15930_vm7, %v18949_v11, %v15938_v19  ;;  %v15953_v5 = vpack.c.bf16 %v15945_v15, %v15945_v15 }
 0xa72   :  { %v15954_v39 = vpack.c.bf16 %v15946_v27, %v15946_v27 }
 0xa73   :  { %16586 = vmatprep.mubr.bf16.mxu0 %v15952_v53 }
 0xa74   :  { %16626 = vmatprep.mubr.bf16.mxu1 %v15954_v39  ;;  %16587 = vmatmul.mubr.bf16.vlgmr.msra.gmra.mrb[44].mxu0 %v15951_v52 }
 0xa75   :  { %16627 = vmatmul.mubr.bf16.vlgmr.msra.gmra.mrb[44].mxu1 %v15953_v5 }
 0xa8a   :  { %v18846_v56 = vpop.f32.mrb[40].mxu0 }
 0xa8b   :  { %v18868_v55 = vpop.f32.mrb[40].mxu1  ;;  %v18847_v7 = vpop.f32.mrb[41].mxu0 }
 0xa8c   :  { %v18848_v29 = vadd.f32 %v18847_v7, %v18846_v56  ;;  %v18869_v28 = vpop.f32.mrb[41].mxu1  ;;  %v18849_v24 = vpop.f32.mrb[42].mxu0 }
 0xa8d   :  { %v18870_v41 = vadd.f32 %v18869_v28, %v18868_v55  ;;  %v18871_v9 = vpop.f32.mrb[42].mxu1  ;;  %v18850_v17 = vpop.f32.mrb[43].mxu0 }
 0xa8e   :  { %v16509_v38 = vadd.f32 %v18848_v29, %v18765_v6  ;;  %v18872_v21 = vpop.f32.mrb[43].mxu1 }
 0xa90   :  { %v16549_v32 = vadd.f32 %v18870_v41, %v16509_v38 }
 0xb47   :  { %v18890_v35 = vpop.f32.mrb[44].mxu0 }
 0xb48   :  { %v18912_v51 = vpop.f32.mrb[44].mxu1  ;;  %v18891_v22 = vpop.f32.mrb[45].mxu0 }
 0xb49   :  { %v18892_v48 = vadd.f32 %v18891_v22, %v18890_v35  ;;  %v18913_v4 = vpop.f32.mrb[45].mxu1  ;;  %v18893_v36 = vpop.f32.mrb[46].mxu0 }
 0xb4a   :  { %v18914_v33 = vadd.f32 %v18913_v4, %v18912_v51  ;;  %v18915_v42 = vpop.f32.mrb[46].mxu1  ;;  %v18894_v61 = vpop.f32.mrb[47].mxu0 }
 0xb4b   :  { %v16589_v62 = vadd.f32 %v18892_v48, %v16549_v32  ;;  %v18916_v58 = vpop.f32.mrb[47].mxu1 }
 0xb4d   :  { %v16629_v63 = vadd.f32 %v18914_v33, %v16589_v62 }
 0xb4f   :  { %16634 = vst [vmem:[#allocation14] sm:$0xff] %v16629_v63 }
 0xb50   :  { %19390 = shalt.err (!%p19387_p4)
}
 0xb51   :  { %s19391_s15 = scalar_lea.hbm %s19976_s7, 128 }
 0xb52   :  { %p19392_p5 = scmp.ne.s32.totalorder %s19976_s7, %s19391_s15  ;;  %p19395_p6 = scmp.lt.u32.totalorder %s19391_s15, %s19976_s7 }
 0xb54   :  { %p19397_p7 = pnand %p19395_p6, %p19392_p5 }
 0xb56   :  { %19400 = shalt.err (!%p19397_p7)
}
 0xb57   :  { %16644 = dma.vmem_to_hbm [thread:$0]  %s16642_s0, 128, %s19976_s7, [#allocation4]  }
 0xb58   :  { %19409 = dma.done.wait [#allocation4], 128  }
 0xb59   :  { %19410 = vsyncadd [#allocation4], 4294967168 }
 0xb5a   :  { %16648 = vsyncpa [#allocation3], 1 }
 0xb5b   :  { %16649 = vsyncpa [#allocation6], 1 }
 0xb5c   :  { %16650 = vsyncpa [#allocation9], 1 }
 0xb5d   :  { %16651 = vsyncpa [#allocation12], 1 }
 0xb5e   :  { %16652 = vsyncpa [#allocation4], 1 }

</bundles_post_ra>
